<compile_context>
chip_gen: v7x
topology: tpu7x:2x2x1
jax: 0.10.0
libtpu: 0.0.40
codegen_flags: <defaults>
</compile_context>

<pallas_src>
import jax
import jax.numpy as jnp
from jax import lax
from jax.experimental import pallas as pl
from jax.experimental.pallas import tpu as pltpu

LANE = 128


def _round_up(x, m):
    return (x + m - 1) // m * m


# ----------------------- Pallas kernels (hot path) -----------------------

def _fused_conv_kernel(x4_ref, w1_ref, b1_ref, w2_ref, b2_ref, o_ref):
    """Per-image fused conv1+relu+pool2 + conv2+relu+pool2.

    x4_ref : (1, 256, 16, 8) bf16  space-to-depth(4) input; row (pa*4+pb)*16+u,
             col v, chan c  ==  x[4u+pa, 4v+pb, c]  (zero padded).
    w1_ref : (9, 8, 32)  bf16   conv1 weights, [dy*3+dx, cin, cout]
    b1_ref : (1, 32)     f32
    w2_ref : (9, 32, 64) bf16   conv2 weights, [dy*3+dx, cin, cout]
    b2_ref : (1, 64)     f32
    o_ref  : (1, 48, 64) bf16   pooled conv2 features, row = qy*8+qx (qx 6,7 pad)
    """
    parities = [(0, 0), (0, 1), (1, 0), (1, 1)]
    corners = [(0, 0), (0, 1), (1, 0), (1, 1)]

    # One upcast; all slicing / reshaping below stays in f32 (8-aligned layouts),
    # operands are cast back to bf16 right before each MXU dot.
    xall = x4_ref[0].astype(jnp.float32)                      # (256, 16, 8)

    # ---- conv1 (3x3, 3->32) + relu + 2x2 maxpool, parity/corner grouped ----
    x_cache = {}

    def x_piece(ra, ca):                                      # (64, 8) f32
        key = (ra, ca)
        if key not in x_cache:
            plane = (ra % 4) * 4 + (ca % 4)
            rs, cs = ra // 4, ca // 4
            blk = xall[plane * 16 + rs: plane * 16 + rs + 8, cs: cs + 8, :]
            x_cache[key] = blk.reshape(64, 8)
        return x_cache[key]

    acc1 = None
    for dy in range(3):
        for dx in range(3):
            pieces = []
            for (a, b) in parities:            # output-row/col parity of pooled act1
                for (cy, cx) in corners:       # 2x2 pool corner
                    pieces.append(x_piece(2 * a + cy + dy, 2 * b + cx + dx))
            lhs = jnp.concatenate(pieces, axis=0).astype(jnp.bfloat16)   # (1024, 8)
            prod = jnp.dot(lhs, w1_ref[dy * 3 + dx],
                           preferred_element_type=jnp.float32)           # (1024, 32)
            acc1 = prod if acc1 is None else acc1 + prod

    # relu(max_c(acc_c) + b) == max_c(relu(acc_c + b)) (shared bias, monotone).
    b1 = b1_ref[...]
    zpad = jnp.zeros((8, 8, 32), jnp.float32)
    act1 = {}                                  # parity (a,b) -> (8, 16, 32) f32
    for pi, (a, b) in enumerate(parities):
        base = pi * 256
        m = jnp.maximum(jnp.maximum(acc1[base: base + 64],
                                    acc1[base + 64: base + 128]),
                        jnp.maximum(acc1[base + 128: base + 192],
                                    acc1[base + 192: base + 256]))        # (64, 32)
        plane = jnp.maximum(m + b1, 0.0).reshape(8, 8, 32)
        act1[(a, b)] = jnp.concatenate([plane, zpad], axis=1)             # (8,16,32)

    # ---- conv2 (3x3, 32->64) + relu + 2x2 maxpool, corner grouped ----
    a_cache = {}

    def a_piece(s, t):                                        # (48, 32) f32
        key = (s, t)
        if key not in a_cache:
            pln = act1[(s % 2, t % 2)]
            blk = pln[s // 2: s // 2 + 6, t // 2: t // 2 + 8, :]          # (6,8,32)
            a_cache[key] = blk.reshape(48, 32)
        return a_cache[key]

    acc2 = None
    for dy in range(3):
        for dx in range(3):
            pieces = [a_piece(cy + dy, cx + dx) for (cy, cx) in corners]
            lhs = jnp.concatenate(pieces, axis=0).astype(jnp.bfloat16)    # (192, 32)
            prod = jnp.dot(lhs, w2_ref[dy * 3 + dx],
                           preferred_element_type=jnp.float32)            # (192, 64)
            acc2 = prod if acc2 is None else acc2 + prod

    m2 = jnp.maximum(jnp.maximum(acc2[0:48], acc2[48:96]),
                     jnp.maximum(acc2[96:144], acc2[144:192]))            # (48, 64)
    act2 = jnp.maximum(m2 + b2_ref[...], 0.0).astype(jnp.bfloat16)
    o_ref[...] = act2.reshape(1, 48, 64)


def _mlp_kernel(x_ref, w1_ref, b1_ref, w2_ref, b2_ref, o_ref):
    """Fused fc1 (+bias+ReLU) and fc2 (+bias); hidden never leaves the kernel."""
    h = jnp.dot(x_ref[...], w1_ref[...], preferred_element_type=jnp.float32)
    h = jnp.maximum(h + b1_ref[...], 0.0)
    y = jnp.dot(h.astype(w2_ref.dtype), w2_ref[...],
                preferred_element_type=jnp.float32)
    o_ref[...] = y + b2_ref[...]


# ----------------------------- wrappers -----------------------------

def conv_stack_pallas(x_nchw, prep):
    """Fused conv1->relu->pool->conv2->relu->pool; returns (N, 48, 64) bf16."""
    N = x_nchw.shape[0]
    # Cast to bf16 FIRST, then cheap space-to-depth(4) of the raw image.
    x = jnp.transpose(x_nchw, (0, 2, 3, 1)).astype(jnp.bfloat16)      # (N,32,32,3)
    x = jnp.pad(x, ((0, 0), (0, 0), (0, 0), (0, 5)))                  # C 3->8
    x = x.reshape(N, 8, 4, 8, 4, 8)                                   # (n,u,pa,v,pb,c)
    x = jnp.transpose(x, (0, 2, 4, 1, 3, 5))                          # (n,pa,pb,u,v,c)
    x = jnp.pad(x, ((0, 0), (0, 0), (0, 0), (0, 8), (0, 8), (0, 0)))  # u,v 8->16
    x4 = x.reshape(N, 256, 16, 8)

    return pl.pallas_call(
        _fused_conv_kernel,
        out_shape=jax.ShapeDtypeStruct((N, 48, 64), jnp.bfloat16),
        grid=(N,),
        in_specs=[
            pl.BlockSpec((1, 256, 16, 8), lambda i: (i, 0, 0, 0)),
            pl.BlockSpec((9, 8, 32), lambda i: (0, 0, 0)),
            pl.BlockSpec((1, 32), lambda i: (0, 0)),
            pl.BlockSpec((9, 32, 64), lambda i: (0, 0, 0)),
            pl.BlockSpec((1, 64), lambda i: (0, 0)),
        ],
        out_specs=pl.BlockSpec((1, 48, 64), lambda i: (i, 0, 0)),
        compiler_params=pltpu.CompilerParams(
            dimension_semantics=("parallel",)),   # v7x: shard batch over 2 TCs
    )(x4, prep["conv1_w"], prep["conv1_b"], prep["conv2_w"], prep["conv2_b"])


def mlp_pallas(feats, prep, n_valid):
    """fc2(relu(fc1(x))) in one kernel.  feats: (N, 48, 64) bf16."""
    N = feats.shape[0]
    flat = feats.reshape(N, 48 * 64)          # row-major (qy, qx8, c); pad cols
    Mp = _round_up(max(N, 1), 16)             # bf16 sublane packing
    flat = jnp.pad(flat, ((0, Mp - N), (0, 0)))

    out = pl.pallas_call(
        _mlp_kernel,
        out_shape=jax.ShapeDtypeStruct((Mp, LANE), jnp.float32),
        grid=(1,),
        in_specs=[
            pl.BlockSpec((Mp, 48 * 64), lambda i: (0, 0)),
            pl.BlockSpec((48 * 64, 64), lambda i: (0, 0)),
            pl.BlockSpec((1, 64), lambda i: (0, 0)),
            pl.BlockSpec((64, LANE), lambda i: (0, 0)),
            pl.BlockSpec((1, LANE), lambda i: (0, 0)),
        ],
        out_specs=pl.BlockSpec((Mp, LANE), lambda i: (0, 0)),
        compiler_params=pltpu.CompilerParams(
            dimension_semantics=("arbitrary",)),
    )(flat, prep["fc1_w"], prep["fc1_b"], prep["fc2_w"], prep["fc2_b"])
    return out[:n_valid, :10]


# ----------------------------- model glue -----------------------------

def init_params(key):
    """Deterministic PyTorch-shaped params (uniform(+-1/sqrt(fan_in)))."""
    ks = jax.random.split(key, 8)

    def u(k, shape, fan_in):
        bound = 1.0 / jnp.sqrt(jnp.float32(fan_in))
        return jax.random.uniform(k, shape, jnp.float32, -bound, bound)

    return {
        "conv1_w": u(ks[0], (32, 3, 3, 3), 3 * 3 * 3),       # (out, in, kh, kw)
        "conv1_b": u(ks[1], (32,), 3 * 3 * 3),
        "conv2_w": u(ks[2], (64, 32, 3, 3), 32 * 3 * 3),
        "conv2_b": u(ks[3], (64,), 32 * 3 * 3),
        "fc1_w": u(ks[4], (64, 64 * 6 * 6), 64 * 6 * 6),     # (out, in) like nn.Linear
        "fc1_b": u(ks[5], (64,), 64 * 6 * 6),
        "fc2_w": u(ks[6], (10, 64), 64),
        "fc2_b": u(ks[7], (10,), 64),
    }


def prepare_params(params):
    """One-time (outside jit) weight layout prep: transpose, permute, pad, cast."""
    def conv_prep(w_oihw, b, cin_pad):
        co, ci, kh, kw = w_oihw.shape
        w = jnp.transpose(w_oihw, (2, 3, 1, 0)).reshape(kh * kw, ci, co)
        w = jnp.pad(w, ((0, 0), (0, cin_pad - ci), (0, 0))).astype(jnp.bfloat16)
        return w, b.reshape(1, co).astype(jnp.float32)

    c1w, c1b = conv_prep(params["conv1_w"], params["conv1_b"], 8)    # (9,8,32)
    c2w, c2b = conv_prep(params["conv2_w"], params["conv2_b"], 32)   # (9,32,64)

    # fc1: fold PyTorch NCHW-flatten (c,h,w) order into the kernel's (h, w8, c)
    # feature row order; rows for the padded columns w in {6,7} are zero.
    w1 = params["fc1_w"].reshape(64, 64, 6, 6)          # (out, c, h, w)
    w1 = jnp.transpose(w1, (2, 3, 1, 0))                # (h, w, c, out)
    w1 = jnp.pad(w1, ((0, 0), (0, 2), (0, 0), (0, 0)))  # w: 6 -> 8 (zero rows)
    w1 = w1.reshape(6 * 8 * 64, 64).astype(jnp.bfloat16)
    b1 = params["fc1_b"].reshape(1, 64).astype(jnp.float32)

    w2 = jnp.pad(params["fc2_w"].T, ((0, 0), (0, LANE - 10))).astype(jnp.bfloat16)
    b2 = jnp.pad(params["fc2_b"], (0, LANE - 10)).reshape(1, LANE).astype(jnp.float32)

    return {"conv1_w": c1w, "conv1_b": c1b, "conv2_w": c2w, "conv2_b": c2b,
            "fc1_w": w1, "fc1_b": b1, "fc2_w": w2, "fc2_b": b2}


def simple_cnn_forward(prep, x_nchw):
    feats = conv_stack_pallas(x_nchw, prep)              # (N, 48, 64) bf16
    return mlp_pallas(feats, prep, x_nchw.shape[0])      # (N, 10) f32


def simple_cnn_reference(params, x):
    """Independent pure-JAX (f32, HIGHEST precision) reference of the PyTorch forward."""
    hp = lax.Precision.HIGHEST

    def conv(x, w, b):
        y = lax.conv_general_dilated(x, w, (1, 1), "VALID",
                                     dimension_numbers=("NCHW", "OIHW", "NCHW"),
                                     precision=hp)
        return jax.nn.relu(y + b[None, :, None, None])

    def pool(x):
        return lax.reduce_window(x, -jnp.inf, lax.max,
                                 (1, 1, 2, 2), (1, 1, 2, 2), "VALID")

    x = pool(conv(x, params["conv1_w"], params["conv1_b"]))
    x = pool(conv(x, params["conv2_w"], params["conv2_b"]))
    x = x.reshape(x.shape[0], -1)
    x = jax.nn.relu(jnp.dot(x, params["fc1_w"].T, precision=hp) + params["fc1_b"])
    return jnp.dot(x, params["fc2_w"].T, precision=hp) + params["fc2_b"]


if __name__ == "__main__":
    key = jax.random.PRNGKey(0)
    k_params, k_x = jax.random.split(key)
    params = init_params(k_params)
    prep = prepare_params(params)        # static layout prep, once, outside jit

    # Input consistent with fc1 = Linear(64*6*6, 64): 3x32x32 images, batch=2.
    x = jax.random.normal(k_x, (2, 3, 32, 32), jnp.float32)

    out = jax.block_until_ready(jax.jit(simple_cnn_forward)(prep, x))
    assert out.shape == (2, 10) and out.dtype == jnp.float32

    ref = jax.block_until_ready(simple_cnn_reference(params, x))
    max_diff = float(jnp.max(jnp.abs(out - ref)))
    assert jnp.allclose(out, ref, rtol=2e-2, atol=2e-2), f"max diff {max_diff}"

    print("KERNEL_OK")
</pallas_src>

<mosaic_0001>
module attributes {stable_mosaic.version = 11 : i64} {
  func.func @_mlp_kernel(%arg0: i32, %arg1: memref<16x3072xbf16, #tpu.memory_space<vmem>>, %arg2: memref<3072x64xbf16, #tpu.memory_space<vmem>>, %arg3: memref<1x64xf32, #tpu.memory_space<vmem>>, %arg4: memref<64x128xbf16, #tpu.memory_space<vmem>>, %arg5: memref<1x128xf32, #tpu.memory_space<vmem>>, %arg6: memref<16x128xf32, #tpu.memory_space<vmem>>) attributes {dimension_semantics = [#tpu.dimension_semantics<arbitrary>], iteration_bounds = array<i64: 1>, scalar_prefetch = 0 : i64, scratch_operands = 0 : i64, tpu.core_type = #tpu.core_type<tc>, window_params = [{pipeline_mode = #tpu.pipeline_mode<synchronous>, transform_indices = @transform_0, window_bounds = array<i64: 16, 3072>}, {pipeline_mode = #tpu.pipeline_mode<synchronous>, transform_indices = @transform_1, window_bounds = array<i64: 3072, 64>}, {pipeline_mode = #tpu.pipeline_mode<synchronous>, transform_indices = @transform_2, window_bounds = array<i64: 1, 64>}, {pipeline_mode = #tpu.pipeline_mode<synchronous>, transform_indices = @transform_3, window_bounds = array<i64: 64, 128>}, {pipeline_mode = #tpu.pipeline_mode<synchronous>, transform_indices = @transform_4, window_bounds = array<i64: 1, 128>}, {pipeline_mode = #tpu.pipeline_mode<synchronous>, transform_indices = @transform_5, window_bounds = array<i64: 16, 128>}]} {
    %c0 = arith.constant 0 : index
    %c0_0 = arith.constant 0 : index
    %0 = vector.load %arg1[%c0, %c0_0] : memref<16x3072xbf16, #tpu.memory_space<vmem>>, vector<16x3072xbf16>
    %c0_1 = arith.constant 0 : index
    %c0_2 = arith.constant 0 : index
    %1 = vector.load %arg2[%c0_1, %c0_2] : memref<3072x64xbf16, #tpu.memory_space<vmem>>, vector<3072x64xbf16>
    %cst = arith.constant dense<0.000000e+00> : vector<16x64xf32>
    %2 = tpu.matmul %0, %1, %cst {dimension_numbers = #tpu.dot_dimension_numbers<[1], [0], [0], [1], [0, 0, 1, 1], [], []>} : vector<16x3072xbf16>, vector<3072x64xbf16>, vector<16x64xf32> -> vector<16x64xf32>
    %c0_3 = arith.constant 0 : index
    %c0_4 = arith.constant 0 : index
    %3 = vector.load %arg3[%c0_3, %c0_4] : memref<1x64xf32, #tpu.memory_space<vmem>>, vector<1x64xf32>
    %4 = vector.broadcast %3 : vector<1x64xf32> to vector<16x64xf32>
    %5 = arith.addf %2, %4 : vector<16x64xf32>
    %cst_5 = arith.constant 0.000000e+00 : f32
    %6 = vector.broadcast %cst_5 : f32 to vector<16x64xf32>
    %7 = arith.maximumf %5, %6 : vector<16x64xf32>
    %8 = arith.truncf %7 : vector<16x64xf32> to vector<16x64xbf16>
    %c0_6 = arith.constant 0 : index
    %c0_7 = arith.constant 0 : index
    %9 = vector.load %arg4[%c0_6, %c0_7] : memref<64x128xbf16, #tpu.memory_space<vmem>>, vector<64x128xbf16>
    %cst_8 = arith.constant dense<0.000000e+00> : vector<16x128xf32>
    %10 = tpu.matmul %8, %9, %cst_8 {dimension_numbers = #tpu.dot_dimension_numbers<[1], [0], [0], [1], [0, 0, 1, 1], [], []>} : vector<16x64xbf16>, vector<64x128xbf16>, vector<16x128xf32> -> vector<16x128xf32>
    %c0_9 = arith.constant 0 : index
    %c0_10 = arith.constant 0 : index
    %11 = vector.load %arg5[%c0_9, %c0_10] : memref<1x128xf32, #tpu.memory_space<vmem>>, vector<1x128xf32>
    %12 = vector.broadcast %11 : vector<1x128xf32> to vector<16x128xf32>
    %13 = arith.addf %10, %12 : vector<16x128xf32>
    %c0_11 = arith.constant 0 : index
    %c0_12 = arith.constant 0 : index
    %14 = vector.load %arg6[%c0_11, %c0_12] : memref<16x128xf32, #tpu.memory_space<vmem>>, vector<16x128xf32>
    tpu.vector_store %arg6[%c0_11, %c0_12], %13 {strides = array<i32>} : memref<16x128xf32, #tpu.memory_space<vmem>>, vector<16x128xf32>,
    return
  }
  func.func @transform_0(%arg0: i32) -> (i32, i32) {
    %c0_i32 = arith.constant 0 : i32
    %c0_i32_0 = arith.constant 0 : i32
    %c0_i32_1 = arith.constant 0 : i32
    return %c0_i32, %c0_i32_0 : i32, i32
  }
  func.func @transform_1(%arg0: i32) -> (i32, i32) {
    %c0_i32 = arith.constant 0 : i32
    %c0_i32_0 = arith.constant 0 : i32
    %c0_i32_1 = arith.constant 0 : i32
    return %c0_i32, %c0_i32_0 : i32, i32
  }
  func.func @transform_2(%arg0: i32) -> (i32, i32) {
    %c0_i32 = arith.constant 0 : i32
    %c0_i32_0 = arith.constant 0 : i32
    %c0_i32_1 = arith.constant 0 : i32
    return %c0_i32, %c0_i32_0 : i32, i32
  }
  func.func @transform_3(%arg0: i32) -> (i32, i32) {
    %c0_i32 = arith.constant 0 : i32
    %c0_i32_0 = arith.constant 0 : i32
    %c0_i32_1 = arith.constant 0 : i32
    return %c0_i32, %c0_i32_0 : i32, i32
  }
  func.func @transform_4(%arg0: i32) -> (i32, i32) {
    %c0_i32 = arith.constant 0 : i32
    %c0_i32_0 = arith.constant 0 : i32
    %c0_i32_1 = arith.constant 0 : i32
    return %c0_i32, %c0_i32_0 : i32, i32
  }
  func.func @transform_5(%arg0: i32) -> (i32, i32) {
    %c0_i32 = arith.constant 0 : i32
    %c0_i32_0 = arith.constant 0 : i32
    %c0_i32_1 = arith.constant 0 : i32
    return %c0_i32, %c0_i32_0 : i32, i32
  }
}

module attributes {stable_mosaic.version = 11 : i64} {
  func.func @_fused_conv_kernel(%arg0: i32, %arg1: memref<1x256x16x8xbf16, #tpu.memory_space<vmem>>, %arg2: memref<9x8x32xbf16, #tpu.memory_space<vmem>>, %arg3: memref<1x32xf32, #tpu.memory_space<vmem>>, %arg4: memref<9x32x64xbf16, #tpu.memory_space<vmem>>, %arg5: memref<1x64xf32, #tpu.memory_space<vmem>>, %arg6: memref<1x48x64xbf16, #tpu.memory_space<vmem>>) attributes {dimension_semantics = [#tpu.dimension_semantics<parallel>], iteration_bounds = array<i64: 2>, scalar_prefetch = 0 : i64, scratch_operands = 0 : i64, tpu.core_type = #tpu.core_type<tc>, window_params = [{transform_indices = @transform_0, window_bounds = array<i64: 1, 256, 16, 8>}, {pipeline_mode = #tpu.pipeline_mode<synchronous>, transform_indices = @transform_1, window_bounds = array<i64: 9, 8, 32>}, {pipeline_mode = #tpu.pipeline_mode<synchronous>, transform_indices = @transform_2, window_bounds = array<i64: 1, 32>}, {pipeline_mode = #tpu.pipeline_mode<synchronous>, transform_indices = @transform_3, window_bounds = array<i64: 9, 32, 64>}, {pipeline_mode = #tpu.pipeline_mode<synchronous>, transform_indices = @transform_4, window_bounds = array<i64: 1, 64>}, {transform_indices = @transform_5, window_bounds = array<i64: 1, 48, 64>}]} {
    %c0 = arith.constant 0 : index
    %c0_0 = arith.constant 0 : index
    %c0_1 = arith.constant 0 : index
    %c0_2 = arith.constant 0 : index
    %0 = vector.load %arg1[%c0, %c0_0, %c0_1, %c0_2] : memref<1x256x16x8xbf16, #tpu.memory_space<vmem>>, vector<1x256x16x8xbf16>
    %1 = vector.shape_cast %0 : vector<1x256x16x8xbf16> to vector<256x16x8xbf16>
    %2 = arith.extf %1 : vector<256x16x8xbf16> to vector<256x16x8xf32>
    %3 = vector.extract_strided_slice %2 {offsets = [0, 0, 0], sizes = [8, 8, 8], strides = [1, 1, 1]} : vector<256x16x8xf32> to vector<8x8x8xf32>
    %4 = vector.shape_cast %3 : vector<8x8x8xf32> to vector<64x8xf32>
    %5 = vector.extract_strided_slice %2 {offsets = [16, 0, 0], sizes = [8, 8, 8], strides = [1, 1, 1]} : vector<256x16x8xf32> to vector<8x8x8xf32>
    %6 = vector.shape_cast %5 : vector<8x8x8xf32> to vector<64x8xf32>
    %7 = vector.extract_strided_slice %2 {offsets = [64, 0, 0], sizes = [8, 8, 8], strides = [1, 1, 1]} : vector<256x16x8xf32> to vector<8x8x8xf32>
    %8 = vector.shape_cast %7 : vector<8x8x8xf32> to vector<64x8xf32>
    %9 = vector.extract_strided_slice %2 {offsets = [80, 0, 0], sizes = [8, 8, 8], strides = [1, 1, 1]} : vector<256x16x8xf32> to vector<8x8x8xf32>
    %10 = vector.shape_cast %9 : vector<8x8x8xf32> to vector<64x8xf32>
    %11 = vector.extract_strided_slice %2 {offsets = [32, 0, 0], sizes = [8, 8, 8], strides = [1, 1, 1]} : vector<256x16x8xf32> to vector<8x8x8xf32>
    %12 = vector.shape_cast %11 : vector<8x8x8xf32> to vector<64x8xf32>
    %13 = vector.extract_strided_slice %2 {offsets = [48, 0, 0], sizes = [8, 8, 8], strides = [1, 1, 1]} : vector<256x16x8xf32> to vector<8x8x8xf32>
    %14 = vector.shape_cast %13 : vector<8x8x8xf32> to vector<64x8xf32>
    %15 = vector.extract_strided_slice %2 {offsets = [96, 0, 0], sizes = [8, 8, 8], strides = [1, 1, 1]} : vector<256x16x8xf32> to vector<8x8x8xf32>
    %16 = vector.shape_cast %15 : vector<8x8x8xf32> to vector<64x8xf32>
    %17 = vector.extract_strided_slice %2 {offsets = [112, 0, 0], sizes = [8, 8, 8], strides = [1, 1, 1]} : vector<256x16x8xf32> to vector<8x8x8xf32>
    %18 = vector.shape_cast %17 : vector<8x8x8xf32> to vector<64x8xf32>
    %19 = vector.extract_strided_slice %2 {offsets = [128, 0, 0], sizes = [8, 8, 8], strides = [1, 1, 1]} : vector<256x16x8xf32> to vector<8x8x8xf32>
    %20 = vector.shape_cast %19 : vector<8x8x8xf32> to vector<64x8xf32>
    %21 = vector.extract_strided_slice %2 {offsets = [144, 0, 0], sizes = [8, 8, 8], strides = [1, 1, 1]} : vector<256x16x8xf32> to vector<8x8x8xf32>
    %22 = vector.shape_cast %21 : vector<8x8x8xf32> to vector<64x8xf32>
    %23 = vector.extract_strided_slice %2 {offsets = [192, 0, 0], sizes = [8, 8, 8], strides = [1, 1, 1]} : vector<256x16x8xf32> to vector<8x8x8xf32>
    %24 = vector.shape_cast %23 : vector<8x8x8xf32> to vector<64x8xf32>
    %25 = vector.extract_strided_slice %2 {offsets = [208, 0, 0], sizes = [8, 8, 8], strides = [1, 1, 1]} : vector<256x16x8xf32> to vector<8x8x8xf32>
    %26 = vector.shape_cast %25 : vector<8x8x8xf32> to vector<64x8xf32>
    %27 = vector.extract_strided_slice %2 {offsets = [160, 0, 0], sizes = [8, 8, 8], strides = [1, 1, 1]} : vector<256x16x8xf32> to vector<8x8x8xf32>
    %28 = vector.shape_cast %27 : vector<8x8x8xf32> to vector<64x8xf32>
    %29 = vector.extract_strided_slice %2 {offsets = [176, 0, 0], sizes = [8, 8, 8], strides = [1, 1, 1]} : vector<256x16x8xf32> to vector<8x8x8xf32>
    %30 = vector.shape_cast %29 : vector<8x8x8xf32> to vector<64x8xf32>
    %31 = vector.extract_strided_slice %2 {offsets = [224, 0, 0], sizes = [8, 8, 8], strides = [1, 1, 1]} : vector<256x16x8xf32> to vector<8x8x8xf32>
    %32 = vector.shape_cast %31 : vector<8x8x8xf32> to vector<64x8xf32>
    %33 = vector.extract_strided_slice %2 {offsets = [240, 0, 0], sizes = [8, 8, 8], strides = [1, 1, 1]} : vector<256x16x8xf32> to vector<8x8x8xf32>
    %34 = vector.shape_cast %33 : vector<8x8x8xf32> to vector<64x8xf32>
    %35 = tpu.concatenate %4, %6, %8, %10, %12, %14, %16, %18, %20, %22, %24, %26, %28, %30, %32, %34 in 0 : vector<64x8xf32>, vector<64x8xf32>, vector<64x8xf32>, vector<64x8xf32>, vector<64x8xf32>, vector<64x8xf32>, vector<64x8xf32>, vector<64x8xf32>, vector<64x8xf32>, vector<64x8xf32>, vector<64x8xf32>, vector<64x8xf32>, vector<64x8xf32>, vector<64x8xf32>, vector<64x8xf32>, vector<64x8xf32> -> vector<1024x8xf32>
    %36 = arith.truncf %35 : vector<1024x8xf32> to vector<1024x8xbf16>
    %c0_3 = arith.constant 0 : index
    %c0_4 = arith.constant 0 : index
    %c0_5 = arith.constant 0 : index
    %37 = vector.load %arg2[%c0_3, %c0_4, %c0_5] : memref<9x8x32xbf16, #tpu.memory_space<vmem>>, vector<1x8x32xbf16>
    %38 = vector.shape_cast %37 : vector<1x8x32xbf16> to vector<8x32xbf16>
    %cst = arith.constant dense<0.000000e+00> : vector<1024x32xf32>
    %39 = tpu.matmul %36, %38, %cst {dimension_numbers = #tpu.dot_dimension_numbers<[1], [0], [0], [1], [0, 0, 1, 1], [], []>} : vector<1024x8xbf16>, vector<8x32xbf16>, vector<1024x32xf32> -> vector<1024x32xf32>
    %40 = vector.extract_strided_slice %2 {offsets = [0, 1, 0], sizes = [8, 8, 8], strides = [1, 1, 1]} : vector<256x16x8xf32> to vector<8x8x8xf32>
    %41 = vector.shape_cast %40 : vector<8x8x8xf32> to vector<64x8xf32>
    %42 = vector.extract_strided_slice %2 {offsets = [64, 1, 0], sizes = [8, 8, 8], strides = [1, 1, 1]} : vector<256x16x8xf32> to vector<8x8x8xf32>
    %43 = vector.shape_cast %42 : vector<8x8x8xf32> to vector<64x8xf32>
    %44 = vector.extract_strided_slice %2 {offsets = [128, 1, 0], sizes = [8, 8, 8], strides = [1, 1, 1]} : vector<256x16x8xf32> to vector<8x8x8xf32>
    %45 = vector.shape_cast %44 : vector<8x8x8xf32> to vector<64x8xf32>
    %46 = vector.extract_strided_slice %2 {offsets = [192, 1, 0], sizes = [8, 8, 8], strides = [1, 1, 1]} : vector<256x16x8xf32> to vector<8x8x8xf32>
    %47 = vector.shape_cast %46 : vector<8x8x8xf32> to vector<64x8xf32>
    %48 = tpu.concatenate %6, %12, %10, %16, %14, %41, %18, %43, %22, %28, %26, %32, %30, %45, %34, %47 in 0 : vector<64x8xf32>, vector<64x8xf32>, vector<64x8xf32>, vector<64x8xf32>, vector<64x8xf32>, vector<64x8xf32>, vector<64x8xf32>, vector<64x8xf32>, vector<64x8xf32>, vector<64x8xf32>, vector<64x8xf32>, vector<64x8xf32>, vector<64x8xf32>, vector<64x8xf32>, vector<64x8xf32>, vector<64x8xf32> -> vector<1024x8xf32>
    %49 = arith.truncf %48 : vector<1024x8xf32> to vector<1024x8xbf16>
    %c1 = arith.constant 1 : index
    %c0_6 = arith.constant 0 : index
    %c0_7 = arith.constant 0 : index
    %50 = vector.load %arg2[%c1, %c0_6, %c0_7] : memref<9x8x32xbf16, #tpu.memory_space<vmem>>, vector<1x8x32xbf16>
    %51 = vector.shape_cast %50 : vector<1x8x32xbf16> to vector<8x32xbf16>
    %cst_8 = arith.constant dense<0.000000e+00> : vector<1024x32xf32>
    %52 = tpu.matmul %49, %51, %cst_8 {dimension_numbers = #tpu.dot_dimension_numbers<[1], [0], [0], [1], [0, 0, 1, 1], [], []>} : vector<1024x8xbf16>, vector<8x32xbf16>, vector<1024x32xf32> -> vector<1024x32xf32>
    %53 = arith.addf %39, %52 : vector<1024x32xf32>
    %54 = vector.extract_strided_slice %2 {offsets = [16, 1, 0], sizes = [8, 8, 8], strides = [1, 1, 1]} : vector<256x16x8xf32> to vector<8x8x8xf32>
    %55 = vector.shape_cast %54 : vector<8x8x8xf32> to vector<64x8xf32>
    %56 = vector.extract_strided_slice %2 {offsets = [80, 1, 0], sizes = [8, 8, 8], strides = [1, 1, 1]} : vector<256x16x8xf32> to vector<8x8x8xf32>
    %57 = vector.shape_cast %56 : vector<8x8x8xf32> to vector<64x8xf32>
    %58 = vector.extract_strided_slice %2 {offsets = [144, 1, 0], sizes = [8, 8, 8], strides = [1, 1, 1]} : vector<256x16x8xf32> to vector<8x8x8xf32>
    %59 = vector.shape_cast %58 : vector<8x8x8xf32> to vector<64x8xf32>
    %60 = vector.extract_strided_slice %2 {offsets = [208, 1, 0], sizes = [8, 8, 8], strides = [1, 1, 1]} : vector<256x16x8xf32> to vector<8x8x8xf32>
    %61 = vector.shape_cast %60 : vector<8x8x8xf32> to vector<64x8xf32>
    %62 = tpu.concatenate %12, %14, %16, %18, %41, %55, %43, %57, %28, %30, %32, %34, %45, %59, %47, %61 in 0 : vector<64x8xf32>, vector<64x8xf32>, vector<64x8xf32>, vector<64x8xf32>, vector<64x8xf32>, vector<64x8xf32>, vector<64x8xf32>, vector<64x8xf32>, vector<64x8xf32>, vector<64x8xf32>, vector<64x8xf32>, vector<64x8xf32>, vector<64x8xf32>, vector<64x8xf32>, vector<64x8xf32>, vector<64x8xf32> -> vector<1024x8xf32>
    %63 = arith.truncf %62 : vector<1024x8xf32> to vector<1024x8xbf16>
    %c2 = arith.constant 2 : index
    %c0_9 = arith.constant 0 : index
    %c0_10 = arith.constant 0 : index
    %64 = vector.load %arg2[%c2, %c0_9, %c0_10] : memref<9x8x32xbf16, #tpu.memory_space<vmem>>, vector<1x8x32xbf16>
    %65 = vector.shape_cast %64 : vector<1x8x32xbf16> to vector<8x32xbf16>
    %cst_11 = arith.constant dense<0.000000e+00> : vector<1024x32xf32>
    %66 = tpu.matmul %63, %65, %cst_11 {dimension_numbers = #tpu.dot_dimension_numbers<[1], [0], [0], [1], [0, 0, 1, 1], [], []>} : vector<1024x8xbf16>, vector<8x32xbf16>, vector<1024x32xf32> -> vector<1024x32xf32>
    %67 = arith.addf %53, %66 : vector<1024x32xf32>
    %68 = vector.extract_strided_slice %2 {offsets = [1, 0, 0], sizes = [8, 8, 8], strides = [1, 1, 1]} : vector<256x16x8xf32> to vector<8x8x8xf32>
    %69 = vector.shape_cast %68 : vector<8x8x8xf32> to vector<64x8xf32>
    %70 = vector.extract_strided_slice %2 {offsets = [17, 0, 0], sizes = [8, 8, 8], strides = [1, 1, 1]} : vector<256x16x8xf32> to vector<8x8x8xf32>
    %71 = vector.shape_cast %70 : vector<8x8x8xf32> to vector<64x8xf32>
    %72 = vector.extract_strided_slice %2 {offsets = [33, 0, 0], sizes = [8, 8, 8], strides = [1, 1, 1]} : vector<256x16x8xf32> to vector<8x8x8xf32>
    %73 = vector.shape_cast %72 : vector<8x8x8xf32> to vector<64x8xf32>
    %74 = vector.extract_strided_slice %2 {offsets = [49, 0, 0], sizes = [8, 8, 8], strides = [1, 1, 1]} : vector<256x16x8xf32> to vector<8x8x8xf32>
    %75 = vector.shape_cast %74 : vector<8x8x8xf32> to vector<64x8xf32>
    %76 = tpu.concatenate %8, %10, %20, %22, %16, %18, %28, %30, %24, %26, %69, %71, %32, %34, %73, %75 in 0 : vector<64x8xf32>, vector<64x8xf32>, vector<64x8xf32>, vector<64x8xf32>, vector<64x8xf32>, vector<64x8xf32>, vector<64x8xf32>, vector<64x8xf32>, vector<64x8xf32>, vector<64x8xf32>, vector<64x8xf32>, vector<64x8xf32>, vector<64x8xf32>, vector<64x8xf32>, vector<64x8xf32>, vector<64x8xf32> -> vector<1024x8xf32>
    %77 = arith.truncf %76 : vector<1024x8xf32> to vector<1024x8xbf16>
    %c3 = arith.constant 3 : index
    %c0_12 = arith.constant 0 : index
    %c0_13 = arith.constant 0 : index
    %78 = vector.load %arg2[%c3, %c0_12, %c0_13] : memref<9x8x32xbf16, #tpu.memory_space<vmem>>, vector<1x8x32xbf16>
    %79 = vector.shape_cast %78 : vector<1x8x32xbf16> to vector<8x32xbf16>
    %cst_14 = arith.constant dense<0.000000e+00> : vector<1024x32xf32>
    %80 = tpu.matmul %77, %79, %cst_14 {dimension_numbers = #tpu.dot_dimension_numbers<[1], [0], [0], [1], [0, 0, 1, 1], [], []>} : vector<1024x8xbf16>, vector<8x32xbf16>, vector<1024x32xf32> -> vector<1024x32xf32>
    %81 = arith.addf %67, %80 : vector<1024x32xf32>
    %82 = vector.extract_strided_slice %2 {offsets = [1, 1, 0], sizes = [8, 8, 8], strides = [1, 1, 1]} : vector<256x16x8xf32> to vector<8x8x8xf32>
    %83 = vector.shape_cast %82 : vector<8x8x8xf32> to vector<64x8xf32>
    %84 = tpu.concatenate %10, %16, %22, %28, %18, %43, %30, %45, %26, %32, %71, %73, %34, %47, %75, %83 in 0 : vector<64x8xf32>, vector<64x8xf32>, vector<64x8xf32>, vector<64x8xf32>, vector<64x8xf32>, vector<64x8xf32>, vector<64x8xf32>, vector<64x8xf32>, vector<64x8xf32>, vector<64x8xf32>, vector<64x8xf32>, vector<64x8xf32>, vector<64x8xf32>, vector<64x8xf32>, vector<64x8xf32>, vector<64x8xf32> -> vector<1024x8xf32>
    %85 = arith.truncf %84 : vector<1024x8xf32> to vector<1024x8xbf16>
    %c4 = arith.constant 4 : index
    %c0_15 = arith.constant 0 : index
    %c0_16 = arith.constant 0 : index
    %86 = vector.load %arg2[%c4, %c0_15, %c0_16] : memref<9x8x32xbf16, #tpu.memory_space<vmem>>, vector<1x8x32xbf16>
    %87 = vector.shape_cast %86 : vector<1x8x32xbf16> to vector<8x32xbf16>
    %cst_17 = arith.constant dense<0.000000e+00> : vector<1024x32xf32>
    %88 = tpu.matmul %85, %87, %cst_17 {dimension_numbers = #tpu.dot_dimension_numbers<[1], [0], [0], [1], [0, 0, 1, 1], [], []>} : vector<1024x8xbf16>, vector<8x32xbf16>, vector<1024x32xf32> -> vector<1024x32xf32>
    %89 = arith.addf %81, %88 : vector<1024x32xf32>
    %90 = vector.extract_strided_slice %2 {offsets = [17, 1, 0], sizes = [8, 8, 8], strides = [1, 1, 1]} : vector<256x16x8xf32> to vector<8x8x8xf32>
    %91 = vector.shape_cast %90 : vector<8x8x8xf32> to vector<64x8xf32>
    %92 = tpu.concatenate %16, %18, %28, %30, %43, %57, %45, %59, %32, %34, %73, %75, %47, %61, %83, %91 in 0 : vector<64x8xf32>, vector<64x8xf32>, vector<64x8xf32>, vector<64x8xf32>, vector<64x8xf32>, vector<64x8xf32>, vector<64x8xf32>, vector<64x8xf32>, vector<64x8xf32>, vector<64x8xf32>, vector<64x8xf32>, vector<64x8xf32>, vector<64x8xf32>, vector<64x8xf32>, vector<64x8xf32>, vector<64x8xf32> -> vector<1024x8xf32>
    %93 = arith.truncf %92 : vector<1024x8xf32> to vector<1024x8xbf16>
    %c5 = arith.constant 5 : index
    %c0_18 = arith.constant 0 : index
    %c0_19 = arith.constant 0 : index
    %94 = vector.load %arg2[%c5, %c0_18, %c0_19] : memref<9x8x32xbf16, #tpu.memory_space<vmem>>, vector<1x8x32xbf16>
    %95 = vector.shape_cast %94 : vector<1x8x32xbf16> to vector<8x32xbf16>
    %cst_20 = arith.constant dense<0.000000e+00> : vector<1024x32xf32>
    %96 = tpu.matmul %93, %95, %cst_20 {dimension_numbers = #tpu.dot_dimension_numbers<[1], [0], [0], [1], [0, 0, 1, 1], [], []>} : vector<1024x8xbf16>, vector<8x32xbf16>, vector<1024x32xf32> -> vector<1024x32xf32>
    %97 = arith.addf %89, %96 : vector<1024x32xf32>
    %98 = vector.extract_strided_slice %2 {offsets = [65, 0, 0], sizes = [8, 8, 8], strides = [1, 1, 1]} : vector<256x16x8xf32> to vector<8x8x8xf32>
    %99 = vector.shape_cast %98 : vector<8x8x8xf32> to vector<64x8xf32>
    %100 = vector.extract_strided_slice %2 {offsets = [81, 0, 0], sizes = [8, 8, 8], strides = [1, 1, 1]} : vector<256x16x8xf32> to vector<8x8x8xf32>
    %101 = vector.shape_cast %100 : vector<8x8x8xf32> to vector<64x8xf32>
    %102 = vector.extract_strided_slice %2 {offsets = [97, 0, 0], sizes = [8, 8, 8], strides = [1, 1, 1]} : vector<256x16x8xf32> to vector<8x8x8xf32>
    %103 = vector.shape_cast %102 : vector<8x8x8xf32> to vector<64x8xf32>
    %104 = vector.extract_strided_slice %2 {offsets = [113, 0, 0], sizes = [8, 8, 8], strides = [1, 1, 1]} : vector<256x16x8xf32> to vector<8x8x8xf32>
    %105 = vector.shape_cast %104 : vector<8x8x8xf32> to vector<64x8xf32>
    %106 = tpu.concatenate %20, %22, %24, %26, %28, %30, %32, %34, %69, %71, %99, %101, %73, %75, %103, %105 in 0 : vector<64x8xf32>, vector<64x8xf32>, vector<64x8xf32>, vector<64x8xf32>, vector<64x8xf32>, vector<64x8xf32>, vector<64x8xf32>, vector<64x8xf32>, vector<64x8xf32>, vector<64x8xf32>, vector<64x8xf32>, vector<64x8xf32>, vector<64x8xf32>, vector<64x8xf32>, vector<64x8xf32>, vector<64x8xf32> -> vector<1024x8xf32>
    %107 = arith.truncf %106 : vector<1024x8xf32> to vector<1024x8xbf16>
    %c6 = arith.constant 6 : index
    %c0_21 = arith.constant 0 : index
    %c0_22 = arith.constant 0 : index
    %108 = vector.load %arg2[%c6, %c0_21, %c0_22] : memref<9x8x32xbf16, #tpu.memory_space<vmem>>, vector<1x8x32xbf16>
    %109 = vector.shape_cast %108 : vector<1x8x32xbf16> to vector<8x32xbf16>
    %cst_23 = arith.constant dense<0.000000e+00> : vector<1024x32xf32>
    %110 = tpu.matmul %107, %109, %cst_23 {dimension_numbers = #tpu.dot_dimension_numbers<[1], [0], [0], [1], [0, 0, 1, 1], [], []>} : vector<1024x8xbf16>, vector<8x32xbf16>, vector<1024x32xf32> -> vector<1024x32xf32>
    %111 = arith.addf %97, %110 : vector<1024x32xf32>
    %112 = vector.extract_strided_slice %2 {offsets = [65, 1, 0], sizes = [8, 8, 8], strides = [1, 1, 1]} : vector<256x16x8xf32> to vector<8x8x8xf32>
    %113 = vector.shape_cast %112 : vector<8x8x8xf32> to vector<64x8xf32>
    %114 = tpu.concatenate %22, %28, %26, %32, %30, %45, %34, %47, %71, %73, %101, %103, %75, %83, %105, %113 in 0 : vector<64x8xf32>, vector<64x8xf32>, vector<64x8xf32>, vector<64x8xf32>, vector<64x8xf32>, vector<64x8xf32>, vector<64x8xf32>, vector<64x8xf32>, vector<64x8xf32>, vector<64x8xf32>, vector<64x8xf32>, vector<64x8xf32>, vector<64x8xf32>, vector<64x8xf32>, vector<64x8xf32>, vector<64x8xf32> -> vector<1024x8xf32>
    %115 = arith.truncf %114 : vector<1024x8xf32> to vector<1024x8xbf16>
    %c7 = arith.constant 7 : index
    %c0_24 = arith.constant 0 : index
    %c0_25 = arith.constant 0 : index
    %116 = vector.load %arg2[%c7, %c0_24, %c0_25] : memref<9x8x32xbf16, #tpu.memory_space<vmem>>, vector<1x8x32xbf16>
    %117 = vector.shape_cast %116 : vector<1x8x32xbf16> to vector<8x32xbf16>
    %cst_26 = arith.constant dense<0.000000e+00> : vector<1024x32xf32>
    %118 = tpu.matmul %115, %117, %cst_26 {dimension_numbers = #tpu.dot_dimension_numbers<[1], [0], [0], [1], [0, 0, 1, 1], [], []>} : vector<1024x8xbf16>, vector<8x32xbf16>, vector<1024x32xf32> -> vector<1024x32xf32>
    %119 = arith.addf %111, %118 : vector<1024x32xf32>
    %120 = vector.extract_strided_slice %2 {offsets = [81, 1, 0], sizes = [8, 8, 8], strides = [1, 1, 1]} : vector<256x16x8xf32> to vector<8x8x8xf32>
    %121 = vector.shape_cast %120 : vector<8x8x8xf32> to vector<64x8xf32>
    %122 = tpu.concatenate %28, %30, %32, %34, %45, %59, %47, %61, %73, %75, %103, %105, %83, %91, %113, %121 in 0 : vector<64x8xf32>, vector<64x8xf32>, vector<64x8xf32>, vector<64x8xf32>, vector<64x8xf32>, vector<64x8xf32>, vector<64x8xf32>, vector<64x8xf32>, vector<64x8xf32>, vector<64x8xf32>, vector<64x8xf32>, vector<64x8xf32>, vector<64x8xf32>, vector<64x8xf32>, vector<64x8xf32>, vector<64x8xf32> -> vector<1024x8xf32>
    %123 = arith.truncf %122 : vector<1024x8xf32> to vector<1024x8xbf16>
    %c8 = arith.constant 8 : index
    %c0_27 = arith.constant 0 : index
    %c0_28 = arith.constant 0 : index
    %124 = vector.load %arg2[%c8, %c0_27, %c0_28] : memref<9x8x32xbf16, #tpu.memory_space<vmem>>, vector<1x8x32xbf16>
    %125 = vector.shape_cast %124 : vector<1x8x32xbf16> to vector<8x32xbf16>
    %cst_29 = arith.constant dense<0.000000e+00> : vector<1024x32xf32>
    %126 = tpu.matmul %123, %125, %cst_29 {dimension_numbers = #tpu.dot_dimension_numbers<[1], [0], [0], [1], [0, 0, 1, 1], [], []>} : vector<1024x8xbf16>, vector<8x32xbf16>, vector<1024x32xf32> -> vector<1024x32xf32>
    %127 = arith.addf %119, %126 : vector<1024x32xf32>
    %c0_30 = arith.constant 0 : index
    %c0_31 = arith.constant 0 : index
    %128 = vector.load %arg3[%c0_30, %c0_31] : memref<1x32xf32, #tpu.memory_space<vmem>>, vector<1x32xf32>
    %cst_32 = arith.constant 0.000000e+00 : f32
    %129 = vector.broadcast %cst_32 : f32 to vector<8x8x32xf32>
    %130 = vector.extract_strided_slice %127 {offsets = [0, 0], sizes = [64, 32], strides = [1, 1]} : vector<1024x32xf32> to vector<64x32xf32>
    %131 = vector.extract_strided_slice %127 {offsets = [64, 0], sizes = [64, 32], strides = [1, 1]} : vector<1024x32xf32> to vector<64x32xf32>
    %132 = arith.maximumf %130, %131 : vector<64x32xf32>
    %133 = vector.extract_strided_slice %127 {offsets = [128, 0], sizes = [64, 32], strides = [1, 1]} : vector<1024x32xf32> to vector<64x32xf32>
    %134 = vector.extract_strided_slice %127 {offsets = [192, 0], sizes = [64, 32], strides = [1, 1]} : vector<1024x32xf32> to vector<64x32xf32>
    %135 = arith.maximumf %133, %134 : vector<64x32xf32>
    %136 = arith.maximumf %132, %135 : vector<64x32xf32>
    %137 = vector.broadcast %128 : vector<1x32xf32> to vector<64x32xf32>
    %138 = arith.addf %136, %137 : vector<64x32xf32>
    %cst_33 = arith.constant 0.000000e+00 : f32
    %139 = vector.broadcast %cst_33 : f32 to vector<64x32xf32>
    %140 = arith.maximumf %138, %139 : vector<64x32xf32>
    %141 = vector.shape_cast %140 : vector<64x32xf32> to vector<8x8x32xf32>
    %142 = tpu.concatenate %141, %129 in 1 : vector<8x8x32xf32>, vector<8x8x32xf32> -> vector<8x16x32xf32>
    %143 = vector.extract_strided_slice %127 {offsets = [256, 0], sizes = [64, 32], strides = [1, 1]} : vector<1024x32xf32> to vector<64x32xf32>
    %144 = vector.extract_strided_slice %127 {offsets = [320, 0], sizes = [64, 32], strides = [1, 1]} : vector<1024x32xf32> to vector<64x32xf32>
    %145 = arith.maximumf %143, %144 : vector<64x32xf32>
    %146 = vector.extract_strided_slice %127 {offsets = [384, 0], sizes = [64, 32], strides = [1, 1]} : vector<1024x32xf32> to vector<64x32xf32>
    %147 = vector.extract_strided_slice %127 {offsets = [448, 0], sizes = [64, 32], strides = [1, 1]} : vector<1024x32xf32> to vector<64x32xf32>
    %148 = arith.maximumf %146, %147 : vector<64x32xf32>
    %149 = arith.maximumf %145, %148 : vector<64x32xf32>
    %150 = vector.broadcast %128 : vector<1x32xf32> to vector<64x32xf32>
    %151 = arith.addf %149, %150 : vector<64x32xf32>
    %cst_34 = arith.constant 0.000000e+00 : f32
    %152 = vector.broadcast %cst_34 : f32 to vector<64x32xf32>
    %153 = arith.maximumf %151, %152 : vector<64x32xf32>
    %154 = vector.shape_cast %153 : vector<64x32xf32> to vector<8x8x32xf32>
    %155 = tpu.concatenate %154, %129 in 1 : vector<8x8x32xf32>, vector<8x8x32xf32> -> vector<8x16x32xf32>
    %156 = vector.extract_strided_slice %127 {offsets = [512, 0], sizes = [64, 32], strides = [1, 1]} : vector<1024x32xf32> to vector<64x32xf32>
    %157 = vector.extract_strided_slice %127 {offsets = [576, 0], sizes = [64, 32], strides = [1, 1]} : vector<1024x32xf32> to vector<64x32xf32>
    %158 = arith.maximumf %156, %157 : vector<64x32xf32>
    %159 = vector.extract_strided_slice %127 {offsets = [640, 0], sizes = [64, 32], strides = [1, 1]} : vector<1024x32xf32> to vector<64x32xf32>
    %160 = vector.extract_strided_slice %127 {offsets = [704, 0], sizes = [64, 32], strides = [1, 1]} : vector<1024x32xf32> to vector<64x32xf32>
    %161 = arith.maximumf %159, %160 : vector<64x32xf32>
    %162 = arith.maximumf %158, %161 : vector<64x32xf32>
    %163 = vector.broadcast %128 : vector<1x32xf32> to vector<64x32xf32>
    %164 = arith.addf %162, %163 : vector<64x32xf32>
    %cst_35 = arith.constant 0.000000e+00 : f32
    %165 = vector.broadcast %cst_35 : f32 to vector<64x32xf32>
    %166 = arith.maximumf %164, %165 : vector<64x32xf32>
    %167 = vector.shape_cast %166 : vector<64x32xf32> to vector<8x8x32xf32>
    %168 = tpu.concatenate %167, %129 in 1 : vector<8x8x32xf32>, vector<8x8x32xf32> -> vector<8x16x32xf32>
    %169 = vector.extract_strided_slice %127 {offsets = [768, 0], sizes = [64, 32], strides = [1, 1]} : vector<1024x32xf32> to vector<64x32xf32>
    %170 = vector.extract_strided_slice %127 {offsets = [832, 0], sizes = [64, 32], strides = [1, 1]} : vector<1024x32xf32> to vector<64x32xf32>
    %171 = arith.maximumf %169, %170 : vector<64x32xf32>
    %172 = vector.extract_strided_slice %127 {offsets = [896, 0], sizes = [64, 32], strides = [1, 1]} : vector<1024x32xf32> to vector<64x32xf32>
    %173 = vector.extract_strided_slice %127 {offsets = [960, 0], sizes = [64, 32], strides = [1, 1]} : vector<1024x32xf32> to vector<64x32xf32>
    %174 = arith.maximumf %172, %173 : vector<64x32xf32>
    %175 = arith.maximumf %171, %174 : vector<64x32xf32>
    %176 = vector.broadcast %128 : vector<1x32xf32> to vector<64x32xf32>
    %177 = arith.addf %175, %176 : vector<64x32xf32>
    %cst_36 = arith.constant 0.000000e+00 : f32
    %178 = vector.broadcast %cst_36 : f32 to vector<64x32xf32>
    %179 = arith.maximumf %177, %178 : vector<64x32xf32>
    %180 = vector.shape_cast %179 : vector<64x32xf32> to vector<8x8x32xf32>
    %181 = tpu.concatenate %180, %129 in 1 : vector<8x8x32xf32>, vector<8x8x32xf32> -> vector<8x16x32xf32>
    %182 = vector.extract_strided_slice %142 {offsets = [0, 0, 0], sizes = [6, 8, 32], strides = [1, 1, 1]} : vector<8x16x32xf32> to vector<6x8x32xf32>
    %183 = vector.shape_cast %182 : vector<6x8x32xf32> to vector<48x32xf32>
    %184 = vector.extract_strided_slice %155 {offsets = [0, 0, 0], sizes = [6, 8, 32], strides = [1, 1, 1]} : vector<8x16x32xf32> to vector<6x8x32xf32>
    %185 = vector.shape_cast %184 : vector<6x8x32xf32> to vector<48x32xf32>
    %186 = vector.extract_strided_slice %168 {offsets = [0, 0, 0], sizes = [6, 8, 32], strides = [1, 1, 1]} : vector<8x16x32xf32> to vector<6x8x32xf32>
    %187 = vector.shape_cast %186 : vector<6x8x32xf32> to vector<48x32xf32>
    %188 = vector.extract_strided_slice %181 {offsets = [0, 0, 0], sizes = [6, 8, 32], strides = [1, 1, 1]} : vector<8x16x32xf32> to vector<6x8x32xf32>
    %189 = vector.shape_cast %188 : vector<6x8x32xf32> to vector<48x32xf32>
    %190 = tpu.concatenate %183, %185, %187, %189 in 0 : vector<48x32xf32>, vector<48x32xf32>, vector<48x32xf32>, vector<48x32xf32> -> vector<192x32xf32>
    %191 = arith.truncf %190 : vector<192x32xf32> to vector<192x32xbf16>
    %c0_37 = arith.constant 0 : index
    %c0_38 = arith.constant 0 : index
    %c0_39 = arith.constant 0 : index
    %192 = vector.load %arg4[%c0_37, %c0_38, %c0_39] : memref<9x32x64xbf16, #tpu.memory_space<vmem>>, vector<1x32x64xbf16>
    %193 = vector.shape_cast %192 : vector<1x32x64xbf16> to vector<32x64xbf16>
    %cst_40 = arith.constant dense<0.000000e+00> : vector<192x64xf32>
    %194 = tpu.matmul %191, %193, %cst_40 {dimension_numbers = #tpu.dot_dimension_numbers<[1], [0], [0], [1], [0, 0, 1, 1], [], []>} : vector<192x32xbf16>, vector<32x64xbf16>, vector<192x64xf32> -> vector<192x64xf32>
    %195 = vector.extract_strided_slice %142 {offsets = [0, 1, 0], sizes = [6, 8, 32], strides = [1, 1, 1]} : vector<8x16x32xf32> to vector<6x8x32xf32>
    %196 = vector.shape_cast %195 : vector<6x8x32xf32> to vector<48x32xf32>
    %197 = vector.extract_strided_slice %168 {offsets = [0, 1, 0], sizes = [6, 8, 32], strides = [1, 1, 1]} : vector<8x16x32xf32> to vector<6x8x32xf32>
    %198 = vector.shape_cast %197 : vector<6x8x32xf32> to vector<48x32xf32>
    %199 = tpu.concatenate %185, %196, %189, %198 in 0 : vector<48x32xf32>, vector<48x32xf32>, vector<48x32xf32>, vector<48x32xf32> -> vector<192x32xf32>
    %200 = arith.truncf %199 : vector<192x32xf32> to vector<192x32xbf16>
    %c1_41 = arith.constant 1 : index
    %c0_42 = arith.constant 0 : index
    %c0_43 = arith.constant 0 : index
    %201 = vector.load %arg4[%c1_41, %c0_42, %c0_43] : memref<9x32x64xbf16, #tpu.memory_space<vmem>>, vector<1x32x64xbf16>
    %202 = vector.shape_cast %201 : vector<1x32x64xbf16> to vector<32x64xbf16>
    %cst_44 = arith.constant dense<0.000000e+00> : vector<192x64xf32>
    %203 = tpu.matmul %200, %202, %cst_44 {dimension_numbers = #tpu.dot_dimension_numbers<[1], [0], [0], [1], [0, 0, 1, 1], [], []>} : vector<192x32xbf16>, vector<32x64xbf16>, vector<192x64xf32> -> vector<192x64xf32>
    %204 = arith.addf %194, %203 : vector<192x64xf32>
    %205 = vector.extract_strided_slice %155 {offsets = [0, 1, 0], sizes = [6, 8, 32], strides = [1, 1, 1]} : vector<8x16x32xf32> to vector<6x8x32xf32>
    %206 = vector.shape_cast %205 : vector<6x8x32xf32> to vector<48x32xf32>
    %207 = vector.extract_strided_slice %181 {offsets = [0, 1, 0], sizes = [6, 8, 32], strides = [1, 1, 1]} : vector<8x16x32xf32> to vector<6x8x32xf32>
    %208 = vector.shape_cast %207 : vector<6x8x32xf32> to vector<48x32xf32>
    %209 = tpu.concatenate %196, %206, %198, %208 in 0 : vector<48x32xf32>, vector<48x32xf32>, vector<48x32xf32>, vector<48x32xf32> -> vector<192x32xf32>
    %210 = arith.truncf %209 : vector<192x32xf32> to vector<192x32xbf16>
    %c2_45 = arith.constant 2 : index
    %c0_46 = arith.constant 0 : index
    %c0_47 = arith.constant 0 : index
    %211 = vector.load %arg4[%c2_45, %c0_46, %c0_47] : memref<9x32x64xbf16, #tpu.memory_space<vmem>>, vector<1x32x64xbf16>
    %212 = vector.shape_cast %211 : vector<1x32x64xbf16> to vector<32x64xbf16>
    %cst_48 = arith.constant dense<0.000000e+00> : vector<192x64xf32>
    %213 = tpu.matmul %210, %212, %cst_48 {dimension_numbers = #tpu.dot_dimension_numbers<[1], [0], [0], [1], [0, 0, 1, 1], [], []>} : vector<192x32xbf16>, vector<32x64xbf16>, vector<192x64xf32> -> vector<192x64xf32>
    %214 = arith.addf %204, %213 : vector<192x64xf32>
    %215 = vector.extract_strided_slice %142 {offsets = [1, 0, 0], sizes = [6, 8, 32], strides = [1, 1, 1]} : vector<8x16x32xf32> to vector<6x8x32xf32>
    %216 = vector.shape_cast %215 : vector<6x8x32xf32> to vector<48x32xf32>
    %217 = vector.extract_strided_slice %155 {offsets = [1, 0, 0], sizes = [6, 8, 32], strides = [1, 1, 1]} : vector<8x16x32xf32> to vector<6x8x32xf32>
    %218 = vector.shape_cast %217 : vector<6x8x32xf32> to vector<48x32xf32>
    %219 = tpu.concatenate %187, %189, %216, %218 in 0 : vector<48x32xf32>, vector<48x32xf32>, vector<48x32xf32>, vector<48x32xf32> -> vector<192x32xf32>
    %220 = arith.truncf %219 : vector<192x32xf32> to vector<192x32xbf16>
    %c3_49 = arith.constant 3 : index
    %c0_50 = arith.constant 0 : index
    %c0_51 = arith.constant 0 : index
    %221 = vector.load %arg4[%c3_49, %c0_50, %c0_51] : memref<9x32x64xbf16, #tpu.memory_space<vmem>>, vector<1x32x64xbf16>
    %222 = vector.shape_cast %221 : vector<1x32x64xbf16> to vector<32x64xbf16>
    %cst_52 = arith.constant dense<0.000000e+00> : vector<192x64xf32>
    %223 = tpu.matmul %220, %222, %cst_52 {dimension_numbers = #tpu.dot_dimension_numbers<[1], [0], [0], [1], [0, 0, 1, 1], [], []>} : vector<192x32xbf16>, vector<32x64xbf16>, vector<192x64xf32> -> vector<192x64xf32>
    %224 = arith.addf %214, %223 : vector<192x64xf32>
    %225 = vector.extract_strided_slice %142 {offsets = [1, 1, 0], sizes = [6, 8, 32], strides = [1, 1, 1]} : vector<8x16x32xf32> to vector<6x8x32xf32>
    %226 = vector.shape_cast %225 : vector<6x8x32xf32> to vector<48x32xf32>
    %227 = tpu.concatenate %189, %198, %218, %226 in 0 : vector<48x32xf32>, vector<48x32xf32>, vector<48x32xf32>, vector<48x32xf32> -> vector<192x32xf32>
    %228 = arith.truncf %227 : vector<192x32xf32> to vector<192x32xbf16>
    %c4_53 = arith.constant 4 : index
    %c0_54 = arith.constant 0 : index
    %c0_55 = arith.constant 0 : index
    %229 = vector.load %arg4[%c4_53, %c0_54, %c0_55] : memref<9x32x64xbf16, #tpu.memory_space<vmem>>, vector<1x32x64xbf16>
    %230 = vector.shape_cast %229 : vector<1x32x64xbf16> to vector<32x64xbf16>
    %cst_56 = arith.constant dense<0.000000e+00> : vector<192x64xf32>
    %231 = tpu.matmul %228, %230, %cst_56 {dimension_numbers = #tpu.dot_dimension_numbers<[1], [0], [0], [1], [0, 0, 1, 1], [], []>} : vector<192x32xbf16>, vector<32x64xbf16>, vector<192x64xf32> -> vector<192x64xf32>
    %232 = arith.addf %224, %231 : vector<192x64xf32>
    %233 = vector.extract_strided_slice %155 {offsets = [1, 1, 0], sizes = [6, 8, 32], strides = [1, 1, 1]} : vector<8x16x32xf32> to vector<6x8x32xf32>
    %234 = vector.shape_cast %233 : vector<6x8x32xf32> to vector<48x32xf32>
    %235 = tpu.concatenate %198, %208, %226, %234 in 0 : vector<48x32xf32>, vector<48x32xf32>, vector<48x32xf32>, vector<48x32xf32> -> vector<192x32xf32>
    %236 = arith.truncf %235 : vector<192x32xf32> to vector<192x32xbf16>
    %c5_57 = arith.constant 5 : index
    %c0_58 = arith.constant 0 : index
    %c0_59 = arith.constant 0 : index
    %237 = vector.load %arg4[%c5_57, %c0_58, %c0_59] : memref<9x32x64xbf16, #tpu.memory_space<vmem>>, vector<1x32x64xbf16>
    %238 = vector.shape_cast %237 : vector<1x32x64xbf16> to vector<32x64xbf16>
    %cst_60 = arith.constant dense<0.000000e+00> : vector<192x64xf32>
    %239 = tpu.matmul %236, %238, %cst_60 {dimension_numbers = #tpu.dot_dimension_numbers<[1], [0], [0], [1], [0, 0, 1, 1], [], []>} : vector<192x32xbf16>, vector<32x64xbf16>, vector<192x64xf32> -> vector<192x64xf32>
    %240 = arith.addf %232, %239 : vector<192x64xf32>
    %241 = vector.extract_strided_slice %168 {offsets = [1, 0, 0], sizes = [6, 8, 32], strides = [1, 1, 1]} : vector<8x16x32xf32> to vector<6x8x32xf32>
    %242 = vector.shape_cast %241 : vector<6x8x32xf32> to vector<48x32xf32>
    %243 = vector.extract_strided_slice %181 {offsets = [1, 0, 0], sizes = [6, 8, 32], strides = [1, 1, 1]} : vector<8x16x32xf32> to vector<6x8x32xf32>
    %244 = vector.shape_cast %243 : vector<6x8x32xf32> to vector<48x32xf32>
    %245 = tpu.concatenate %216, %218, %242, %244 in 0 : vector<48x32xf32>, vector<48x32xf32>, vector<48x32xf32>, vector<48x32xf32> -> vector<192x32xf32>
    %246 = arith.truncf %245 : vector<192x32xf32> to vector<192x32xbf16>
    %c6_61 = arith.constant 6 : index
    %c0_62 = arith.constant 0 : index
    %c0_63 = arith.constant 0 : index
    %247 = vector.load %arg4[%c6_61, %c0_62, %c0_63] : memref<9x32x64xbf16, #tpu.memory_space<vmem>>, vector<1x32x64xbf16>
    %248 = vector.shape_cast %247 : vector<1x32x64xbf16> to vector<32x64xbf16>
    %cst_64 = arith.constant dense<0.000000e+00> : vector<192x64xf32>
    %249 = tpu.matmul %246, %248, %cst_64 {dimension_numbers = #tpu.dot_dimension_numbers<[1], [0], [0], [1], [0, 0, 1, 1], [], []>} : vector<192x32xbf16>, vector<32x64xbf16>, vector<192x64xf32> -> vector<192x64xf32>
    %250 = arith.addf %240, %249 : vector<192x64xf32>
    %251 = vector.extract_strided_slice %168 {offsets = [1, 1, 0], sizes = [6, 8, 32], strides = [1, 1, 1]} : vector<8x16x32xf32> to vector<6x8x32xf32>
    %252 = vector.shape_cast %251 : vector<6x8x32xf32> to vector<48x32xf32>
    %253 = tpu.concatenate %218, %226, %244, %252 in 0 : vector<48x32xf32>, vector<48x32xf32>, vector<48x32xf32>, vector<48x32xf32> -> vector<192x32xf32>
    %254 = arith.truncf %253 : vector<192x32xf32> to vector<192x32xbf16>
    %c7_65 = arith.constant 7 : index
    %c0_66 = arith.constant 0 : index
    %c0_67 = arith.constant 0 : index
    %255 = vector.load %arg4[%c7_65, %c0_66, %c0_67] : memref<9x32x64xbf16, #tpu.memory_space<vmem>>, vector<1x32x64xbf16>
    %256 = vector.shape_cast %255 : vector<1x32x64xbf16> to vector<32x64xbf16>
    %cst_68 = arith.constant dense<0.000000e+00> : vector<192x64xf32>
    %257 = tpu.matmul %254, %256, %cst_68 {dimension_numbers = #tpu.dot_dimension_numbers<[1], [0], [0], [1], [0, 0, 1, 1], [], []>} : vector<192x32xbf16>, vector<32x64xbf16>, vector<192x64xf32> -> vector<192x64xf32>
    %258 = arith.addf %250, %257 : vector<192x64xf32>
    %259 = vector.extract_strided_slice %181 {offsets = [1, 1, 0], sizes = [6, 8, 32], strides = [1, 1, 1]} : vector<8x16x32xf32> to vector<6x8x32xf32>
    %260 = vector.shape_cast %259 : vector<6x8x32xf32> to vector<48x32xf32>
    %261 = tpu.concatenate %226, %234, %252, %260 in 0 : vector<48x32xf32>, vector<48x32xf32>, vector<48x32xf32>, vector<48x32xf32> -> vector<192x32xf32>
    %262 = arith.truncf %261 : vector<192x32xf32> to vector<192x32xbf16>
    %c8_69 = arith.constant 8 : index
    %c0_70 = arith.constant 0 : index
    %c0_71 = arith.constant 0 : index
    %263 = vector.load %arg4[%c8_69, %c0_70, %c0_71] : memref<9x32x64xbf16, #tpu.memory_space<vmem>>, vector<1x32x64xbf16>
    %264 = vector.shape_cast %263 : vector<1x32x64xbf16> to vector<32x64xbf16>
    %cst_72 = arith.constant dense<0.000000e+00> : vector<192x64xf32>
    %265 = tpu.matmul %262, %264, %cst_72 {dimension_numbers = #tpu.dot_dimension_numbers<[1], [0], [0], [1], [0, 0, 1, 1], [], []>} : vector<192x32xbf16>, vector<32x64xbf16>, vector<192x64xf32> -> vector<192x64xf32>
    %266 = arith.addf %258, %265 : vector<192x64xf32>
    %267 = vector.extract_strided_slice %266 {offsets = [0, 0], sizes = [48, 64], strides = [1, 1]} : vector<192x64xf32> to vector<48x64xf32>
    %268 = vector.extract_strided_slice %266 {offsets = [48, 0], sizes = [48, 64], strides = [1, 1]} : vector<192x64xf32> to vector<48x64xf32>
    %269 = arith.maximumf %267, %268 : vector<48x64xf32>
    %270 = vector.extract_strided_slice %266 {offsets = [96, 0], sizes = [48, 64], strides = [1, 1]} : vector<192x64xf32> to vector<48x64xf32>
    %271 = vector.extract_strided_slice %266 {offsets = [144, 0], sizes = [48, 64], strides = [1, 1]} : vector<192x64xf32> to vector<48x64xf32>
    %272 = arith.maximumf %270, %271 : vector<48x64xf32>
    %273 = arith.maximumf %269, %272 : vector<48x64xf32>
    %c0_73 = arith.constant 0 : index
    %c0_74 = arith.constant 0 : index
    %274 = vector.load %arg5[%c0_73, %c0_74] : memref<1x64xf32, #tpu.memory_space<vmem>>, vector<1x64xf32>
    %275 = vector.broadcast %274 : vector<1x64xf32> to vector<48x64xf32>
    %276 = arith.addf %273, %275 : vector<48x64xf32>
    %cst_75 = arith.constant 0.000000e+00 : f32
    %277 = vector.broadcast %cst_75 : f32 to vector<48x64xf32>
    %278 = arith.maximumf %276, %277 : vector<48x64xf32>
    %279 = arith.truncf %278 : vector<48x64xf32> to vector<48x64xbf16>
    %280 = vector.shape_cast %279 : vector<48x64xbf16> to vector<1x48x64xbf16>
    %c0_76 = arith.constant 0 : index
    %c0_77 = arith.constant 0 : index
    %c0_78 = arith.constant 0 : index
    %281 = vector.load %arg6[%c0_76, %c0_77, %c0_78] : memref<1x48x64xbf16, #tpu.memory_space<vmem>>, vector<1x48x64xbf16>
    tpu.vector_store %arg6[%c0_76, %c0_77, %c0_78], %280 {strides = array<i32>} : memref<1x48x64xbf16, #tpu.memory_space<vmem>>, vector<1x48x64xbf16>,
    return
  }
  func.func @transform_0(%arg0: i32) -> (i32, i32, i32, i32) {
    %c0_i32 = arith.constant 0 : i32
    %c0_i32_0 = arith.constant 0 : i32
    %c0_i32_1 = arith.constant 0 : i32
    %c0_i32_2 = arith.constant 0 : i32
    return %arg0, %c0_i32, %c0_i32_0, %c0_i32_1 : i32, i32, i32, i32
  }
  func.func @transform_1(%arg0: i32) -> (i32, i32, i32) {
    %c0_i32 = arith.constant 0 : i32
    %c0_i32_0 = arith.constant 0 : i32
    %c0_i32_1 = arith.constant 0 : i32
    %c0_i32_2 = arith.constant 0 : i32
    return %c0_i32, %c0_i32_0, %c0_i32_1 : i32, i32, i32
  }
  func.func @transform_2(%arg0: i32) -> (i32, i32) {
    %c0_i32 = arith.constant 0 : i32
    %c0_i32_0 = arith.constant 0 : i32
    %c0_i32_1 = arith.constant 0 : i32
    return %c0_i32, %c0_i32_0 : i32, i32
  }
  func.func @transform_3(%arg0: i32) -> (i32, i32, i32) {
    %c0_i32 = arith.constant 0 : i32
    %c0_i32_0 = arith.constant 0 : i32
    %c0_i32_1 = arith.constant 0 : i32
    %c0_i32_2 = arith.constant 0 : i32
    return %c0_i32, %c0_i32_0, %c0_i32_1 : i32, i32, i32
  }
  func.func @transform_4(%arg0: i32) -> (i32, i32) {
    %c0_i32 = arith.constant 0 : i32
    %c0_i32_0 = arith.constant 0 : i32
    %c0_i32_1 = arith.constant 0 : i32
    return %c0_i32, %c0_i32_0 : i32, i32
  }
  func.func @transform_5(%arg0: i32) -> (i32, i32, i32) {
    %c0_i32 = arith.constant 0 : i32
    %c0_i32_0 = arith.constant 0 : i32
    %c0_i32_1 = arith.constant 0 : i32
    return %arg0, %c0_i32, %c0_i32_0 : i32, i32, i32
  }
}

</mosaic_0001>

<bundles_post_ra>
// kernel: simple_cnn_forward.3
= control target key start
LH: loop header
LB: loop body
LE: loop exit
PB: predicated region body
PF: predicated region fallthrough
CT: control target
= control target key end

     0   :  { %vm2996_vm0 = vmmov 0   ;;  %vm2242_vm1 = vcmask 523264   ;;  %s3699_s1 = inlined_call_operand.vmem [shape: bf16[3072,64], index: 1, kind: input, shape index: {}]   ;;  %s3700_s0 = inlined_call_operand.vmem [shape: bf16[16,3072], index: 0, kind: input, shape index: {}]   ;;  %s3701_s2 = inlined_call_operand.vmem [shape: f32[1,64], index: 2, kind: input, shape index: {}]   ;;  %s3702_s3 = inlined_call_operand.vmem [shape: bf16[64,128], index: 3, kind: input, shape index: {}]   ;;  %s3703_s4 = inlined_call_operand.vmem [shape: f32[1,128], index: 4, kind: input, shape index: {}]   ;;  %s3704_s5 = inlined_call_operand.vmem [shape: f32[16,128], index: 5, kind: output, shape index: {}]  }
   0x1   :  { %v2799_v0 = vld [vmem:[%s3699_s1 + $0x40] sm:$0xff]   ;;  %v2803_v4 = vld [vmem:[%s3699_s1 + $0x48] sm:$0xff]   ;;  %v2807_v8 = vld [vmem:[%s3699_s1 + $0x50] sm:$0xff]  }
   0x2   :  { %v2800_v1 = vld [vmem:[%s3699_s1 + $0xc0] sm:$0xff]   ;;  %2516 = vmatprep.subr.bf16.mxu0 %v2799_v0  ;;  %v2804_v5 = vld [vmem:[%s3699_s1 + $0xc8] sm:$0xff]   ;;  %v2808_v9 = vld [vmem:[%s3699_s1 + $0xd0] sm:$0xff]  }
   0x3   :  { %v2801_v2 = vld [vmem:[%s3699_s1] sm:$0xff]   ;;  %2538 = vmatprep.subr.bf16.mxu1 %v2800_v1  ;;  %v2805_v6 = vld [vmem:[%s3699_s1 + $0x8] sm:$0xff]   ;;  %v2809_v10 = vld [vmem:[%s3699_s1 + $0x10] sm:$0xff]  }
   0x4   :  { %v2802_v3 = vld [vmem:[%s3699_s1 + $0x80] sm:$0xff]   ;;  %2517 = vmatpush3.bf16.msra.mxu0 %v2801_v2  ;;  %v2806_v7 = vld [vmem:[%s3699_s1 + $0x88] sm:$0xff]   ;;  %v2810_v11 = vld [vmem:[%s3699_s1 + $0x90] sm:$0xff]  }
   0x5   :  { %2539 = vmatpush3.bf16.msra.mxu1 %v2802_v3  ;;  %2518 = vmatprep.subr.bf16.mxu0 %v2803_v4  ;;  %v2811_v12 = vld [vmem:[%s3699_s1 + $0x58] sm:$0xff]   ;;  %v2815_v16 = vld [vmem:[%s3699_s1 + $0x60] sm:$0xff]   ;;  %v2819_v20 = vld [vmem:[%s3699_s1 + $0x68] sm:$0xff]  }
   0x6   :  { %2540 = vmatprep.subr.bf16.mxu1 %v2804_v5  ;;  %v2812_v13 = vld [vmem:[%s3699_s1 + $0xd8] sm:$0xff]   ;;  %v2816_v17 = vld [vmem:[%s3699_s1 + $0xe0] sm:$0xff]   ;;  %v2820_v21 = vld [vmem:[%s3699_s1 + $0xe8] sm:$0xff]  }
   0x7   :  { %v2813_v14 = vld [vmem:[%s3699_s1 + $0x18] sm:$0xff]   ;;  %v2817_v18 = vld [vmem:[%s3699_s1 + $0x20] sm:$0xff]   ;;  %v2821_v22 = vld [vmem:[%s3699_s1 + $0x28] sm:$0xff]  }
   0x8   :  { %2519 = vmatpush3.bf16.msra.mxu0 %v2805_v6  ;;  %v2814_v15 = vld [vmem:[%s3699_s1 + $0x98] sm:$0xff]   ;;  %v2818_v19 = vld [vmem:[%s3699_s1 + $0xa0] sm:$0xff]   ;;  %v2822_v23 = vld [vmem:[%s3699_s1 + $0xa8] sm:$0xff]  }
   0x9   :  { %2541 = vmatpush3.bf16.msra.mxu1 %v2806_v7  ;;  %2520 = vmatprep.subr.bf16.mxu0 %v2807_v8  ;;  %v2823_v24 = vld [vmem:[%s3699_s1 + $0x70] sm:$0xff]   ;;  %v2827_v28 = vld [vmem:[%s3699_s1 + $0x78] sm:$0xff]   ;;  %v21_v32 = vld [vmem:[%s3700_s0] sm:$0xff] }
   0xa   :  { %2542 = vmatprep.subr.bf16.mxu1 %v2808_v9  ;;  %v2824_v25 = vld [vmem:[%s3699_s1 + $0xf0] sm:$0xff]   ;;  %v2828_v29 = vld [vmem:[%s3699_s1 + $0xf8] sm:$0xff]   ;;  %v33_v33 = vld [vmem:[%s3700_s0 + $0x60] sm:$0xff] }
   0xb   :  { %v2825_v26 = vld [vmem:[%s3699_s1 + $0x30] sm:$0xff]   ;;  %v2829_v30 = vld [vmem:[%s3699_s1 + $0x38] sm:$0xff]   ;;  %v22_v34 = vld [vmem:[%s3700_s0 + $0x8] sm:$0xff]  ;;  %v2294_v35 = vcombine.low %v21_v32, %v33_v33  ;;  %v2295_v36 = vcombine.high %v21_v32, %v33_v33 }
   0xc   :  { %2521 = vmatpush3.bf16.msra.mxu0 %v2809_v10  ;;  %v2826_v27 = vld [vmem:[%s3699_s1 + $0xb0] sm:$0xff]   ;;  %v2830_v31 = vld [vmem:[%s3699_s1 + $0xb8] sm:$0xff]   ;;  %v34_v37 = vld [vmem:[%s3700_s0 + $0x68] sm:$0xff] }
   0xd   :  { %2543 = vmatpush3.bf16.msra.mxu1 %v2810_v11  ;;  %2522 = vmatprep.subr.bf16.mxu0 %v2811_v12  ;;  %v2296_v38 = vcombine.low %v22_v34, %v34_v37  ;;  %v2297_v39 = vcombine.high %v22_v34, %v34_v37  ;;  %v2831_v40 = vld [vmem:[%s3699_s1 + $0x140] sm:$0xff]   ;;  %v2835_v44 = vld [vmem:[%s3699_s1 + $0x148] sm:$0xff]   ;;  %v2839_v48 = vld [vmem:[%s3699_s1 + $0x150] sm:$0xff]  }
   0xe   :  { %2544 = vmatprep.subr.bf16.mxu1 %v2812_v13  ;;  %1740 = vmatprep.mubr.bf16.mxu0 %v2295_v36  ;;  %v2832_v41 = vld [vmem:[%s3699_s1 + $0x1c0] sm:$0xff]   ;;  %v2836_v45 = vld [vmem:[%s3699_s1 + $0x1c8] sm:$0xff]   ;;  %v2840_v49 = vld [vmem:[%s3699_s1 + $0x1d0] sm:$0xff]  }
   0xf   :  { %1781 = vmatprep.mubr.bf16.mxu1 %v2297_v39  ;;  %v2833_v42 = vld [vmem:[%s3699_s1 + $0x100] sm:$0xff]   ;;  %v2837_v46 = vld [vmem:[%s3699_s1 + $0x108] sm:$0xff]   ;;  %v2841_v50 = vld [vmem:[%s3699_s1 + $0x110] sm:$0xff]  }
  0x10   :  { %2523 = vmatpush3.bf16.msra.mxu0 %v2813_v14  ;;  %v2834_v43 = vld [vmem:[%s3699_s1 + $0x180] sm:$0xff]   ;;  %v2838_v47 = vld [vmem:[%s3699_s1 + $0x188] sm:$0xff]   ;;  %v2842_v51 = vld [vmem:[%s3699_s1 + $0x190] sm:$0xff]  }
  0x11   :  { %2545 = vmatpush3.bf16.msra.mxu1 %v2814_v15  ;;  %2524 = vmatprep.subr.bf16.mxu0 %v2815_v16  ;;  %v2843_v52 = vld [vmem:[%s3699_s1 + $0x158] sm:$0xff]   ;;  %v2847_v56 = vld [vmem:[%s3699_s1 + $0x160] sm:$0xff]   ;;  %v2851_v60 = vld [vmem:[%s3699_s1 + $0x168] sm:$0xff]  }
  0x12   :  { %2546 = vmatprep.subr.bf16.mxu1 %v2816_v17  ;;  %v2844_v53 = vld [vmem:[%s3699_s1 + $0x1d8] sm:$0xff]   ;;  %v2848_v57 = vld [vmem:[%s3699_s1 + $0x1e0] sm:$0xff]   ;;  %v2852_v61 = vld [vmem:[%s3699_s1 + $0x1e8] sm:$0xff]  }
  0x13   :  { %v2845_v54 = vld [vmem:[%s3699_s1 + $0x118] sm:$0xff]   ;;  %v2849_v58 = vld [vmem:[%s3699_s1 + $0x120] sm:$0xff]   ;;  %v2853_v62 = vld [vmem:[%s3699_s1 + $0x128] sm:$0xff]  }
  0x14   :  { %2525 = vmatpush3.bf16.msra.mxu0 %v2817_v18  ;;  %v2846_v55 = vld [vmem:[%s3699_s1 + $0x198] sm:$0xff]   ;;  %v2850_v59 = vld [vmem:[%s3699_s1 + $0x1a0] sm:$0xff]   ;;  %v2854_v63 = vld [vmem:[%s3699_s1 + $0x1a8] sm:$0xff]  }
  0x15   :  { %2547 = vmatpush3.bf16.msra.mxu1 %v2818_v19  ;;  %2526 = vmatprep.subr.bf16.mxu0 %v2819_v20  ;;  %v2855_v0 = vld [vmem:[%s3699_s1 + $0x170] sm:$0xff]   ;;  %v2859_v4 = vld [vmem:[%s3699_s1 + $0x178] sm:$0xff]   ;;  %v2863_v16 = vld [vmem:[%s3699_s1 + $0x240] sm:$0xff]  }
  0x16   :  { %2548 = vmatprep.subr.bf16.mxu1 %v2820_v21  ;;  %v2856_v1 = vld [vmem:[%s3699_s1 + $0x1f0] sm:$0xff]   ;;  %v2860_v5 = vld [vmem:[%s3699_s1 + $0x1f8] sm:$0xff]   ;;  %v2864_v17 = vld [vmem:[%s3699_s1 + $0x2c0] sm:$0xff]  }
  0x17   :  { %v2857_v2 = vld [vmem:[%s3699_s1 + $0x130] sm:$0xff]   ;;  %v2861_v6 = vld [vmem:[%s3699_s1 + $0x138] sm:$0xff]   ;;  %v2865_v18 = vld [vmem:[%s3699_s1 + $0x200] sm:$0xff]  }
  0x18   :  { %2527 = vmatpush3.bf16.msra.mxu0 %v2821_v22  ;;  %v2858_v3 = vld [vmem:[%s3699_s1 + $0x1b0] sm:$0xff]   ;;  %v2862_v7 = vld [vmem:[%s3699_s1 + $0x1b8] sm:$0xff]   ;;  %v2866_v19 = vld [vmem:[%s3699_s1 + $0x280] sm:$0xff]  }
  0x19   :  { %2549 = vmatpush3.bf16.msra.mxu1 %v2822_v23  ;;  %2528 = vmatprep.subr.bf16.mxu0 %v2823_v24  ;;  %v23_v8 = vld [vmem:[%s3700_s0 + $0x10] sm:$0xff]  ;;  %v24_v12 = vld [vmem:[%s3700_s0 + $0x18] sm:$0xff]  ;;  %v2867_v20 = vld [vmem:[%s3699_s1 + $0x248] sm:$0xff]  }
  0x1a   :  { %2550 = vmatprep.subr.bf16.mxu1 %v2824_v25  ;;  %v35_v9 = vld [vmem:[%s3700_s0 + $0x70] sm:$0xff]  ;;  %v36_v13 = vld [vmem:[%s3700_s0 + $0x78] sm:$0xff]  ;;  %v2868_v21 = vld [vmem:[%s3699_s1 + $0x2c8] sm:$0xff]  }
  0x1b   :  { %v2298_v10 = vcombine.low %v23_v8, %v35_v9  ;;  %v2299_v11 = vcombine.high %v23_v8, %v35_v9  ;;  %v2300_v14 = vcombine.low %v24_v12, %v36_v13  ;;  %v2301_v15 = vcombine.high %v24_v12, %v36_v13  ;;  %v2869_v22 = vld [vmem:[%s3699_s1 + $0x208] sm:$0xff]   ;;  %v2871_v24 = vld [vmem:[%s3699_s1 + $0x250] sm:$0xff]   ;;  %v2879_v32 = vld [vmem:[%s3699_s1 + $0x260] sm:$0xff]  }
  0x1c   :  { %2529 = vmatpush3.bf16.msra.mxu0 %v2825_v26  ;;  %v2870_v23 = vld [vmem:[%s3699_s1 + $0x288] sm:$0xff]   ;;  %v2872_v25 = vld [vmem:[%s3699_s1 + $0x2d0] sm:$0xff]   ;;  %v2880_v33 = vld [vmem:[%s3699_s1 + $0x2e0] sm:$0xff]  }
  0x1d   :  { %2551 = vmatpush3.bf16.msra.mxu1 %v2826_v27  ;;  %2530 = vmatprep.subr.bf16.mxu0 %v2827_v28  ;;  %v2873_v26 = vld [vmem:[%s3699_s1 + $0x210] sm:$0xff]   ;;  %v2875_v28 = vld [vmem:[%s3699_s1 + $0x258] sm:$0xff]   ;;  %v2881_v34 = vld [vmem:[%s3699_s1 + $0x220] sm:$0xff]  }
  0x1e   :  { %2552 = vmatprep.subr.bf16.mxu1 %v2828_v29  ;;  %v2874_v27 = vld [vmem:[%s3699_s1 + $0x290] sm:$0xff]   ;;  %v2876_v29 = vld [vmem:[%s3699_s1 + $0x2d8] sm:$0xff]   ;;  %v2883_v36 = vld [vmem:[%s3699_s1 + $0x268] sm:$0xff]  }
  0x1f   :  { %v2884_v37 = vld [vmem:[%s3699_s1 + $0x2e8] sm:$0xff]   ;;  %v2911_v8 = vld [vmem:[%s3699_s1 + $0x360] sm:$0xff]  }
  0x20   :  { %2531 = vmatpush3.bf16.msra.mxu0 %v2829_v30  ;;  %v2877_v30 = vld [vmem:[%s3699_s1 + $0x218] sm:$0xff]   ;;  %v2886_v39 = vld [vmem:[%s3699_s1 + $0x2a8] sm:$0xff]   ;;  %v2912_v9 = vld [vmem:[%s3699_s1 + $0x3e0] sm:$0xff]  }
  0x21   :  { %2553 = vmatpush3.bf16.msra.mxu1 %v2830_v31  ;;  %2560 = vmatprep.subr.bf16.mxu0 %v2831_v40  ;;  %v2878_v31 = vld [vmem:[%s3699_s1 + $0x298] sm:$0xff]   ;;  %v2887_v40 = vld [vmem:[%s3699_s1 + $0x270] sm:$0xff]   ;;  %v2915_v12 = vld [vmem:[%s3699_s1 + $0x368] sm:$0xff]  }
  0x22   :  { %2582 = vmatprep.subr.bf16.mxu1 %v2832_v41  ;;  %v2888_v41 = vld [vmem:[%s3699_s1 + $0x2f0] sm:$0xff]   ;;  %v2916_v13 = vld [vmem:[%s3699_s1 + $0x3e8] sm:$0xff]  }
  0x23   :  { %1741 = vmatmul.mubr.bf16.vlgmr.msra.gmra.mrb[0].mxu0 %v2294_v35  ;;  %v2882_v35 = vld [vmem:[%s3699_s1 + $0x2a0] sm:$0xff]  }
  0x24   :  { %1782 = vmatmul.mubr.bf16.vlgmr.msra.gmra.mrb[0].mxu1 %v2296_v38  ;;  %2561 = vmatpush3.bf16.msra.mxu0 %v2833_v42  ;;  %v2885_v38 = vld [vmem:[%s3699_s1 + $0x228] sm:$0xff]   ;;  %v2889_v42 = vld [vmem:[%s3699_s1 + $0x230] sm:$0xff]  }
  0x25   :  { %2583 = vmatpush3.bf16.msra.mxu1 %v2834_v43  ;;  %2562 = vmatprep.subr.bf16.mxu0 %v2835_v44  ;;  %v2890_v43 = vld [vmem:[%s3699_s1 + $0x2b0] sm:$0xff]   ;;  %v2891_v44 = vld [vmem:[%s3699_s1 + $0x278] sm:$0xff]  }
  0x26   :  { %2584 = vmatprep.subr.bf16.mxu1 %v2836_v45  ;;  %1822 = vmatprep.mubr.bf16.mxu0 %v2299_v11  ;;  %v2892_v45 = vld [vmem:[%s3699_s1 + $0x2f8] sm:$0xff]   ;;  %v2914_v11 = vld [vmem:[%s3699_s1 + $0x3a0] sm:$0xff]  }
  0x27   :  { %1863 = vmatprep.mubr.bf16.mxu1 %v2301_v15  ;;  %v2918_v15 = vld [vmem:[%s3699_s1 + $0x3a8] sm:$0xff]  }
  0x28   :  { %2563 = vmatpush3.bf16.msra.mxu0 %v2837_v46  ;;  %v2893_v46 = vld [vmem:[%s3699_s1 + $0x238] sm:$0xff]  }
  0x29   :  { %2585 = vmatpush3.bf16.msra.mxu1 %v2838_v47  ;;  %2564 = vmatprep.subr.bf16.mxu0 %v2839_v48  ;;  %v2894_v47 = vld [vmem:[%s3699_s1 + $0x2b8] sm:$0xff]   ;;  %v25_v48 = vld [vmem:[%s3700_s0 + $0x20] sm:$0xff] }
  0x2a   :  { %2586 = vmatprep.subr.bf16.mxu1 %v2840_v49  ;;  %v37_v49 = vld [vmem:[%s3700_s0 + $0x80] sm:$0xff] }
  0x2c   :  { %2565 = vmatpush3.bf16.msra.mxu0 %v2841_v50  ;;  %v26_v50 = vld [vmem:[%s3700_s0 + $0x28] sm:$0xff] }
  0x2d   :  { %2587 = vmatpush3.bf16.msra.mxu1 %v2842_v51  ;;  %2566 = vmatprep.subr.bf16.mxu0 %v2843_v52  ;;  %v38_v51 = vld [vmem:[%s3700_s0 + $0x88] sm:$0xff]  ;;  %v2302_v52 = vcombine.low %v25_v48, %v37_v49 }
  0x2e   :  { %2588 = vmatprep.subr.bf16.mxu1 %v2844_v53  ;;  %v2303_v53 = vcombine.high %v25_v48, %v37_v49  ;;  %v2943_v48 = vld [vmem:[%s3699_s1 + $0x460] sm:$0xff]  }
  0x2f   :  { %v2944_v49 = vld [vmem:[%s3699_s1 + $0x4e0] sm:$0xff]  }
  0x30   :  { %2567 = vmatpush3.bf16.msra.mxu0 %v2845_v54  ;;  %v2304_v54 = vcombine.low %v26_v50, %v38_v51 }
  0x31   :  { %2589 = vmatpush3.bf16.msra.mxu1 %v2846_v55  ;;  %2568 = vmatprep.subr.bf16.mxu0 %v2847_v56  ;;  %v2305_v55 = vcombine.high %v26_v50, %v38_v51  ;;  %v2895_v56 = vld [vmem:[%s3699_s1 + $0x340] sm:$0xff]  }
  0x32   :  { %2590 = vmatprep.subr.bf16.mxu1 %v2848_v57  ;;  %v2896_v57 = vld [vmem:[%s3699_s1 + $0x3c0] sm:$0xff]  }
  0x33   :  { %v2945_v50 = vld [vmem:[%s3699_s1 + $0x420] sm:$0xff]  }
  0x34   :  { %2569 = vmatpush3.bf16.msra.mxu0 %v2849_v58  ;;  %v2897_v58 = vld [vmem:[%s3699_s1 + $0x300] sm:$0xff]  }
  0x35   :  { %2591 = vmatpush3.bf16.msra.mxu1 %v2850_v59  ;;  %2570 = vmatprep.subr.bf16.mxu0 %v2851_v60  ;;  %v2898_v59 = vld [vmem:[%s3699_s1 + $0x380] sm:$0xff]   ;;  %v2899_v60 = vld [vmem:[%s3699_s1 + $0x348] sm:$0xff]  }
  0x36   :  { %2592 = vmatprep.subr.bf16.mxu1 %v2852_v61  ;;  %v2900_v61 = vld [vmem:[%s3699_s1 + $0x3c8] sm:$0xff]   ;;  %v2946_v51 = vld [vmem:[%s3699_s1 + $0x4a0] sm:$0xff]  }
  0x38   :  { %2571 = vmatpush3.bf16.msra.mxu0 %v2853_v62  ;;  %v2901_v62 = vld [vmem:[%s3699_s1 + $0x308] sm:$0xff]  }
  0x39   :  { %2593 = vmatpush3.bf16.msra.mxu1 %v2854_v63  ;;  %2572 = vmatprep.subr.bf16.mxu0 %v2855_v0  ;;  %v2902_v63 = vld [vmem:[%s3699_s1 + $0x388] sm:$0xff]   ;;  %v2903_v0 = vld [vmem:[%s3699_s1 + $0x350] sm:$0xff]  }
  0x3a   :  { %2594 = vmatprep.subr.bf16.mxu1 %v2856_v1  ;;  %v2904_v1 = vld [vmem:[%s3699_s1 + $0x3d0] sm:$0xff]  }
  0x3c   :  { %2573 = vmatpush3.bf16.msra.mxu0 %v2857_v2  ;;  %v2905_v2 = vld [vmem:[%s3699_s1 + $0x310] sm:$0xff]  }
  0x3d   :  { %2595 = vmatpush3.bf16.msra.mxu1 %v2858_v3  ;;  %2574 = vmatprep.subr.bf16.mxu0 %v2859_v4  ;;  %v2906_v3 = vld [vmem:[%s3699_s1 + $0x390] sm:$0xff]   ;;  %v2907_v4 = vld [vmem:[%s3699_s1 + $0x358] sm:$0xff]  }
  0x3e   :  { %2596 = vmatprep.subr.bf16.mxu1 %v2860_v5  ;;  %v2908_v5 = vld [vmem:[%s3699_s1 + $0x3d8] sm:$0xff]  }
  0x40   :  { %2575 = vmatpush3.bf16.msra.mxu0 %v2861_v6  ;;  %v2909_v6 = vld [vmem:[%s3699_s1 + $0x318] sm:$0xff]  }
  0x41   :  { %2597 = vmatpush3.bf16.msra.mxu1 %v2862_v7  ;;  %2604 = vmatprep.subr.bf16.mxu0 %v2863_v16  ;;  %v2910_v7 = vld [vmem:[%s3699_s1 + $0x398] sm:$0xff]   ;;  %v2919_v16 = vld [vmem:[%s3699_s1 + $0x370] sm:$0xff]  }
  0x42   :  { %2626 = vmatprep.subr.bf16.mxu1 %v2864_v17  ;;  %v2920_v17 = vld [vmem:[%s3699_s1 + $0x3f0] sm:$0xff]  }
  0x43   :  { %1823 = vmatmul.mubr.bf16.vlgmr.msra.gmra.mrb[4].mxu0 %v2298_v10  ;;  %v2913_v10 = vld [vmem:[%s3699_s1 + $0x320] sm:$0xff]  }
  0x44   :  { %1864 = vmatmul.mubr.bf16.vlgmr.msra.gmra.mrb[4].mxu1 %v2300_v14  ;;  %2605 = vmatpush3.bf16.msra.mxu0 %v2865_v18  ;;  %v2917_v14 = vld [vmem:[%s3699_s1 + $0x328] sm:$0xff]   ;;  %v2921_v18 = vld [vmem:[%s3699_s1 + $0x330] sm:$0xff]  }
  0x45   :  { %2627 = vmatpush3.bf16.msra.mxu1 %v2866_v19  ;;  %2606 = vmatprep.subr.bf16.mxu0 %v2867_v20  ;;  %v2922_v19 = vld [vmem:[%s3699_s1 + $0x3b0] sm:$0xff]   ;;  %v2923_v20 = vld [vmem:[%s3699_s1 + $0x378] sm:$0xff]  }
  0x46   :  { %2628 = vmatprep.subr.bf16.mxu1 %v2868_v21  ;;  %1904 = vmatprep.mubr.bf16.mxu0 %v2303_v53  ;;  %v2924_v21 = vld [vmem:[%s3699_s1 + $0x3f8] sm:$0xff]   ;;  %v2948_v53 = vld [vmem:[%s3699_s1 + $0x4e8] sm:$0xff]  }
  0x47   :  { %1945 = vmatprep.mubr.bf16.mxu1 %v2305_v55  ;;  %v2950_v55 = vld [vmem:[%s3699_s1 + $0x4a8] sm:$0xff]  }
  0x48   :  { %2607 = vmatpush3.bf16.msra.mxu0 %v2869_v22  ;;  %v2925_v22 = vld [vmem:[%s3699_s1 + $0x338] sm:$0xff]  }
  0x49   :  { %2629 = vmatpush3.bf16.msra.mxu1 %v2870_v23  ;;  %2608 = vmatprep.subr.bf16.mxu0 %v2871_v24  ;;  %v2926_v23 = vld [vmem:[%s3699_s1 + $0x3b8] sm:$0xff]   ;;  %v27_v24 = vld [vmem:[%s3700_s0 + $0x30] sm:$0xff] }
  0x4a   :  { %2630 = vmatprep.subr.bf16.mxu1 %v2872_v25  ;;  %v39_v25 = vld [vmem:[%s3700_s0 + $0x90] sm:$0xff] }
  0x4c   :  { %2609 = vmatpush3.bf16.msra.mxu0 %v2873_v26  ;;  %v28_v26 = vld [vmem:[%s3700_s0 + $0x38] sm:$0xff] }
  0x4d   :  { %2631 = vmatpush3.bf16.msra.mxu1 %v2874_v27  ;;  %2610 = vmatprep.subr.bf16.mxu0 %v2875_v28  ;;  %v2306_v27 = vcombine.low %v27_v24, %v39_v25  ;;  %v2307_v28 = vcombine.high %v27_v24, %v39_v25  ;;  %v2975_v24 = vld [vmem:[%s3699_s1 + $0x560] sm:$0xff]  }
  0x4e   :  { %2632 = vmatprep.subr.bf16.mxu1 %v2876_v29  ;;  %v40_v29 = vld [vmem:[%s3700_s0 + $0x98] sm:$0xff]  ;;  %v2976_v25 = vld [vmem:[%s3699_s1 + $0x5e0] sm:$0xff]  }
  0x50   :  { %2611 = vmatpush3.bf16.msra.mxu0 %v2877_v30  ;;  %v2308_v30 = vcombine.low %v28_v26, %v40_v29 }
  0x51   :  { %2633 = vmatpush3.bf16.msra.mxu1 %v2878_v31  ;;  %2612 = vmatprep.subr.bf16.mxu0 %v2879_v32  ;;  %v2309_v31 = vcombine.high %v28_v26, %v40_v29  ;;  %v2927_v32 = vld [vmem:[%s3699_s1 + $0x440] sm:$0xff]   ;;  %v2980_v29 = vld [vmem:[%s3699_s1 + $0x5e8] sm:$0xff]  }
  0x52   :  { %2634 = vmatprep.subr.bf16.mxu1 %v2880_v33  ;;  %v2928_v33 = vld [vmem:[%s3699_s1 + $0x4c0] sm:$0xff]  }
  0x53   :  { %v2977_v26 = vld [vmem:[%s3699_s1 + $0x520] sm:$0xff]  }
  0x54   :  { %2613 = vmatpush3.bf16.msra.mxu0 %v2881_v34  ;;  %v2929_v34 = vld [vmem:[%s3699_s1 + $0x400] sm:$0xff]  }
  0x55   :  { %2635 = vmatpush3.bf16.msra.mxu1 %v2882_v35  ;;  %2614 = vmatprep.subr.bf16.mxu0 %v2883_v36  ;;  %v2930_v35 = vld [vmem:[%s3699_s1 + $0x480] sm:$0xff]   ;;  %v2931_v36 = vld [vmem:[%s3699_s1 + $0x448] sm:$0xff]  }
  0x56   :  { %2636 = vmatprep.subr.bf16.mxu1 %v2884_v37  ;;  %v2932_v37 = vld [vmem:[%s3699_s1 + $0x4c8] sm:$0xff]  }
  0x58   :  { %2615 = vmatpush3.bf16.msra.mxu0 %v2885_v38  ;;  %v2933_v38 = vld [vmem:[%s3699_s1 + $0x408] sm:$0xff]  }
  0x59   :  { %2637 = vmatpush3.bf16.msra.mxu1 %v2886_v39  ;;  %2616 = vmatprep.subr.bf16.mxu0 %v2887_v40  ;;  %v2934_v39 = vld [vmem:[%s3699_s1 + $0x488] sm:$0xff]   ;;  %v2935_v40 = vld [vmem:[%s3699_s1 + $0x450] sm:$0xff]  }
  0x5a   :  { %2638 = vmatprep.subr.bf16.mxu1 %v2888_v41  ;;  %v2936_v41 = vld [vmem:[%s3699_s1 + $0x4d0] sm:$0xff]  }
  0x5c   :  { %2617 = vmatpush3.bf16.msra.mxu0 %v2889_v42  ;;  %v2937_v42 = vld [vmem:[%s3699_s1 + $0x410] sm:$0xff]  }
  0x5d   :  { %2639 = vmatpush3.bf16.msra.mxu1 %v2890_v43  ;;  %2618 = vmatprep.subr.bf16.mxu0 %v2891_v44  ;;  %v2938_v43 = vld [vmem:[%s3699_s1 + $0x490] sm:$0xff]   ;;  %v2939_v44 = vld [vmem:[%s3699_s1 + $0x458] sm:$0xff]  }
  0x5e   :  { %2640 = vmatprep.subr.bf16.mxu1 %v2892_v45  ;;  %v2940_v45 = vld [vmem:[%s3699_s1 + $0x4d8] sm:$0xff]  }
  0x60   :  { %2619 = vmatpush3.bf16.msra.mxu0 %v2893_v46  ;;  %v2941_v46 = vld [vmem:[%s3699_s1 + $0x418] sm:$0xff]  }
  0x61   :  { %2641 = vmatpush3.bf16.msra.mxu1 %v2894_v47  ;;  %2648 = vmatprep.subr.bf16.mxu0 %v2895_v56  ;;  %v2942_v47 = vld [vmem:[%s3699_s1 + $0x498] sm:$0xff]   ;;  %v2951_v56 = vld [vmem:[%s3699_s1 + $0x470] sm:$0xff]  }
  0x62   :  { %2670 = vmatprep.subr.bf16.mxu1 %v2896_v57  ;;  %v2952_v57 = vld [vmem:[%s3699_s1 + $0x4f0] sm:$0xff]  }
  0x63   :  { %1905 = vmatmul.mubr.bf16.vlgmr.msra.gmra.mrb[8].mxu0 %v2302_v52  ;;  %v2947_v52 = vld [vmem:[%s3699_s1 + $0x468] sm:$0xff]  }
  0x64   :  { %1946 = vmatmul.mubr.bf16.vlgmr.msra.gmra.mrb[8].mxu1 %v2304_v54  ;;  %2649 = vmatpush3.bf16.msra.mxu0 %v2897_v58  ;;  %v2949_v54 = vld [vmem:[%s3699_s1 + $0x428] sm:$0xff]   ;;  %v2953_v58 = vld [vmem:[%s3699_s1 + $0x430] sm:$0xff]  }
  0x65   :  { %2671 = vmatpush3.bf16.msra.mxu1 %v2898_v59  ;;  %2650 = vmatprep.subr.bf16.mxu0 %v2899_v60  ;;  %v2954_v59 = vld [vmem:[%s3699_s1 + $0x4b0] sm:$0xff]   ;;  %v2955_v60 = vld [vmem:[%s3699_s1 + $0x478] sm:$0xff]  }
  0x66   :  { %2672 = vmatprep.subr.bf16.mxu1 %v2900_v61  ;;  %1986 = vmatprep.mubr.bf16.mxu0 %v2307_v28  ;;  %v2956_v61 = vld [vmem:[%s3699_s1 + $0x4f8] sm:$0xff]   ;;  %v2979_v28 = vld [vmem:[%s3699_s1 + $0x568] sm:$0xff]  }
  0x67   :  { %2027 = vmatprep.mubr.bf16.mxu1 %v2309_v31  ;;  %v2982_v31 = vld [vmem:[%s3699_s1 + $0x5a8] sm:$0xff]  }
  0x68   :  { %2651 = vmatpush3.bf16.msra.mxu0 %v2901_v62  ;;  %v2957_v62 = vld [vmem:[%s3699_s1 + $0x438] sm:$0xff]  }
  0x69   :  { %2673 = vmatpush3.bf16.msra.mxu1 %v2902_v63  ;;  %2652 = vmatprep.subr.bf16.mxu0 %v2903_v0  ;;  %v2958_v63 = vld [vmem:[%s3699_s1 + $0x4b8] sm:$0xff]   ;;  %v29_v0 = vld [vmem:[%s3700_s0 + $0x40] sm:$0xff] }
  0x6a   :  { %2674 = vmatprep.subr.bf16.mxu1 %v2904_v1  ;;  %v41_v1 = vld [vmem:[%s3700_s0 + $0xa0] sm:$0xff] }
  0x6c   :  { %2653 = vmatpush3.bf16.msra.mxu0 %v2905_v2  ;;  %v2310_v2 = vcombine.low %v29_v0, %v41_v1 }
  0x6d   :  { %2675 = vmatpush3.bf16.msra.mxu1 %v2906_v3  ;;  %2654 = vmatprep.subr.bf16.mxu0 %v2907_v4  ;;  %v2311_v3 = vcombine.high %v29_v0, %v41_v1  ;;  %v30_v4 = vld [vmem:[%s3700_s0 + $0x48] sm:$0xff]  ;;  %v2995_v1 = vmov 0.0  }
  0x6e   :  { %2676 = vmatprep.subr.bf16.mxu1 %v2908_v5  ;;  %v42_v5 = vld [vmem:[%s3700_s0 + $0xa8] sm:$0xff] }
  0x70   :  { %2655 = vmatpush3.bf16.msra.mxu0 %v2909_v6  ;;  %v2312_v6 = vcombine.low %v30_v4, %v42_v5 }
  0x71   :  { %2677 = vmatpush3.bf16.msra.mxu1 %v2910_v7  ;;  %2656 = vmatprep.subr.bf16.mxu0 %v2911_v8  ;;  %v2313_v7 = vcombine.high %v30_v4, %v42_v5  ;;  %v2959_v8 = vld [vmem:[%s3699_s1 + $0x540] sm:$0xff]  }
  0x72   :  { %2678 = vmatprep.subr.bf16.mxu1 %v2912_v9  ;;  %v2960_v9 = vld [vmem:[%s3699_s1 + $0x5c0] sm:$0xff]  }
  0x74   :  { %2657 = vmatpush3.bf16.msra.mxu0 %v2913_v10  ;;  %v2961_v10 = vld [vmem:[%s3699_s1 + $0x500] sm:$0xff]  }
  0x75   :  { %2679 = vmatpush3.bf16.msra.mxu1 %v2914_v11  ;;  %2658 = vmatprep.subr.bf16.mxu0 %v2915_v12  ;;  %v2962_v11 = vld [vmem:[%s3699_s1 + $0x580] sm:$0xff]   ;;  %v2963_v12 = vld [vmem:[%s3699_s1 + $0x548] sm:$0xff]  }
  0x76   :  { %2680 = vmatprep.subr.bf16.mxu1 %v2916_v13  ;;  %v2964_v13 = vld [vmem:[%s3699_s1 + $0x5c8] sm:$0xff]  }
  0x78   :  { %2659 = vmatpush3.bf16.msra.mxu0 %v2917_v14  ;;  %v2965_v14 = vld [vmem:[%s3699_s1 + $0x508] sm:$0xff]  }
  0x79   :  { %2681 = vmatpush3.bf16.msra.mxu1 %v2918_v15  ;;  %2660 = vmatprep.subr.bf16.mxu0 %v2919_v16  ;;  %v2966_v15 = vld [vmem:[%s3699_s1 + $0x588] sm:$0xff]   ;;  %v2967_v16 = vld [vmem:[%s3699_s1 + $0x550] sm:$0xff]  }
  0x7a   :  { %2682 = vmatprep.subr.bf16.mxu1 %v2920_v17  ;;  %v2968_v17 = vld [vmem:[%s3699_s1 + $0x5d0] sm:$0xff]  }
  0x7c   :  { %2661 = vmatpush3.bf16.msra.mxu0 %v2921_v18  ;;  %v2969_v18 = vld [vmem:[%s3699_s1 + $0x510] sm:$0xff]  }
  0x7d   :  { %2683 = vmatpush3.bf16.msra.mxu1 %v2922_v19  ;;  %2662 = vmatprep.subr.bf16.mxu0 %v2923_v20  ;;  %v2970_v19 = vld [vmem:[%s3699_s1 + $0x590] sm:$0xff]   ;;  %v2971_v20 = vld [vmem:[%s3699_s1 + $0x558] sm:$0xff]  }
  0x7e   :  { %2684 = vmatprep.subr.bf16.mxu1 %v2924_v21  ;;  %v2972_v21 = vld [vmem:[%s3699_s1 + $0x5d8] sm:$0xff]  }
  0x80   :  { %2663 = vmatpush3.bf16.msra.mxu0 %v2925_v22  ;;  %v2973_v22 = vld [vmem:[%s3699_s1 + $0x518] sm:$0xff]  }
  0x81   :  { %2685 = vmatpush3.bf16.msra.mxu1 %v2926_v23  ;;  %2692 = vmatprep.subr.bf16.mxu0 %v2927_v32  ;;  %v2974_v23 = vld [vmem:[%s3699_s1 + $0x598] sm:$0xff]   ;;  %v2983_v32 = vld [vmem:[%s3699_s1 + $0x570] sm:$0xff]  }
  0x82   :  { %2714 = vmatprep.subr.bf16.mxu1 %v2928_v33  ;;  %v2984_v33 = vld [vmem:[%s3699_s1 + $0x5f0] sm:$0xff]  }
  0x83   :  { %1987 = vmatmul.mubr.bf16.vlgmr.msra.gmra.mrb[12].mxu0 %v2306_v27  ;;  %v2978_v27 = vld [vmem:[%s3699_s1 + $0x5a0] sm:$0xff]  }
  0x84   :  { %2028 = vmatmul.mubr.bf16.vlgmr.msra.gmra.mrb[12].mxu1 %v2308_v30  ;;  %2693 = vmatpush3.bf16.msra.mxu0 %v2929_v34  ;;  %v2981_v30 = vld [vmem:[%s3699_s1 + $0x528] sm:$0xff]   ;;  %v2985_v34 = vld [vmem:[%s3699_s1 + $0x530] sm:$0xff]  }
  0x85   :  { %2715 = vmatpush3.bf16.msra.mxu1 %v2930_v35  ;;  %2694 = vmatprep.subr.bf16.mxu0 %v2931_v36  ;;  %v2986_v35 = vld [vmem:[%s3699_s1 + $0x5b0] sm:$0xff]   ;;  %v2987_v36 = vld [vmem:[%s3699_s1 + $0x578] sm:$0xff]  }
  0x86   :  { %2716 = vmatprep.subr.bf16.mxu1 %v2932_v37  ;;  %2068 = vmatprep.mubr.bf16.mxu0 %v2311_v3  ;;  %v2988_v37 = vld [vmem:[%s3699_s1 + $0x5f8] sm:$0xff]  }
  0x87   :  { %2109 = vmatprep.mubr.bf16.mxu1 %v2313_v7 }
  0x88   :  { %2695 = vmatpush3.bf16.msra.mxu0 %v2933_v38  ;;  %v2989_v38 = vld [vmem:[%s3699_s1 + $0x538] sm:$0xff]  }
  0x89   :  { %2717 = vmatpush3.bf16.msra.mxu1 %v2934_v39  ;;  %2696 = vmatprep.subr.bf16.mxu0 %v2935_v40  ;;  %v2990_v39 = vld [vmem:[%s3699_s1 + $0x5b8] sm:$0xff]   ;;  %v31_v40 = vld [vmem:[%s3700_s0 + $0x50] sm:$0xff] }
  0x8a   :  { %2718 = vmatprep.subr.bf16.mxu1 %v2936_v41  ;;  %v43_v41 = vld [vmem:[%s3700_s0 + $0xb0] sm:$0xff] }
  0x8c   :  { %2697 = vmatpush3.bf16.msra.mxu0 %v2937_v42  ;;  %v32_v42 = vld [vmem:[%s3700_s0 + $0x58] sm:$0xff] }
  0x8d   :  { %2719 = vmatpush3.bf16.msra.mxu1 %v2938_v43  ;;  %2698 = vmatprep.subr.bf16.mxu0 %v2939_v44  ;;  %v44_v43 = vld [vmem:[%s3700_s0 + $0xb8] sm:$0xff]  ;;  %v2314_v44 = vcombine.low %v31_v40, %v43_v41 }
  0x8e   :  { %2720 = vmatprep.subr.bf16.mxu1 %v2940_v45  ;;  %v2315_v45 = vcombine.high %v31_v40, %v43_v41 }
  0x90   :  { %2699 = vmatpush3.bf16.msra.mxu0 %v2941_v46  ;;  %v2316_v46 = vcombine.low %v32_v42, %v44_v43 }
  0x91   :  { %2721 = vmatpush3.bf16.msra.mxu1 %v2942_v47  ;;  %2700 = vmatprep.subr.bf16.mxu0 %v2943_v48  ;;  %v2317_v47 = vcombine.high %v32_v42, %v44_v43 }
  0x92   :  { %2722 = vmatprep.subr.bf16.mxu1 %v2944_v49 }
  0x94   :  { %2701 = vmatpush3.bf16.msra.mxu0 %v2945_v50  ;;  %v2293_v50 = vld [vmem:[%s3701_s2] ss:$0 sm:$0xff] }
  0x95   :  { %2723 = vmatpush3.bf16.msra.mxu1 %v2946_v51  ;;  %2702 = vmatprep.subr.bf16.mxu0 %v2947_v52 }
  0x96   :  { %2724 = vmatprep.subr.bf16.mxu1 %v2948_v53 }
  0x98   :  { %2703 = vmatpush3.bf16.msra.mxu0 %v2949_v54 }
  0x99   :  { %2725 = vmatpush3.bf16.msra.mxu1 %v2950_v55  ;;  %2704 = vmatprep.subr.bf16.mxu0 %v2951_v56 }
  0x9a   :  { %2726 = vmatprep.subr.bf16.mxu1 %v2952_v57 }
  0x9c   :  { %2705 = vmatpush3.bf16.msra.mxu0 %v2953_v58 }
  0x9d   :  { %2727 = vmatpush3.bf16.msra.mxu1 %v2954_v59  ;;  %2706 = vmatprep.subr.bf16.mxu0 %v2955_v60 }
  0x9e   :  { %2728 = vmatprep.subr.bf16.mxu1 %v2956_v61 }
  0xa0   :  { %2707 = vmatpush3.bf16.msra.mxu0 %v2957_v62 }
  0xa1   :  { %2729 = vmatpush3.bf16.msra.mxu1 %v2958_v63  ;;  %2736 = vmatprep.subr.bf16.mxu0 %v2959_v8 }
  0xa2   :  { %2758 = vmatprep.subr.bf16.mxu1 %v2960_v9 }
  0xa3   :  { %2069 = vmatmul.mubr.bf16.vlgmr.msra.gmra.mrb[16].mxu0 %v2310_v2  ;;  %v2991_v2 = vld [vmem:[%s3702_s3] sm:$0xff]  }
  0xa4   :  { %2110 = vmatmul.mubr.bf16.vlgmr.msra.gmra.mrb[16].mxu1 %v2312_v6  ;;  %2737 = vmatpush3.bf16.msra.mxu0 %v2961_v10 }
  0xa5   :  { %2759 = vmatpush3.bf16.msra.mxu1 %v2962_v11  ;;  %2738 = vmatprep.subr.bf16.mxu0 %v2963_v12 }
  0xa6   :  { %2760 = vmatprep.subr.bf16.mxu1 %v2964_v13  ;;  %2150 = vmatprep.mubr.bf16.mxu0 %v2315_v45 }
  0xa7   :  { %2191 = vmatprep.mubr.bf16.mxu1 %v2317_v47 }
  0xa8   :  { %2739 = vmatpush3.bf16.msra.mxu0 %v2965_v14 }
  0xa9   :  { %2761 = vmatpush3.bf16.msra.mxu1 %v2966_v15  ;;  %2740 = vmatprep.subr.bf16.mxu0 %v2967_v16 }
  0xaa   :  { %2762 = vmatprep.subr.bf16.mxu1 %v2968_v17 }
  0xac   :  { %2741 = vmatpush3.bf16.msra.mxu0 %v2969_v18  ;;  %v2992_v18 = vld [vmem:[%s3702_s3 + $0x8] sm:$0xff]  }
  0xad   :  { %2763 = vmatpush3.bf16.msra.mxu1 %v2970_v19  ;;  %2742 = vmatprep.subr.bf16.mxu0 %v2971_v20  ;;  %v2993_v20 = vld [vmem:[%s3702_s3 + $0x10] sm:$0xff]  }
  0xae   :  { %2764 = vmatprep.subr.bf16.mxu1 %v2972_v21  ;;  %v2994_v21 = vld [vmem:[%s3702_s3 + $0x18] sm:$0xff]  }
  0xb0   :  { %2743 = vmatpush3.bf16.msra.mxu0 %v2973_v22 }
  0xb1   :  { %2765 = vmatpush3.bf16.msra.mxu1 %v2974_v23  ;;  %2744 = vmatprep.subr.bf16.mxu0 %v2975_v24 }
  0xb2   :  { %2766 = vmatprep.subr.bf16.mxu1 %v2976_v25 }
  0xb4   :  { %2745 = vmatpush3.bf16.msra.mxu0 %v2977_v26 }
  0xb5   :  { %2767 = vmatpush3.bf16.msra.mxu1 %v2978_v27  ;;  %2746 = vmatprep.subr.bf16.mxu0 %v2979_v28 }
  0xb6   :  { %2768 = vmatprep.subr.bf16.mxu1 %v2980_v29 }
  0xb8   :  { %2747 = vmatpush3.bf16.msra.mxu0 %v2981_v30 }
  0xb9   :  { %2769 = vmatpush3.bf16.msra.mxu1 %v2982_v31  ;;  %2748 = vmatprep.subr.bf16.mxu0 %v2983_v32 }
  0xba   :  { %2770 = vmatprep.subr.bf16.mxu1 %v2984_v33 }
  0xbc   :  { %2749 = vmatpush3.bf16.msra.mxu0 %v2985_v34 }
  0xbd   :  { %2771 = vmatpush3.bf16.msra.mxu1 %v2986_v35  ;;  %2750 = vmatprep.subr.bf16.mxu0 %v2987_v36 }
  0xbe   :  { %2772 = vmatprep.subr.bf16.mxu1 %v2988_v37 }
  0xc0   :  { %2751 = vmatpush3.bf16.msra.mxu0 %v2989_v38 }
  0xc1   :  { %2773 = vmatpush3.bf16.msra.mxu1 %v2990_v39  ;;  %2785 = vmatprep.subr.bf16.mxu0 %v2995_v1 }
  0xc3   :  { %2151 = vmatmul.mubr.bf16.vlgmr.msra.gmra.mrb[20].mxu0 %v2314_v44 }
  0xc4   :  { %2192 = vmatmul.mubr.bf16.vlgmr.msra.gmra.mrb[20].mxu1 %v2316_v46  ;;  %2786 = vmatpush3.bf16.msra.mxu0 %v2991_v2 }
  0xc5   :  { %2787 = vmatprep.subr.bf16.mxu0 %v2995_v1  ;;  %2793 = vmatprep.mubr.msk.bf16.mxu0 %vm2996_vm0, %v2995_v1 }
  0xc8   :  { %2788 = vmatpush3.bf16.msra.mxu0 %v2992_v18 }
  0xc9   :  { %2789 = vmatprep.subr.bf16.mxu0 %v2995_v1 }
  0xcc   :  { %2790 = vmatpush3.bf16.msra.mxu0 %v2993_v20 }
  0xcd   :  { %2791 = vmatprep.subr.bf16.mxu0 %v2995_v1 }
  0xd0   :  { %2792 = vmatpush3.bf16.msra.mxu0 %v2994_v21 }
  0xf6   :  { %v2532_v48 = vpop.f32.mrb[0].mxu0 }
  0xf7   :  { %v2554_v49 = vpop.f32.mrb[0].mxu1  ;;  %v2533_v51 = vpop.f32.mrb[1].mxu0 }
  0xf8   :  { %v2534_v52 = vadd.f32 %v2533_v51, %v2532_v48  ;;  %v2555_v53 = vpop.f32.mrb[1].mxu1  ;;  %v2535_v54 = vpop.f32.mrb[2].mxu0 }
  0xf9   :  { %v2556_v55 = vadd.f32 %v2555_v53, %v2554_v49  ;;  %v2557_v56 = vpop.f32.mrb[2].mxu1  ;;  %v2536_v57 = vpop.f32.mrb[3].mxu0 }
  0xfa   :  { %v1743_v58 = vadd.f32 %v2534_v52, %v2293_v50  ;;  %v2537_v59 = vadd.f32 %v2536_v57, %v2535_v54  ;;  %v2558_v60 = vpop.f32.mrb[3].mxu1 }
  0xfb   :  { %v2559_v61 = vadd.f32 %v2558_v60, %v2557_v56 }
  0xfc   :  { %v1784_v62 = vadd.f32 %v2556_v55, %v1743_v58  ;;  %v1746_v63 = vadd.f32 %v2537_v59, %v2293_v50 }
  0xfe   :  { %v1787_v0 = vadd.f32 %v2559_v61, %v1746_v63 }
 0x116   :  { %v2576_v3 = vpop.f32.mrb[4].mxu0 }
 0x117   :  { %v2598_v4 = vpop.f32.mrb[4].mxu1  ;;  %v2577_v5 = vpop.f32.mrb[5].mxu0 }
 0x118   :  { %v2578_v6 = vadd.f32 %v2577_v5, %v2576_v3  ;;  %v2599_v7 = vpop.f32.mrb[5].mxu1  ;;  %v2579_v8 = vpop.f32.mrb[6].mxu0 }
 0x119   :  { %v2600_v9 = vadd.f32 %v2599_v7, %v2598_v4  ;;  %v2601_v10 = vpop.f32.mrb[6].mxu1  ;;  %v2580_v11 = vpop.f32.mrb[7].mxu0 }
 0x11a   :  { %v1825_v12 = vadd.f32 %v2578_v6, %v1784_v62  ;;  %v2581_v13 = vadd.f32 %v2580_v11, %v2579_v8  ;;  %v2602_v14 = vpop.f32.mrb[7].mxu1 }
 0x11b   :  { %v2603_v15 = vadd.f32 %v2602_v14, %v2601_v10 }
 0x11c   :  { %v1866_v16 = vadd.f32 %v2600_v9, %v1825_v12  ;;  %v1828_v17 = vadd.f32 %v2581_v13, %v1787_v0 }
 0x11e   :  { %v1869_v19 = vadd.f32 %v2603_v15, %v1828_v17 }
 0x136   :  { %v2620_v22 = vpop.f32.mrb[8].mxu0 }
 0x137   :  { %v2642_v23 = vpop.f32.mrb[8].mxu1  ;;  %v2621_v24 = vpop.f32.mrb[9].mxu0 }
 0x138   :  { %v2643_v25 = vpop.f32.mrb[9].mxu1  ;;  %v2622_v26 = vadd.f32 %v2621_v24, %v2620_v22  ;;  %v2623_v28 = vpop.f32.mrb[10].mxu0 }
 0x139   :  { %v2644_v27 = vadd.f32 %v2643_v25, %v2642_v23  ;;  %v2645_v29 = vpop.f32.mrb[10].mxu1  ;;  %v2624_v30 = vpop.f32.mrb[11].mxu0  ;;  %v2510_v25 = vld [vmem:[%s3703_s4] ss:$0 sm:$0xff] }
 0x13a   :  { %v2646_v31 = vpop.f32.mrb[11].mxu1  ;;  %v1907_v32 = vadd.f32 %v2622_v26, %v1866_v16  ;;  %v2625_v33 = vadd.f32 %v2624_v30, %v2623_v28 }
 0x13b   :  { %v2647_v34 = vadd.f32 %v2646_v31, %v2645_v29 }
 0x13c   :  { %v1948_v35 = vadd.f32 %v2644_v27, %v1907_v32  ;;  %v1910_v36 = vadd.f32 %v2625_v33, %v1869_v19 }
 0x13e   :  { %v1951_v37 = vadd.f32 %v2647_v34, %v1910_v36 }
 0x156   :  { %v2664_v38 = vpop.f32.mrb[12].mxu0 }
 0x157   :  { %v2686_v39 = vpop.f32.mrb[12].mxu1  ;;  %v2665_v40 = vpop.f32.mrb[13].mxu0 }
 0x158   :  { %v2666_v41 = vadd.f32 %v2665_v40, %v2664_v38  ;;  %v2687_v42 = vpop.f32.mrb[13].mxu1  ;;  %v2667_v43 = vpop.f32.mrb[14].mxu0 }
 0x159   :  { %v2688_v44 = vadd.f32 %v2687_v42, %v2686_v39  ;;  %v2689_v45 = vpop.f32.mrb[14].mxu1  ;;  %v2668_v46 = vpop.f32.mrb[15].mxu0 }
 0x15a   :  { %v1989_v47 = vadd.f32 %v2666_v41, %v1948_v35  ;;  %v2669_v48 = vadd.f32 %v2668_v46, %v2667_v43  ;;  %v2690_v49 = vpop.f32.mrb[15].mxu1 }
 0x15b   :  { %v2691_v50 = vadd.f32 %v2690_v49, %v2689_v45 }
 0x15c   :  { %v2030_v51 = vadd.f32 %v2688_v44, %v1989_v47  ;;  %v1992_v52 = vadd.f32 %v2669_v48, %v1951_v37 }
 0x15e   :  { %v2033_v53 = vadd.f32 %v2691_v50, %v1992_v52 }
 0x176   :  { %v2708_v54 = vpop.f32.mrb[16].mxu0 }
 0x177   :  { %v2730_v55 = vpop.f32.mrb[16].mxu1  ;;  %v2709_v56 = vpop.f32.mrb[17].mxu0 }
 0x178   :  { %v2710_v57 = vadd.f32 %v2709_v56, %v2708_v54  ;;  %v2731_v58 = vpop.f32.mrb[17].mxu1  ;;  %v2711_v59 = vpop.f32.mrb[18].mxu0 }
 0x179   :  { %v2732_v60 = vadd.f32 %v2731_v58, %v2730_v55  ;;  %v2733_v61 = vpop.f32.mrb[18].mxu1  ;;  %v2712_v62 = vpop.f32.mrb[19].mxu0 }
 0x17a   :  { %v2071_v63 = vadd.f32 %v2710_v57, %v2030_v51  ;;  %v2713_v0 = vadd.f32 %v2712_v62, %v2711_v59  ;;  %v2734_v1 = vpop.f32.mrb[19].mxu1 }
 0x17b   :  { %v2735_v2 = vadd.f32 %v2734_v1, %v2733_v61 }
 0x17c   :  { %v2112_v3 = vadd.f32 %v2732_v60, %v2071_v63  ;;  %v2074_v4 = vadd.f32 %v2713_v0, %v2033_v53 }
 0x17e   :  { %v2115_v5 = vadd.f32 %v2735_v2, %v2074_v4 }
 0x196   :  { %v2752_v6 = vpop.f32.mrb[20].mxu0 }
 0x197   :  { %v2774_v7 = vpop.f32.mrb[20].mxu1  ;;  %v2753_v8 = vpop.f32.mrb[21].mxu0 }
 0x198   :  { %v2775_v9 = vpop.f32.mrb[21].mxu1  ;;  %v2754_v10 = vadd.f32 %v2753_v8, %v2752_v6  ;;  %v2755_v12 = vpop.f32.mrb[22].mxu0 }
 0x199   :  { %v2776_v11 = vadd.f32 %v2775_v9, %v2774_v7  ;;  %v2777_v13 = vpop.f32.mrb[22].mxu1  ;;  %v2756_v14 = vpop.f32.mrb[23].mxu0 }
 0x19a   :  { %v2778_v15 = vpop.f32.mrb[23].mxu1  ;;  %v2153_v16 = vadd.f32 %v2754_v10, %v2112_v3  ;;  %v2757_v17 = vadd.f32 %v2756_v14, %v2755_v12 }
 0x19b   :  { %v2779_v18 = vadd.f32 %v2778_v15, %v2777_v13 }
 0x19c   :  { %v2194_v19 = vadd.f32 %v2776_v11, %v2153_v16  ;;  %v2156_v20 = vadd.f32 %v2757_v17, %v2115_v5 }
 0x19e   :  { %v2197_v21 = vadd.f32 %v2779_v18, %v2156_v20  ;;  %v2200_v22 = vmax.f32 %v2194_v19, 0.0 }
 0x1a0   :  { %v2201_v23 = vmax.f32 %v2197_v21, 0.0 }
 0x1a2   :  { %v2202_v24 = vpack.c.bf16 %v2201_v23, %v2200_v22 }
 0x1a4   :  { %2794 = vmatmul.mubr.msk.bf16.vlgmr.msra.gmra.mrb[24].mxu0 %vm2242_vm1, %v2202_v24 }
 0x277   :  { %v2280_v26 = vpop.f32.mrb[24].mxu0 }
 0x278   :  { %v2281_v27 = vadd.f32 %v2510_v25, %v2280_v26  ;;  %v2795_v28 = vpop.f32.mrb[25].mxu0 }
 0x279   :  { %v2283_v29 = vpop.f32.mrb[26].mxu0 }
 0x27a   :  { %2287 = vst [vmem:[%s3704_s5] sm:$0xff] %v2281_v27  ;;  %v2284_v30 = vadd.f32 %v2510_v25, %v2283_v29  ;;  %v2796_v31 = vpop.f32.mrb[27].mxu0 }
 0x27c   :  { %2288 = vst [vmem:[%s3704_s5 + $0x8] sm:$0xff] %v2284_v30 }

// kernel: simple_cnn_forward.2
= control target key start
LH: loop header
LB: loop body
LE: loop exit
PB: predicated region body
PF: predicated region fallthrough
CT: control target
= control target key end

     0   :  { %s13706_s18 = smov 0   ;;  %s16904_s0 = inlined_call_operand.vmem [shape: bf16[2,256,16,8], index: 0, kind: input, shape index: {}]   ;;  %s16905_s1 = inlined_call_operand.vmem [shape: bf16[9,8,32], index: 1, kind: input, shape index: {}]   ;;  %s16906_s2 = inlined_call_operand.vmem [shape: f32[1,32], index: 2, kind: input, shape index: {}]   ;;  %s16907_s3 = inlined_call_operand.vmem [shape: bf16[9,32,64], index: 3, kind: input, shape index: {}]   ;;  %s16908_s4 = inlined_call_operand.vmem [shape: f32[1,64], index: 4, kind: input, shape index: {}]   ;;  %s16909_s5 = inlined_call_operand.vmem [shape: bf16[2,48,64], index: 5, kind: output, shape index: {}]  }
   0x1 LB: > { %s9268_s19 = sadd.s32 4294967295, %s13673_s18   ;;  %p9272_p0 = scmp.ge.s32.totalorder %s13673_s18, 1  ;;  %s13673_s18 = sphi %s13706_s18, %s15_s18  }
   0x2   : > { %p187_p1 = scmp.lt.s32.totalorder %s13673_s18, 3 }
   0x4   : > { %p188_p2 = pnand %p9272_p0, %p187_p1 }
   0x6   : > { %191 = sbr.rel (%p188_p2) target bundleno = 2230 (0x8b6), region = 40 }
   0xd   : > { %vm1103_vm0 = vcmask 1043456   ;;  %v9550_v0 = vld [vmem:[%s16905_s1 + $0xc] sm:$0xf]  ;;  %v9340_v1 = vld [vmem:[%s16905_s1 + $0x4] sm:$0xf]  ;;  %p215_p3 = scmp.lt.s32.totalorder %s9268_s19, 1 }
   0xe   : > { %13469 = vmatprep.subr.msk.bf16.mxu0 %vm1103_vm0, %v9550_v0  ;;  %13466 = vmatprep.subr.msk.bf16.mxu1 %vm1103_vm0, %v9340_v1  ;;  %v13723_v2 = vsel %vm1103_vm0, %v9550_v0, 0  ;;  %v1105_v3 = vsel %vm1103_vm0, %v9340_v1, 0  ;;  %v9615_v4 = vld [vmem:[%s16905_s1 + $0x10] sm:$0xf]  ;;  %vm910_vm1 = vcmask 64512   ;;  %vm715_vm2 = vcmask 1046528  }
   0xf   : > { %17119 = vst [vmem:[#allocation2_spill] sm:$0xff] %v13723_v2  ;;  %11233 = vmatpush3.bf16.msra.mxu0 %v13723_v2  ;;  %10843 = vmatpush3.bf16.msra.mxu1 %v1105_v3  ;;  %s17652_s19 = smov (!%p215_p3, %s9268_s19), 1  ;;  %v3853_v22 = vsel %vm1103_vm0, %v9615_v4, 0  ;;  %v13789_v25 = vld [vmem:[%s16905_s1 + $0x14] sm:$0xf]  ;;  %vm7446_vm3 = vcmask 261120  }
  0x10   : > { %13471 = vmatprep.subr.msk.bf16.mxu0 %vm1103_vm0, %v9615_v4  ;;  %s10124_s26 = sshll.u32 %s17652_s19, 11  ;;  %s13476_s13 = smul.u32 24, %s17652_s19  ;;  %vm9206_vm4 = vcmask 519168  }
  0x11   : > { %s13737_s29 = scalar_lea.vmem %s16904_s0, %s10124_s26 }
  0x12   : > { %v244_v5 = vld [vmem:[%s13737_s29 + $0x80] sm:$0xf]  ;;  %v246_v6 = vld [vmem:[%s13737_s29 + $0x88] sm:$0xf]  ;;  %v248_v7 = vld [vmem:[%s13737_s29 + $0x90] sm:$0xf]  ;;  %s16887_s16 = scalar_lea.vmem %s16909_s5, %s13476_s13 }
  0x13   : > { %v13742_v8 = vcombine.low %v244_v5, %v246_v6  ;;  %v13745_v9 = vld [vmem:[%s13737_s29 + $0x200] sm:$0xf]  ;;  %v13748_v10 = vld [vmem:[%s13737_s29 + $0x208] sm:$0xf]  ;;  %v13750_v11 = vcombine.low %v246_v6, %v248_v7  ;;  %v13753_v12 = vld [vmem:[%s13737_s29 + $0x210] sm:$0xf] }
  0x14   : > { %17120 = vst [vmem:[#allocation3_spill] sm:$0xff] %v13748_v10  ;;  %17122 = vst [vmem:[#allocation5_spill] sm:$0xff] %v13753_v12  ;;  %v250_v13 = vld [vmem:[%s13737_s29 + $0x98] sm:$0xf]  ;;  %v13763_v15 = vcombine.low %v13745_v9, %v13748_v10  ;;  %v252_v16 = vld [vmem:[%s13737_s29 + $0xa0] sm:$0xf] }
  0x15   : > { %17121 = vst [vmem:[#allocation4_spill] sm:$0xff] %v13750_v11  ;;  %v13757_v14 = vld [vmem:[%s13737_s29 + $0x218] sm:$0xf]  ;;  %10844 = vmatprep.mubr.msk.bf16.mxu1 %vm910_vm1, %v13742_v8  ;;  %v254_v17 = vld [vmem:[%s13737_s29 + $0xa8] sm:$0xf]  ;;  %v13774_v20 = vcombine.low %v248_v7, %v250_v13 }
  0x16   : > { %17123 = vst [vmem:[#allocation6_spill] sm:$0xff] %v13763_v15  ;;  %v13770_v19 = vld [vmem:[%s13737_s29 + $0x220] sm:$0xf]  ;;  %11234 = vmatprep.mubr.msk.bf16.mxu0 %vm910_vm1, %v13763_v15  ;;  %v13778_v21 = vcombine.low %v13753_v12, %v13757_v14  ;;  %v13782_v23 = vld [vmem:[%s13737_s29 + $0x228] sm:$0xf]  ;;  %v13784_v24 = vcombine.low %v252_v16, %v254_v17 }
  0x17   : > { %17124 = vst [vmem:[#allocation7_spill] sm:$0xff] %v13774_v20  ;;  %10845 = vmatmul.mubr.msk.bf16.vlgmr.msra.gmra.mrb[0].mxu1 %vm910_vm1, %v13774_v20  ;;  %v13797_v26 = vcombine.low %v13770_v19, %v13782_v23  ;;  %v256_v27 = vld [vmem:[%s13737_s29 + $0xb0] sm:$0xf]  ;;  %v258_v28 = vld [vmem:[%s13737_s29 + $0xb8] sm:$0xf] }
  0x18   : > { %17125 = vst [vmem:[#allocation8_spill] sm:$0xff] %v13778_v21  ;;  %17126 = vst [vmem:[#allocation9_spill] sm:$0xff] %v13784_v24  ;;  %11235 = vmatmul.mubr.msk.bf16.vlgmr.msra.gmra.mrb[0].mxu0 %vm910_vm1, %v13778_v21  ;;  %10848 = vmatprep.mubr.msk.bf16.mxu1 %vm910_vm1, %v13784_v24  ;;  %v13804_v29 = vld [vmem:[%s13737_s29 + $0x230] sm:$0xf]  ;;  %v13807_v30 = vld [vmem:[%s13737_s29 + $0x238] sm:$0xf]  ;;  %v13817_v35 = vcombine.low %v256_v27, %v258_v28 }
  0x19   : > { %17127 = vst [vmem:[#allocation10_spill] sm:$0xff] %v13797_v26  ;;  %11363 = vmatpush3.bf16.msra.mxu0 %v3853_v22  ;;  %v262_v31 = vld [vmem:[%s13737_s29 + $0x100] sm:$0xf]  ;;  %11238 = vmatprep.mubr.msk.bf16.mxu0 %vm910_vm1, %v13797_v26  ;;  %v263_v32 = vld [vmem:[%s13737_s29 + $0x108] sm:$0xf]  ;;  %v13821_v36 = vcombine.low %v13804_v29, %v13807_v30 }
  0x1a   : > { %v298_v33 = vld [vmem:[%s13737_s29 + $0x280] sm:$0xf]  ;;  %v300_v34 = vld [vmem:[%s13737_s29 + $0x288] sm:$0xf]  ;;  %13472 = vmatprep.subr.msk.bf16.mxu0 %vm1103_vm0, %v13789_v25  ;;  %17128 = vst [vmem:[#allocation11_spill] sm:$0xff] %v13817_v35  ;;  %v13824_v38 = vcombine.low %v262_v31, %v263_v32 }
  0x1b   : > { %17129 = vst [vmem:[#allocation12_spill] sm:$0xff] %v13821_v36  ;;  %v264_v37 = vld [vmem:[%s13737_s29 + $0x110] sm:$0xf]  ;;  %v13826_v39 = vcombine.low %v298_v33, %v300_v34  ;;  %v265_v41 = vld [vmem:[%s13737_s29 + $0x118] sm:$0xf] }
  0x1c   : > { %17130 = vst [vmem:[#allocation13_spill] sm:$0xff] %v13824_v38  ;;  %v13828_v40 = vcombine.low %v263_v32, %v264_v37  ;;  %v266_v42 = vld [vmem:[%s13737_s29 + $0x120] sm:$0xf]  ;;  %v302_v43 = vld [vmem:[%s13737_s29 + $0x290] sm:$0xf]  ;;  %v13851_v52 = vcombine.low %v264_v37, %v265_v41 }
  0x1d   : > { %v13833_v44 = vcombine.low %v265_v41, %v266_v42  ;;  %v267_v45 = vld [vmem:[%s13737_s29 + $0x128] sm:$0xf]  ;;  %v268_v46 = vld [vmem:[%s13737_s29 + $0x130] sm:$0xf]  ;;  %v335_v47 = vld [vmem:[%s13737_s29 + $0x404] ss:$8 sps:$4 sm:$0xff]  }
  0x1e   : > { %v304_v48 = vld [vmem:[%s13737_s29 + $0x298] sm:$0xf]  ;;  %v306_v49 = vld [vmem:[%s13737_s29 + $0x2a0] sm:$0xf]  ;;  %v308_v50 = vld [vmem:[%s13737_s29 + $0x2a8] sm:$0xf]  ;;  %v13849_v51 = vcombine.low %v267_v45, %v268_v46  ;;  %v539_v56 = vunpack.c.l.bf16 %v335_v47  ;;  %v541_v58 = vunpack.c.h.bf16 %v335_v47  ;;  %v13861_v62 = vcombine.low %v266_v42, %v267_v45 }
  0x1f   : > { %10849 = vmatmul.mubr.msk.bf16.gmra.mrb[4].mxu1 %vm910_vm1, %v13817_v35  ;;  %17131 = vst [vmem:[#allocation14_spill] sm:$0xff] %v13851_v52  ;;  %v334_v53 = vld [vmem:[%s13737_s29 + $0x400] sm:$0xf]  ;;  %v336_v54 = vld [vmem:[%s13737_s29 + $0x408] sm:$0xf]  ;;  %v13859_v61 = vcombine.low %v302_v43, %v304_v48  ;;  %v13863_v63 = vcombine.low %v306_v49, %v308_v50 }
  0x20   : > { %11239 = vmatmul.mubr.msk.bf16.gmra.mrb[4].mxu0 %vm910_vm1, %v13821_v36  ;;  %10852 = vmatprep.mubr.msk.bf16.mxu1 %vm910_vm1, %v13824_v38  ;;  %v538_v55 = vunpack.c.l.bf16 %v334_v53  ;;  %v540_v57 = vunpack.c.l.bf16 %v336_v54  ;;  %v13856_v59 = vld [vmem:[%s13737_s29 + $0x410] sm:$0xf]  ;;  %v339_v60 = vld [vmem:[%s13737_s29 + $0x414] ss:$8 sps:$4 sm:$0xff]   ;;  %17132 = vst [vmem:[#allocation15_spill] sm:$0xff] %v13861_v62  ;;  %v813_v3 = vrot.slane %v539_v56, 1 }
  0x21   : > { %11242 = vmatprep.mubr.msk.bf16.mxu0 %vm910_vm1, %v13826_v39  ;;  %v542_v0 = vunpack.c.l.bf16 %v13856_v59  ;;  %v816_v5 = vrot.slane %v541_v58, 1  ;;  %v13867_v6 = vld [vmem:[%s13737_s29 + $0x418] sm:$0xf]  ;;  %v543_v13 = vunpack.c.l.bf16 %v339_v60  ;;  %v545_v17 = vunpack.c.h.bf16 %v339_v60  ;;  %v342_v22 = vld [vmem:[%s13737_s29 + $0x420] sm:$0xf] }
  0x22   : > { %v812_v1 = vrot.slane %v538_v55, 1  ;;  %v815_v4 = vrot.slane %v540_v57, 1  ;;  %v13870_v7 = vld [vmem:[%s13737_s29 + $0x138] sm:$0xf]  ;;  %v544_v16 = vunpack.c.l.bf16 %v13867_v6  ;;  %v343_v27 = vld [vmem:[%s13737_s29 + $0x424] ss:$8 sps:$4 sm:$0xff]   ;;  %v546_v34 = vunpack.c.l.bf16 %v342_v22 }
  0x23   : > { %v310_v28 = vld [vmem:[%s13737_s29 + $0x2b0] sm:$0xf]  ;;  %v818_v33 = vrot.slane %v542_v0, 1  ;;  %v819_v41 = vrot.slane %v543_v13, 1  ;;  %v822_v43 = vrot.slane %v545_v17, 1  ;;  %v13890_v47 = vcombine.low %v268_v46, %v13870_v7 }
  0x24   : > { %v814_v31 = vsel %vm715_vm2, %v812_v1, %v813_v3  ;;  %v817_v32 = vsel %vm715_vm2, %v815_v4, %v816_v5  ;;  %v821_v42 = vrot.slane %v544_v16, 1  ;;  %v344_v45 = vld [vmem:[%s13737_s29 + $0x428] sm:$0xf]  ;;  %v312_v48 = vld [vmem:[%s13737_s29 + $0x2b8] sm:$0xf]  ;;  %v547_v49 = vunpack.c.l.bf16 %v343_v27 }
  0x25   : > { %v13882_v37 = vpack.c.bf16 %v817_v32, %v814_v31  ;;  %17134 = vst [vmem:[#allocation17_spill] sm:$0xff] %v13890_v47  ;;  %v548_v50 = vunpack.c.l.bf16 %v344_v45  ;;  %v549_v55 = vunpack.c.h.bf16 %v343_v27  ;;  %v346_v56 = vld [vmem:[%s13737_s29 + $0x430] sm:$0xf]  ;;  %v347_v57 = vld [vmem:[%s13737_s29 + $0x434] ss:$8 sps:$4 sm:$0xff]   ;;  %v820_v58 = vsel %vm715_vm2, %v818_v33, %v819_v41 }
  0x26   : > { %v823_v60 = vsel %vm715_vm2, %v821_v42, %v822_v43  ;;  %v824_v0 = vrot.slane %v546_v34, 1  ;;  %v550_v1 = vunpack.c.l.bf16 %v346_v56  ;;  %v825_v4 = vrot.slane %v547_v49, 1  ;;  %v348_v16 = vld [vmem:[%s13737_s29 + $0x438] sm:$0xf]  ;;  %v322_v18 = vld [vmem:[%s13737_s29 + $0x330] sm:$0xf] }
  0x27   : > { %10853 = vmatmul.mubr.msk.bf16.gmra.mrb[8].mxu1 %vm910_vm1, %v13851_v52  ;;  %17133 = vst [vmem:[#allocation16_spill] sm:$0xff] %v13882_v37  ;;  %v13897_v3 = vpack.c.bf16 %v823_v60, %v820_v58  ;;  %v827_v5 = vrot.slane %v548_v50, 1  ;;  %v828_v13 = vrot.slane %v549_v55, 1  ;;  %v13900_v46 = vcombine.low %v310_v28, %v312_v48  ;;  %v272_v50 = vld [vmem:[%s13737_s29 + $0x188] sm:$0xf] }
  0x28   : > { %11243 = vmatmul.mubr.msk.bf16.gmra.mrb[8].mxu0 %vm910_vm1, %v13859_v61  ;;  %10856 = vmatprep.mubr.msk.bf16.mxu1 %vm910_vm1, %v13861_v62  ;;  %v551_v17 = vunpack.c.l.bf16 %v347_v57  ;;  %v552_v31 = vunpack.c.l.bf16 %v348_v16  ;;  %v553_v32 = vunpack.c.h.bf16 %v347_v57  ;;  %v13902_v27 = vcombine.low %v334_v53, %v336_v54  ;;  %v13922_v55 = vld [vmem:[%s13737_s29 + $0x190] sm:$0xf]  ;;  %v13925_v57 = vld [vmem:[%s13737_s29 + $0x198] sm:$0xf]  ;;  %v13931_v60 = vld [vmem:[%s13737_s29 + $0x1a0] sm:$0xf] }
  0x29   : > { %11246 = vmatprep.mubr.msk.bf16.mxu0 %vm910_vm1, %v13863_v63  ;;  %17135 = vst [vmem:[#allocation18_spill] sm:$0xff] %v13897_v3  ;;  %v826_v33 = vsel %vm715_vm2, %v824_v0, %v825_v4  ;;  %v829_v34 = vsel %vm715_vm2, %v827_v5, %v828_v13  ;;  %v830_v41 = vrot.slane %v550_v1, 1  ;;  %v13928_v58 = vcombine.low %v272_v50, %v13922_v55  ;;  %v13934_v0 = vld [vmem:[%s13737_s29 + $0x1a8] sm:$0xf]  ;;  %v13937_v1 = vld [vmem:[%s13737_s29 + $0x1b0] sm:$0xf] }
  0x2a   : > { %17136 = vst [vmem:[#allocation19_spill] sm:$0xff] %v13902_v27  ;;  %v13906_v42 = vpack.c.bf16 %v829_v34, %v826_v33  ;;  %v831_v43 = vrot.slane %v551_v17, 1  ;;  %v833_v28 = vrot.slane %v552_v31, 1  ;;  %v834_v48 = vrot.slane %v553_v32, 1  ;;  %v318_v34 = vld [vmem:[%s13737_s29 + $0x310] sm:$0xf] }
  0x2b   : > { %17139 = vst [vmem:[#allocation22_spill] sm:$0xff] %v13928_v58  ;;  %v13941_v4 = vcombine.low %v13925_v57, %v13931_v60  ;;  %v13945_v5 = vcombine.low %v13934_v0, %v13937_v1  ;;  %v13949_v13 = vcombine.low %v13856_v59, %v13867_v6  ;;  %v13951_v17 = vcombine.low %v342_v22, %v344_v45  ;;  %v316_v59 = vld [vmem:[%s13737_s29 + $0x300] sm:$0xf]  ;;  %v317_v6 = vld [vmem:[%s13737_s29 + $0x308] sm:$0xf] }
  0x2c   : > { %17137 = vst [vmem:[#allocation20_spill] sm:$0xff] %v13906_v42  ;;  %v832_v53 = vsel %vm715_vm2, %v830_v41, %v831_v43  ;;  %v835_v54 = vsel %vm715_vm2, %v833_v28, %v834_v48  ;;  %v350_v22 = vld [vmem:[%s13737_s29 + $0x480] sm:$0xf]  ;;  %v352_v45 = vld [vmem:[%s13737_s29 + $0x488] sm:$0xf]  ;;  %v13965_v31 = vcombine.low %v346_v56, %v348_v16  ;;  %v13967_v32 = vcombine.low %v316_v59, %v317_v6 }
  0x2d   : > { %v13918_v49 = vpack.c.bf16 %v835_v54, %v832_v53  ;;  %17140 = vst [vmem:[#allocation23_spill] sm:$0xff] %v13941_v4  ;;  %17141 = vst [vmem:[#allocation24_spill] sm:$0xff] %v13945_v5  ;;  %v13969_v33 = vcombine.low %v350_v22, %v352_v45  ;;  %v319_v41 = vld [vmem:[%s13737_s29 + $0x318] sm:$0xf]  ;;  %v354_v56 = vld [vmem:[%s13737_s29 + $0x490] sm:$0xf] }
  0x2e   : > { %17142 = vst [vmem:[#allocation25_spill] sm:$0xff] %v13949_v13  ;;  %17143 = vst [vmem:[#allocation26_spill] sm:$0xff] %v13951_v17  ;;  %v356_v16 = vld [vmem:[%s13737_s29 + $0x498] sm:$0xf]  ;;  %v320_v43 = vld [vmem:[%s13737_s29 + $0x320] sm:$0xf]  ;;  %v13987_v54 = vcombine.low %v318_v34, %v319_v41 }
  0x2f   : > { %10857 = vmatmul.mubr.msk.bf16.gmra.mrb[12].mxu1 %vm910_vm1, %v13890_v47  ;;  %17138 = vst [vmem:[#allocation21_spill] sm:$0xff] %v13918_v49  ;;  %17144 = vst [vmem:[#allocation27_spill] sm:$0xff] %v13965_v31  ;;  %v321_v28 = vld [vmem:[%s13737_s29 + $0x328] sm:$0xf]  ;;  %v358_v48 = vld [vmem:[%s13737_s29 + $0x4a0] sm:$0xf]  ;;  %v13989_v59 = vcombine.low %v354_v56, %v356_v16 }
  0x30   : > { %11247 = vmatmul.mubr.msk.bf16.gmra.mrb[12].mxu0 %vm910_vm1, %v13900_v46  ;;  %10860 = vmatprep.mubr.msk.bf16.mxu1 %vm910_vm1, %v13826_v39  ;;  %17145 = vst [vmem:[#allocation28_spill] sm:$0xff] %v13967_v32  ;;  %17146 = vst [vmem:[#allocation29_spill] sm:$0xff] %v13969_v33  ;;  %v360_v53 = vld [vmem:[%s13737_s29 + $0x4a8] sm:$0xf]  ;;  %v13991_v6 = vcombine.low %v320_v43, %v321_v28  ;;  %v13996_v45 = vld [vmem:[%s13737_s29] sm:$0xf] }
  0x31   : > { %11250 = vmatprep.mubr.msk.bf16.mxu0 %vm910_vm1, %v13902_v27  ;;  %17147 = vst [vmem:[#allocation30_spill] sm:$0xff] %v13987_v54  ;;  %17148 = vst [vmem:[#allocation31_spill] sm:$0xff] %v13989_v59  ;;  %v13993_v22 = vcombine.low %v358_v48, %v360_v53  ;;  %v323_v2 = vld [vmem:[%s13737_s29 + $0x338] sm:$0xf]  ;;  %v271_v41 = vld [vmem:[%s13737_s29 + $0x180] sm:$0xf]  ;;  %v430_v16 = vunpack.c.l.bf16 %v13996_v45 }
  0x32   : > { %17149 = vst [vmem:[#allocation32_spill] sm:$0xff] %v13991_v6  ;;  %v364_v34 = vld [vmem:[%s13737_s29 + $0x4b8] sm:$0xf]  ;;  %v14013_v56 = vld [vmem:[%s13737_s29 + $0x8] sm:$0xf]  ;;  %v14016_v28 = vcombine.low %v322_v18, %v323_v2  ;;  %v14020_v53 = vcombine.low %v271_v41, %v272_v50  ;;  %v14044_v41 = vcombine.low %v13931_v60, %v13934_v0 }
  0x33   : > { %17150 = vst [vmem:[#allocation33_spill] sm:$0xff] %v13993_v22  ;;  %v716_v47 = vrot.slane %v430_v16, 1  ;;  %v14032_v50 = vld [vmem:[%s13737_s29 + $0x10] sm:$0xf]  ;;  %v14047_v16 = vld [vmem:[%s13737_s29 + $0x20] sm:$0xf] }
  0x34   : > { %17151 = vst [vmem:[#allocation34_spill] sm:$0xff] %v14016_v28  ;;  %17153 = vst [vmem:[#allocation36_spill] sm:$0xff] %v14020_v53  ;;  %v325_v52 = vld [vmem:[%s13737_s29 + $0x380] sm:$0xf]  ;;  %v326_v5 = vld [vmem:[%s13737_s29 + $0x388] sm:$0xf]  ;;  %v438_v38 = vunpack.c.l.bf16 %v14047_v16 }
  0x35   : > { %17155 = vst [vmem:[#allocation38_spill] sm:$0xff] %v14044_v41  ;;  %v14081_v36 = vcombine.low %v325_v52, %v326_v5  ;;  %v14084_v21 = vld [vmem:[%s13737_s29 + $0x30] sm:$0xf]  ;;  %v239_v15 = vld [vmem:[%s13737_s29 + $0x34] ss:$8 sps:$4 sm:$0xff]  }
  0x36   : > { %v728_v35 = vrot.slane %v438_v38, 1  ;;  %v442_v5 = vunpack.c.l.bf16 %v14084_v21 }
  0x37   : > { %10861 = vmatmul.mubr.msk.bf16.gmra.mrb[16].mxu1 %vm910_vm1, %v13859_v61  ;;  %17158 = vst [vmem:[#allocation41_spill] sm:$0xff] %v14081_v36 }
  0x38   : > { %11251 = vmatmul.mubr.msk.bf16.gmra.mrb[16].mxu0 %vm910_vm1, %v13949_v13  ;;  %10864 = vmatprep.mubr.msk.bf16.mxu1 %vm910_vm1, %v13863_v63  ;;  %v432_v13 = vunpack.c.l.bf16 %v14013_v56 }
  0x39   : > { %11254 = vmatprep.mubr.msk.bf16.mxu0 %vm910_vm1, %v13951_v17  ;;  %v227_v17 = vld [vmem:[%s13737_s29 + $0x4] ss:$8 sps:$4 sm:$0xff]  }
  0x3a   : > { %v431_v43 = vunpack.c.l.bf16 %v227_v17  ;;  %v433_v27 = vunpack.c.h.bf16 %v227_v17  ;;  %v719_v2 = vrot.slane %v432_v13, 1  ;;  %v231_v17 = vld [vmem:[%s13737_s29 + $0x14] ss:$8 sps:$4 sm:$0xff]   ;;  %v235_v13 = vld [vmem:[%s13737_s29 + $0x24] ss:$8 sps:$4 sm:$0xff]  }
  0x3b   : > { %v441_v58 = vunpack.c.h.bf16 %v235_v13 }
  0x3c   : > { %v717_v62 = vrot.slane %v431_v43, 1  ;;  %v720_v18 = vrot.slane %v433_v27, 1  ;;  %v14051_v43 = vld [vmem:[%s13737_s29 + $0x28] sm:$0xf]  ;;  %v434_v27 = vunpack.c.l.bf16 %v14032_v50 }
  0x3d   : > { %v440_v4 = vunpack.c.l.bf16 %v14051_v43  ;;  %v732_v20 = vrot.slane %v441_v58, 1  ;;  %v327_v58 = vld [vmem:[%s13737_s29 + $0x390] sm:$0xf] }
  0x3e   : > { %v718_v60 = vsel %vm715_vm2, %v716_v47, %v717_v62  ;;  %v14067_v0 = vsel %vm715_vm2, %v719_v2, %v720_v18  ;;  %v722_v47 = vrot.slane %v434_v27, 1 }
  0x3f   : > { %10865 = vmatmul.mubr.msk.bf16.gmra.mrb[20].mxu1 %vm910_vm1, %v13900_v46  ;;  %v14079_v18 = vpack.c.bf16 %v14067_v0, %v718_v60  ;;  %v731_v24 = vrot.slane %v440_v4, 1  ;;  %v328_v4 = vld [vmem:[%s13737_s29 + $0x398] sm:$0xf] }
  0x40   : > { %11255 = vmatmul.mubr.msk.bf16.gmra.mrb[20].mxu0 %vm910_vm1, %v13965_v31  ;;  %10868 = vmatprep.mubr.msk.bf16.mxu1 %vm910_vm1, %v13967_v32  ;;  %v362_v31 = vld [vmem:[%s13737_s29 + $0x4b0] sm:$0xf] }
  0x41   : > { %11258 = vmatprep.mubr.msk.bf16.mxu0 %vm910_vm1, %v13969_v33  ;;  %v14018_v48 = vcombine.low %v362_v31, %v364_v34  ;;  %v14037_v31 = vcombine.low %v13922_v55, %v13925_v57  ;;  %v14040_v34 = vld [vmem:[%s13737_s29 + $0x18] sm:$0xf]  ;;  %v435_v55 = vunpack.c.l.bf16 %v231_v17  ;;  %17157 = vst [vmem:[#allocation40_spill] sm:$0xff] %v14079_v18 }
  0x42   : > { %v14063_v57 = vld [vmem:[%s13737_s29 + $0x1b8] sm:$0xf] }
  0x43   : > { %17152 = vst [vmem:[#allocation35_spill] sm:$0xff] %v14018_v48  ;;  %17154 = vst [vmem:[#allocation37_spill] sm:$0xff] %v14037_v31  ;;  %v14076_v62 = vcombine.low %v13937_v1, %v14063_v57  ;;  %v723_v2 = vrot.slane %v435_v55, 1  ;;  %v14088_v1 = vld [vmem:[%s13737_s29 + $0x38] sm:$0xf]  ;;  %v14112_v55 = vsel %vm715_vm2, %v731_v24, %v732_v20 }
  0x44   : > { %17162 = vst [vmem:[#allocation45_spill] sm:$0xff] %v14112_v55 }
  0x45   : > { %17156 = vst [vmem:[#allocation39_spill] sm:$0xff] %v14076_v62  ;;  %v14095_v52 = vsel %vm715_vm2, %v722_v47, %v723_v2  ;;  %v14118_v47 = vcombine.low %v327_v58, %v328_v4  ;;  %v486_v58 = vunpack.c.l.bf16 %v13748_v10  ;;  %v330_v4 = vld [vmem:[%s13737_s29 + $0x3a8] sm:$0xf]  ;;  %v490_v10 = vunpack.c.l.bf16 %v13757_v14 }
  0x46   : > { %17159 = vst [vmem:[#allocation42_spill] sm:$0xff] %v14095_v52 }
  0x47   : > { %10869 = vmatmul.mubr.msk.bf16.gmra.mrb[24].mxu1 %vm910_vm1, %v13987_v54  ;;  %17164 = vst [vmem:[#allocation47_spill] sm:$0xff] %v14118_v47 }
  0x48   : > { %11259 = vmatmul.mubr.msk.bf16.gmra.mrb[24].mxu0 %vm910_vm1, %v13989_v59  ;;  %10872 = vmatprep.mubr.msk.bf16.mxu1 %vm910_vm1, %v13991_v6 }
  0x49   : > { %11262 = vmatprep.mubr.msk.bf16.mxu0 %vm910_vm1, %v13993_v22 }
  0x4f   : > { %10873 = vmatmul.mubr.msk.bf16.gmra.mrb[28].mxu1 %vm910_vm1, %v14016_v28 }
  0x50   : > { %11263 = vmatmul.mubr.msk.bf16.gmra.mrb[28].mxu0 %vm910_vm1, %v14018_v48  ;;  %10876 = vmatprep.mubr.msk.bf16.mxu1 %vm910_vm1, %v14020_v53  ;;  %v437_v53 = vunpack.c.h.bf16 %v231_v17 }
  0x51   : > { %11266 = vmatprep.mubr.msk.bf16.mxu0 %vm910_vm1, %v13967_v32 }
  0x52   : > { %v726_v26 = vrot.slane %v437_v53, 1  ;;  %v443_v53 = vunpack.c.l.bf16 %v239_v15 }
  0x57   : > { %10877 = vmatmul.mubr.msk.bf16.gmra.mrb[32].mxu1 %vm910_vm1, %v14037_v31  ;;  %v436_v31 = vunpack.c.l.bf16 %v14040_v34 }
  0x58   : > { %11267 = vmatmul.mubr.msk.bf16.gmra.mrb[32].mxu0 %vm910_vm1, %v13987_v54  ;;  %10880 = vmatprep.mubr.msk.bf16.mxu1 %vm910_vm1, %v14044_v41  ;;  %v439_v41 = vunpack.c.l.bf16 %v235_v13 }
  0x59   : > { %11270 = vmatprep.mubr.msk.bf16.mxu0 %vm910_vm1, %v13991_v6  ;;  %v725_v17 = vrot.slane %v436_v31, 1  ;;  %v444_v31 = vunpack.c.l.bf16 %v14088_v1 }
  0x5a   : > { %v729_v13 = vrot.slane %v439_v41, 1  ;;  %v445_v41 = vunpack.c.h.bf16 %v239_v15 }
  0x5b   : > { %v14103_v38 = vsel %vm715_vm2, %v725_v17, %v726_v26  ;;  %v734_v26 = vrot.slane %v442_v5, 1  ;;  %v735_v17 = vrot.slane %v443_v53, 1  ;;  %v737_v15 = vrot.slane %v444_v31, 1  ;;  %v281_v5 = vld [vmem:[%s13737_s29 + $0x204] ss:$8 sps:$4 sm:$0xff]  }
  0x5c   : > { %17160 = vst [vmem:[#allocation43_spill] sm:$0xff] %v14103_v38  ;;  %v14109_v27 = vsel %vm715_vm2, %v728_v35, %v729_v13  ;;  %v14116_v60 = vpack.c.bf16 %v14103_v38, %v14095_v52  ;;  %v4521_v13 = vsel %vm1103_vm0, %v13789_v25, 0  ;;  %v329_v25 = vld [vmem:[%s13737_s29 + $0x3a0] sm:$0xf]  ;;  %v485_v53 = vunpack.c.l.bf16 %v281_v5  ;;  %v293_v52 = vld [vmem:[%s13737_s29 + $0x234] ss:$8 sps:$4 sm:$0xff]  }
  0x5d   : > { %17161 = vst [vmem:[#allocation44_spill] sm:$0xff] %v14109_v27  ;;  %v14122_v2 = vpack.c.bf16 %v14112_v55, %v14109_v27  ;;  %v14133_v20 = vsel %vm715_vm2, %v734_v26, %v735_v17  ;;  %v487_v31 = vunpack.c.h.bf16 %v281_v5  ;;  %v767_v17 = vrot.slane %v486_v58, 1  ;;  %v332_v58 = vld [vmem:[%s13737_s29 + $0x3b8] sm:$0xf] }
  0x5e   : > { %17163 = vst [vmem:[#allocation46_spill] sm:$0xff] %v14116_v60  ;;  %17166 = vst [vmem:[#allocation49_spill] sm:$0xff] %v14133_v20  ;;  %v492_v5 = vunpack.c.l.bf16 %v13770_v19 }
  0x5f   : > { %10881 = vmatmul.mubr.msk.bf16.gmra.mrb[36].mxu1 %vm910_vm1, %v14076_v62  ;;  %17165 = vst [vmem:[#allocation48_spill] sm:$0xff] %v14122_v2  ;;  %v773_v62 = vrot.slane %v490_v10, 1 }
  0x60   : > { %11271 = vmatmul.mubr.msk.bf16.gmra.mrb[36].mxu0 %vm910_vm1, %v14016_v28  ;;  %10884 = vmatprep.mubr.msk.bf16.mxu1 %vm910_vm1, %v14079_v18  ;;  %v738_v18 = vrot.slane %v445_v41, 1  ;;  %v14157_v41 = vcombine.low %v329_v25, %v330_v4  ;;  %v494_v25 = vunpack.c.l.bf16 %v13782_v23  ;;  %v776_v55 = vrot.slane %v492_v5, 1 }
  0x61   : > { %11274 = vmatprep.mubr.msk.bf16.mxu0 %vm910_vm1, %v14081_v36 }
  0x62   : > { %v14136_v24 = vsel %vm715_vm2, %v737_v15, %v738_v18  ;;  %v484_v18 = vunpack.c.l.bf16 %v13745_v9  ;;  %17169 = vst [vmem:[#allocation52_spill] sm:$0xff] %v14157_v41  ;;  %v765_v15 = vrot.slane %v485_v53, 1  ;;  %v488_v9 = vunpack.c.l.bf16 %v13753_v12 }
  0x63   : > { %17167 = vst [vmem:[#allocation50_spill] sm:$0xff] %v14136_v24  ;;  %v14140_v35 = vpack.c.bf16 %v14136_v24, %v14133_v20  ;;  %v779_v27 = vrot.slane %v494_v25, 1  ;;  %v14247_v25 = vld [vmem:[%s13737_s29 + $0x500] ss:$8 sps:$4 sm:$0xff]  }
  0x64   : > { %v764_v26 = vrot.slane %v484_v18, 1  ;;  %v331_v18 = vld [vmem:[%s13737_s29 + $0x3b0] sm:$0xf] }
  0x65   : > { %17168 = vst [vmem:[#allocation51_spill] sm:$0xff] %v14140_v35  ;;  %v14179_v23 = vcombine.low %v331_v18, %v332_v58  ;;  %v14258_v18 = vld [vmem:[%s13737_s29 + $0x510] ss:$8 sps:$4 sm:$0xff]   ;;  %v14261_v58 = vld [vmem:[%s13737_s29 + $0x520] ss:$8 sps:$4 sm:$0xff]  }
  0x66   : > { %v766_v53 = vsel %vm715_vm2, %v764_v26, %v765_v15  ;;  %v496_v26 = vunpack.c.l.bf16 %v13804_v29  ;;  %v497_v29 = vunpack.c.l.bf16 %v293_v52 }
  0x67   : > { %10885 = vmatmul.mubr.msk.bf16.gmra.mrb[40].mxu1 %vm910_vm1, %v14116_v60  ;;  %v770_v60 = vrot.slane %v488_v9, 1  ;;  %17171 = vst [vmem:[#allocation54_spill] sm:$0xff] %v14179_v23 }
  0x68   : > { %11275 = vmatmul.mubr.msk.bf16.gmra.mrb[40].mxu0 %vm910_vm1, %v14118_v47  ;;  %10888 = vmatprep.mubr.msk.bf16.mxu1 %vm910_vm1, %v14122_v2  ;;  %v289_v2 = vld [vmem:[%s13737_s29 + $0x224] ss:$8 sps:$4 sm:$0xff]  }
  0x69   : > { %11364 = vmatprep.mubr.msk.bf16.mxu0 %vm910_vm1, %v13826_v39  ;;  %v493_v12 = vunpack.c.l.bf16 %v289_v2  ;;  %v495_v19 = vunpack.c.h.bf16 %v289_v2 }
  0x6b   : > { %v777_v38 = vrot.slane %v493_v12, 1 }
  0x6d   : > { %v14202_v2 = vsel %vm715_vm2, %v776_v55, %v777_v38  ;;  %v698_v55 = vld [vmem:[%s16905_s1] sm:$0xf] }
  0x6e   : > { %17175 = vst [vmem:[#allocation58_spill] sm:$0xff] %v14202_v2  ;;  %13467 = vmatprep.subr.msk.bf16.mxu1 %vm1103_vm0, %v698_v55 }
  0x6f   : > { %10889 = vmatmul.mubr.msk.bf16.gmra.mrb[44].mxu1 %vm910_vm1, %v14140_v35  ;;  %v285_v35 = vld [vmem:[%s13737_s29 + $0x214] ss:$8 sps:$4 sm:$0xff]  }
  0x70   : > { %11365 = vmatmul.mubr.msk.bf16.vlgmr.msra.gmra.mrb[0].mxu0 %vm910_vm1, %v13859_v61  ;;  %10892 = vmatprep.mubr.msk.bf16.mxu1 %vm910_vm1, %v14081_v36  ;;  %v489_v4 = vunpack.c.l.bf16 %v285_v35  ;;  %v491_v14 = vunpack.c.h.bf16 %v285_v35  ;;  %v780_v35 = vrot.slane %v495_v19, 1 }
  0x71   : > { %11493 = vmatpush3.bf16.msra.mxu0 %v4521_v13  ;;  %11368 = vmatprep.mubr.msk.bf16.mxu0 %vm910_vm1, %v13863_v63  ;;  %v768_v13 = vrot.slane %v487_v31, 1 }
  0x72   : > { %v774_v20 = vrot.slane %v491_v14, 1  ;;  %v14205_v15 = vsel %vm715_vm2, %v779_v27, %v780_v35  ;;  %v14283_v14 = vld [vmem:[%s13737_s29 + $0x680] sm:$0xf]  ;;  %v14301_v35 = vld [vmem:[%s13737_s29 + $0x690] sm:$0xf] }
  0x73   : > { %v14177_v31 = vsel %vm715_vm2, %v767_v17, %v768_v13  ;;  %v498_v17 = vunpack.c.l.bf16 %v13807_v30  ;;  %v499_v30 = vunpack.c.h.bf16 %v293_v52  ;;  %17176 = vst [vmem:[#allocation59_spill] sm:$0xff] %v14205_v15  ;;  %v782_v13 = vrot.slane %v496_v26, 1  ;;  %17182 = vst [vmem:[#allocation65_spill] sm:$0xff] %v14283_v14  ;;  %v14304_v26 = vld [vmem:[%s13737_s29 + $0x698] sm:$0xf] }
  0x74   : > { %17170 = vst [vmem:[#allocation53_spill] sm:$0xff] %v14177_v31  ;;  %v14182_v24 = vpack.c.bf16 %v14177_v31, %v766_v53  ;;  %v14199_v12 = vsel %vm715_vm2, %v773_v62, %v774_v20  ;;  %v783_v62 = vrot.slane %v497_v29, 1  ;;  %v1685_v20 = vsel %vm1103_vm0, %v698_v55, 0  ;;  %v14286_v53 = vld [vmem:[%s13737_s29 + $0x688] sm:$0xf]  ;;  %17185 = vst [vmem:[#allocation68_spill] sm:$0xff] %v14301_v35 }
  0x75   : > { %17174 = vst [vmem:[#allocation57_spill] sm:$0xff] %v14199_v12  ;;  %v785_v5 = vrot.slane %v498_v17, 1  ;;  %10973 = vmatpush3.bf16.msra.mxu1 %v1685_v20  ;;  %17183 = vst [vmem:[#allocation66_spill] sm:$0xff] %v14286_v53  ;;  %v14290_v19 = vcombine.low %v14283_v14, %v14286_v53  ;;  %v14307_v17 = vld [vmem:[%s13737_s29 + $0x6a0] sm:$0xf] }
  0x76   : > { %17172 = vst [vmem:[#allocation55_spill] sm:$0xff] %v14182_v24  ;;  %v14224_v52 = vsel %vm715_vm2, %v782_v13, %v783_v62  ;;  %17186 = vst [vmem:[#allocation69_spill] sm:$0xff] %v14304_v26  ;;  %v14310_v29 = vld [vmem:[%s13737_s29 + $0x6a8] sm:$0xf]  ;;  %v14332_v62 = vld [vmem:[%s13737_s29 + $0x6b8] sm:$0xf] }
  0x77   : > { %10893 = vmatmul.mubr.msk.bf16.gmra.mrb[48].mxu1 %vm910_vm1, %v14118_v47  ;;  %17179 = vst [vmem:[#allocation62_spill] sm:$0xff] %v14224_v52  ;;  %17184 = vst [vmem:[#allocation67_spill] sm:$0xff] %v14290_v19  ;;  %v14318_v13 = vcombine.low %v14307_v17, %v14310_v29  ;;  %v14339_v55 = vld [vmem:[%s13737_s29 + $0x700] ss:$8 sps:$4 sm:$0xff]   ;;  %v14350_v20 = vld [vmem:[%s13737_s29 + $0x710] ss:$8 sps:$4 sm:$0xff]  }
  0x78   : > { %11369 = vmatmul.mubr.msk.bf16.gmra.mrb[4].mxu0 %vm910_vm1, %v13900_v46  ;;  %10896 = vmatprep.mubr.msk.bf16.mxu1 %vm910_vm1, %v14157_v41  ;;  %17187 = vst [vmem:[#allocation70_spill] sm:$0xff] %v14307_v17  ;;  %17188 = vst [vmem:[#allocation71_spill] sm:$0xff] %v14310_v29  ;;  %v14413_v31 = vld [vmem:[%s16905_s1 + $0x18] sm:$0xf]  ;;  %v383_v29 = vld [vmem:[%s13737_s29 + $0x604] ss:$8 sps:$4 sm:$0xff]  }
  0x79   : > { %11372 = vmatprep.mubr.msk.bf16.mxu0 %vm910_vm1, %v13967_v32  ;;  %v771_v32 = vrot.slane %v489_v4, 1  ;;  %v14272_v4 = vld [vmem:[%s13737_s29 + $0x530] ss:$8 sps:$4 sm:$0xff]   ;;  %17190 = vst [vmem:[#allocation73_spill] sm:$0xff] %v14318_v13  ;;  %17192 = vst [vmem:[#allocation75_spill] sm:$0xff] %v14332_v62  ;;  %13473 = vmatprep.subr.msk.bf16.mxu0 %vm1103_vm0, %v14413_v31  ;;  %v589_v14 = vunpack.c.h.bf16 %v383_v29 }
  0x7a   : > { %17194 = vst [vmem:[#allocation77_spill] sm:$0xff] %v14339_v55  ;;  %v14425_v17 = vld [vmem:[%s13737_s29 + $0x608] sm:$0xf] }
  0x7b   : > { %v14196_v10 = vsel %vm715_vm2, %v770_v60, %v771_v32  ;;  %v14213_v32 = vpack.c.bf16 %v14205_v15, %v14202_v2  ;;  %v786_v60 = vrot.slane %v499_v30, 1  ;;  %v14314_v30 = vcombine.low %v14301_v35, %v14304_v26  ;;  %v14367_v15 = vld [vmem:[%s13737_s29 + $0x730] ss:$8 sps:$4 sm:$0xff]   ;;  %17199 = vst [vmem:[#allocation82_spill] sm:$0xff] %v14425_v17 }
  0x7c   : > { %17173 = vst [vmem:[#allocation56_spill] sm:$0xff] %v14196_v10  ;;  %v14209_v9 = vpack.c.bf16 %v14199_v12, %v14196_v10  ;;  %v14370_v2 = vld [vmem:[%s13737_s29 + $0x590] ss:$8 sps:$4 sm:$0xff]   ;;  %v14373_v12 = vld [vmem:[%s13737_s29 + $0x5a0] ss:$8 sps:$4 sm:$0xff]   ;;  %v587_v35 = vunpack.c.l.bf16 %v383_v29  ;;  %v588_v53 = vunpack.c.l.bf16 %v14425_v17 }
  0x7d   : > { %17178 = vst [vmem:[#allocation61_spill] sm:$0xff] %v14213_v32  ;;  %v14227_v38 = vsel %vm715_vm2, %v785_v5, %v786_v60  ;;  %17189 = vst [vmem:[#allocation72_spill] sm:$0xff] %v14314_v30  ;;  %v14329_v5 = vld [vmem:[%s13737_s29 + $0x6b0] sm:$0xf] }
  0x7e   : > { %17177 = vst [vmem:[#allocation60_spill] sm:$0xff] %v14209_v9  ;;  %17180 = vst [vmem:[#allocation63_spill] sm:$0xff] %v14227_v38  ;;  %v14231_v27 = vpack.c.bf16 %v14227_v38, %v14224_v52  ;;  %v14336_v60 = vcombine.low %v14329_v5, %v14332_v62  ;;  %v14353_v38 = vld [vmem:[%s13737_s29 + $0x720] ss:$8 sps:$4 sm:$0xff]   ;;  %v14384_v10 = vld [vmem:[%s13737_s29 + $0x5b0] ss:$8 sps:$4 sm:$0xff]  }
  0x7f   : > { %10897 = vmatmul.mubr.msk.bf16.gmra.mrb[52].mxu1 %vm910_vm1, %v14179_v23  ;;  %17191 = vst [vmem:[#allocation74_spill] sm:$0xff] %v14329_v5  ;;  %v14356_v52 = vld [vmem:[%s13737_s29 + $0x580] ss:$8 sps:$4 sm:$0xff]   ;;  %17195 = vst [vmem:[#allocation78_spill] sm:$0xff] %v14370_v2 }
  0x80   : > { %11373 = vmatmul.mubr.msk.bf16.gmra.mrb[8].mxu0 %vm910_vm1, %v13987_v54  ;;  %10900 = vmatprep.mubr.msk.bf16.mxu1 %vm910_vm1, %v14182_v24  ;;  %17181 = vst [vmem:[#allocation64_spill] sm:$0xff] %v14231_v27  ;;  %17193 = vst [vmem:[#allocation76_spill] sm:$0xff] %v14336_v60  ;;  %v14418_v62 = vld [vmem:[%s13737_s29 + $0x780] ss:$8 sps:$4 sm:$0xff]  }
  0x81   : > { %11376 = vmatprep.mubr.msk.bf16.mxu0 %vm910_vm1, %v13991_v6  ;;  %17196 = vst [vmem:[#allocation79_spill] sm:$0xff] %v14373_v12  ;;  %17197 = vst [vmem:[#allocation80_spill] sm:$0xff] %v14384_v10  ;;  %v14421_v5 = vld [vmem:[%s13737_s29 + $0x600] sm:$0xf] }
  0x82   : > { %17198 = vst [vmem:[#allocation81_spill] sm:$0xff] %v14421_v5  ;;  %v586_v26 = vunpack.c.l.bf16 %v14421_v5  ;;  %v14455_v5 = vld [vmem:[%s13737_s29 + $0x628] sm:$0xf] }
  0x87   : > { %10901 = vmatmul.mubr.msk.bf16.gmra.mrb[56].mxu1 %vm910_vm1, %v14209_v9 }
  0x88   : > { %11377 = vmatmul.mubr.msk.bf16.gmra.mrb[12].mxu0 %vm910_vm1, %v14016_v28  ;;  %10904 = vmatprep.mubr.msk.bf16.mxu1 %vm910_vm1, %v14213_v32 }
  0x89   : > { %11380 = vmatprep.mubr.msk.bf16.mxu0 %vm910_vm1, %v13969_v33 }
  0x8f   : > { %10905 = vmatmul.mubr.msk.bf16.gmra.mrb[60].mxu1 %vm910_vm1, %v14231_v27 }
  0x90   : > { %11381 = vmatmul.mubr.msk.bf16.gmra.mrb[16].mxu0 %vm910_vm1, %v13989_v59  ;;  %10908 = vmatprep.mubr.msk.bf16.mxu1 %vm910_vm1, %v13969_v33 }
  0x91   : > { %11384 = vmatprep.mubr.msk.bf16.mxu0 %vm910_vm1, %v13993_v22 }
  0x97   : > { %10909 = vmatmul.mubr.msk.bf16.gmra.mrb[64].mxu1 %vm910_vm1, %v13989_v59 }
  0x98   : > { %11385 = vmatmul.mubr.msk.bf16.gmra.mrb[20].mxu0 %vm910_vm1, %v14018_v48  ;;  %10912 = vmatprep.mubr.msk.bf16.mxu1 %vm910_vm1, %v13993_v22 }
  0x99   : > { %11388 = vmatprep.mubr.msk.bf16.mxu0 %vm910_vm1, %v14247_v25 }
  0x9f   : > { %10913 = vmatmul.mubr.msk.bf16.gmra.mrb[68].mxu1 %vm910_vm1, %v14018_v48  ;;  %v391_v48 = vld [vmem:[%s13737_s29 + $0x624] ss:$8 sps:$4 sm:$0xff]  }
  0xa0   : > { %11389 = vmatmul.mubr.msk.bf16.gmra.mrb[24].mxu0 %vm910_vm1, %v14258_v18  ;;  %10916 = vmatprep.mubr.msk.bf16.mxu1 %vm910_vm1, %v14247_v25  ;;  %v597_v22 = vunpack.c.h.bf16 %v391_v48 }
  0xa1   : > { %11392 = vmatprep.mubr.msk.bf16.mxu0 %vm910_vm1, %v14261_v58 }
  0xa7   : > { %10917 = vmatmul.mubr.msk.bf16.gmra.mrb[72].mxu1 %vm910_vm1, %v14258_v18 }
  0xa8   : > { %11393 = vmatmul.mubr.msk.bf16.gmra.mrb[28].mxu0 %vm910_vm1, %v14272_v4  ;;  %10920 = vmatprep.mubr.msk.bf16.mxu1 %vm910_vm1, %v14261_v58 }
  0xa9   : > { %11396 = vmatprep.mubr.msk.bf16.mxu0 %vm910_vm1, %v14081_v36 }
  0xaf   : > { %10921 = vmatmul.mubr.msk.bf16.gmra.mrb[76].mxu1 %vm910_vm1, %v14272_v4 }
  0xb0   : > { %11397 = vmatmul.mubr.msk.bf16.gmra.mrb[32].mxu0 %vm910_vm1, %v14118_v47  ;;  %10924 = vmatprep.mubr.msk.bf16.mxu1 %vm910_vm1, %v14290_v19 }
  0xb1   : > { %11400 = vmatprep.mubr.msk.bf16.mxu0 %vm910_vm1, %v14157_v41 }
  0xb7   : > { %10925 = vmatmul.mubr.msk.bf16.gmra.mrb[80].mxu1 %vm910_vm1, %v14314_v30 }
  0xb8   : > { %11401 = vmatmul.mubr.msk.bf16.gmra.mrb[36].mxu0 %vm910_vm1, %v14179_v23  ;;  %10928 = vmatprep.mubr.msk.bf16.mxu1 %vm910_vm1, %v14318_v13 }
  0xb9   : > { %11404 = vmatprep.mubr.msk.bf16.mxu0 %vm910_vm1, %v14182_v24  ;;  %v596_v24 = vunpack.c.l.bf16 %v14455_v5 }
  0xbf   : > { %10929 = vmatmul.mubr.msk.bf16.gmra.mrb[84].mxu1 %vm910_vm1, %v14336_v60 }
  0xc0   : > { %11405 = vmatmul.mubr.msk.bf16.gmra.mrb[40].mxu0 %vm910_vm1, %v14209_v9  ;;  %10932 = vmatprep.mubr.msk.bf16.mxu1 %vm910_vm1, %v14339_v55  ;;  %v14448_v9 = vld [vmem:[%s13737_s29 + $0x618] sm:$0xf] }
  0xc1   : > { %11408 = vmatprep.mubr.msk.bf16.mxu0 %vm910_vm1, %v14213_v32  ;;  %v387_v32 = vld [vmem:[%s13737_s29 + $0x614] ss:$8 sps:$4 sm:$0xff]   ;;  %17201 = vst [vmem:[#allocation84_spill] sm:$0xff] %v14448_v9  ;;  %v592_v29 = vunpack.c.l.bf16 %v14448_v9  ;;  %v875_v9 = vrot.slane %v596_v24, 1 }
  0xc2   : > { %v593_v17 = vunpack.c.h.bf16 %v387_v32 }
  0xc3   : > { %v869_v33 = vrot.slane %v592_v29, 1 }
  0xc7   : > { %10933 = vmatmul.mubr.msk.bf16.gmra.mrb[88].mxu1 %vm910_vm1, %v14350_v20 }
  0xc8   : > { %11409 = vmatmul.mubr.msk.bf16.gmra.mrb[44].mxu0 %vm910_vm1, %v14231_v27  ;;  %10936 = vmatprep.mubr.msk.bf16.mxu1 %vm910_vm1, %v14353_v38  ;;  %v864_v27 = vrot.slane %v589_v14, 1 }
  0xc9   : > { %11412 = vmatprep.mubr.msk.bf16.mxu0 %vm910_vm1, %v14356_v52 }
  0xcf   : > { %10937 = vmatmul.mubr.msk.bf16.gmra.mrb[92].mxu1 %vm910_vm1, %v14367_v15 }
  0xd0   : > { %11413 = vmatmul.mubr.msk.bf16.gmra.mrb[48].mxu0 %vm910_vm1, %v14370_v2  ;;  %10940 = vmatprep.mubr.msk.bf16.mxu1 %vm910_vm1, %v14356_v52 }
  0xd1   : > { %11416 = vmatprep.mubr.msk.bf16.mxu0 %vm910_vm1, %v14373_v12 }
  0xd7   : > { %10941 = vmatmul.mubr.msk.bf16.gmra.mrb[96].mxu1 %vm910_vm1, %v14370_v2  ;;  %v14481_v2 = vld [vmem:[%s13737_s29 + $0x638] sm:$0xf] }
  0xd8   : > { %11417 = vmatmul.mubr.msk.bf16.gmra.mrb[52].mxu0 %vm910_vm1, %v14384_v10  ;;  %10944 = vmatprep.mubr.msk.bf16.mxu1 %vm910_vm1, %v14373_v12  ;;  %v600_v24 = vunpack.c.l.bf16 %v14481_v2 }
  0xd9   : > { %11420 = vmatprep.mubr.msk.bf16.mxu0 %vm910_vm1, %v13882_v37 }
  0xda   : > { %v881_v29 = vrot.slane %v600_v24, 1  ;;  %v14548_v24 = vld [vmem:[%s13737_s29 + $0xb8] sm:$0xf] }
  0xdb   : > { %17214 = vst [vmem:[#allocation97_spill] sm:$0xff] %v14548_v24 }
  0xdf   : > { %10945 = vmatmul.mubr.msk.bf16.gmra.mrb[100].mxu1 %vm910_vm1, %v14384_v10  ;;  %v14472_v10 = vld [vmem:[%s13737_s29 + $0x7b0] ss:$8 sps:$4 sm:$0xff]  }
  0xe0   : > { %11421 = vmatmul.mubr.msk.bf16.gmra.mrb[56].mxu0 %vm910_vm1, %v13897_v3  ;;  %10948 = vmatprep.mubr.msk.bf16.mxu1 %vm910_vm1, %v13882_v37  ;;  %v860_v37 = vrot.slane %v586_v26, 1 }
  0xe1   : > { %11424 = vmatprep.mubr.msk.bf16.mxu0 %vm910_vm1, %v13906_v42 }
  0xe7   : > { %10949 = vmatmul.mubr.msk.bf16.gmra.mrb[104].mxu1 %vm910_vm1, %v13897_v3  ;;  %v14444_v3 = vld [vmem:[%s13737_s29 + $0x610] sm:$0xf] }
  0xe8   : > { %11425 = vmatmul.mubr.msk.bf16.gmra.mrb[60].mxu0 %vm910_vm1, %v13918_v49  ;;  %10952 = vmatprep.mubr.msk.bf16.mxu1 %vm910_vm1, %v13906_v42  ;;  %v14441_v42 = vld [vmem:[%s13737_s29 + $0x7a0] ss:$8 sps:$4 sm:$0xff]   ;;  %17200 = vst [vmem:[#allocation83_spill] sm:$0xff] %v14444_v3  ;;  %v590_v26 = vunpack.c.l.bf16 %v14444_v3  ;;  %v595_v3 = vunpack.c.l.bf16 %v391_v48 }
  0xe9   : > { %11428 = vmatprep.mubr.msk.bf16.mxu0 %vm910_vm1, %v14290_v19  ;;  %v863_v19 = vrot.slane %v588_v53, 1 }
  0xea   : > { %v866_v59 = vrot.slane %v590_v26, 1 }
  0xeb   : > { %v865_v53 = vsel %vm715_vm2, %v863_v19, %v864_v27  ;;  %v395_v27 = vld [vmem:[%s13737_s29 + $0x634] ss:$8 sps:$4 sm:$0xff]  }
  0xef   : > { %10953 = vmatmul.mubr.msk.bf16.gmra.mrb[108].mxu1 %vm910_vm1, %v13918_v49  ;;  %v14438_v49 = vld [vmem:[%s13737_s29 + $0x790] ss:$8 sps:$4 sm:$0xff]  }
  0xf0   : > { %11429 = vmatmul.mubr.msk.bf16.gmra.mrb[64].mxu0 %vm910_vm1, %v14314_v30  ;;  %10956 = vmatprep.mubr.msk.bf16.mxu1 %vm910_vm1, %v14418_v62  ;;  %v861_v30 = vrot.slane %v587_v35, 1  ;;  %v591_v35 = vunpack.c.l.bf16 %v387_v32  ;;  %v873_v32 = vrot.slane %v595_v3, 1 }
  0xf1   : > { %11432 = vmatprep.mubr.msk.bf16.mxu0 %vm910_vm1, %v14318_v13  ;;  %v14451_v13 = vld [vmem:[%s13737_s29 + $0x620] sm:$0xf] }
  0xf2   : > { %17202 = vst [vmem:[#allocation85_spill] sm:$0xff] %v14451_v13  ;;  %v862_v14 = vsel %vm715_vm2, %v860_v37, %v861_v30  ;;  %v867_v12 = vrot.slane %v591_v35, 1  ;;  %v870_v37 = vrot.slane %v593_v17, 1  ;;  %v14477_v30 = vld [vmem:[%s13737_s29 + $0x630] sm:$0xf]  ;;  %v601_v17 = vunpack.c.h.bf16 %v395_v27 }
  0xf3   : > { %v598_v26 = vunpack.c.l.bf16 %v14477_v30 }
  0xf4   : > { %v868_v48 = vsel %vm715_vm2, %v866_v59, %v867_v12  ;;  %v871_v3 = vsel %vm715_vm2, %v869_v33, %v870_v37  ;;  %v882_v33 = vrot.slane %v601_v17, 1 }
  0xf5   : > { %v14497_v12 = vpack.c.bf16 %v871_v3, %v868_v48  ;;  %v878_v35 = vrot.slane %v598_v26, 1  ;;  %v9276_v48 = vcombine.low %v13996_v45, %v14013_v56  ;;  %v14526_v26 = vld [vmem:[%s13737_s29 + $0xa8] sm:$0xf]  ;;  %v14529_v3 = vld [vmem:[%s13737_s29 + $0xb0] sm:$0xf]  ;;  %v9277_v56 = vcombine.low %v14032_v50, %v14040_v34 }
  0xf6   : > { %17210 = vst [vmem:[#allocation93_spill] sm:$0xff] %v14526_v26  ;;  %17211 = vst [vmem:[#allocation94_spill] sm:$0xff] %v14529_v3  ;;  %v14543_v45 = vld [vmem:[%s13737_s29 + $0xc0] sm:$0xf]  ;;  %v9279_v50 = vcombine.low %v14084_v21, %v14088_v1  ;;  %v17217_v21 = vld [vmem:[#allocation9_spill] sm:$0xff] }
  0xf7   : > { %10957 = vmatmul.mubr.msk.bf16.gmra.mrb[112].mxu1 %vm910_vm1, %v14438_v49  ;;  %17204 = vst [vmem:[#allocation87_spill] sm:$0xff] %v14497_v12  ;;  %17213 = vst [vmem:[#allocation96_spill] sm:$0xff] %v14543_v45  ;;  %v14552_v17 = vcombine.low %v14548_v24, %v14543_v45  ;;  %v270_v34 = vld [vmem:[%s13737_s29 + $0x140] sm:$0xf]  ;;  %v17218_v1 = vld [vmem:[#allocation11_spill] sm:$0xff] }
  0xf8   : > { %11433 = vmatmul.mubr.msk.bf16.gmra.mrb[68].mxu0 %vm910_vm1, %v14336_v60  ;;  %10960 = vmatprep.mubr.msk.bf16.mxu1 %vm910_vm1, %v14441_v42  ;;  %v594_v60 = vunpack.c.l.bf16 %v14451_v13  ;;  %v876_v13 = vrot.slane %v597_v22, 1  ;;  %v599_v22 = vunpack.c.l.bf16 %v395_v27  ;;  %v14514_v27 = vld [vmem:[%s13737_s29 + $0x98] sm:$0xf]  ;;  %v17258_v24 = vld [vmem:[#allocation82_spill] sm:$0xff] }
  0xf9   : > { %11436 = vmatprep.mubr.msk.bf16.mxu0 %vm910_vm1, %v14339_v55  ;;  %v14474_v55 = vpack.c.bf16 %v865_v53, %v862_v14  ;;  %17207 = vst [vmem:[#allocation90_spill] sm:$0xff] %v14514_v27  ;;  %17215 = vst [vmem:[#allocation98_spill] sm:$0xff] %v14552_v17 }
  0xfa   : > { %v872_v19 = vrot.slane %v594_v60, 1  ;;  %v877_v59 = vsel %vm715_vm2, %v875_v9, %v876_v13  ;;  %v879_v53 = vrot.slane %v599_v22, 1  ;;  %v883_v13 = vsel %vm715_vm2, %v881_v29, %v882_v33  ;;  %v17224_v29 = vld [vmem:[#allocation23_spill] sm:$0xff]  ;;  %v17225_v33 = vld [vmem:[#allocation13_spill] sm:$0xff] }
  0xfb   : > { %17203 = vst [vmem:[#allocation86_spill] sm:$0xff] %v14474_v55  ;;  %v14533_v22 = vcombine.low %v14526_v26, %v14529_v3  ;;  %v17259_v3 = vld [vmem:[#allocation81_spill] sm:$0xff] }
  0xfc   : > { %v874_v60 = vsel %vm715_vm2, %v872_v19, %v873_v32  ;;  %v880_v9 = vsel %vm715_vm2, %v878_v35, %v879_v53  ;;  %v14517_v19 = vld [vmem:[%s13737_s29 + $0xa0] sm:$0xf]  ;;  %v17222_v35 = vld [vmem:[#allocation12_spill] sm:$0xff]  ;;  %v14759_v26 = vcombine.low %v17259_v3, %v17258_v24 }
  0xfd   : > { %v14499_v14 = vpack.c.bf16 %v877_v59, %v874_v60  ;;  %v14511_v37 = vpack.c.bf16 %v883_v13, %v880_v9  ;;  %17208 = vst [vmem:[#allocation91_spill] sm:$0xff] %v14517_v19  ;;  %v14521_v32 = vcombine.low %v14514_v27, %v14517_v19  ;;  %17212 = vst [vmem:[#allocation95_spill] sm:$0xff] %v14533_v22  ;;  %v17221_v59 = vld [vmem:[#allocation10_spill] sm:$0xff] }
  0xfe   : > { %v9278_v60 = vcombine.low %v14047_v16, %v14051_v43  ;;  %v14573_v16 = vcombine.low %v13870_v7, %v270_v34  ;;  %v17216_v43 = vld [vmem:[#allocation7_spill] sm:$0xff]  ;;  %v17220_v7 = vld [vmem:[#allocation8_spill] sm:$0xff]  ;;  %v17223_v53 = vld [vmem:[#allocation22_spill] sm:$0xff]  ;;  %17260 = vst [vmem:[#allocation12_spill] sm:$0xff] %v14759_v26 }
  0xff   : > { %10961 = vmatmul.mubr.msk.bf16.gmra.mrb[116].mxu1 %vm910_vm1, %v14472_v10  ;;  %17205 = vst [vmem:[#allocation88_spill] sm:$0xff] %v14499_v14  ;;  %17206 = vst [vmem:[#allocation89_spill] sm:$0xff] %v14511_v37  ;;  %v17233_v34 = vld [vmem:[#allocation44_spill] sm:$0xff]  ;;  %v305_v27 = vld [vmem:[%s13737_s29 + $0x29c] ss:$8 sps:$4 sm:$0xff]  }
 0x100   : > { %11437 = vmatmul.mubr.msk.bf16.gmra.mrb[72].mxu0 %vm910_vm1, %v14350_v20  ;;  %10964 = vmatprep.mubr.msk.bf16.mxu1 %vm910_vm1, %v14474_v55  ;;  %17209 = vst [vmem:[#allocation92_spill] sm:$0xff] %v14521_v32  ;;  %v14776_v3 = vld [vmem:[%s13737_s29 + $0x2a0] sm:$0xf] }
 0x101   : > { %11440 = vmatprep.mubr.msk.bf16.mxu0 %vm910_vm1, %v14353_v38  ;;  %17265 = vst [vmem:[#allocation13_spill] sm:$0xff] %v14776_v3 }
 0x107   : > { %10965 = vmatmul.mubr.msk.bf16.gmra.mrb[120].mxu1 %vm910_vm1, %v14497_v12 }
 0x108   : > { %11441 = vmatmul.mubr.msk.bf16.gmra.mrb[76].mxu0 %vm910_vm1, %v14367_v15  ;;  %10968 = vmatprep.mubr.msk.bf16.mxu1 %vm910_vm1, %v14499_v14 }
 0x109   : > { %11444 = vmatprep.mubr.msk.bf16.mxu0 %vm910_vm1, %v13750_v11  ;;  %v17253_v11 = vld [vmem:[#allocation31_spill] sm:$0xff] }
 0x10f   : > { %10969 = vmatmul.mubr.msk.bf16.gmra.mrb[124].mxu1 %vm910_vm1, %v14511_v37 }
 0x110   : > { %11445 = vmatmul.mubr.msk.bf16.gmra.mrb[80].mxu0 %vm910_vm1, %v14521_v32  ;;  %10974 = vmatprep.mubr.msk.bf16.mxu1 %vm910_vm1, %v9276_v48  ;;  %v14632_v48 = vld [vmem:[%s13737_s29 + $0x40] sm:$0xf]  ;;  %v299_v32 = vld [vmem:[%s13737_s29 + $0x284] ss:$16 sps:$4 sm:$0xff]  }
 0x111   : > { %11448 = vmatprep.mubr.msk.bf16.mxu0 %vm910_vm1, %v14533_v22  ;;  %17229 = vst [vmem:[#allocation9_spill] sm:$0xff] %v14632_v48  ;;  %v17252_v22 = vld [vmem:[#allocation79_spill] sm:$0xff] }
 0x117   : > { %10975 = vmatmul.mubr.msk.bf16.vlgmr.msra.gmra.mrb[0].mxu1 %vm910_vm1, %v9277_v56  ;;  %v17230_v56 = vld [vmem:[#allocation14_spill] sm:$0xff] }
 0x118   : > { %11449 = vmatmul.mubr.msk.bf16.gmra.mrb[84].mxu0 %vm910_vm1, %v14552_v17  ;;  %10978 = vmatprep.mubr.msk.bf16.mxu1 %vm910_vm1, %v9278_v60  ;;  %v17231_v60 = vld [vmem:[#allocation15_spill] sm:$0xff] }
 0x119   : > { %11452 = vmatprep.mubr.msk.bf16.mxu0 %vm910_vm1, %v13828_v40  ;;  %v17245_v17 = vld [vmem:[#allocation39_spill] sm:$0xff] }
 0x11f   : > { %10979 = vmatmul.mubr.msk.bf16.gmra.mrb[4].mxu1 %vm910_vm1, %v9279_v50  ;;  %v17232_v50 = vld [vmem:[#allocation43_spill] sm:$0xff] }
 0x120   : > { %11453 = vmatmul.mubr.msk.bf16.gmra.mrb[88].mxu0 %vm910_vm1, %v13833_v44  ;;  %10982 = vmatprep.mubr.msk.bf16.mxu1 %vm910_vm1, %v13742_v8  ;;  %v17219_v8 = vld [vmem:[#allocation6_spill] sm:$0xff] }
 0x121   : > { %11456 = vmatprep.mubr.msk.bf16.mxu0 %vm910_vm1, %v13849_v51 }
 0x127   : > { %10983 = vmatmul.mubr.msk.bf16.gmra.mrb[8].mxu1 %vm910_vm1, %v17216_v43  ;;  %v14649_v43 = vpack.c.bf16 %v17233_v34, %v17232_v50  ;;  %v17240_v50 = vld [vmem:[#allocation50_spill] sm:$0xff] }
 0x128   : > { %11457 = vmatmul.mubr.msk.bf16.gmra.mrb[92].mxu0 %vm910_vm1, %v14573_v16  ;;  %10986 = vmatprep.mubr.msk.bf16.mxu1 %vm910_vm1, %v17217_v21  ;;  %v17235_v21 = vld [vmem:[#allocation45_spill] sm:$0xff] }
 0x129   : > { %11460 = vmatprep.mubr.msk.bf16.mxu0 %vm910_vm1, %v14418_v62  ;;  %17234 = vst [vmem:[#allocation11_spill] sm:$0xff] %v14649_v43 }
 0x12f   : > { %10987 = vmatmul.mubr.msk.bf16.gmra.mrb[12].mxu1 %vm910_vm1, %v17218_v1  ;;  %v17236_v1 = vld [vmem:[#allocation49_spill] sm:$0xff] }
 0x130   : > { %11461 = vmatmul.mubr.msk.bf16.gmra.mrb[96].mxu0 %vm910_vm1, %v14438_v49  ;;  %10990 = vmatprep.mubr.msk.bf16.mxu1 %vm910_vm1, %v17219_v8  ;;  %v14653_v8 = vpack.c.bf16 %v17236_v1, %v17235_v21  ;;  %v17242_v21 = vld [vmem:[#allocation37_spill] sm:$0xff]  ;;  %v5231_v1 = vsel %vm1103_vm0, %v14413_v31, 0  ;;  %v9469_v31 = vld [vmem:[%s16905_s1 + $0x8] sm:$0xf] }
 0x131   : > { %11464 = vmatprep.mubr.msk.bf16.mxu0 %vm910_vm1, %v14441_v42  ;;  %13468 = vmatprep.subr.msk.bf16.mxu1 %vm1103_vm0, %v9469_v31 }
 0x132   : > { %17237 = vst [vmem:[#allocation6_spill] sm:$0xff] %v14653_v8 }
 0x137   : > { %10991 = vmatmul.mubr.msk.bf16.gmra.mrb[16].mxu1 %vm910_vm1, %v17220_v7 }
 0x138   : > { %11465 = vmatmul.mubr.msk.bf16.gmra.mrb[100].mxu0 %vm910_vm1, %v14472_v10  ;;  %10994 = vmatprep.mubr.msk.bf16.mxu1 %vm910_vm1, %v17221_v59 }
 0x139   : > { %11468 = vmatprep.mubr.msk.bf16.mxu0 %vm910_vm1, %v14474_v55 }
 0x13f   : > { %10995 = vmatmul.mubr.msk.bf16.gmra.mrb[20].mxu1 %vm910_vm1, %v17222_v35  ;;  %v17238_v35 = vld [vmem:[#allocation17_spill] sm:$0xff] }
 0x140   : > { %11469 = vmatmul.mubr.msk.bf16.gmra.mrb[104].mxu0 %vm910_vm1, %v14497_v12  ;;  %10998 = vmatprep.mubr.msk.bf16.mxu1 %vm910_vm1, %v13826_v39  ;;  %v279_v39 = vld [vmem:[%s13737_s29 + $0x1c0] sm:$0xf] }
 0x141   : > { %11472 = vmatprep.mubr.msk.bf16.mxu0 %vm910_vm1, %v14499_v14  ;;  %v14625_v9 = vcombine.low %v14063_v57, %v279_v39  ;;  %v446_v57 = vunpack.c.l.bf16 %v14632_v48  ;;  %v17239_v39 = vld [vmem:[#allocation36_spill] sm:$0xff] }
 0x142   : > { %v17254_v48 = vld [vmem:[#allocation80_spill] sm:$0xff] }
 0x143   : > { %v3830_v7 = vrot.slane %v446_v57, 1  ;;  %v17243_v57 = vld [vmem:[#allocation38_spill] sm:$0xff] }
 0x147   : > { %10999 = vmatmul.mubr.msk.bf16.gmra.mrb[24].mxu1 %vm910_vm1, %v13859_v61  ;;  %v17226_v61 = vld [vmem:[#allocation24_spill] sm:$0xff] }
 0x148   : > { %11473 = vmatmul.mubr.msk.bf16.gmra.mrb[108].mxu0 %vm910_vm1, %v14511_v37  ;;  %11002 = vmatprep.mubr.msk.bf16.mxu1 %vm910_vm1, %v13863_v63  ;;  %v17227_v63 = vld [vmem:[#allocation42_spill] sm:$0xff] }
 0x149   : > { %11476 = vmatprep.mubr.msk.bf16.mxu0 %vm910_vm1, %v17223_v53  ;;  %v14629_v13 = vpack.c.bf16 %v17227_v63, %v14067_v0 }
 0x14b   : > { %17228 = vst [vmem:[#allocation7_spill] sm:$0xff] %v14629_v13 }
 0x14f   : > { %11003 = vmatmul.mubr.msk.bf16.gmra.mrb[28].mxu1 %vm910_vm1, %v13900_v46  ;;  %v14635_v46 = vld [vmem:[%s13737_s29 + $0x44] ss:$584 sps:$4 sm:$0xff]  }
 0x150   : > { %11477 = vmatmul.mubr.msk.bf16.gmra.mrb[112].mxu0 %vm910_vm1, %v17224_v29  ;;  %11006 = vmatprep.mubr.msk.bf16.mxu1 %vm910_vm1, %v17225_v33  ;;  %v447_v0 = vunpack.c.l.bf16 %v14635_v46  ;;  %v505_v45 = vunpack.c.h.bf16 %v14635_v46  ;;  %v17263_v46 = vld [vmem:[#allocation35_spill] sm:$0xff] }
 0x151   : > { %11480 = vmatprep.mubr.msk.bf16.mxu0 %vm910_vm1, %v17226_v61 }
 0x152   : > { %v3831_v59 = vrot.slane %v447_v0, 1  ;;  %v17244_v0 = vld [vmem:[#allocation28_spill] sm:$0xff] }
 0x154   : > { %v3832_v63 = vsel %vm715_vm2, %v3830_v7, %v3831_v59  ;;  %v17246_v7 = vld [vmem:[#allocation19_spill] sm:$0xff]  ;;  %v2475_v59 = vsel %vm1103_vm0, %v9469_v31, 0 }
 0x155   : > { %v14665_v34 = vpack.c.bf16 %v3832_v63, %v17240_v50  ;;  %11103 = vmatpush3.bf16.msra.mxu1 %v2475_v59  ;;  %v13605_v63 = vld [vmem:[%s16905_s1 + $0xc] sm:$0xf]  ;;  %v17247_v50 = vld [vmem:[#allocation25_spill] sm:$0xff]  ;;  %v17250_v59 = vld [vmem:[#allocation78_spill] sm:$0xff] }
 0x156   : > { %13470 = vmatprep.subr.msk.bf16.mxu1 %vm1103_vm0, %v13605_v63  ;;  %v17249_v31 = vld [vmem:[#allocation27_spill] sm:$0xff]  ;;  %v17251_v63 = vld [vmem:[#allocation29_spill] sm:$0xff] }
 0x157   : > { %11007 = vmatmul.mubr.msk.bf16.gmra.mrb[32].mxu1 %vm910_vm1, %v17230_v56  ;;  %17241 = vst [vmem:[#allocation8_spill] sm:$0xff] %v14665_v34 }
 0x158   : > { %11481 = vmatmul.mubr.msk.bf16.gmra.mrb[116].mxu0 %vm910_vm1, %v14625_v9  ;;  %11010 = vmatprep.mubr.msk.bf16.mxu1 %vm910_vm1, %v17231_v60 }
 0x159   : > { %11484 = vmatprep.mubr.msk.bf16.mxu0 %vm910_vm1, %v14629_v13 }
 0x15f   : > { %11011 = vmatmul.mubr.msk.bf16.gmra.mrb[36].mxu1 %vm910_vm1, %v17238_v35 }
 0x160   : > { %11485 = vmatmul.mubr.msk.bf16.gmra.mrb[120].mxu0 %vm910_vm1, %v14649_v43  ;;  %11014 = vmatprep.mubr.msk.bf16.mxu1 %vm910_vm1, %v17239_v39  ;;  %v309_v43 = vld [vmem:[%s13737_s29 + $0x2ac] ss:$8 sps:$4 sm:$0xff]  }
 0x161   : > { %11488 = vmatprep.mubr.msk.bf16.mxu0 %vm910_vm1, %v14653_v8 }
 0x167   : > { %11015 = vmatmul.mubr.msk.bf16.gmra.mrb[40].mxu1 %vm910_vm1, %v17242_v21 }
 0x168   : > { %11489 = vmatmul.mubr.msk.bf16.gmra.mrb[124].mxu0 %vm910_vm1, %v14665_v34  ;;  %11018 = vmatprep.mubr.msk.bf16.mxu1 %vm910_vm1, %v17243_v57 }
 0x169   : > { %11494 = vmatprep.mubr.msk.bf16.mxu0 %vm910_vm1, %v17244_v0 }
 0x16f   : > { %11019 = vmatmul.mubr.msk.bf16.gmra.mrb[44].mxu1 %vm910_vm1, %v17245_v17 }
 0x170   : > { %11495 = vmatmul.mubr.msk.bf16.vlgmr.msra.gmra.mrb[0].mxu0 %vm910_vm1, %v13987_v54  ;;  %11022 = vmatprep.mubr.msk.bf16.mxu1 %vm910_vm1, %v17244_v0 }
 0x171   : > { %11623 = vmatpush3.bf16.msra.mxu0 %v5231_v1  ;;  %11498 = vmatprep.mubr.msk.bf16.mxu0 %vm910_vm1, %v13991_v6  ;;  %v17248_v1 = vld [vmem:[#allocation26_spill] sm:$0xff] }
 0x177   : > { %11023 = vmatmul.mubr.msk.bf16.gmra.mrb[48].mxu1 %vm910_vm1, %v13987_v54  ;;  %v313_v54 = vld [vmem:[%s13737_s29 + $0x2bc] ss:$456 sps:$4 sm:$0xff]  }
 0x178   : > { %11499 = vmatmul.mubr.msk.bf16.gmra.mrb[4].mxu0 %vm910_vm1, %v14016_v28  ;;  %11026 = vmatprep.mubr.msk.bf16.mxu1 %vm910_vm1, %v13991_v6 }
 0x179   : > { %11502 = vmatprep.mubr.msk.bf16.mxu0 %vm910_vm1, %v14081_v36 }
 0x17f   : > { %11027 = vmatmul.mubr.msk.bf16.gmra.mrb[52].mxu1 %vm910_vm1, %v14016_v28  ;;  %v17270_v28 = vld [vmem:[#allocation83_spill] sm:$0xff] }
 0x180   : > { %11503 = vmatmul.mubr.msk.bf16.gmra.mrb[8].mxu0 %vm910_vm1, %v14118_v47  ;;  %11030 = vmatprep.mubr.msk.bf16.mxu1 %vm910_vm1, %v14081_v36  ;;  %v17269_v36 = vld [vmem:[#allocation84_spill] sm:$0xff] }
 0x181   : > { %11506 = vmatprep.mubr.msk.bf16.mxu0 %vm910_vm1, %v14157_v41 }
 0x187   : > { %11031 = vmatmul.mubr.msk.bf16.gmra.mrb[56].mxu1 %vm910_vm1, %v14118_v47 }
 0x188   : > { %11507 = vmatmul.mubr.msk.bf16.gmra.mrb[12].mxu0 %vm910_vm1, %v14179_v23  ;;  %11034 = vmatprep.mubr.msk.bf16.mxu1 %vm910_vm1, %v14157_v41  ;;  %v17264_v41 = vld [vmem:[#allocation60_spill] sm:$0xff] }
 0x189   : > { %11510 = vmatprep.mubr.msk.bf16.mxu0 %vm910_vm1, %v14247_v25 }
 0x18f   : > { %11035 = vmatmul.mubr.msk.bf16.gmra.mrb[60].mxu1 %vm910_vm1, %v14179_v23 }
 0x190   : > { %11511 = vmatmul.mubr.msk.bf16.gmra.mrb[16].mxu0 %vm910_vm1, %v14258_v18  ;;  %11038 = vmatprep.mubr.msk.bf16.mxu1 %vm910_vm1, %v17246_v7  ;;  %v14753_v7 = vld [vmem:[%s13737_s29 + $0x288] sm:$0xf] }
 0x191   : > { %11514 = vmatprep.mubr.msk.bf16.mxu0 %vm910_vm1, %v14261_v58  ;;  %17257 = vst [vmem:[#allocation10_spill] sm:$0xff] %v14753_v7  ;;  %v504_v34 = vunpack.c.l.bf16 %v14753_v7  ;;  %v14768_v7 = vld [vmem:[%s13737_s29 + $0x298] sm:$0xf] }
 0x192   : > { %17262 = vst [vmem:[#allocation23_spill] sm:$0xff] %v14768_v7  ;;  %v508_v13 = vunpack.c.l.bf16 %v14768_v7  ;;  %v509_v7 = vunpack.c.l.bf16 %v305_v27 }
 0x193   : > { %v2283_v8 = vrot.slane %v504_v34, 1  ;;  %v17267_v34 = vld [vmem:[#allocation61_spill] sm:$0xff] }
 0x197   : > { %11039 = vmatmul.mubr.msk.bf16.gmra.mrb[64].mxu1 %vm910_vm1, %v17247_v50 }
 0x198   : > { %11515 = vmatmul.mubr.msk.bf16.gmra.mrb[20].mxu0 %vm910_vm1, %v14272_v4  ;;  %11042 = vmatprep.mubr.msk.bf16.mxu1 %vm910_vm1, %v17248_v1  ;;  %v17255_v1 = vld [vmem:[#allocation33_spill] sm:$0xff] }
 0x199   : > { %11518 = vmatprep.mubr.msk.bf16.mxu0 %vm910_vm1, %v14356_v52 }
 0x19f   : > { %11043 = vmatmul.mubr.msk.bf16.gmra.mrb[68].mxu1 %vm910_vm1, %v17249_v31  ;;  %v17256_v31 = vld [vmem:[#allocation55_spill] sm:$0xff] }
 0x1a0   : > { %11519 = vmatmul.mubr.msk.bf16.gmra.mrb[24].mxu0 %vm910_vm1, %v17250_v59  ;;  %11046 = vmatprep.mubr.msk.bf16.mxu1 %vm910_vm1, %v17251_v63  ;;  %v13606_v63 = vld [vmem:[%s13737_s29 + $0x280] sm:$0xf] }
 0x1a1   : > { %11522 = vmatprep.mubr.msk.bf16.mxu0 %vm910_vm1, %v17252_v22  ;;  %v502_v50 = vunpack.c.l.bf16 %v13606_v63  ;;  %v14764_v63 = vld [vmem:[%s13737_s29 + $0x290] sm:$0xf] }
 0x1a2   : > { %17261 = vst [vmem:[#allocation22_spill] sm:$0xff] %v14764_v63  ;;  %v506_v23 = vunpack.c.l.bf16 %v14764_v63 }
 0x1a4   : > { %v2286_v47 = vrot.slane %v506_v23, 1  ;;  %v14804_v23 = vld [vmem:[%s13737_s29 + $0x2b0] sm:$0xf] }
 0x1a5   : > { %17274 = vst [vmem:[#allocation43_spill] sm:$0xff] %v14804_v23 }
 0x1a7   : > { %11047 = vmatmul.mubr.msk.bf16.gmra.mrb[72].mxu1 %vm910_vm1, %v17253_v11  ;;  %v503_v11 = vunpack.c.l.bf16 %v299_v32 }
 0x1a8   : > { %11523 = vmatmul.mubr.msk.bf16.gmra.mrb[28].mxu0 %vm910_vm1, %v17254_v48  ;;  %11050 = vmatprep.mubr.msk.bf16.mxu1 %vm910_vm1, %v17255_v1  ;;  %v2280_v1 = vrot.slane %v502_v50, 1  ;;  %v507_v50 = vunpack.c.h.bf16 %v299_v32 }
 0x1a9   : > { %11526 = vmatprep.mubr.msk.bf16.mxu0 %vm910_vm1, %v17256_v31  ;;  %v2281_v19 = vrot.slane %v503_v11, 1  ;;  %v2284_v31 = vrot.slane %v505_v45, 1  ;;  %v510_v11 = vunpack.c.l.bf16 %v14776_v3  ;;  %v14780_v45 = vld [vmem:[%s13737_s29 + $0x2a8] sm:$0xf]  ;;  %v511_v3 = vunpack.c.h.bf16 %v305_v27 }
 0x1aa   : > { %17266 = vst [vmem:[#allocation24_spill] sm:$0xff] %v14780_v45  ;;  %v512_v24 = vunpack.c.l.bf16 %v14780_v45  ;;  %v2289_v45 = vrot.slane %v508_v13, 1  ;;  %v514_v13 = vunpack.c.l.bf16 %v14804_v23  ;;  %v13617_v23 = vld [vmem:[%s13737_s29 + $0x498] sm:$0xf] }
 0x1ab   : > { %v2282_v63 = vsel %vm715_vm2, %v2280_v1, %v2281_v19  ;;  %v2287_v19 = vrot.slane %v507_v50, 1  ;;  %v2290_v1 = vrot.slane %v509_v7, 1  ;;  %v2293_v27 = vrot.slane %v511_v3, 1 }
 0x1ac   : > { %v517_v3 = vunpack.c.l.bf16 %v313_v54  ;;  %v14833_v50 = vcombine.low %v14477_v30, %v14481_v2  ;;  %v17284_v2 = vld [vmem:[#allocation67_spill] sm:$0xff] }
 0x1ad   : > { %v14823_v7 = vsel %vm715_vm2, %v2289_v45, %v2290_v1 }
 0x1ae   : > { %17278 = vst [vmem:[#allocation49_spill] sm:$0xff] %v14823_v7  ;;  %17281 = vst [vmem:[#allocation50_spill] sm:$0xff] %v14833_v50  ;;  %v2302_v1 = vrot.slane %v517_v3, 1 }
 0x1af   : > { %11051 = vmatmul.mubr.msk.bf16.gmra.mrb[76].mxu1 %vm910_vm1, %v17263_v46  ;;  %v14789_v46 = vsel %vm715_vm2, %v2283_v8, %v2284_v31  ;;  %v2292_v8 = vrot.slane %v510_v11, 1  ;;  %v2295_v31 = vrot.slane %v512_v24, 1 }
 0x1b0   : > { %11527 = vmatmul.mubr.msk.bf16.gmra.mrb[32].mxu0 %vm910_vm1, %v17264_v41  ;;  %11054 = vmatprep.mubr.msk.bf16.mxu1 %vm910_vm1, %v14759_v26  ;;  %17268 = vst [vmem:[#allocation42_spill] sm:$0xff] %v14789_v46  ;;  %v513_v41 = vunpack.c.l.bf16 %v309_v43  ;;  %v14793_v26 = vcombine.low %v17270_v28, %v17269_v36  ;;  %v14800_v6 = vpack.c.bf16 %v14789_v46, %v2282_v63  ;;  %v14808_v36 = vld [vmem:[%s13737_s29 + $0x2b8] sm:$0xf]  ;;  %v515_v63 = vunpack.c.h.bf16 %v309_v43 }
 0x1b1   : > { %11530 = vmatprep.mubr.msk.bf16.mxu0 %vm910_vm1, %v17267_v34  ;;  %v17272_v34 = vld [vmem:[#allocation85_spill] sm:$0xff]  ;;  %17275 = vst [vmem:[#allocation44_spill] sm:$0xff] %v14808_v36  ;;  %v516_v28 = vunpack.c.l.bf16 %v14808_v36  ;;  %v14826_v11 = vsel %vm715_vm2, %v2292_v8, %v2293_v27  ;;  %v17288_v27 = vld [vmem:[#allocation72_spill] sm:$0xff] }
 0x1b2   : > { %17271 = vst [vmem:[#allocation14_spill] sm:$0xff] %v14793_v26  ;;  %v14797_v32 = vcombine.low %v17272_v34, %v14455_v5  ;;  %v2296_v37 = vrot.slane %v513_v41, 1  ;;  %v17276_v5 = vld [vmem:[#allocation64_spill] sm:$0xff]  ;;  %v14820_v41 = vsel %vm715_vm2, %v2286_v47, %v2287_v19  ;;  %17279 = vst [vmem:[#allocation17_spill] sm:$0xff] %v14826_v11  ;;  %v2298_v34 = vrot.slane %v514_v13, 1  ;;  %v17289_v13 = vld [vmem:[#allocation73_spill] sm:$0xff] }
 0x1b3   : > { %17277 = vst [vmem:[#allocation45_spill] sm:$0xff] %v14820_v41  ;;  %v14837_v47 = vpack.c.bf16 %v14823_v7, %v14820_v41  ;;  %v2301_v45 = vrot.slane %v516_v28, 1  ;;  %v2299_v19 = vrot.slane %v515_v63, 1  ;;  %v17290_v28 = vld [vmem:[#allocation16_spill] sm:$0xff]  ;;  %v13614_v63 = vld [vmem:[%s13737_s29 + $0x480] sm:$0xf] }
 0x1b4   : > { %17273 = vst [vmem:[#allocation15_spill] sm:$0xff] %v14797_v32  ;;  %v14829_v24 = vsel %vm715_vm2, %v2295_v31, %v2296_v37  ;;  %v353_v31 = vld [vmem:[%s13737_s29 + $0x48c] ss:$8 sps:$4 sm:$0xff]   ;;  %v554_v3 = vunpack.c.l.bf16 %v13614_v63  ;;  %v13616_v41 = vld [vmem:[%s13737_s29 + $0x490] sm:$0xf] }
 0x1b5   : > { %17280 = vst [vmem:[#allocation36_spill] sm:$0xff] %v14829_v24  ;;  %17282 = vst [vmem:[#allocation37_spill] sm:$0xff] %v14837_v47  ;;  %v14841_v43 = vpack.c.bf16 %v14829_v24, %v14826_v11  ;;  %v14852_v30 = vsel %vm715_vm2, %v2298_v34, %v2299_v19  ;;  %v14855_v37 = vsel %vm715_vm2, %v2301_v45, %v2302_v1  ;;  %v555_v34 = vunpack.c.h.bf16 %v313_v54  ;;  %v13615_v45 = vld [vmem:[%s13737_s29 + $0x488] sm:$0xf]  ;;  %v17291_v54 = vld [vmem:[#allocation76_spill] sm:$0xff] }
 0x1b6   : > { %17285 = vst [vmem:[#allocation28_spill] sm:$0xff] %v14852_v30  ;;  %17286 = vst [vmem:[#allocation39_spill] sm:$0xff] %v14855_v37  ;;  %v14859_v8 = vpack.c.bf16 %v14855_v37, %v14852_v30  ;;  %v556_v19 = vunpack.c.l.bf16 %v13615_v45  ;;  %v557_v1 = vunpack.c.l.bf16 %v353_v31  ;;  %v357_v37 = vld [vmem:[%s13737_s29 + $0x49c] ss:$8 sps:$4 sm:$0xff]   ;;  %v2328_v30 = vrot.slane %v554_v3, 1 }
 0x1b7   : > { %11055 = vmatmul.mubr.msk.bf16.gmra.mrb[80].mxu1 %vm910_vm1, %v14793_v26  ;;  %17283 = vst [vmem:[#allocation38_spill] sm:$0xff] %v14841_v43  ;;  %v2329_v24 = vrot.slane %v555_v34, 1  ;;  %v558_v46 = vunpack.c.l.bf16 %v13616_v41  ;;  %v559_v36 = vunpack.c.h.bf16 %v353_v31  ;;  %v561_v63 = vunpack.c.l.bf16 %v357_v37  ;;  %v17292_v45 = vld [vmem:[#allocation18_spill] sm:$0xff]  ;;  %v13619_v34 = vld [vmem:[%s13737_s29 + $0x90] sm:$0xf] }
 0x1b8   : > { %11531 = vmatmul.mubr.msk.bf16.gmra.mrb[36].mxu0 %vm910_vm1, %v17276_v5  ;;  %11058 = vmatprep.mubr.msk.bf16.mxu1 %vm910_vm1, %v14797_v32  ;;  %17287 = vst [vmem:[#allocation78_spill] sm:$0xff] %v14859_v8  ;;  %v2331_v11 = vrot.slane %v556_v19, 1  ;;  %v2332_v7 = vrot.slane %v557_v1, 1  ;;  %v452_v19 = vunpack.c.l.bf16 %v13619_v34  ;;  %v17293_v41 = vld [vmem:[#allocation20_spill] sm:$0xff]  ;;  %v13620_v1 = vld [vmem:[%s13737_s29 + $0x4a0] sm:$0xf] }
 0x1b9   : > { %11534 = vmatprep.mubr.msk.bf16.mxu0 %vm910_vm1, %v14800_v6  ;;  %v2334_v34 = vrot.slane %v558_v46, 1  ;;  %v2335_v32 = vrot.slane %v559_v36, 1  ;;  %v14898_v46 = vld [vmem:[%s13737_s29 + $0x8c] ss:$1584 sps:$4 sm:$0xff]  }
 0x1ba   : > { %v2333_v31 = vsel %vm715_vm2, %v2331_v11, %v2332_v7  ;;  %v14893_v11 = vld [vmem:[%s13737_s29 + $0x4bc] ss:$456 sps:$4 sm:$0xff]  }
 0x1bb   : > { %v14901_v36 = vld [vmem:[%s13737_s29 + $0x94] ss:$8 sps:$4 sm:$0xff]  }
 0x1bf   : > { %11059 = vmatmul.mubr.msk.bf16.gmra.mrb[84].mxu1 %vm910_vm1, %v14833_v50  ;;  %v13621_v50 = vld [vmem:[%s13737_s29 + $0x4a8] sm:$0xf] }
 0x1c0   : > { %11535 = vmatmul.mubr.msk.bf16.gmra.mrb[40].mxu0 %vm910_vm1, %v14837_v47  ;;  %11062 = vmatprep.mubr.msk.bf16.mxu1 %vm910_vm1, %v17284_v2  ;;  %v563_v2 = vunpack.c.h.bf16 %v357_v37 }
 0x1c1   : > { %11538 = vmatprep.mubr.msk.bf16.mxu0 %vm910_vm1, %v14841_v43 }
 0x1c7   : > { %11063 = vmatmul.mubr.msk.bf16.gmra.mrb[88].mxu1 %vm910_vm1, %v17288_v27  ;;  %v13618_v27 = vld [vmem:[%s13737_s29 + $0x88] sm:$0xf] }
 0x1c8   : > { %11539 = vmatmul.mubr.msk.bf16.gmra.mrb[44].mxu0 %vm910_vm1, %v14859_v8  ;;  %11066 = vmatprep.mubr.msk.bf16.mxu1 %vm910_vm1, %v17289_v13  ;;  %v361_v13 = vld [vmem:[%s13737_s29 + $0x4ac] ss:$8 sps:$4 sm:$0xff]   ;;  %v450_v3 = vunpack.c.l.bf16 %v13618_v27 }
 0x1c9   : > { %11542 = vmatprep.mubr.msk.bf16.mxu0 %vm910_vm1, %v17290_v28  ;;  %v560_v28 = vunpack.c.l.bf16 %v13617_v23  ;;  %v2330_v23 = vsel %vm715_vm2, %v2328_v30, %v2329_v24  ;;  %v565_v27 = vunpack.c.l.bf16 %v361_v13  ;;  %v2341_v24 = vrot.slane %v563_v2, 1  ;;  %v13622_v2 = vld [vmem:[%s13737_s29 + $0x4b0] sm:$0xf] }
 0x1ca   : > { %v14890_v8 = vpack.c.bf16 %v2333_v31, %v2330_v23  ;;  %v2235_v37 = vrot.slane %v450_v3, 1 }
 0x1cb   : > { %v2337_v26 = vrot.slane %v560_v28, 1  ;;  %v2344_v7 = vrot.slane %v565_v27, 1  ;;  %v17295_v28 = vld [vmem:[#allocation21_spill] sm:$0xff]  ;;  %v13624_v27 = vld [vmem:[%s13737_s29 + $0x80] sm:$0xf] }
 0x1cc   : > { %17294 = vst [vmem:[#allocation79_spill] sm:$0xff] %v14890_v8 }
 0x1cf   : > { %11067 = vmatmul.mubr.msk.bf16.gmra.mrb[92].mxu1 %vm910_vm1, %v17291_v54  ;;  %v562_v54 = vunpack.c.l.bf16 %v13620_v1  ;;  %v2238_v1 = vrot.slane %v452_v19, 1 }
 0x1d0   : > { %11543 = vmatmul.mubr.msk.bf16.gmra.mrb[48].mxu0 %vm910_vm1, %v17292_v45  ;;  %11070 = vmatprep.mubr.msk.bf16.mxu1 %vm910_vm1, %v14247_v25  ;;  %v564_v45 = vunpack.c.l.bf16 %v13621_v50  ;;  %v2338_v25 = vrot.slane %v561_v63, 1  ;;  %v2336_v50 = vsel %vm715_vm2, %v2334_v34, %v2335_v32  ;;  %v566_v63 = vunpack.c.l.bf16 %v13622_v2 }
 0x1d1   : > { %11546 = vmatprep.mubr.msk.bf16.mxu0 %vm910_vm1, %v17293_v41  ;;  %v2340_v41 = vrot.slane %v562_v54, 1  ;;  %v567_v54 = vunpack.c.h.bf16 %v361_v13  ;;  %v453_v32 = vunpack.c.l.bf16 %v14901_v36  ;;  %v448_v34 = vunpack.c.l.bf16 %v13624_v27 }
 0x1d2   : > { %v2343_v30 = vrot.slane %v564_v45, 1  ;;  %v2339_v43 = vsel %vm715_vm2, %v2337_v26, %v2338_v25  ;;  %v451_v45 = vunpack.c.l.bf16 %v14898_v46  ;;  %v13623_v26 = vld [vmem:[%s13737_s29 + $0x4b8] sm:$0xf]  ;;  %v2346_v2 = vrot.slane %v566_v63, 1 }
 0x1d3   : > { %v568_v3 = vunpack.c.l.bf16 %v13623_v26  ;;  %v2342_v19 = vsel %vm715_vm2, %v2340_v41, %v2341_v24  ;;  %v2239_v31 = vrot.slane %v453_v32, 1  ;;  %v14919_v25 = vpack.c.bf16 %v2339_v43, %v2336_v50 }
 0x1d4   : > { %v2345_v23 = vsel %vm715_vm2, %v2343_v30, %v2344_v7  ;;  %v2236_v13 = vrot.slane %v451_v45, 1  ;;  %v14934_v30 = vld [vmem:[%s13737_s29 + $0x84] ss:$48 sps:$4 sm:$0xff]   ;;  %v2232_v43 = vrot.slane %v448_v34, 1 }
 0x1d5   : > { %17296 = vst [vmem:[#allocation80_spill] sm:$0xff] %v14919_v25  ;;  %v14925_v26 = vsel %vm715_vm2, %v2238_v1, %v2239_v31  ;;  %v2349_v47 = vrot.slane %v568_v3, 1  ;;  %v449_v7 = vunpack.c.l.bf16 %v14934_v30  ;;  %v17305_v3 = vld [vmem:[#allocation69_spill] sm:$0xff]  ;;  %v17307_v31 = vld [vmem:[#allocation71_spill] sm:$0xff] }
 0x1d6   : > { %v612_v27 = vunpack.c.l.bf16 %v17307_v31  ;;  %v253_v31 = vld [vmem:[%s13737_s29 + $0xa4] ss:$8 sps:$4 sm:$0xff]  }
 0x1d7   : > { %11071 = vmatmul.mubr.msk.bf16.gmra.mrb[96].mxu1 %vm910_vm1, %v14258_v18  ;;  %v569_v18 = vunpack.c.l.bf16 %v14893_v11  ;;  %v2233_v50 = vrot.slane %v449_v7, 1 }
 0x1d8   : > { %11547 = vmatmul.mubr.msk.bf16.gmra.mrb[52].mxu0 %vm910_vm1, %v17295_v28  ;;  %11074 = vmatprep.mubr.msk.bf16.mxu1 %vm910_vm1, %v14261_v58  ;;  %v2347_v58 = vrot.slane %v567_v54, 1  ;;  %v14922_v28 = vsel %vm715_vm2, %v2235_v37, %v2236_v13 }
 0x1d9   : > { %11550 = vmatprep.mubr.msk.bf16.mxu0 %vm910_vm1, %v14890_v8  ;;  %v14927_v8 = vpack.c.bf16 %v2345_v23, %v2342_v19  ;;  %v2350_v41 = vrot.slane %v569_v18, 1  ;;  %v14931_v24 = vpack.c.bf16 %v14925_v26, %v14922_v28  ;;  %v608_v18 = vunpack.c.l.bf16 %v17305_v3  ;;  %v17316_v3 = vld [vmem:[#allocation34_spill] sm:$0xff] }
 0x1da   : > { %v2348_v37 = vsel %vm715_vm2, %v2346_v2, %v2347_v58 }
 0x1db   : > { %17297 = vst [vmem:[#allocation82_spill] sm:$0xff] %v14927_v8  ;;  %17298 = vst [vmem:[#allocation81_spill] sm:$0xff] %v14931_v24  ;;  %v2351_v1 = vsel %vm715_vm2, %v2349_v47, %v2350_v41  ;;  %v14965_v47 = vld [vmem:[%s16905_s1 + $0x1c] sm:$0xf] }
 0x1dc   : > { %v14947_v63 = vpack.c.bf16 %v2351_v1, %v2348_v37  ;;  %13474 = vmatprep.subr.msk.bf16.mxu0 %vm1103_vm0, %v14965_v47  ;;  %v2391_v1 = vrot.slane %v612_v27, 1  ;;  %v17321_v27 = vld [vmem:[#allocation54_spill] sm:$0xff] }
 0x1de   : > { %17299 = vst [vmem:[#allocation84_spill] sm:$0xff] %v14947_v63 }
 0x1df   : > { %11075 = vmatmul.mubr.msk.bf16.gmra.mrb[100].mxu1 %vm910_vm1, %v14272_v4  ;;  %v14950_v4 = vsel %vm715_vm2, %v2232_v43, %v2233_v50 }
 0x1e0   : > { %11551 = vmatmul.mubr.msk.bf16.gmra.mrb[56].mxu0 %vm910_vm1, %v14919_v25  ;;  %11078 = vmatprep.mubr.msk.bf16.mxu1 %vm910_vm1, %v14356_v52  ;;  %v2408_v54 = vpack.c.bf16 %v14922_v28, %v14950_v4  ;;  %v17300_v52 = vld [vmem:[#allocation77_spill] sm:$0xff]  ;;  %v17338_v28 = vld [vmem:[#allocation19_spill] sm:$0xff] }
 0x1e1   : > { %11554 = vmatprep.mubr.msk.bf16.mxu0 %vm910_vm1, %v14927_v8 }
 0x1e7   : > { %11079 = vmatmul.mubr.msk.bf16.gmra.mrb[104].mxu1 %vm910_vm1, %v17250_v59 }
 0x1e8   : > { %11555 = vmatmul.mubr.msk.bf16.gmra.mrb[60].mxu0 %vm910_vm1, %v14947_v63  ;;  %11082 = vmatprep.mubr.msk.bf16.mxu1 %vm910_vm1, %v17252_v22 }
 0x1e9   : > { %11558 = vmatprep.mubr.msk.bf16.mxu0 %vm910_vm1, %v17300_v52 }
 0x1ef   : > { %11083 = vmatmul.mubr.msk.bf16.gmra.mrb[108].mxu1 %vm910_vm1, %v17254_v48 }
 0x1f0   : > { %11559 = vmatmul.mubr.msk.bf16.gmra.mrb[64].mxu0 %vm910_vm1, %v14350_v20  ;;  %11086 = vmatprep.mubr.msk.bf16.mxu1 %vm910_vm1, %v17300_v52  ;;  %v17309_v52 = vld [vmem:[#allocation30_spill] sm:$0xff] }
 0x1f1   : > { %11562 = vmatprep.mubr.msk.bf16.mxu0 %vm910_vm1, %v14353_v38 }
 0x1f7   : > { %11087 = vmatmul.mubr.msk.bf16.gmra.mrb[112].mxu1 %vm910_vm1, %v14350_v20  ;;  %v17303_v20 = vld [vmem:[#allocation66_spill] sm:$0xff] }
 0x1f8   : > { %11563 = vmatmul.mubr.msk.bf16.gmra.mrb[68].mxu0 %vm910_vm1, %v14367_v15  ;;  %11090 = vmatprep.mubr.msk.bf16.mxu1 %vm910_vm1, %v14353_v38  ;;  %v604_v22 = vunpack.c.l.bf16 %v17303_v20 }
 0x1f9   : > { %11566 = vmatprep.mubr.msk.bf16.mxu0 %vm910_vm1, %v14418_v62 }
 0x1ff   : > { %11091 = vmatmul.mubr.msk.bf16.gmra.mrb[116].mxu1 %vm910_vm1, %v14367_v15  ;;  %v17302_v15 = vld [vmem:[#allocation65_spill] sm:$0xff] }
 0x200   : > { %11567 = vmatmul.mubr.msk.bf16.gmra.mrb[72].mxu0 %vm910_vm1, %v14438_v49  ;;  %11094 = vmatprep.mubr.msk.bf16.mxu1 %vm910_vm1, %v14418_v62  ;;  %v602_v38 = vunpack.c.l.bf16 %v17302_v15  ;;  %v603_v62 = vunpack.c.h.bf16 %v14893_v11  ;;  %v17311_v15 = vld [vmem:[#allocation74_spill] sm:$0xff] }
 0x201   : > { %11570 = vmatprep.mubr.msk.bf16.mxu0 %vm910_vm1, %v14441_v42 }
 0x202   : > { %v2376_v48 = vrot.slane %v602_v38, 1  ;;  %v614_v38 = vunpack.c.l.bf16 %v17311_v15  ;;  %v17328_v15 = vld [vmem:[#allocation94_spill] sm:$0xff] }
 0x207   : > { %11095 = vmatmul.mubr.msk.bf16.gmra.mrb[120].mxu1 %vm910_vm1, %v14438_v49  ;;  %v401_v49 = vld [vmem:[%s13737_s29 + $0x68c] ss:$8 sps:$4 sm:$0xff]  }
 0x208   : > { %11571 = vmatmul.mubr.msk.bf16.gmra.mrb[76].mxu0 %vm910_vm1, %v14472_v10  ;;  %11098 = vmatprep.mubr.msk.bf16.mxu1 %vm910_vm1, %v14441_v42  ;;  %v17301_v42 = vld [vmem:[#allocation2_spill] sm:$0xff]  ;;  %v607_v45 = vunpack.c.h.bf16 %v401_v49 }
 0x209   : > { %11574 = vmatprep.mubr.msk.bf16.mxu0 %vm910_vm1, %v13828_v40 }
 0x20a   : > { %v2383_v58 = vrot.slane %v607_v45, 1 }
 0x20f   : > { %11099 = vmatmul.mubr.msk.bf16.gmra.mrb[124].mxu1 %vm910_vm1, %v14472_v10 }
 0x210   : > { %11575 = vmatmul.mubr.msk.bf16.gmra.mrb[80].mxu0 %vm910_vm1, %v13833_v44  ;;  %11104 = vmatprep.mubr.msk.bf16.mxu1 %vm910_vm1, %v17225_v33  ;;  %v605_v33 = vunpack.c.l.bf16 %v401_v49 }
 0x211   : > { %11578 = vmatprep.mubr.msk.bf16.mxu0 %vm910_vm1, %v13849_v51 }
 0x217   : > { %11105 = vmatmul.mubr.msk.bf16.vlgmr.msra.gmra.mrb[0].mxu1 %vm910_vm1, %v17230_v56  ;;  %v2377_v56 = vrot.slane %v603_v62, 1  ;;  %v17312_v62 = vld [vmem:[#allocation32_spill] sm:$0xff] }
 0x218   : > { %11579 = vmatmul.mubr.msk.bf16.gmra.mrb[84].mxu0 %vm910_vm1, %v14573_v16  ;;  %11108 = vmatprep.mubr.msk.bf16.mxu1 %vm910_vm1, %v17231_v60  ;;  %v2379_v60 = vrot.slane %v604_v22, 1 }
 0x219   : > { %11582 = vmatprep.mubr.msk.bf16.mxu0 %vm910_vm1, %v17223_v53  ;;  %12265 = vmatpush3.bf16.msra.mxu1 %v17301_v42  ;;  %v2378_v11 = vsel %vm715_vm2, %v2376_v48, %v2377_v56  ;;  %v17310_v42 = vld [vmem:[#allocation89_spill] sm:$0xff]  ;;  %v617_v56 = vunpack.c.h.bf16 %v14898_v46 }
 0x21a   : > { %v17317_v46 = vld [vmem:[#allocation41_spill] sm:$0xff] }
 0x21f   : > { %11109 = vmatmul.mubr.msk.bf16.gmra.mrb[4].mxu1 %vm910_vm1, %v17238_v35  ;;  %v2380_v35 = vrot.slane %v605_v33, 1  ;;  %v17313_v33 = vld [vmem:[#allocation75_spill] sm:$0xff] }
 0x220   : > { %11583 = vmatmul.mubr.msk.bf16.gmra.mrb[88].mxu0 %vm910_vm1, %v17224_v29  ;;  %11112 = vmatprep.mubr.msk.bf16.mxu1 %vm910_vm1, %v17239_v39  ;;  %v405_v39 = vld [vmem:[%s13737_s29 + $0x69c] ss:$8 sps:$4 sm:$0xff]   ;;  %v616_v48 = vunpack.c.l.bf16 %v17313_v33 }
 0x221   : > { %11586 = vmatprep.mubr.msk.bf16.mxu0 %vm910_vm1, %v17226_v61  ;;  %v2381_v32 = vsel %vm715_vm2, %v2379_v60, %v2380_v35  ;;  %v609_v19 = vunpack.c.l.bf16 %v405_v39  ;;  %v611_v13 = vunpack.c.h.bf16 %v405_v39 }
 0x222   : > { %v15054_v41 = vpack.c.bf16 %v2381_v32, %v2378_v11  ;;  %v2397_v11 = vrot.slane %v616_v48, 1  ;;  %v2398_v32 = vrot.slane %v617_v56, 1 }
 0x223   : > { %v2386_v43 = vrot.slane %v609_v19, 1  ;;  %v2389_v37 = vrot.slane %v611_v13, 1  ;;  %v17320_v13 = vld [vmem:[#allocation7_spill] sm:$0xff] }
 0x224   : > { %17308 = vst [vmem:[#allocation83_spill] sm:$0xff] %v15054_v41 }
 0x227   : > { %11113 = vmatmul.mubr.msk.bf16.gmra.mrb[8].mxu1 %vm910_vm1, %v17242_v21  ;;  %v409_v21 = vld [vmem:[%s13737_s29 + $0x6ac] ss:$8 sps:$4 sm:$0xff]  }
 0x228   : > { %11587 = vmatmul.mubr.msk.bf16.gmra.mrb[92].mxu0 %vm910_vm1, %v14625_v9  ;;  %11116 = vmatprep.mubr.msk.bf16.mxu1 %vm910_vm1, %v17243_v57  ;;  %v17304_v57 = vld [vmem:[#allocation68_spill] sm:$0xff]  ;;  %v613_v34 = vunpack.c.l.bf16 %v409_v21  ;;  %v615_v22 = vunpack.c.h.bf16 %v409_v21 }
 0x229   : > { %11590 = vmatprep.mubr.msk.bf16.mxu0 %vm910_vm1, %v14474_v55  ;;  %v606_v59 = vunpack.c.l.bf16 %v17304_v57  ;;  %v2394_v57 = vrot.slane %v614_v38, 1  ;;  %v460_v38 = vunpack.c.l.bf16 %v17328_v15 }
 0x22a   : > { %v2392_v50 = vrot.slane %v613_v34, 1  ;;  %v2395_v45 = vrot.slane %v615_v22, 1  ;;  %v17322_v34 = vld [vmem:[#allocation11_spill] sm:$0xff] }
 0x22b   : > { %v2382_v2 = vrot.slane %v606_v59, 1 }
 0x22c   : > { %v2393_v35 = vsel %vm715_vm2, %v2391_v1, %v2392_v50  ;;  %v2396_v21 = vsel %vm715_vm2, %v2394_v57, %v2395_v45  ;;  %v455_v1 = vunpack.c.h.bf16 %v14901_v36  ;;  %v457_v50 = vunpack.c.l.bf16 %v253_v31  ;;  %v17330_v36 = vld [vmem:[#allocation96_spill] sm:$0xff] }
 0x22d   : > { %v2384_v49 = vsel %vm715_vm2, %v2382_v2, %v2383_v58  ;;  %v17323_v2 = vld [vmem:[#allocation90_spill] sm:$0xff] }
 0x22e   : > { %v454_v58 = vunpack.c.l.bf16 %v17323_v2  ;;  %v2242_v48 = vrot.slane %v455_v1, 1  ;;  %v2245_v56 = vrot.slane %v457_v50, 1 }
 0x22f   : > { %11117 = vmatmul.mubr.msk.bf16.gmra.mrb[12].mxu1 %vm910_vm1, %v17245_v17  ;;  %v17306_v17 = vld [vmem:[#allocation70_spill] sm:$0xff] }
 0x230   : > { %11591 = vmatmul.mubr.msk.bf16.gmra.mrb[96].mxu0 %vm910_vm1, %v14497_v12  ;;  %11120 = vmatprep.mubr.msk.bf16.mxu1 %vm910_vm1, %v17244_v0  ;;  %v610_v23 = vunpack.c.l.bf16 %v17306_v17  ;;  %v2385_v0 = vrot.slane %v608_v18, 1  ;;  %v2399_v18 = vsel %vm715_vm2, %v2397_v11, %v2398_v32  ;;  %v17318_v17 = vld [vmem:[#allocation47_spill] sm:$0xff]  ;;  %v2241_v22 = vrot.slane %v454_v58, 1  ;;  %v259_v11 = vld [vmem:[%s13737_s29 + $0xbc] ss:$8 sps:$4 sm:$0xff]  }
 0x231   : > { %11594 = vmatprep.mubr.msk.bf16.mxu0 %vm910_vm1, %v14499_v14  ;;  %v15085_v19 = vpack.c.bf16 %v2399_v18, %v2396_v21  ;;  %v17329_v32 = vld [vmem:[#allocation97_spill] sm:$0xff]  ;;  %v17331_v21 = vld [vmem:[#allocation46_spill] sm:$0xff]  ;;  %v17332_v18 = vld [vmem:[#allocation8_spill] sm:$0xff]  ;;  %v463_v2 = vunpack.c.l.bf16 %v259_v11  ;;  %v465_v58 = vunpack.c.h.bf16 %v259_v11 }
 0x232   : > { %v2388_v7 = vrot.slane %v610_v23, 1  ;;  %v2387_v20 = vsel %vm715_vm2, %v2385_v0, %v2386_v43  ;;  %v17319_v23 = vld [vmem:[#allocation52_spill] sm:$0xff]  ;;  %v17324_v0 = vld [vmem:[#allocation91_spill] sm:$0xff] }
 0x233   : > { %v15071_v39 = vpack.c.bf16 %v2387_v20, %v2384_v49  ;;  %v456_v43 = vunpack.c.l.bf16 %v17324_v0  ;;  %v461_v20 = vunpack.c.h.bf16 %v14934_v30  ;;  %v17333_v30 = vld [vmem:[#allocation48_spill] sm:$0xff]  ;;  %v4499_v15 = vrot.slane %v465_v58, 1  ;;  %v17346_v11 = vld [vmem:[#allocation31_spill] sm:$0xff] }
 0x234   : > { %v2390_v60 = vsel %vm715_vm2, %v2388_v7, %v2389_v37  ;;  %v17325_v7 = vld [vmem:[#allocation40_spill] sm:$0xff]  ;;  %v17326_v37 = vld [vmem:[#allocation6_spill] sm:$0xff] }
 0x235   : > { %17314 = vst [vmem:[#allocation85_spill] sm:$0xff] %v15071_v39  ;;  %v15073_v59 = vpack.c.bf16 %v2393_v35, %v2390_v60  ;;  %v2244_v33 = vrot.slane %v456_v43, 1  ;;  %v2250_v35 = vrot.slane %v460_v38, 1  ;;  %v2251_v45 = vrot.slane %v461_v20, 1  ;;  %v17336_v38 = vld [vmem:[#allocation51_spill] sm:$0xff] }
 0x236   : > { %v15202_v58 = vld [vmem:[%s13737_s29 + $0x520] ss:$8 sps:$4 sm:$0xff]  }
 0x237   : > { %11121 = vmatmul.mubr.msk.bf16.gmra.mrb[16].mxu1 %vm910_vm1, %v17309_v52  ;;  %17315 = vst [vmem:[#allocation64_spill] sm:$0xff] %v15073_v59  ;;  %v17327_v52 = vld [vmem:[#allocation93_spill] sm:$0xff]  ;;  %v2252_v43 = vsel %vm715_vm2, %v2250_v35, %v2251_v45  ;;  %v17342_v35 = vld [vmem:[#allocation60_spill] sm:$0xff] }
 0x238   : > { %11595 = vmatmul.mubr.msk.bf16.gmra.mrb[100].mxu0 %vm910_vm1, %v17310_v42  ;;  %11124 = vmatprep.mubr.msk.bf16.mxu1 %vm910_vm1, %v17312_v62  ;;  %v458_v49 = vunpack.c.l.bf16 %v17327_v52  ;;  %v459_v62 = vunpack.c.h.bf16 %v253_v31  ;;  %v2246_v31 = vsel %vm715_vm2, %v2244_v33, %v2245_v56  ;;  %v17340_v56 = vld [vmem:[#allocation55_spill] sm:$0xff]  ;;  %v17345_v45 = vld [vmem:[#allocation29_spill] sm:$0xff] }
 0x239   : > { %11598 = vmatprep.mubr.msk.bf16.mxu0 %vm910_vm1, %v15054_v41 }
 0x23a   : > { %v2247_v60 = vrot.slane %v458_v49, 1  ;;  %v2248_v57 = vrot.slane %v459_v62, 1  ;;  %v2254_v49 = vrot.slane %v463_v2, 1  ;;  %v17355_v2 = vld [vmem:[#allocation50_spill] sm:$0xff] }
 0x23c   : > { %v2249_v0 = vsel %vm715_vm2, %v2247_v60, %v2248_v57  ;;  %v17341_v60 = vld [vmem:[#allocation26_spill] sm:$0xff]  ;;  %v17343_v57 = vld [vmem:[#allocation27_spill] sm:$0xff] }
 0x23d   : > { %v15127_v52 = vpack.c.bf16 %v2252_v43, %v2249_v0 }
 0x23f   : > { %11125 = vmatmul.mubr.msk.bf16.gmra.mrb[20].mxu1 %vm910_vm1, %v17316_v3  ;;  %v462_v3 = vunpack.c.l.bf16 %v17329_v32  ;;  %17335 = vst [vmem:[#allocation2_spill] sm:$0xff] %v15127_v52  ;;  %v17347_v32 = vld [vmem:[#allocation33_spill] sm:$0xff] }
 0x240   : > { %11599 = vmatmul.mubr.msk.bf16.gmra.mrb[104].mxu0 %vm910_vm1, %v15071_v39  ;;  %11128 = vmatprep.mubr.msk.bf16.mxu1 %vm910_vm1, %v17317_v46  ;;  %v464_v46 = vunpack.c.l.bf16 %v17330_v36  ;;  %v17349_v36 = vld [vmem:[#allocation35_spill] sm:$0xff] }
 0x241   : > { %11602 = vmatprep.mubr.msk.bf16.mxu0 %vm910_vm1, %v15073_v59 }
 0x242   : > { %v4498_v50 = vrot.slane %v464_v46, 1  ;;  %v17350_v46 = vld [vmem:[#allocation38_spill] sm:$0xff] }
 0x244   : > { %v4500_v20 = vsel %vm715_vm2, %v4498_v50, %v4499_v15  ;;  %v15216_v50 = vld [vmem:[%s13737_s29 + $0x580] ss:$8 sps:$4 sm:$0xff]   ;;  %v15223_v15 = vld [vmem:[%s13737_s29 + $0x590] ss:$8 sps:$4 sm:$0xff]  }
 0x247   : > { %11129 = vmatmul.mubr.msk.bf16.gmra.mrb[24].mxu1 %vm910_vm1, %v17318_v17  ;;  %v2243_v17 = vsel %vm715_vm2, %v2241_v22, %v2242_v48  ;;  %v2410_v48 = vpack.c.bf16 %v2249_v0, %v2246_v31  ;;  %v17356_v0 = vld [vmem:[#allocation67_spill] sm:$0xff] }
 0x248   : > { %11603 = vmatmul.mubr.msk.bf16.gmra.mrb[108].mxu0 %vm910_vm1, %v15085_v19  ;;  %11132 = vmatprep.mubr.msk.bf16.mxu1 %vm910_vm1, %v17319_v23  ;;  %v15125_v1 = vpack.c.bf16 %v2246_v31, %v2243_v17  ;;  %v2409_v22 = vpack.c.bf16 %v2243_v17, %v14925_v26  ;;  %v17339_v26 = vld [vmem:[#allocation25_spill] sm:$0xff]  ;;  %v17354_v17 = vld [vmem:[#allocation15_spill] sm:$0xff] }
 0x249   : > { %11606 = vmatprep.mubr.msk.bf16.mxu0 %vm910_vm1, %v17320_v13  ;;  %v15195_v31 = vld [vmem:[%s13737_s29 + $0x510] ss:$8 sps:$4 sm:$0xff]  }
 0x24a   : > { %17334 = vst [vmem:[#allocation77_spill] sm:$0xff] %v15125_v1  ;;  %v17385_v13 = vld [vmem:[#allocation5_spill] sm:$0xff] }
 0x24f   : > { %11133 = vmatmul.mubr.msk.bf16.gmra.mrb[28].mxu1 %vm910_vm1, %v17321_v27 }
 0x250   : > { %11607 = vmatmul.mubr.msk.bf16.gmra.mrb[112].mxu0 %vm910_vm1, %v17322_v34  ;;  %11136 = vmatprep.mubr.msk.bf16.mxu1 %vm910_vm1, %v17325_v7  ;;  %v2253_v7 = vrot.slane %v462_v3, 1  ;;  %v17348_v3 = vld [vmem:[#allocation37_spill] sm:$0xff] }
 0x251   : > { %11610 = vmatprep.mubr.msk.bf16.mxu0 %vm910_vm1, %v17326_v37 }
 0x252   : > { %v2255_v62 = vsel %vm715_vm2, %v2253_v7, %v2254_v49  ;;  %v17357_v7 = vld [vmem:[#allocation72_spill] sm:$0xff]  ;;  %v17358_v49 = vld [vmem:[#allocation73_spill] sm:$0xff] }
 0x253   : > { %v15142_v33 = vpack.c.bf16 %v4500_v20, %v2255_v62  ;;  %v2411_v4 = vpack.c.bf16 %v2255_v62, %v2252_v43  ;;  %v15209_v43 = vld [vmem:[%s13737_s29 + $0x530] ss:$8 sps:$4 sm:$0xff]   ;;  %v15230_v62 = vld [vmem:[%s13737_s29 + $0x5a0] ss:$8 sps:$4 sm:$0xff]  }
 0x254   : > { %v15237_v20 = vld [vmem:[%s13737_s29 + $0x5b0] ss:$8 sps:$4 sm:$0xff]  }
 0x255   : > { %17337 = vst [vmem:[#allocation65_spill] sm:$0xff] %v15142_v33 }
 0x257   : > { %11137 = vmatmul.mubr.msk.bf16.gmra.mrb[32].mxu1 %vm910_vm1, %v17331_v21  ;;  %v17352_v21 = vld [vmem:[#allocation78_spill] sm:$0xff] }
 0x258   : > { %11611 = vmatmul.mubr.msk.bf16.gmra.mrb[116].mxu0 %vm910_vm1, %v17332_v18  ;;  %11140 = vmatprep.mubr.msk.bf16.mxu1 %vm910_vm1, %v17333_v30  ;;  %v15188_v30 = vld [vmem:[%s13737_s29 + $0x500] ss:$8 sps:$4 sm:$0xff]   ;;  %v13646_v18 = vld [vmem:[%s13737_s29 + $0x30] sm:$0xf] }
 0x259   : > { %11614 = vmatprep.mubr.msk.bf16.mxu0 %vm910_vm1, %v14931_v24  ;;  %v13644_v24 = vld [vmem:[%s13737_s29 + $0x20] sm:$0xf] }
 0x25f   : > { %11141 = vmatmul.mubr.msk.bf16.gmra.mrb[36].mxu1 %vm910_vm1, %v17336_v38  ;;  %v17359_v38 = vld [vmem:[#allocation76_spill] sm:$0xff] }
 0x260   : > { %11615 = vmatmul.mubr.msk.bf16.gmra.mrb[120].mxu0 %vm910_vm1, %v15125_v1  ;;  %11144 = vmatprep.mubr.msk.bf16.mxu1 %vm910_vm1, %v2408_v54  ;;  %v5899_v54 = vsel %vm1103_vm0, %v14965_v47, 0  ;;  %v17344_v47 = vld [vmem:[#allocation61_spill] sm:$0xff] }
 0x261   : > { %11618 = vmatprep.mubr.msk.bf16.mxu0 %vm910_vm1, %v15127_v52  ;;  %v15334_v52 = vld [vmem:[%s16905_s1 + $0x20] sm:$0xf]  ;;  %v13643_v1 = vld [vmem:[%s13737_s29 + $0x18] sm:$0xf] }
 0x267   : > { %11145 = vmatmul.mubr.msk.bf16.gmra.mrb[40].mxu1 %vm910_vm1, %v2409_v22  ;;  %v15244_v22 = vld [vmem:[%s13737_s29 + $0x700] ss:$8 sps:$4 sm:$0xff]  }
 0x268   : > { %11619 = vmatmul.mubr.msk.bf16.gmra.mrb[124].mxu0 %vm910_vm1, %v15142_v33  ;;  %11148 = vmatprep.mubr.msk.bf16.mxu1 %vm910_vm1, %v2410_v48  ;;  %v15251_v48 = vld [vmem:[%s13737_s29 + $0x710] ss:$8 sps:$4 sm:$0xff]  }
 0x269   : > { %11624 = vmatprep.mubr.msk.bf16.mxu0 %vm910_vm1, %v17338_v28  ;;  %v15258_v28 = vld [vmem:[%s13737_s29 + $0x720] ss:$8 sps:$4 sm:$0xff]   ;;  %v15323_v33 = vld [vmem:[%s13737_s29 + $0x7b0] ss:$8 sps:$4 sm:$0xff]  }
 0x26f   : > { %11149 = vmatmul.mubr.msk.bf16.gmra.mrb[44].mxu1 %vm910_vm1, %v2411_v4  ;;  %v15265_v4 = vld [vmem:[%s13737_s29 + $0x730] ss:$8 sps:$4 sm:$0xff]  }
 0x270   : > { %11625 = vmatmul.mubr.msk.bf16.vlgmr.msra.gmra.mrb[0].mxu0 %vm910_vm1, %v17339_v26  ;;  %11152 = vmatprep.mubr.msk.bf16.mxu1 %vm910_vm1, %v17340_v56  ;;  %v15279_v26 = vld [vmem:[%s13737_s29 + $0x790] ss:$8 sps:$4 sm:$0xff]   ;;  %v15286_v56 = vld [vmem:[%s13737_s29 + $0x7a0] ss:$8 sps:$4 sm:$0xff]  }
 0x271   : > { %11753 = vmatpush3.bf16.msra.mxu0 %v5899_v54  ;;  %11628 = vmatprep.mubr.msk.bf16.mxu0 %vm910_vm1, %v17341_v60  ;;  %v15272_v54 = vld [vmem:[%s13737_s29 + $0x780] ss:$8 sps:$4 sm:$0xff]   ;;  %v17360_v60 = vld [vmem:[#allocation16_spill] sm:$0xff] }
 0x272   : > { %13475 = vmatprep.subr.msk.bf16.mxu0 %vm1103_vm0, %v15334_v52 }
 0x277   : > { %11153 = vmatmul.mubr.msk.bf16.gmra.mrb[48].mxu1 %vm910_vm1, %v17342_v35  ;;  %v17361_v35 = vld [vmem:[#allocation18_spill] sm:$0xff] }
 0x278   : > { %11629 = vmatmul.mubr.msk.bf16.gmra.mrb[4].mxu0 %vm910_vm1, %v17343_v57  ;;  %11156 = vmatprep.mubr.msk.bf16.mxu1 %vm910_vm1, %v17344_v47  ;;  %v17362_v57 = vld [vmem:[#allocation20_spill] sm:$0xff]  ;;  %v17364_v47 = vld [vmem:[#allocation79_spill] sm:$0xff] }
 0x279   : > { %11632 = vmatprep.mubr.msk.bf16.mxu0 %vm910_vm1, %v17345_v45 }
 0x27f   : > { %11157 = vmatmul.mubr.msk.bf16.gmra.mrb[52].mxu1 %vm910_vm1, %v17276_v5  ;;  %v17351_v5 = vld [vmem:[#allocation12_spill] sm:$0xff] }
 0x280   : > { %11633 = vmatmul.mubr.msk.bf16.gmra.mrb[8].mxu0 %vm910_vm1, %v17346_v11  ;;  %11160 = vmatprep.mubr.msk.bf16.mxu1 %vm910_vm1, %v14800_v6  ;;  %v17353_v6 = vld [vmem:[#allocation14_spill] sm:$0xff] }
 0x281   : > { %11636 = vmatprep.mubr.msk.bf16.mxu0 %vm910_vm1, %v17347_v32 }
 0x287   : > { %11161 = vmatmul.mubr.msk.bf16.gmra.mrb[56].mxu1 %vm910_vm1, %v17348_v3  ;;  %v13640_v3 = vld [vmem:[%s13737_s29 + $0x8] sm:$0xf] }
 0x288   : > { %11637 = vmatmul.mubr.msk.bf16.gmra.mrb[12].mxu0 %vm910_vm1, %v17349_v36  ;;  %11164 = vmatprep.mubr.msk.bf16.mxu1 %vm910_vm1, %v17350_v46  ;;  %v13641_v46 = vld [vmem:[%s13737_s29 + $0x10] sm:$0xf] }
 0x289   : > { %11640 = vmatprep.mubr.msk.bf16.mxu0 %vm910_vm1, %v17351_v5 }
 0x28f   : > { %11165 = vmatmul.mubr.msk.bf16.gmra.mrb[60].mxu1 %vm910_vm1, %v17352_v21  ;;  %v15318_v21 = vcombine.low %v13640_v3, %v13641_v46 }
 0x290   : > { %11641 = vmatmul.mubr.msk.bf16.gmra.mrb[16].mxu0 %vm910_vm1, %v17353_v6  ;;  %11168 = vmatprep.mubr.msk.bf16.mxu1 %vm910_vm1, %v15188_v30 }
 0x291   : > { %11644 = vmatprep.mubr.msk.bf16.mxu0 %vm910_vm1, %v17354_v17 }
 0x297   : > { %11169 = vmatmul.mubr.msk.bf16.gmra.mrb[64].mxu1 %vm910_vm1, %v15195_v31 }
 0x298   : > { %11645 = vmatmul.mubr.msk.bf16.gmra.mrb[20].mxu0 %vm910_vm1, %v17355_v2  ;;  %11172 = vmatprep.mubr.msk.bf16.mxu1 %vm910_vm1, %v15202_v58 }
 0x299   : > { %11648 = vmatprep.mubr.msk.bf16.mxu0 %vm910_vm1, %v17356_v0 }
 0x29f   : > { %11173 = vmatmul.mubr.msk.bf16.gmra.mrb[68].mxu1 %vm910_vm1, %v15209_v43 }
 0x2a0   : > { %11649 = vmatmul.mubr.msk.bf16.gmra.mrb[24].mxu0 %vm910_vm1, %v17357_v7  ;;  %11176 = vmatprep.mubr.msk.bf16.mxu1 %vm910_vm1, %v15216_v50 }
 0x2a1   : > { %11652 = vmatprep.mubr.msk.bf16.mxu0 %vm910_vm1, %v17358_v49 }
 0x2a7   : > { %11177 = vmatmul.mubr.msk.bf16.gmra.mrb[72].mxu1 %vm910_vm1, %v15223_v15 }
 0x2a8   : > { %11653 = vmatmul.mubr.msk.bf16.gmra.mrb[28].mxu0 %vm910_vm1, %v17359_v38  ;;  %11180 = vmatprep.mubr.msk.bf16.mxu1 %vm910_vm1, %v15230_v62 }
 0x2a9   : > { %11656 = vmatprep.mubr.msk.bf16.mxu0 %vm910_vm1, %v15188_v30 }
 0x2af   : > { %11181 = vmatmul.mubr.msk.bf16.gmra.mrb[76].mxu1 %vm910_vm1, %v15237_v20 }
 0x2b0   : > { %11657 = vmatmul.mubr.msk.bf16.gmra.mrb[32].mxu0 %vm910_vm1, %v15195_v31  ;;  %11184 = vmatprep.mubr.msk.bf16.mxu1 %vm910_vm1, %v15244_v22 }
 0x2b1   : > { %11660 = vmatprep.mubr.msk.bf16.mxu0 %vm910_vm1, %v15202_v58 }
 0x2b7   : > { %11185 = vmatmul.mubr.msk.bf16.gmra.mrb[80].mxu1 %vm910_vm1, %v15251_v48 }
 0x2b8   : > { %11661 = vmatmul.mubr.msk.bf16.gmra.mrb[36].mxu0 %vm910_vm1, %v15209_v43  ;;  %11188 = vmatprep.mubr.msk.bf16.mxu1 %vm910_vm1, %v15258_v28 }
 0x2b9   : > { %11664 = vmatprep.mubr.msk.bf16.mxu0 %vm910_vm1, %v15216_v50 }
 0x2bf   : > { %11189 = vmatmul.mubr.msk.bf16.gmra.mrb[84].mxu1 %vm910_vm1, %v15265_v4 }
 0x2c0   : > { %11665 = vmatmul.mubr.msk.bf16.gmra.mrb[40].mxu0 %vm910_vm1, %v15223_v15  ;;  %11192 = vmatprep.mubr.msk.bf16.mxu1 %vm910_vm1, %v15272_v54 }
 0x2c1   : > { %11668 = vmatprep.mubr.msk.bf16.mxu0 %vm910_vm1, %v15230_v62 }
 0x2c7   : > { %11193 = vmatmul.mubr.msk.bf16.gmra.mrb[88].mxu1 %vm910_vm1, %v15279_v26 }
 0x2c8   : > { %11669 = vmatmul.mubr.msk.bf16.gmra.mrb[44].mxu0 %vm910_vm1, %v15237_v20  ;;  %11196 = vmatprep.mubr.msk.bf16.mxu1 %vm910_vm1, %v15286_v56 }
 0x2c9   : > { %11672 = vmatprep.mubr.msk.bf16.mxu0 %vm910_vm1, %v15244_v22 }
 0x2cf   : > { %11197 = vmatmul.mubr.msk.bf16.gmra.mrb[92].mxu1 %vm910_vm1, %v14472_v10  ;;  %v17363_v10 = vld [vmem:[#allocation21_spill] sm:$0xff] }
 0x2d0   : > { %11673 = vmatmul.mubr.msk.bf16.gmra.mrb[48].mxu0 %vm910_vm1, %v15251_v48  ;;  %11200 = vmatprep.mubr.msk.bf16.mxu1 %vm910_vm1, %v17360_v60 }
 0x2d1   : > { %11676 = vmatprep.mubr.msk.bf16.mxu0 %vm910_vm1, %v15258_v28 }
 0x2d7   : > { %11201 = vmatmul.mubr.msk.bf16.gmra.mrb[96].mxu1 %vm910_vm1, %v17361_v35 }
 0x2d8   : > { %11677 = vmatmul.mubr.msk.bf16.gmra.mrb[52].mxu0 %vm910_vm1, %v15265_v4  ;;  %11204 = vmatprep.mubr.msk.bf16.mxu1 %vm910_vm1, %v17362_v57 }
 0x2d9   : > { %11680 = vmatprep.mubr.msk.bf16.mxu0 %vm910_vm1, %v15272_v54 }
 0x2df   : > { %11205 = vmatmul.mubr.msk.bf16.gmra.mrb[100].mxu1 %vm910_vm1, %v17363_v10 }
 0x2e0   : > { %11681 = vmatmul.mubr.msk.bf16.gmra.mrb[56].mxu0 %vm910_vm1, %v15279_v26  ;;  %11208 = vmatprep.mubr.msk.bf16.mxu1 %vm910_vm1, %v17364_v47  ;;  %v13645_v47 = vld [vmem:[%s13737_s29 + $0x28] sm:$0xf] }
 0x2e1   : > { %11684 = vmatprep.mubr.msk.bf16.mxu0 %vm910_vm1, %v15286_v56  ;;  %v15350_v37 = vcombine.low %v13645_v47, %v13646_v18  ;;  %v13647_v18 = vld [vmem:[%s13737_s29 + $0x38] sm:$0xf] }
 0x2e2   : > { %v17371_v47 = vld [vmem:[#allocation9_spill] sm:$0xff] }
 0x2e7   : > { %11209 = vmatmul.mubr.msk.bf16.gmra.mrb[104].mxu1 %vm910_vm1, %v14919_v25  ;;  %v15344_v25 = vcombine.low %v13643_v1, %v13644_v24 }
 0x2e8   : > { %11685 = vmatmul.mubr.msk.bf16.gmra.mrb[60].mxu0 %vm910_vm1, %v15323_v33  ;;  %11212 = vmatprep.mubr.msk.bf16.mxu1 %vm910_vm1, %v14927_v8 }
 0x2e9   : > { %11688 = vmatprep.mubr.msk.bf16.mxu0 %vm910_vm1, %v15318_v21 }
 0x2ea   : > { %v15338_v3 = vpop.f32.mrb[0].mxu1 }
 0x2eb   : > { %17365 = vst [vmem:[#allocation66_spill] sm:$0xff] %v15338_v3  ;;  %v15340_v46 = vpop.f32.mrb[1].mxu1  ;;  %v17373_v3 = vld [vmem:[#allocation4_spill] sm:$0xff] }
 0x2ec   : > { %17366 = vst [vmem:[#allocation68_spill] sm:$0xff] %v15340_v46  ;;  %v15346_v8 = vpop.f32.mrb[2].mxu1 }
 0x2ed   : > { %17367 = vst [vmem:[#allocation69_spill] sm:$0xff] %v15346_v8  ;;  %v15352_v34 = vpop.f32.mrb[3].mxu1  ;;  %v15368_v8 = vcombine.low %v13647_v18, %v17371_v47  ;;  %v17378_v47 = vld [vmem:[#allocation92_spill] sm:$0xff] }
 0x2ee   : > { %17368 = vst [vmem:[#allocation70_spill] sm:$0xff] %v15352_v34 }
 0x2ef   : > { %11213 = vmatmul.mubr.msk.bf16.gmra.mrb[108].mxu1 %vm910_vm1, %v14947_v63  ;;  %v17383_v63 = vld [vmem:[#allocation98_spill] sm:$0xff] }
 0x2f0   : > { %11689 = vmatmul.mubr.msk.bf16.gmra.mrb[64].mxu0 %vm910_vm1, %v15344_v25  ;;  %11216 = vmatprep.mubr.msk.bf16.mxu1 %vm910_vm1, %v14474_v55  ;;  %v13651_v55 = vld [vmem:[%s13737_s29 + $0x230] sm:$0xf] }
 0x2f1   : > { %11692 = vmatprep.mubr.msk.bf16.mxu0 %vm910_vm1, %v15350_v37 }
 0x2f2   : > { %v15362_v24 = vpop.f32.mrb[4].mxu1 }
 0x2f3   : > { %17369 = vst [vmem:[#allocation71_spill] sm:$0xff] %v15362_v24  ;;  %v15364_v1 = vpop.f32.mrb[5].mxu1 }
 0x2f4   : > { %17370 = vst [vmem:[#allocation30_spill] sm:$0xff] %v15364_v1  ;;  %v11111_v34 = vpop.f32.mrb[6].mxu1 }
 0x2f5   : > { %v15370_v46 = vpop.f32.mrb[7].mxu1 }
 0x2f6   : > { %17372 = vst [vmem:[#allocation74_spill] sm:$0xff] %v15370_v46  ;;  %v17379_v46 = vld [vmem:[#allocation95_spill] sm:$0xff] }
 0x2f7   : > { %11217 = vmatmul.mubr.msk.bf16.gmra.mrb[112].mxu1 %vm910_vm1, %v14497_v12  ;;  %v13650_v12 = vld [vmem:[%s13737_s29 + $0x228] sm:$0xf] }
 0x2f8   : > { %11693 = vmatmul.mubr.msk.bf16.gmra.mrb[68].mxu0 %vm910_vm1, %v15368_v8  ;;  %11220 = vmatprep.mubr.msk.bf16.mxu1 %vm910_vm1, %v14499_v14  ;;  %v9747_v10 = vcombine.low %v13650_v12, %v13651_v55 }
 0x2f9   : > { %11696 = vmatprep.mubr.msk.bf16.mxu0 %vm910_vm1, %v17373_v3 }
 0x2fa   : > { %v15380_v1 = vpop.f32.mrb[8].mxu1 }
 0x2fb   : > { %17374 = vst [vmem:[#allocation32_spill] sm:$0xff] %v15380_v1  ;;  %v15382_v24 = vpop.f32.mrb[9].mxu1 }
 0x2fc   : > { %17375 = vst [vmem:[#allocation75_spill] sm:$0xff] %v15382_v24  ;;  %v15384_v18 = vpop.f32.mrb[10].mxu1 }
 0x2fd   : > { %17376 = vst [vmem:[#allocation34_spill] sm:$0xff] %v15384_v18  ;;  %v15386_v34 = vpop.f32.mrb[11].mxu1 }
 0x2fe   : > { %17377 = vst [vmem:[#allocation41_spill] sm:$0xff] %v15386_v34 }
 0x2ff   : > { %11221 = vmatmul.mubr.msk.bf16.gmra.mrb[116].mxu1 %vm910_vm1, %v17310_v42 }
 0x300   : > { %11697 = vmatmul.mubr.msk.bf16.gmra.mrb[72].mxu0 %vm910_vm1, %v17378_v47  ;;  %11224 = vmatprep.mubr.msk.bf16.mxu1 %vm910_vm1, %v15054_v41  ;;  %v17384_v41 = vld [vmem:[#allocation3_spill] sm:$0xff] }
 0x301   : > { %11700 = vmatprep.mubr.msk.bf16.mxu0 %vm910_vm1, %v17379_v46  ;;  %v17386_v42 = vcombine.low %v17384_v41, %v17385_v13  ;;  %v15431_v41 = vld [vmem:[%s13737_s29 + $0x240] sm:$0xf] }
 0x302   : > { %v15396_v24 = vpop.f32.mrb[12].mxu1 }
 0x303   : > { %17380 = vst [vmem:[#allocation47_spill] sm:$0xff] %v15396_v24  ;;  %v15398_v18 = vpop.f32.mrb[13].mxu1 }
 0x304   : > { %17381 = vst [vmem:[#allocation52_spill] sm:$0xff] %v15398_v18  ;;  %v11119_v34 = vpop.f32.mrb[14].mxu1  ;;  %v13649_v18 = vld [vmem:[%s13737_s29 + $0x220] sm:$0xf] }
 0x305   : > { %v15400_v1 = vpop.f32.mrb[15].mxu1 }
 0x306   : > { %17382 = vst [vmem:[#allocation54_spill] sm:$0xff] %v15400_v1  ;;  %v13648_v1 = vld [vmem:[%s13737_s29 + $0x218] sm:$0xf] }
 0x307   : > { %11225 = vmatmul.mubr.msk.bf16.gmra.mrb[120].mxu1 %vm910_vm1, %v15071_v39  ;;  %v9746_v39 = vcombine.low %v13648_v1, %v13649_v18  ;;  %v13652_v1 = vld [vmem:[%s13737_s29 + $0x238] sm:$0xf]  ;;  %v17392_v18 = vld [vmem:[#allocation22_spill] sm:$0xff] }
 0x308   : > { %11701 = vmatmul.mubr.msk.bf16.gmra.mrb[76].mxu0 %vm910_vm1, %v17383_v63  ;;  %11228 = vmatprep.mubr.msk.bf16.mxu1 %vm910_vm1, %v15073_v59  ;;  %v9748_v55 = vcombine.low %v13652_v1, %v15431_v41  ;;  %v17398_v1 = vld [vmem:[#allocation23_spill] sm:$0xff] }
 0x309   : > { %11704 = vmatprep.mubr.msk.bf16.mxu0 %vm910_vm1, %v17386_v42 }
 0x30a   : > { %v15412_v24 = vpop.f32.mrb[16].mxu1 }
 0x30b   : > { %v15414_v34 = vpop.f32.mrb[17].mxu1 }
 0x30c   : > { %17387 = vst [vmem:[#allocation90_spill] sm:$0xff] %v15414_v34  ;;  %v15418_v14 = vpop.f32.mrb[18].mxu1  ;;  %v13666_v34 = vld [vmem:[%s13737_s29 + $0x3b8] sm:$0xf] }
 0x30d   : > { %17388 = vst [vmem:[#allocation91_spill] sm:$0xff] %v15418_v14  ;;  %v15422_v59 = vpop.f32.mrb[19].mxu1 }
 0x30e   : > { %17389 = vst [vmem:[#allocation40_spill] sm:$0xff] %v15422_v59  ;;  %v17393_v59 = vld [vmem:[#allocation10_spill] sm:$0xff] }
 0x30f   : > { %11229 = vmatmul.mubr.msk.bf16.gmra.mrb[124].mxu1 %vm910_vm1, %v15085_v19  ;;  %v15441_v14 = vcombine.low %v17393_v59, %v17392_v18  ;;  %v17397_v59 = vld [vmem:[#allocation13_spill] sm:$0xff] }
 0x310   : > { %11705 = vmatmul.mubr.msk.bf16.gmra.mrb[80].mxu0 %vm910_vm1, %v9746_v39  ;;  %11278 = vmatprep.mubr.msk.bf16.mxu1 %vm910_vm1, %v17319_v23 }
 0x311   : > { %11708 = vmatprep.mubr.msk.bf16.mxu0 %vm910_vm1, %v9747_v10 }
 0x312   : > { %v15433_v42 = vpop.f32.mrb[20].mxu1 }
 0x313   : > { %17390 = vst [vmem:[#allocation93_spill] sm:$0xff] %v15433_v42  ;;  %v15435_v13 = vpop.f32.mrb[21].mxu1  ;;  %v13664_v42 = vld [vmem:[%s13737_s29 + $0x3a8] sm:$0xf] }
 0x314   : > { %17391 = vst [vmem:[#allocation94_spill] sm:$0xff] %v15435_v13  ;;  %v11127_v12 = vpop.f32.mrb[22].mxu1 }
 0x315   : > { %v15443_v39 = vpop.f32.mrb[23].mxu1  ;;  %v15458_v12 = vcombine.low %v17398_v1, %v17397_v59  ;;  %v15477_v59 = vld [vmem:[%s13737_s29 + $0x2c0] sm:$0xf] }
 0x316   : > { %17394 = vst [vmem:[#allocation97_spill] sm:$0xff] %v15443_v39  ;;  %v17400_v39 = vld [vmem:[#allocation43_spill] sm:$0xff] }
 0x317   : > { %11279 = vmatmul.mubr.msk.bf16.vlgmr.msra.gmra.mrb[44].mxu1 %vm910_vm1, %v17321_v27  ;;  %v17401_v27 = vld [vmem:[#allocation24_spill] sm:$0xff] }
 0x318   : > { %11709 = vmatmul.mubr.msk.bf16.gmra.mrb[84].mxu0 %vm910_vm1, %v9748_v55  ;;  %11282 = vmatprep.mubr.msk.bf16.mxu1 %vm910_vm1, %v15188_v30  ;;  %v15464_v13 = vcombine.low %v17401_v27, %v17400_v39  ;;  %v17405_v27 = vld [vmem:[#allocation44_spill] sm:$0xff] }
 0x319   : > { %11712 = vmatprep.mubr.msk.bf16.mxu0 %vm910_vm1, %v15441_v14 }
 0x31a   : > { %v15452_v23 = vpop.f32.mrb[24].mxu1 }
 0x31b   : > { %17395 = vst [vmem:[#allocation96_spill] sm:$0xff] %v15452_v23  ;;  %v15454_v10 = vpop.f32.mrb[25].mxu1 }
 0x31c   : > { %17396 = vst [vmem:[#allocation46_spill] sm:$0xff] %v15454_v10  ;;  %v15460_v18 = vpop.f32.mrb[26].mxu1 }
 0x31d   : > { %17399 = vst [vmem:[#allocation48_spill] sm:$0xff] %v15460_v18  ;;  %v15466_v55 = vpop.f32.mrb[27].mxu1 }
 0x31e   : > { %17402 = vst [vmem:[#allocation51_spill] sm:$0xff] %v15466_v55  ;;  %v15485_v55 = vcombine.low %v17405_v27, %v15477_v59 }
 0x31f   : > { %11283 = vmatmul.mubr.msk.bf16.gmra.mrb[48].mxu1 %vm910_vm1, %v15195_v31 }
 0x320   : > { %11713 = vmatmul.mubr.msk.bf16.gmra.mrb[88].mxu0 %vm910_vm1, %v15458_v12  ;;  %11286 = vmatprep.mubr.msk.bf16.mxu1 %vm910_vm1, %v15202_v58 }
 0x321   : > { %11716 = vmatprep.mubr.msk.bf16.mxu0 %vm910_vm1, %v15464_v13 }
 0x322   : > { %v15479_v1 = vpop.f32.mrb[28].mxu1 }
 0x323   : > { %17403 = vst [vmem:[#allocation19_spill] sm:$0xff] %v15479_v1  ;;  %v15481_v39 = vpop.f32.mrb[29].mxu1 }
 0x324   : > { %17404 = vst [vmem:[#allocation25_spill] sm:$0xff] %v15481_v39  ;;  %v11135_v18 = vpop.f32.mrb[30].mxu1 }
 0x325   : > { %v15487_v10 = vpop.f32.mrb[31].mxu1 }
 0x326   : > { %17406 = vst [vmem:[#allocation55_spill] sm:$0xff] %v15487_v10 }
 0x327   : > { %11287 = vmatmul.mubr.msk.bf16.gmra.mrb[52].mxu1 %vm910_vm1, %v15209_v43 }
 0x328   : > { %11717 = vmatmul.mubr.msk.bf16.gmra.mrb[92].mxu0 %vm910_vm1, %v15485_v55  ;;  %11290 = vmatprep.mubr.msk.bf16.mxu1 %vm910_vm1, %v15216_v50 }
 0x329   : > { %11720 = vmatprep.mubr.msk.bf16.mxu0 %vm910_vm1, %v13828_v40 }
 0x32a   : > { %v15497_v39 = vpop.f32.mrb[32].mxu1 }
 0x32b   : > { %17407 = vst [vmem:[#allocation26_spill] sm:$0xff] %v15497_v39  ;;  %v15499_v1 = vpop.f32.mrb[33].mxu1 }
 0x32c   : > { %17408 = vst [vmem:[#allocation60_spill] sm:$0xff] %v15499_v1  ;;  %v15501_v27 = vpop.f32.mrb[34].mxu1 }
 0x32d   : > { %17409 = vst [vmem:[#allocation27_spill] sm:$0xff] %v15501_v27  ;;  %v15503_v18 = vpop.f32.mrb[35].mxu1 }
 0x32e   : > { %17410 = vst [vmem:[#allocation61_spill] sm:$0xff] %v15503_v18 }
 0x32f   : > { %11291 = vmatmul.mubr.msk.bf16.gmra.mrb[56].mxu1 %vm910_vm1, %v15223_v15 }
 0x330   : > { %11721 = vmatmul.mubr.msk.bf16.gmra.mrb[96].mxu0 %vm910_vm1, %v13833_v44  ;;  %11294 = vmatprep.mubr.msk.bf16.mxu1 %vm910_vm1, %v15230_v62 }
 0x331   : > { %11724 = vmatprep.mubr.msk.bf16.mxu0 %vm910_vm1, %v13849_v51 }
 0x332   : > { %v15513_v10 = vpop.f32.mrb[36].mxu1 }
 0x333   : > { %17411 = vst [vmem:[#allocation29_spill] sm:$0xff] %v15513_v10  ;;  %v15515_v1 = vpop.f32.mrb[37].mxu1 }
 0x334   : > { %17412 = vst [vmem:[#allocation31_spill] sm:$0xff] %v15515_v1  ;;  %v11143_v27 = vpop.f32.mrb[38].mxu1 }
 0x335   : > { %v15517_v18 = vpop.f32.mrb[39].mxu1 }
 0x336   : > { %17413 = vst [vmem:[#allocation33_spill] sm:$0xff] %v15517_v18 }
 0x337   : > { %11295 = vmatmul.mubr.msk.bf16.gmra.mrb[60].mxu1 %vm910_vm1, %v15237_v20 }
 0x338   : > { %11725 = vmatmul.mubr.msk.bf16.gmra.mrb[100].mxu0 %vm910_vm1, %v14573_v16  ;;  %11298 = vmatprep.mubr.msk.bf16.mxu1 %vm910_vm1, %v17351_v5  ;;  %v13653_v5 = vld [vmem:[%s13737_s29 + $0x308] sm:$0xf] }
 0x339   : > { %11728 = vmatprep.mubr.msk.bf16.mxu0 %vm910_vm1, %v17223_v53 }
 0x33a   : > { %v15527_v10 = vpop.f32.mrb[40].mxu1 }
 0x33b   : > { %17414 = vst [vmem:[#allocation37_spill] sm:$0xff] %v15527_v10  ;;  %v15529_v1 = vpop.f32.mrb[41].mxu1 }
 0x33c   : > { %17415 = vst [vmem:[#allocation35_spill] sm:$0xff] %v15529_v1  ;;  %v15531_v27 = vpop.f32.mrb[42].mxu1  ;;  %v13654_v1 = vld [vmem:[%s13737_s29 + $0x310] sm:$0xf] }
 0x33d   : > { %17416 = vst [vmem:[#allocation38_spill] sm:$0xff] %v15531_v27  ;;  %v15533_v18 = vpop.f32.mrb[43].mxu1  ;;  %v15545_v27 = vcombine.low %v13653_v5, %v13654_v1  ;;  %v13657_v1 = vld [vmem:[%s13737_s29 + $0x328] sm:$0xf]  ;;  %v13658_v5 = vld [vmem:[%s13737_s29 + $0x330] sm:$0xf] }
 0x33e   : > { %17417 = vst [vmem:[#allocation12_spill] sm:$0xff] %v15533_v18  ;;  %v15561_v10 = vcombine.low %v13657_v1, %v13658_v5  ;;  %v13660_v1 = vld [vmem:[%s13737_s29 + $0x388] sm:$0xf]  ;;  %v13661_v5 = vld [vmem:[%s13737_s29 + $0x390] sm:$0xf] }
 0x33f   : > { %11299 = vmatmul.mubr.msk.bf16.gmra.mrb[64].mxu1 %vm910_vm1, %v17353_v6  ;;  %v13655_v6 = vld [vmem:[%s13737_s29 + $0x318] sm:$0xf]  ;;  %v15577_v39 = vcombine.low %v13660_v1, %v13661_v5  ;;  %v13665_v1 = vld [vmem:[%s13737_s29 + $0x3b0] sm:$0xf] }
 0x340   : > { %11729 = vmatmul.mubr.msk.bf16.gmra.mrb[104].mxu0 %vm910_vm1, %v17224_v29  ;;  %11302 = vmatprep.mubr.msk.bf16.mxu1 %vm910_vm1, %v17354_v17  ;;  %v13656_v17 = vld [vmem:[%s13737_s29 + $0x320] sm:$0xf]  ;;  %v15593_v5 = vcombine.low %v13664_v42, %v13665_v1 }
 0x341   : > { %11732 = vmatprep.mubr.msk.bf16.mxu0 %vm910_vm1, %v17226_v61  ;;  %v15557_v18 = vcombine.low %v13655_v6, %v13656_v17  ;;  %v13659_v6 = vld [vmem:[%s13737_s29 + $0x338] sm:$0xf] }
 0x347   : > { %11303 = vmatmul.mubr.msk.bf16.gmra.mrb[68].mxu1 %vm910_vm1, %v17355_v2  ;;  %v324_v2 = vld [vmem:[%s13737_s29 + $0x340] sm:$0xf] }
 0x348   : > { %11733 = vmatmul.mubr.msk.bf16.gmra.mrb[108].mxu0 %vm910_vm1, %v14625_v9  ;;  %11306 = vmatprep.mubr.msk.bf16.mxu1 %vm910_vm1, %v17356_v0  ;;  %v15573_v17 = vcombine.low %v13659_v6, %v324_v2  ;;  %v13662_v2 = vld [vmem:[%s13737_s29 + $0x398] sm:$0xf]  ;;  %v13663_v6 = vld [vmem:[%s13737_s29 + $0x3a0] sm:$0xf] }
 0x349   : > { %11736 = vmatprep.mubr.msk.bf16.mxu0 %vm910_vm1, %v15545_v27  ;;  %v15589_v23 = vcombine.low %v13662_v2, %v13663_v6 }
 0x34f   : > { %11307 = vmatmul.mubr.msk.bf16.gmra.mrb[72].mxu1 %vm910_vm1, %v17357_v7 }
 0x350   : > { %11737 = vmatmul.mubr.msk.bf16.gmra.mrb[112].mxu0 %vm910_vm1, %v15557_v18  ;;  %11310 = vmatprep.mubr.msk.bf16.mxu1 %vm910_vm1, %v17358_v49 }
 0x351   : > { %11740 = vmatprep.mubr.msk.bf16.mxu0 %vm910_vm1, %v15561_v10 }
 0x357   : > { %11311 = vmatmul.mubr.msk.bf16.gmra.mrb[76].mxu1 %vm910_vm1, %v17359_v38 }
 0x358   : > { %11741 = vmatmul.mubr.msk.bf16.gmra.mrb[116].mxu0 %vm910_vm1, %v15573_v17  ;;  %11314 = vmatprep.mubr.msk.bf16.mxu1 %vm910_vm1, %v15318_v21  ;;  %v333_v21 = vld [vmem:[%s13737_s29 + $0x3c0] sm:$0xf] }
 0x359   : > { %11744 = vmatprep.mubr.msk.bf16.mxu0 %vm910_vm1, %v15577_v39  ;;  %v15605_v2 = vcombine.low %v13666_v34, %v333_v21 }
 0x35f   : > { %11315 = vmatmul.mubr.msk.bf16.gmra.mrb[80].mxu1 %vm910_vm1, %v15344_v25  ;;  %v6567_v25 = vsel %vm1103_vm0, %v15334_v52, 0  ;;  %v17420_v52 = vld [vmem:[#allocation87_spill] sm:$0xff] }
 0x360   : > { %11745 = vmatmul.mubr.msk.bf16.gmra.mrb[120].mxu0 %vm910_vm1, %v15589_v23  ;;  %11318 = vmatprep.mubr.msk.bf16.mxu1 %vm910_vm1, %v15350_v37  ;;  %v17419_v37 = vld [vmem:[#allocation86_spill] sm:$0xff] }
 0x361   : > { %11748 = vmatprep.mubr.msk.bf16.mxu0 %vm910_vm1, %v15593_v5 }
 0x367   : > { %11319 = vmatmul.mubr.msk.bf16.gmra.mrb[84].mxu1 %vm910_vm1, %v15368_v8  ;;  %v17418_v8 = vld [vmem:[#allocation21_spill] sm:$0xff] }
 0x368   : > { %11749 = vmatmul.mubr.msk.bf16.gmra.mrb[124].mxu0 %vm910_vm1, %v15605_v2  ;;  %11322 = vmatprep.mubr.msk.bf16.mxu1 %vm910_vm1, %v17373_v3 }
 0x369   : > { %11754 = vmatprep.mubr.msk.bf16.mxu0 %vm910_vm1, %v17345_v45  ;;  %v17421_v45 = vld [vmem:[#allocation88_spill] sm:$0xff] }
 0x36f   : > { %11323 = vmatmul.mubr.msk.bf16.gmra.mrb[88].mxu1 %vm910_vm1, %v17378_v47 }
 0x370   : > { %11755 = vmatmul.mubr.msk.bf16.vlgmr.msra.gmra.mrb[0].mxu0 %vm910_vm1, %v17346_v11  ;;  %11326 = vmatprep.mubr.msk.bf16.mxu1 %vm910_vm1, %v17379_v46  ;;  %v17422_v11 = vld [vmem:[#allocation89_spill] sm:$0xff] }
 0x371   : > { %11883 = vmatpush3.bf16.msra.mxu0 %v6567_v25  ;;  %11758 = vmatprep.mubr.msk.bf16.mxu0 %vm910_vm1, %v17347_v32 }
 0x377   : > { %11327 = vmatmul.mubr.msk.bf16.gmra.mrb[92].mxu1 %vm910_vm1, %v17383_v63 }
 0x378   : > { %11759 = vmatmul.mubr.msk.bf16.gmra.mrb[4].mxu0 %vm910_vm1, %v17349_v36  ;;  %11330 = vmatprep.mubr.msk.bf16.mxu1 %vm910_vm1, %v15244_v22 }
 0x379   : > { %11762 = vmatprep.mubr.msk.bf16.mxu0 %vm910_vm1, %v15188_v30 }
 0x37f   : > { %11331 = vmatmul.mubr.msk.bf16.gmra.mrb[96].mxu1 %vm910_vm1, %v15251_v48 }
 0x380   : > { %11763 = vmatmul.mubr.msk.bf16.gmra.mrb[8].mxu0 %vm910_vm1, %v15195_v31  ;;  %11334 = vmatprep.mubr.msk.bf16.mxu1 %vm910_vm1, %v15258_v28 }
 0x381   : > { %11766 = vmatprep.mubr.msk.bf16.mxu0 %vm910_vm1, %v15202_v58 }
 0x387   : > { %11335 = vmatmul.mubr.msk.bf16.gmra.mrb[100].mxu1 %vm910_vm1, %v15265_v4 }
 0x388   : > { %11767 = vmatmul.mubr.msk.bf16.gmra.mrb[12].mxu0 %vm910_vm1, %v15209_v43  ;;  %11338 = vmatprep.mubr.msk.bf16.mxu1 %vm910_vm1, %v15272_v54 }
 0x389   : > { %11770 = vmatprep.mubr.msk.bf16.mxu0 %vm910_vm1, %v17356_v0 }
 0x38f   : > { %11339 = vmatmul.mubr.msk.bf16.gmra.mrb[104].mxu1 %vm910_vm1, %v15279_v26 }
 0x390   : > { %11771 = vmatmul.mubr.msk.bf16.gmra.mrb[16].mxu0 %vm910_vm1, %v17357_v7  ;;  %11342 = vmatprep.mubr.msk.bf16.mxu1 %vm910_vm1, %v15286_v56 }
 0x391   : > { %11774 = vmatprep.mubr.msk.bf16.mxu0 %vm910_vm1, %v17358_v49 }
 0x397   : > { %11343 = vmatmul.mubr.msk.bf16.gmra.mrb[108].mxu1 %vm910_vm1, %v15323_v33 }
 0x398   : > { %11775 = vmatmul.mubr.msk.bf16.gmra.mrb[20].mxu0 %vm910_vm1, %v17359_v38  ;;  %11346 = vmatprep.mubr.msk.bf16.mxu1 %vm910_vm1, %v13828_v40 }
 0x399   : > { %11778 = vmatprep.mubr.msk.bf16.mxu0 %vm910_vm1, %v15244_v22 }
 0x39f   : > { %11347 = vmatmul.mubr.msk.bf16.gmra.mrb[112].mxu1 %vm910_vm1, %v13833_v44 }
 0x3a0   : > { %11779 = vmatmul.mubr.msk.bf16.gmra.mrb[24].mxu0 %vm910_vm1, %v15251_v48  ;;  %11350 = vmatprep.mubr.msk.bf16.mxu1 %vm910_vm1, %v13849_v51 }
 0x3a1   : > { %11782 = vmatprep.mubr.msk.bf16.mxu0 %vm910_vm1, %v15258_v28 }
 0x3a7   : > { %11351 = vmatmul.mubr.msk.bf16.gmra.mrb[116].mxu1 %vm910_vm1, %v14573_v16 }
 0x3a8   : > { %11783 = vmatmul.mubr.msk.bf16.gmra.mrb[28].mxu0 %vm910_vm1, %v15265_v4  ;;  %11354 = vmatprep.mubr.msk.bf16.mxu1 %vm910_vm1, %v17223_v53 }
 0x3a9   : > { %11786 = vmatprep.mubr.msk.bf16.mxu0 %vm910_vm1, %v15216_v50 }
 0x3af   : > { %11355 = vmatmul.mubr.msk.bf16.gmra.mrb[120].mxu1 %vm910_vm1, %v17224_v29 }
 0x3b0   : > { %11787 = vmatmul.mubr.msk.bf16.gmra.mrb[32].mxu0 %vm910_vm1, %v15223_v15  ;;  %11358 = vmatprep.mubr.msk.bf16.mxu1 %vm910_vm1, %v17226_v61 }
 0x3b1   : > { %11790 = vmatprep.mubr.msk.bf16.mxu0 %vm910_vm1, %v15230_v62 }
 0x3b7   : > { %11359 = vmatmul.mubr.msk.bf16.gmra.mrb[124].mxu1 %vm910_vm1, %v14625_v9 }
 0x3b8   : > { %11791 = vmatmul.mubr.msk.bf16.gmra.mrb[36].mxu0 %vm910_vm1, %v15237_v20 }
 0x3b9   : > { %11794 = vmatprep.mubr.msk.bf16.mxu0 %vm910_vm1, %v17360_v60 }
 0x3c0   : > { %11795 = vmatmul.mubr.msk.bf16.gmra.mrb[40].mxu0 %vm910_vm1, %v17361_v35 }
 0x3c1   : > { %11798 = vmatprep.mubr.msk.bf16.mxu0 %vm910_vm1, %v17362_v57 }
 0x3c8   : > { %11799 = vmatmul.mubr.msk.bf16.gmra.mrb[44].mxu0 %vm910_vm1, %v17418_v8 }
 0x3c9   : > { %11802 = vmatprep.mubr.msk.bf16.mxu0 %vm910_vm1, %v15272_v54 }
 0x3d0   : > { %11803 = vmatmul.mubr.msk.bf16.gmra.mrb[48].mxu0 %vm910_vm1, %v15279_v26 }
 0x3d1   : > { %11806 = vmatprep.mubr.msk.bf16.mxu0 %vm910_vm1, %v15286_v56 }
 0x3d8   : > { %11807 = vmatmul.mubr.msk.bf16.gmra.mrb[52].mxu0 %vm910_vm1, %v15323_v33 }
 0x3d9   : > { %11810 = vmatprep.mubr.msk.bf16.mxu0 %vm910_vm1, %v17419_v37 }
 0x3e0   : > { %11811 = vmatmul.mubr.msk.bf16.gmra.mrb[56].mxu0 %vm910_vm1, %v17420_v52 }
 0x3e1   : > { %11814 = vmatprep.mubr.msk.bf16.mxu0 %vm910_vm1, %v17421_v45 }
 0x3e8   : > { %11815 = vmatmul.mubr.msk.bf16.gmra.mrb[60].mxu0 %vm910_vm1, %v17422_v11 }
 0x3e9   : > { %11818 = vmatprep.mubr.msk.bf16.mxu0 %vm910_vm1, %v17373_v3 }
 0x3ea   : > { %v15719_v32 = vpop.f32.mrb[44].mxu1 }
 0x3eb   : > { %v15721_v36 = vpop.f32.mrb[45].mxu1 }
 0x3ec   : > { %17423 = vst [vmem:[#allocation78_spill] sm:$0xff] %v15721_v36  ;;  %v11281_v0 = vpop.f32.mrb[46].mxu1 }
 0x3ed   : > { %v15723_v7 = vpop.f32.mrb[47].mxu1 }
 0x3ee   : > { %17424 = vst [vmem:[#allocation14_spill] sm:$0xff] %v15723_v7 }
 0x3f0   : > { %11819 = vmatmul.mubr.msk.bf16.gmra.mrb[64].mxu0 %vm910_vm1, %v17378_v47 }
 0x3f1   : > { %11822 = vmatprep.mubr.msk.bf16.mxu0 %vm910_vm1, %v17379_v46 }
 0x3f2   : > { %v15729_v49 = vpop.f32.mrb[48].mxu1 }
 0x3f3   : > { %17425 = vst [vmem:[#allocation15_spill] sm:$0xff] %v15729_v49  ;;  %v15731_v38 = vpop.f32.mrb[49].mxu1  ;;  %v17481_v49 = vld [vmem:[#allocation62_spill] sm:$0xff] }
 0x3f4   : > { %17426 = vst [vmem:[#allocation50_spill] sm:$0xff] %v15731_v38  ;;  %v15733_v34 = vpop.f32.mrb[50].mxu1  ;;  %v17480_v38 = vld [vmem:[#allocation59_spill] sm:$0xff] }
 0x3f5   : > { %17427 = vst [vmem:[#allocation67_spill] sm:$0xff] %v15733_v34  ;;  %v15735_v3 = vpop.f32.mrb[51].mxu1  ;;  %v17479_v34 = vld [vmem:[#allocation58_spill] sm:$0xff]  ;;  %v15889_v7 = vpack.c.bf16 %v17481_v49, %v17480_v38 }
 0x3f6   : > { %17428 = vst [vmem:[#allocation72_spill] sm:$0xff] %v15735_v3 }
 0x3f8   : > { %11823 = vmatmul.mubr.msk.bf16.gmra.mrb[68].mxu0 %vm910_vm1, %v17383_v63 }
 0x3f9   : > { %11826 = vmatprep.mubr.msk.bf16.mxu0 %vm910_vm1, %v13828_v40 }
 0x3fa   : > { %v15741_v42 = vpop.f32.mrb[52].mxu1 }
 0x3fb   : > { %17429 = vst [vmem:[#allocation73_spill] sm:$0xff] %v15741_v42  ;;  %v15743_v47 = vpop.f32.mrb[53].mxu1  ;;  %v17475_v42 = vld [vmem:[#allocation56_spill] sm:$0xff] }
 0x3fc   : > { %17430 = vst [vmem:[#allocation76_spill] sm:$0xff] %v15743_v47  ;;  %v11289_v6 = vpop.f32.mrb[54].mxu1 }
 0x3fd   : > { %v15745_v46 = vpop.f32.mrb[55].mxu1 }
 0x3fe   : > { %17431 = vst [vmem:[#allocation16_spill] sm:$0xff] %v15745_v46 }
 0x400   : > { %11827 = vmatmul.mubr.msk.bf16.gmra.mrb[72].mxu0 %vm910_vm1, %v13833_v44 }
 0x401   : > { %11830 = vmatprep.mubr.msk.bf16.mxu0 %vm910_vm1, %v13849_v51 }
 0x402   : > { %v15751_v1 = vpop.f32.mrb[56].mxu1 }
 0x403   : > { %17432 = vst [vmem:[#allocation18_spill] sm:$0xff] %v15751_v1  ;;  %v15753_v21 = vpop.f32.mrb[57].mxu1 }
 0x404   : > { %17433 = vst [vmem:[#allocation20_spill] sm:$0xff] %v15753_v21  ;;  %v15755_v63 = vpop.f32.mrb[58].mxu1 }
 0x405   : > { %17434 = vst [vmem:[#allocation9_spill] sm:$0xff] %v15755_v63  ;;  %v15757_v25 = vpop.f32.mrb[59].mxu1 }
 0x406   : > { %17435 = vst [vmem:[#allocation4_spill] sm:$0xff] %v15757_v25 }
 0x408   : > { %11831 = vmatmul.mubr.msk.bf16.gmra.mrb[76].mxu0 %vm910_vm1, %v14573_v16 }
 0x409   : > { %11834 = vmatprep.mubr.msk.bf16.mxu0 %vm910_vm1, %v15441_v14 }
 0x40a   : > { %v15763_v0 = vpop.f32.mrb[60].mxu1 }
 0x40b   : > { %17436 = vst [vmem:[#allocation92_spill] sm:$0xff] %v15763_v0  ;;  %v15765_v6 = vpop.f32.mrb[61].mxu1 }
 0x40c   : > { %17437 = vst [vmem:[#allocation95_spill] sm:$0xff] %v15765_v6  ;;  %v11297_v46 = vpop.f32.mrb[62].mxu1 }
 0x40d   : > { %v15767_v47 = vpop.f32.mrb[63].mxu1 }
 0x40e   : > { %17438 = vst [vmem:[#allocation98_spill] sm:$0xff] %v15767_v47 }
 0x410   : > { %11835 = vmatmul.mubr.msk.bf16.gmra.mrb[80].mxu0 %vm910_vm1, %v15458_v12 }
 0x411   : > { %11838 = vmatprep.mubr.msk.bf16.mxu0 %vm910_vm1, %v15464_v13 }
 0x412   : > { %v15773_v25 = vpop.f32.mrb[64].mxu1 }
 0x413   : > { %17439 = vst [vmem:[#allocation3_spill] sm:$0xff] %v15773_v25  ;;  %v15775_v63 = vpop.f32.mrb[65].mxu1 }
 0x414   : > { %17440 = vst [vmem:[#allocation5_spill] sm:$0xff] %v15775_v63  ;;  %v15777_v21 = vpop.f32.mrb[66].mxu1 }
 0x415   : > { %17441 = vst [vmem:[#allocation22_spill] sm:$0xff] %v15777_v21  ;;  %v15779_v14 = vpop.f32.mrb[67].mxu1 }
 0x416   : > { %17442 = vst [vmem:[#allocation10_spill] sm:$0xff] %v15779_v14 }
 0x418   : > { %11839 = vmatmul.mubr.msk.bf16.gmra.mrb[84].mxu0 %vm910_vm1, %v15485_v55 }
 0x419   : > { %11842 = vmatprep.mubr.msk.bf16.mxu0 %vm910_vm1, %v15545_v27 }
 0x41a   : > { %v15785_v46 = vpop.f32.mrb[68].mxu1 }
 0x41b   : > { %17443 = vst [vmem:[#allocation13_spill] sm:$0xff] %v15785_v46  ;;  %v15787_v12 = vpop.f32.mrb[69].mxu1 }
 0x41c   : > { %17444 = vst [vmem:[#allocation23_spill] sm:$0xff] %v15787_v12  ;;  %v11305_v47 = vpop.f32.mrb[70].mxu1 }
 0x41d   : > { %v15789_v13 = vpop.f32.mrb[71].mxu1 }
 0x41e   : > { %17445 = vst [vmem:[#allocation43_spill] sm:$0xff] %v15789_v13 }
 0x420   : > { %11843 = vmatmul.mubr.msk.bf16.gmra.mrb[88].mxu0 %vm910_vm1, %v15557_v18 }
 0x421   : > { %11846 = vmatprep.mubr.msk.bf16.mxu0 %vm910_vm1, %v15561_v10 }
 0x422   : > { %v15795_v14 = vpop.f32.mrb[72].mxu1 }
 0x423   : > { %17446 = vst [vmem:[#allocation24_spill] sm:$0xff] %v15795_v14  ;;  %v15797_v21 = vpop.f32.mrb[73].mxu1 }
 0x424   : > { %17447 = vst [vmem:[#allocation44_spill] sm:$0xff] %v15797_v21  ;;  %v15799_v55 = vpop.f32.mrb[74].mxu1 }
 0x425   : > { %17448 = vst [vmem:[#allocation21_spill] sm:$0xff] %v15799_v55  ;;  %v15801_v63 = vpop.f32.mrb[75].mxu1 }
 0x426   : > { %17449 = vst [vmem:[#allocation86_spill] sm:$0xff] %v15801_v63 }
 0x428   : > { %11847 = vmatmul.mubr.msk.bf16.gmra.mrb[92].mxu0 %vm910_vm1, %v15573_v17 }
 0x429   : > { %11850 = vmatprep.mubr.msk.bf16.mxu0 %vm910_vm1, %v17223_v53 }
 0x42a   : > { %v15807_v47 = vpop.f32.mrb[76].mxu1 }
 0x42b   : > { %17450 = vst [vmem:[#allocation87_spill] sm:$0xff] %v15807_v47  ;;  %v15809_v13 = vpop.f32.mrb[77].mxu1 }
 0x42c   : > { %17451 = vst [vmem:[#allocation88_spill] sm:$0xff] %v15809_v13  ;;  %v11313_v12 = vpop.f32.mrb[78].mxu1 }
 0x42d   : > { %v15811_v46 = vpop.f32.mrb[79].mxu1  ;;  %v17457_v12 = vld [vmem:[#allocation7_spill] sm:$0xff] }
 0x42e   : > { %17452 = vst [vmem:[#allocation89_spill] sm:$0xff] %v15811_v46 }
 0x430   : > { %11851 = vmatmul.mubr.msk.bf16.gmra.mrb[96].mxu0 %vm910_vm1, %v17224_v29 }
 0x431   : > { %11854 = vmatprep.mubr.msk.bf16.mxu0 %vm910_vm1, %v17226_v61 }
 0x432   : > { %v15817_v63 = vpop.f32.mrb[80].mxu1 }
 0x433   : > { %17453 = vst [vmem:[#allocation99_spill] sm:$0xff] %v15817_v63  ;;  %v15819_v55 = vpop.f32.mrb[81].mxu1  ;;  %v17461_v63 = vld [vmem:[#allocation11_spill] sm:$0xff] }
 0x434   : > { %17454 = vst [vmem:[#allocation100_spill] sm:$0xff] %v15819_v55  ;;  %v15821_v21 = vpop.f32.mrb[82].mxu1  ;;  %v17462_v55 = vld [vmem:[#allocation6_spill] sm:$0xff] }
 0x435   : > { %17455 = vst [vmem:[#allocation101_spill] sm:$0xff] %v15821_v21  ;;  %v15823_v14 = vpop.f32.mrb[83].mxu1 }
 0x436   : > { %17456 = vst [vmem:[#allocation102_spill] sm:$0xff] %v15823_v14 }
 0x438   : > { %11855 = vmatmul.mubr.msk.bf16.gmra.mrb[100].mxu0 %vm910_vm1, %v14625_v9 }
 0x439   : > { %11858 = vmatprep.mubr.msk.bf16.mxu0 %vm910_vm1, %v17457_v12 }
 0x43a   : > { %v15829_v46 = vpop.f32.mrb[84].mxu1 }
 0x43b   : > { %17458 = vst [vmem:[#allocation7_spill] sm:$0xff] %v15829_v46  ;;  %v15831_v13 = vpop.f32.mrb[85].mxu1  ;;  %v17467_v46 = vld [vmem:[#allocation8_spill] sm:$0xff] }
 0x43c   : > { %17459 = vst [vmem:[#allocation103_spill] sm:$0xff] %v15831_v13  ;;  %v11321_v47 = vpop.f32.mrb[86].mxu1 }
 0x43d   : > { %v15833_v25 = vpop.f32.mrb[87].mxu1 }
 0x43e   : > { %17460 = vst [vmem:[#allocation104_spill] sm:$0xff] %v15833_v25 }
 0x440   : > { %11859 = vmatmul.mubr.msk.bf16.gmra.mrb[104].mxu0 %vm910_vm1, %v17461_v63 }
 0x441   : > { %11862 = vmatprep.mubr.msk.bf16.mxu0 %vm910_vm1, %v17462_v55 }
 0x442   : > { %v15839_v14 = vpop.f32.mrb[88].mxu1 }
 0x443   : > { %17463 = vst [vmem:[#allocation11_spill] sm:$0xff] %v15839_v14  ;;  %v15841_v21 = vpop.f32.mrb[89].mxu1  ;;  %v17474_v14 = vld [vmem:[#allocation53_spill] sm:$0xff] }
 0x444   : > { %17464 = vst [vmem:[#allocation6_spill] sm:$0xff] %v15841_v21  ;;  %v15843_v6 = vpop.f32.mrb[90].mxu1 }
 0x445   : > { %17465 = vst [vmem:[#allocation105_spill] sm:$0xff] %v15843_v6  ;;  %v15845_v0 = vpop.f32.mrb[91].mxu1 }
 0x446   : > { %17466 = vst [vmem:[#allocation106_spill] sm:$0xff] %v15845_v0 }
 0x448   : > { %11863 = vmatmul.mubr.msk.bf16.gmra.mrb[108].mxu0 %vm910_vm1, %v17467_v46 }
 0x449   : > { %11866 = vmatprep.mubr.msk.bf16.mxu0 %vm910_vm1, %v15577_v39 }
 0x44a   : > { %v15851_v47 = vpop.f32.mrb[92].mxu1 }
 0x44b   : > { %17468 = vst [vmem:[#allocation8_spill] sm:$0xff] %v15851_v47  ;;  %v15853_v25 = vpop.f32.mrb[93].mxu1  ;;  %v15869_v47 = vpack.c.bf16 %v17475_v42, %v17474_v14 }
 0x44c   : > { %17469 = vst [vmem:[#allocation107_spill] sm:$0xff] %v15853_v25  ;;  %v11329_v13 = vpop.f32.mrb[94].mxu1 }
 0x44d   : > { %v15855_v1 = vpop.f32.mrb[95].mxu1  ;;  %v297_v13 = vld [vmem:[%s13737_s29 + $0x244] sm:$0xf] }
 0x44e   : > { %17470 = vst [vmem:[#allocation108_spill] sm:$0xff] %v15855_v1  ;;  %v500_v1 = vunpack.c.l.bf16 %v15431_v41 }
 0x450   : > { %11867 = vmatmul.mubr.msk.bf16.gmra.mrb[112].mxu0 %vm910_vm1, %v15589_v23  ;;  %v5876_v14 = vrot.slane %v500_v1, 1  ;;  %v17482_v1 = vld [vmem:[#allocation63_spill] sm:$0xff] }
 0x451   : > { %11870 = vmatprep.mubr.msk.bf16.mxu0 %vm910_vm1, %v15593_v5 }
 0x452   : > { %v15861_v0 = vpop.f32.mrb[96].mxu1 }
 0x453   : > { %17471 = vst [vmem:[#allocation109_spill] sm:$0xff] %v15861_v0  ;;  %v15863_v6 = vpop.f32.mrb[97].mxu1  ;;  %v501_v0 = vunpack.c.l.bf16 %v297_v13 }
 0x454   : > { %17472 = vst [vmem:[#allocation110_spill] sm:$0xff] %v15863_v6  ;;  %v15865_v21 = vpop.f32.mrb[98].mxu1 }
 0x455   : > { %17473 = vst [vmem:[#allocation111_spill] sm:$0xff] %v15865_v21  ;;  %v15871_v25 = vpop.f32.mrb[99].mxu1  ;;  %v17478_v21 = vld [vmem:[#allocation57_spill] sm:$0xff]  ;;  %v5877_v36 = vrot.slane %v501_v0, 1 }
 0x456   : > { %17476 = vst [vmem:[#allocation53_spill] sm:$0xff] %v15871_v25  ;;  %v15885_v42 = vpack.c.bf16 %v17479_v34, %v17478_v21 }
 0x457   : > { %v5878_v13 = vsel %vm715_vm2, %v5876_v14, %v5877_v36 }
 0x458   : > { %11871 = vmatmul.mubr.msk.bf16.gmra.mrb[116].mxu0 %vm910_vm1, %v15605_v2  ;;  %v15903_v21 = vpack.c.bf16 %v5878_v13, %v17482_v1 }
 0x459   : > { %11874 = vmatprep.mubr.msk.bf16.mxu0 %vm910_vm1, %v15869_v47 }
 0x45a   : > { %v15879_v3 = vpop.f32.mrb[100].mxu1 }
 0x45b   : > { %v15881_v6 = vpop.f32.mrb[101].mxu1 }
 0x45c   : > { %17477 = vst [vmem:[#allocation56_spill] sm:$0xff] %v15881_v6  ;;  %v11337_v25 = vpop.f32.mrb[102].mxu1 }
 0x45d   : > { %v15891_v41 = vpop.f32.mrb[103].mxu1 }
 0x460   : > { %11875 = vmatmul.mubr.msk.bf16.gmra.mrb[120].mxu0 %vm910_vm1, %v15885_v42 }
 0x461   : > { %11878 = vmatprep.mubr.msk.bf16.mxu0 %vm910_vm1, %v15889_v7 }
 0x462   : > { %v15898_v6 = vpop.f32.mrb[104].mxu1 }
 0x463   : > { %v15900_v34 = vpop.f32.mrb[105].mxu1 }
 0x464   : > { %v15905_v49 = vpop.f32.mrb[106].mxu1 }
 0x465   : > { %v15907_v38 = vpop.f32.mrb[107].mxu1 }
 0x466   : > { %17483 = vst [vmem:[#allocation57_spill] sm:$0xff] %v15907_v38 }
 0x468   : > { %11879 = vmatmul.mubr.msk.bf16.gmra.mrb[124].mxu0 %vm910_vm1, %v15903_v21 }
 0x469   : > { %11884 = vmatprep.mubr.msk.bf16.mxu0 %vm910_vm1, %v15188_v30 }
 0x46a   : > { %v15913_v25 = vpop.f32.mrb[108].mxu1 }
 0x46b   : > { %v15915_v36 = vpop.f32.mrb[109].mxu1 }
 0x46c   : > { %v11345_v0 = vpop.f32.mrb[110].mxu1 }
 0x46d   : > { %v15917_v14 = vpop.f32.mrb[111].mxu1 }
 0x46e   : > { %17484 = vst [vmem:[#allocation58_spill] sm:$0xff] %v15917_v14 }
 0x470   : > { %11885 = vmatmul.mubr.msk.bf16.vlgmr.msra.gmra.mrb[0].mxu0 %vm910_vm1, %v15195_v31 }
 0x471   : > { %11888 = vmatprep.mubr.msk.bf16.mxu0 %vm910_vm1, %v15202_v58 }
 0x472   : > { %v15923_v13 = vpop.f32.mrb[112].mxu1 }
 0x473   : > { %v15925_v1 = vpop.f32.mrb[113].mxu1 }
 0x474   : > { %v15927_v38 = vpop.f32.mrb[114].mxu1 }
 0x475   : > { %17485 = vst [vmem:[#allocation59_spill] sm:$0xff] %v15927_v38  ;;  %v15929_v30 = vpop.f32.mrb[115].mxu1 }
 0x476   : > { %17486 = vst [vmem:[#allocation62_spill] sm:$0xff] %v15929_v30 }
 0x478   : > { %11889 = vmatmul.mubr.msk.bf16.gmra.mrb[4].mxu0 %vm910_vm1, %v15209_v43 }
 0x479   : > { %11892 = vmatprep.mubr.msk.bf16.mxu0 %vm910_vm1, %v15216_v50 }
 0x47a   : > { %v15935_v0 = vpop.f32.mrb[116].mxu1 }
 0x47b   : > { %v15937_v31 = vpop.f32.mrb[117].mxu1 }
 0x47c   : > { %v11353_v14 = vpop.f32.mrb[118].mxu1 }
 0x47d   : > { %v15939_v58 = vpop.f32.mrb[119].mxu1 }
 0x47e   : > { %17487 = vst [vmem:[#allocation63_spill] sm:$0xff] %v15939_v58 }
 0x480   : > { %11893 = vmatmul.mubr.msk.bf16.gmra.mrb[8].mxu0 %vm910_vm1, %v15223_v15 }
 0x481   : > { %11896 = vmatprep.mubr.msk.bf16.mxu0 %vm910_vm1, %v15230_v62 }
 0x482   : > { %v15945_v30 = vpop.f32.mrb[120].mxu1 }
 0x483   : > { %v15947_v38 = vpop.f32.mrb[121].mxu1 }
 0x484   : > { %v15949_v43 = vpop.f32.mrb[122].mxu1 }
 0x485   : > { %v15951_v50 = vpop.f32.mrb[123].mxu1 }
 0x488   : > { %11897 = vmatmul.mubr.msk.bf16.gmra.mrb[12].mxu0 %vm910_vm1, %v15237_v20  ;;  %v17488_v20 = vld [vmem:[#allocation79_spill] sm:$0xff] }
 0x489   : > { %11900 = vmatprep.mubr.msk.bf16.mxu0 %vm910_vm1, %v15244_v22  ;;  %v17489_v22 = vld [vmem:[#allocation80_spill] sm:$0xff] }
 0x48a   : > { %v15957_v14 = vpop.f32.mrb[124].mxu1 }
 0x48b   : > { %v15959_v15 = vpop.f32.mrb[125].mxu1 }
 0x48c   : > { %v11361_v58 = vpop.f32.mrb[126].mxu1 }
 0x48d   : > { %v15961_v62 = vpop.f32.mrb[127].mxu1  ;;  %v17507_v58 = vld [vmem:[#allocation75_spill] sm:$0xff] }
 0x490   : > { %11901 = vmatmul.mubr.msk.bf16.gmra.mrb[16].mxu0 %vm910_vm1, %v15251_v48  ;;  %v17490_v48 = vld [vmem:[#allocation82_spill] sm:$0xff] }
 0x491   : > { %11904 = vmatprep.mubr.msk.bf16.mxu0 %vm910_vm1, %v15258_v28  ;;  %v17492_v28 = vld [vmem:[#allocation83_spill] sm:$0xff] }
 0x498   : > { %11905 = vmatmul.mubr.msk.bf16.gmra.mrb[20].mxu0 %vm910_vm1, %v15265_v4  ;;  %v17493_v4 = vld [vmem:[#allocation85_spill] sm:$0xff] }
 0x499   : > { %11908 = vmatprep.mubr.msk.bf16.mxu0 %vm910_vm1, %v15272_v54  ;;  %v17494_v54 = vld [vmem:[#allocation64_spill] sm:$0xff] }
 0x4a0   : > { %11909 = vmatmul.mubr.msk.bf16.gmra.mrb[24].mxu0 %vm910_vm1, %v15279_v26  ;;  %v17499_v26 = vld [vmem:[#allocation68_spill] sm:$0xff] }
 0x4a1   : > { %11912 = vmatprep.mubr.msk.bf16.mxu0 %vm910_vm1, %v15286_v56 }
 0x4a8   : > { %11913 = vmatmul.mubr.msk.bf16.gmra.mrb[28].mxu0 %vm910_vm1, %v15323_v33  ;;  %v17491_v33 = vld [vmem:[#allocation84_spill] sm:$0xff] }
 0x4a9   : > { %11916 = vmatprep.mubr.msk.bf16.mxu0 %vm910_vm1, %v17360_v60 }
 0x4b0   : > { %11917 = vmatmul.mubr.msk.bf16.gmra.mrb[32].mxu0 %vm910_vm1, %v17361_v35  ;;  %v17500_v35 = vld [vmem:[#allocation69_spill] sm:$0xff] }
 0x4b1   : > { %11920 = vmatprep.mubr.msk.bf16.mxu0 %vm910_vm1, %v17362_v57 }
 0x4b8   : > { %11921 = vmatmul.mubr.msk.bf16.gmra.mrb[36].mxu0 %vm910_vm1, %v17418_v8  ;;  %v17504_v8 = vld [vmem:[#allocation30_spill] sm:$0xff] }
 0x4b9   : > { %11924 = vmatprep.mubr.msk.bf16.mxu0 %vm910_vm1, %v17488_v20 }
 0x4c0   : > { %11925 = vmatmul.mubr.msk.bf16.gmra.mrb[40].mxu0 %vm910_vm1, %v17489_v22 }
 0x4c1   : > { %11928 = vmatprep.mubr.msk.bf16.mxu0 %vm910_vm1, %v17490_v48  ;;  %v17508_v48 = vld [vmem:[#allocation42_spill] sm:$0xff] }
 0x4c8   : > { %11929 = vmatmul.mubr.msk.bf16.gmra.mrb[44].mxu0 %vm910_vm1, %v17491_v33  ;;  %v17509_v33 = vld [vmem:[#allocation45_spill] sm:$0xff] }
 0x4c9   : > { %11932 = vmatprep.mubr.msk.bf16.mxu0 %vm910_vm1, %v17419_v37 }
 0x4d0   : > { %11933 = vmatmul.mubr.msk.bf16.gmra.mrb[48].mxu0 %vm910_vm1, %v17420_v52 }
 0x4d1   : > { %11936 = vmatprep.mubr.msk.bf16.mxu0 %vm910_vm1, %v17421_v45 }
 0x4d8   : > { %11937 = vmatmul.mubr.msk.bf16.gmra.mrb[52].mxu0 %vm910_vm1, %v17422_v11  ;;  %v17505_v11 = vld [vmem:[#allocation74_spill] sm:$0xff] }
 0x4d9   : > { %11940 = vmatprep.mubr.msk.bf16.mxu0 %vm910_vm1, %v17492_v28  ;;  %v6548_v28 = vpack.c.bf16 %v17509_v33, %v17508_v48  ;;  %v17520_v33 = vld [vmem:[#allocation90_spill] sm:$0xff] }
 0x4e0   : > { %11941 = vmatmul.mubr.msk.bf16.gmra.mrb[56].mxu0 %vm910_vm1, %v17493_v4 }
 0x4e1   : > { %11944 = vmatprep.mubr.msk.bf16.mxu0 %vm910_vm1, %v17494_v54  ;;  %v17510_v54 = vld [vmem:[#allocation34_spill] sm:$0xff] }
 0x4e8   : > { %11945 = vmatmul.mubr.msk.bf16.gmra.mrb[60].mxu0 %vm910_vm1, %v15085_v19 }
 0x4e9   : > { %11948 = vmatprep.mubr.msk.bf16.mxu0 %vm910_vm1, %v13828_v40  ;;  %v13582_v40 = vld [vmem:[%s16907_s3 + $0x10] sm:$0xff]  }
 0x4ea   : > { %12012 = vmatprep.subr.bf16.mxu1 %v13582_v40 }
 0x4eb   : > { %12013 = vmatpush3.bf16.msra.mxu1 %v13582_v40 }
 0x4f0   : > { %11949 = vmatmul.mubr.msk.bf16.gmra.mrb[64].mxu0 %vm910_vm1, %v13833_v44  ;;  %v17495_v44 = vld [vmem:[#allocation81_spill] sm:$0xff] }
 0x4f1   : > { %11952 = vmatprep.mubr.msk.bf16.mxu0 %vm910_vm1, %v13849_v51  ;;  %v13583_v51 = vld [vmem:[%s16907_s3 + $0x18] sm:$0xff]  }
 0x4f2   : > { %12014 = vmatprep.subr.bf16.mxu1 %v13583_v51 }
 0x4f3   : > { %12015 = vmatpush3.bf16.msra.mxu1 %v13583_v51  ;;  %v17511_v51 = vld [vmem:[#allocation41_spill] sm:$0xff] }
 0x4f8   : > { %11953 = vmatmul.mubr.msk.bf16.gmra.mrb[68].mxu0 %vm910_vm1, %v14573_v16  ;;  %v17496_v16 = vld [vmem:[#allocation77_spill] sm:$0xff] }
 0x4f9   : > { %11956 = vmatprep.mubr.msk.bf16.mxu0 %vm910_vm1, %v17223_v53  ;;  %v17497_v53 = vld [vmem:[#allocation2_spill] sm:$0xff] }
 0x500   : > { %11957 = vmatmul.mubr.msk.bf16.gmra.mrb[72].mxu0 %vm910_vm1, %v17224_v29 }
 0x501   : > { %11960 = vmatprep.mubr.msk.bf16.mxu0 %vm910_vm1, %v17226_v61  ;;  %v17498_v61 = vld [vmem:[#allocation66_spill] sm:$0xff] }
 0x508   : > { %11961 = vmatmul.mubr.msk.bf16.gmra.mrb[76].mxu0 %vm910_vm1, %v14625_v9 }
 0x509   : > { %11964 = vmatprep.mubr.msk.bf16.mxu0 %vm910_vm1, %v15545_v27 }
 0x510   : > { %11965 = vmatmul.mubr.msk.bf16.gmra.mrb[80].mxu0 %vm910_vm1, %v15557_v18  ;;  %v17502_v18 = vld [vmem:[#allocation65_spill] sm:$0xff] }
 0x511   : > { %11968 = vmatprep.mubr.msk.bf16.mxu0 %vm910_vm1, %v15561_v10  ;;  %v17501_v10 = vld [vmem:[#allocation70_spill] sm:$0xff] }
 0x518   : > { %11969 = vmatmul.mubr.msk.bf16.gmra.mrb[84].mxu0 %vm910_vm1, %v15573_v17  ;;  %v17503_v17 = vld [vmem:[#allocation71_spill] sm:$0xff] }
 0x519   : > { %11972 = vmatprep.mubr.msk.bf16.mxu0 %vm910_vm1, %v15577_v39 }
 0x520   : > { %11973 = vmatmul.mubr.msk.bf16.gmra.mrb[88].mxu0 %vm910_vm1, %v15589_v23 }
 0x521   : > { %11976 = vmatprep.mubr.msk.bf16.mxu0 %vm910_vm1, %v15593_v5 }
 0x528   : > { %11977 = vmatmul.mubr.msk.bf16.gmra.mrb[92].mxu0 %vm910_vm1, %v15605_v2 }
 0x529   : > { %11980 = vmatprep.mubr.msk.bf16.mxu0 %vm910_vm1, %v17457_v12 }
 0x530   : > { %11981 = vmatmul.mubr.msk.bf16.gmra.mrb[96].mxu0 %vm910_vm1, %v17461_v63 }
 0x531   : > { %11984 = vmatprep.mubr.msk.bf16.mxu0 %vm910_vm1, %v17462_v55  ;;  %v17506_v55 = vld [vmem:[#allocation32_spill] sm:$0xff] }
 0x538   : > { %11985 = vmatmul.mubr.msk.bf16.gmra.mrb[100].mxu0 %vm910_vm1, %v17467_v46 }
 0x539   : > { %11988 = vmatprep.mubr.msk.bf16.mxu0 %vm910_vm1, %v17495_v44  ;;  %v315_v44 = vld [vmem:[%s13737_s29 + $0x2c4] sm:$0xf] }
 0x540   : > { %11989 = vmatmul.mubr.msk.bf16.gmra.mrb[104].mxu0 %vm910_vm1, %v17496_v16 }
 0x541   : > { %11992 = vmatprep.mubr.msk.bf16.mxu0 %vm910_vm1, %v17497_v53 }
 0x543   : > { %v11886_v29 = vpop.f32.mrb[0].mxu0 }
 0x544   : > { %v16062_v9 = vadd.f32 %v11886_v29, %v17498_v61  ;;  %v6603_v19 = vpop.f32.mrb[1].mxu0  ;;  %v518_v29 = vunpack.c.l.bf16 %v15477_v59  ;;  %v17517_v59 = vld [vmem:[#allocation28_spill] sm:$0xff] }
 0x545   : > { %v16065_v56 = vadd.f32 %v6603_v19, %v17499_v26  ;;  %v11887_v60 = vpop.f32.mrb[2].mxu0  ;;  %v17512_v26 = vld [vmem:[#allocation47_spill] sm:$0xff] }
 0x546   : > { %v16068_v57 = vadd.f32 %v11887_v60, %v17500_v35  ;;  %v6606_v23 = vpop.f32.mrb[3].mxu0 }
 0x547   : > { %v16071_v39 = vadd.f32 %v6606_v23, %v17501_v10  ;;  %v17514_v23 = vld [vmem:[#allocation17_spill] sm:$0xff] }
 0x548   : > { %11993 = vmatmul.mubr.msk.bf16.gmra.mrb[108].mxu0 %vm910_vm1, %v17502_v18  ;;  %v6544_v18 = vrot.slane %v518_v29, 1 }
 0x549   : > { %11996 = vmatprep.mubr.msk.bf16.mxu0 %vm910_vm1, %v15869_v47 }
 0x54b   : > { %v11890_v27 = vpop.f32.mrb[4].mxu0 }
 0x54c   : > { %v16078_v5 = vadd.f32 %v11890_v27, %v17503_v17  ;;  %v6619_v2 = vpop.f32.mrb[5].mxu0  ;;  %v17516_v17 = vld [vmem:[#allocation36_spill] sm:$0xff] }
 0x54d   : > { %v16081_v37 = vadd.f32 %v6619_v2, %v17504_v8  ;;  %v11891_v52 = vpop.f32.mrb[6].mxu0  ;;  %v6550_v2 = vpack.c.bf16 %v17517_v59, %v17516_v17 }
 0x54e   : > { %v6622_v45 = vpop.f32.mrb[7].mxu0 }
 0x54f   : > { %v16084_v63 = vadd.f32 %v6622_v45, %v17505_v11  ;;  %v17518_v11 = vld [vmem:[#allocation54_spill] sm:$0xff] }
 0x550   : > { %11997 = vmatmul.mubr.msk.bf16.gmra.mrb[112].mxu0 %vm910_vm1, %v15885_v42 }
 0x551   : > { %12000 = vmatprep.mubr.msk.bf16.mxu0 %vm910_vm1, %v15889_v7 }
 0x553   : > { %v11894_v46 = vpop.f32.mrb[8].mxu0 }
 0x554   : > { %v16091_v12 = vadd.f32 %v11894_v46, %v17506_v55  ;;  %v6634_v47 = vpop.f32.mrb[9].mxu0 }
 0x555   : > { %v16094_v20 = vadd.f32 %v6634_v47, %v17507_v58  ;;  %v11895_v22 = vpop.f32.mrb[10].mxu0 }
 0x556   : > { %v7213_v4 = vmax.f32 %v16062_v9, %v16091_v12  ;;  %v12275_v42 = vadd.f32 %v11895_v22, %v17510_v54  ;;  %v6637_v40 = vpop.f32.mrb[11].mxu0  ;;  %v519_v9 = vunpack.c.l.bf16 %v315_v44  ;;  %v17519_v22 = vld [vmem:[#allocation39_spill] sm:$0xff] }
 0x557   : > { %v7211_v7 = vmax.f32 %v16065_v56, %v16094_v20  ;;  %v12276_v16 = vadd.f32 %v6637_v40, %v17511_v51  ;;  %v17513_v56 = vld [vmem:[#allocation49_spill] sm:$0xff]  ;;  %v17522_v51 = vld [vmem:[#allocation40_spill] sm:$0xff] }
 0x558   : > { %v7214_v53 = vmax.f32 %v16068_v57, %v12275_v42  ;;  %12001 = vmatmul.mubr.msk.bf16.gmra.mrb[116].mxu0 %vm910_vm1, %v15903_v21  ;;  %v6549_v10 = vpack.c.bf16 %v17514_v23, %v17513_v56  ;;  %v17515_v57 = vld [vmem:[#allocation52_spill] sm:$0xff]  ;;  %v17521_v42 = vld [vmem:[#allocation91_spill] sm:$0xff] }
 0x559   : > { %v7212_v61 = vmax.f32 %v16071_v39, %v12276_v16  ;;  %12004 = vmatprep.mubr.msk.bf16.mxu0 %vm910_vm1, %v6548_v28  ;;  %v6545_v39 = vrot.slane %v519_v9, 1  ;;  %v17523_v9 = vld [vmem:[#allocation93_spill] sm:$0xff] }
 0x55b   : > { %v11898_v19 = vpop.f32.mrb[12].mxu0  ;;  %v6546_v12 = vsel %vm715_vm2, %v6544_v18, %v6545_v39 }
 0x55c   : > { %v16112_v60 = vadd.f32 %v11898_v19, %v17512_v26  ;;  %v6650_v35 = vpop.f32.mrb[13].mxu0  ;;  %v6551_v48 = vpack.c.bf16 %v6546_v12, %v17519_v22  ;;  %v17528_v12 = vld [vmem:[#allocation48_spill] sm:$0xff]  ;;  %v16148_v22 = vld [vmem:[%s16906_s2] ss:$0 sm:$0xff] }
 0x55d   : > { %v16117_v27 = vadd.f32 %v6650_v35, %v17515_v57  ;;  %v11899_v21 = vpop.f32.mrb[14].mxu0  ;;  %v17524_v35 = vld [vmem:[#allocation94_spill] sm:$0xff] }
 0x55e   : > { %v7217_v8 = vmax.f32 %v16078_v5, %v16112_v60  ;;  %v6653_v52 = vpop.f32.mrb[15].mxu0  ;;  %v17526_v21 = vld [vmem:[#allocation96_spill] sm:$0xff] }
 0x55f   : > { %v7215_v45 = vmax.f32 %v16081_v37, %v16117_v27  ;;  %v16126_v46 = vadd.f32 %v6653_v52, %v17518_v11 }
 0x560   : > { %12005 = vmatmul.mubr.msk.bf16.gmra.mrb[120].mxu0 %vm910_vm1, %v6549_v10  ;;  %v17525_v10 = vld [vmem:[#allocation97_spill] sm:$0xff] }
 0x561   : > { %v7216_v55 = vmax.f32 %v16084_v63, %v16126_v46  ;;  %12008 = vmatprep.mubr.msk.bf16.mxu0 %vm910_vm1, %v6550_v2  ;;  %v17527_v2 = vld [vmem:[#allocation46_spill] sm:$0xff]  ;;  %v17539_v46 = vld [vmem:[#allocation60_spill] sm:$0xff] }
 0x563   : > { %v11902_v47 = vpop.f32.mrb[16].mxu0 }
 0x564   : > { %v12280_v58 = vadd.f32 %v11902_v47, %v15412_v24  ;;  %v6665_v20 = vpop.f32.mrb[17].mxu0 }
 0x565   : > { %v12281_v28 = vadd.f32 %v6665_v20, %v17520_v33  ;;  %v11903_v54 = vpop.f32.mrb[18].mxu0  ;;  %v17529_v33 = vld [vmem:[#allocation51_spill] sm:$0xff] }
 0x566   : > { %v12282_v40 = vadd.f32 %v11903_v54, %v17521_v42  ;;  %v6668_v44 = vpop.f32.mrb[19].mxu0 }
 0x567   : > { %v12283_v16 = vadd.f32 %v6668_v44, %v17522_v51 }
 0x568   : > { %12009 = vmatmul.mubr.msk.bf16.gmra.mrb[124].mxu0 %vm910_vm1, %v6551_v48 }
 0x56b   : > { %v11906_v29 = vpop.f32.mrb[20].mxu0 }
 0x56c   : > { %v12284_v19 = vadd.f32 %v11906_v29, %v17523_v9  ;;  %v6681_v26 = vpop.f32.mrb[21].mxu0 }
 0x56d   : > { %v12285_v56 = vadd.f32 %v6681_v26, %v17524_v35  ;;  %v11907_v24 = vpop.f32.mrb[22].mxu0 }
 0x56e   : > { %v6684_v23 = vpop.f32.mrb[23].mxu0 }
 0x56f   : > { %v12286_v18 = vadd.f32 %v6684_v23, %v17525_v10 }
 0x573   : > { %v11910_v57 = vpop.f32.mrb[24].mxu0 }
 0x574   : > { %v12287_v17 = vadd.f32 %v11910_v57, %v17526_v21  ;;  %v6696_v59 = vpop.f32.mrb[25].mxu0  ;;  %v17530_v57 = vld [vmem:[#allocation19_spill] sm:$0xff] }
 0x575   : > { %v12288_v39 = vadd.f32 %v6696_v59, %v17527_v2  ;;  %v11911_v52 = vpop.f32.mrb[26].mxu0 }
 0x576   : > { %v7220_v11 = vmax.f32 %v12280_v58, %v12287_v17  ;;  %v12289_v47 = vadd.f32 %v11911_v52, %v17528_v12  ;;  %v6699_v20 = vpop.f32.mrb[27].mxu0  ;;  %v13675_v17 = vmov 0.0  }
 0x577   : > { %v7218_v48 = vmax.f32 %v12281_v28, %v12288_v39  ;;  %v12290_v54 = vadd.f32 %v6699_v20, %v17529_v33  ;;  %v16157_v59 = vrot.slane %v13675_v17, 1  ;;  %v17532_v20 = vld [vmem:[#allocation55_spill] sm:$0xff] }
 0x578   : > { %v7227_v42 = vmax.f32 %v7213_v4, %v7220_v11  ;;  %v7221_v44 = vmax.f32 %v12282_v40, %v12289_v47  ;;  %v17531_v40 = vld [vmem:[#allocation25_spill] sm:$0xff] }
 0x579   : > { %v7225_v51 = vmax.f32 %v7211_v7, %v7218_v48  ;;  %v7219_v29 = vmax.f32 %v12283_v16, %v12290_v54 }
 0x57a   : > { %v7240_v9 = vadd.f32 %v16148_v22, %v7227_v42  ;;  %v7228_v26 = vmax.f32 %v7214_v53, %v7221_v44 }
 0x57b   : > { %v7238_v58 = vadd.f32 %v16148_v22, %v7225_v51  ;;  %v7226_v35 = vmax.f32 %v7212_v61, %v7219_v29  ;;  %v11914_v24 = vpop.f32.mrb[28].mxu0 }
 0x57c   : > { %v16153_v23 = vmax.f32 %v7240_v9, 0.0  ;;  %v7241_v10 = vadd.f32 %v16148_v22, %v7228_v26  ;;  %v12291_v21 = vadd.f32 %v11914_v24, %v17530_v57  ;;  %v6712_v28 = vpop.f32.mrb[29].mxu0 }
 0x57d   : > { %v7245_v4 = vmax.f32 %v7238_v58, 0.0  ;;  %v7239_v7 = vadd.f32 %v16148_v22, %v7226_v35  ;;  %v12292_v16 = vadd.f32 %v6712_v28, %v17531_v40  ;;  %v11915_v53 = vpop.f32.mrb[30].mxu0  ;;  %v17535_v35 = vld [vmem:[#allocation26_spill] sm:$0xff] }
 0x57e   : > { %v7385_v2 = vrot.slane %v16153_v23, 1  ;;  %v16162_v61 = vmax.f32 %v7241_v10, 0.0  ;;  %v7224_v39 = vmax.f32 %v12284_v19, %v12291_v21  ;;  %v6715_v52 = vpop.f32.mrb[31].mxu0 }
 0x57f   : > { %v7380_v11 = vrot.slane %v7245_v4, 1  ;;  %v7246_v12 = vmax.f32 %v7239_v7, 0.0  ;;  %v7222_v47 = vmax.f32 %v12285_v56, %v12292_v16  ;;  %v12293_v48 = vadd.f32 %v6715_v52, %v17532_v20  ;;  %v17540_v7 = vld [vmem:[#allocation27_spill] sm:$0xff]  ;;  %v17564_v20 = vld [vmem:[#allocation20_spill] sm:$0xff] }
 0x580   : > { %v7387_v54 = vrot.slane %v16162_v61, 1  ;;  %v7231_v42 = vmax.f32 %v7217_v8, %v7224_v39  ;;  %v7386_v44 = vsel %vm715_vm2, %v7385_v2, %v16157_v59  ;;  %v17541_v39 = vld [vmem:[#allocation61_spill] sm:$0xff] }
 0x581   : > { %v7383_v51 = vrot.slane %v7246_v12, 1  ;;  %v7229_v19 = vmax.f32 %v7215_v45, %v7222_v47  ;;  %v7223_v56 = vmax.f32 %v12286_v18, %v12293_v48  ;;  %v7382_v29 = vsel %vm715_vm2, %v7380_v11, %v16157_v59 }
 0x582   : > { %v7244_v9 = vadd.f32 %v16148_v22, %v7231_v42  ;;  %v7388_v26 = vsel %vm715_vm2, %v7387_v54, %v16157_v59  ;;  %v16181_v58 = vpack.c.bf16 %v7246_v12, %v7245_v4  ;;  %v16184_v5 = vpack.c.bf16 %v16153_v23, %v7246_v12 }
 0x583   : > { %v7242_v60 = vadd.f32 %v16148_v22, %v7229_v19  ;;  %v7230_v37 = vmax.f32 %v7216_v55, %v7223_v56  ;;  %v11918_v27 = vpop.f32.mrb[32].mxu0  ;;  %v7384_v8 = vsel %vm715_vm2, %v7383_v51, %v16157_v59  ;;  %v16192_v45 = vpack.c.bf16 %v7388_v26, %v7386_v44  ;;  %v17545_v19 = vld [vmem:[#allocation29_spill] sm:$0xff] }
 0x584   : > { %17533 = vst [vmem:[#allocation79_spill] sm:$0xff] %v16184_v5  ;;  %v7251_v18 = vmax.f32 %v7244_v9, 0.0  ;;  %v16195_v24 = vadd.f32 %v11918_v27, %v17535_v35  ;;  %v6727_v10 = vpop.f32.mrb[33].mxu0  ;;  %v16197_v57 = vpack.c.bf16 %v7384_v8, %v7382_v29  ;;  %v16199_v21 = vpack.c.bf16 %v7386_v44, %v7384_v8 }
 0x585   : > { %17534 = vst [vmem:[#allocation80_spill] sm:$0xff] %v16192_v45  ;;  %v16201_v28 = vmax.f32 %v7242_v60, 0.0  ;;  %v7243_v63 = vadd.f32 %v16148_v22, %v7230_v37  ;;  %v16205_v55 = vadd.f32 %v6727_v10, %v17539_v46  ;;  %v11919_v17 = vpop.f32.mrb[34].mxu0  ;;  %v17548_v37 = vld [vmem:[#allocation31_spill] sm:$0xff] }
 0x586   : > { %17536 = vst [vmem:[#allocation82_spill] sm:$0xff] %v16197_v57  ;;  %17537 = vst [vmem:[#allocation84_spill] sm:$0xff] %v16199_v21  ;;  %v8208_v4 = vrot.slane %v7251_v18, 1  ;;  %v16208_v40 = vadd.f32 %v11919_v17, %v17540_v7  ;;  %v6730_v16 = vpop.f32.mrb[35].mxu0 }
 0x587   : > { %17538 = vst [vmem:[#allocation83_spill] sm:$0xff] %v16201_v28  ;;  %v7389_v53 = vrot.slane %v16201_v28, 1  ;;  %v16211_v2 = vmax.f32 %v7243_v63, 0.0  ;;  %v16214_v52 = vadd.f32 %v6730_v16, %v17541_v39  ;;  %v16218_v11 = vpack.c.bf16 %v16201_v28, %v16162_v61  ;;  %v17550_v63 = vld [vmem:[#allocation37_spill] sm:$0xff]  ;;  %v17552_v39 = vld [vmem:[#allocation38_spill] sm:$0xff] }
 0x588   : > { %v8209_v51 = vsel %vm715_vm2, %v8208_v4, %v16157_v59  ;;  %v17551_v4 = vld [vmem:[#allocation35_spill] sm:$0xff] }
 0x589   : > { %17542 = vst [vmem:[#allocation85_spill] sm:$0xff] %v16218_v11  ;;  %v7391_v12 = vrot.slane %v16211_v2, 1  ;;  %v7390_v47 = vsel %vm715_vm2, %v7389_v53, %v16157_v59  ;;  %v16226_v48 = vpack.c.bf16 %v7251_v18, %v16211_v2  ;;  %v17549_v18 = vld [vmem:[#allocation33_spill] sm:$0xff] }
 0x58a   : > { %v16228_v54 = vpack.c.bf16 %v7390_v47, %v7388_v26 }
 0x58b   : > { %17543 = vst [vmem:[#allocation64_spill] sm:$0xff] %v16226_v48  ;;  %v11922_v42 = vpop.f32.mrb[36].mxu0  ;;  %v7392_v44 = vsel %vm715_vm2, %v7391_v12, %v16157_v59  ;;  %v17566_v48 = vld [vmem:[#allocation4_spill] sm:$0xff] }
 0x58c   : > { %17544 = vst [vmem:[#allocation81_spill] sm:$0xff] %v16228_v54  ;;  %v16235_v56 = vadd.f32 %v11922_v42, %v17545_v19  ;;  %v6743_v29 = vpop.f32.mrb[37].mxu0  ;;  %v16237_v9 = vpack.c.bf16 %v7392_v44, %v7390_v47  ;;  %v16239_v60 = vpack.c.bf16 %v8209_v51, %v7392_v44  ;;  %v17553_v44 = vld [vmem:[#allocation12_spill] sm:$0xff] }
 0x58d   : > { %v16242_v27 = vadd.f32 %v6743_v29, %v17548_v37  ;;  %v11923_v26 = vpop.f32.mrb[38].mxu0 }
 0x58e   : > { %17546 = vst [vmem:[#allocation77_spill] sm:$0xff] %v16237_v9  ;;  %17547 = vst [vmem:[#allocation2_spill] sm:$0xff] %v16239_v60  ;;  %v6746_v8 = vpop.f32.mrb[39].mxu0 }
 0x58f   : > { %v16245_v35 = vadd.f32 %v6746_v8, %v17549_v18  ;;  %v17554_v18 = vld [vmem:[#allocation78_spill] sm:$0xff] }
 0x593   : > { %v11926_v10 = vpop.f32.mrb[40].mxu0 }
 0x594   : > { %v12301_v46 = vadd.f32 %v11926_v10, %v17550_v63  ;;  %v6758_v17 = vpop.f32.mrb[41].mxu0 }
 0x595   : > { %v12302_v7 = vadd.f32 %v6758_v17, %v17551_v4  ;;  %v11927_v16 = vpop.f32.mrb[42].mxu0  ;;  %v17555_v17 = vld [vmem:[#allocation14_spill] sm:$0xff]  ;;  %v17556_v4 = vld [vmem:[#allocation15_spill] sm:$0xff] }
 0x596   : > { %v7254_v53 = vmax.f32 %v16195_v24, %v12301_v46  ;;  %v12303_v12 = vadd.f32 %v11927_v16, %v17552_v39  ;;  %v6761_v47 = vpop.f32.mrb[43].mxu0  ;;  %v17557_v39 = vld [vmem:[#allocation50_spill] sm:$0xff] }
 0x597   : > { %v7252_v42 = vmax.f32 %v16205_v55, %v12302_v7  ;;  %v12304_v51 = vadd.f32 %v6761_v47, %v17553_v44  ;;  %v17558_v44 = vld [vmem:[#allocation67_spill] sm:$0xff] }
 0x598   : > { %v7255_v19 = vmax.f32 %v16208_v40, %v12303_v12 }
 0x599   : > { %v7253_v29 = vmax.f32 %v16214_v52, %v12304_v51  ;;  %v17565_v52 = vld [vmem:[#allocation9_spill] sm:$0xff] }
 0x59b   : > { %v11930_v37 = vpop.f32.mrb[44].mxu0 }
 0x59c   : > { %v16256_v26 = vadd.f32 %v11930_v37, %v15719_v32  ;;  %v6774_v8 = vpop.f32.mrb[45].mxu0  ;;  %v17559_v37 = vld [vmem:[#allocation72_spill] sm:$0xff] }
 0x59d   : > { %v16259_v10 = vadd.f32 %v6774_v8, %v17554_v18  ;;  %v11931_v24 = vpop.f32.mrb[46].mxu0 }
 0x59e   : > { %v7258_v63 = vmax.f32 %v16235_v56, %v16256_v26  ;;  %v6777_v46 = vpop.f32.mrb[47].mxu0  ;;  %v16278_v24 = vld [vmem:[%s16907_s3] sm:$0xff]  }
 0x59f   : > { %v7256_v55 = vmax.f32 %v16242_v27, %v16259_v10  ;;  %v16266_v40 = vadd.f32 %v6777_v46, %v17555_v17  ;;  %v17560_v27 = vld [vmem:[#allocation73_spill] sm:$0xff]  ;;  %v17561_v46 = vld [vmem:[#allocation76_spill] sm:$0xff]  ;;  %12040 = vmatprep.subr.bf16.mxu1 %v16278_v24 }
 0x5a3   : > { %v11934_v32 = vpop.f32.mrb[48].mxu0 }
 0x5a4   : > { %v12308_v7 = vadd.f32 %v11934_v32, %v17556_v4  ;;  %v6789_v16 = vpop.f32.mrb[49].mxu0 }
 0x5a5   : > { %v12309_v12 = vadd.f32 %v6789_v16, %v17557_v39  ;;  %v11935_v47 = vpop.f32.mrb[50].mxu0  ;;  %v17562_v16 = vld [vmem:[#allocation16_spill] sm:$0xff] }
 0x5a6   : > { %v12310_v51 = vadd.f32 %v11935_v47, %v17558_v44  ;;  %v6792_v56 = vpop.f32.mrb[51].mxu0  ;;  %v17563_v44 = vld [vmem:[#allocation18_spill] sm:$0xff] }
 0x5a7   : > { %v12311_v26 = vadd.f32 %v6792_v56, %v17559_v37 }
 0x5ab   : > { %v11938_v8 = vpop.f32.mrb[52].mxu0 }
 0x5ac   : > { %v12312_v18 = vadd.f32 %v11938_v8, %v17560_v27  ;;  %v6805_v10 = vpop.f32.mrb[53].mxu0 }
 0x5ad   : > { %v12313_v17 = vadd.f32 %v6805_v10, %v17561_v46  ;;  %v11939_v32 = vpop.f32.mrb[54].mxu0 }
 0x5ae   : > { %v6808_v4 = vpop.f32.mrb[55].mxu0 }
 0x5af   : > { %v12314_v39 = vadd.f32 %v6808_v4, %v17562_v16 }
 0x5b3   : > { %v11942_v47 = vpop.f32.mrb[56].mxu0 }
 0x5b4   : > { %v12315_v56 = vadd.f32 %v11942_v47, %v17563_v44  ;;  %v6820_v37 = vpop.f32.mrb[57].mxu0 }
 0x5b5   : > { %v12316_v8 = vadd.f32 %v6820_v37, %v17564_v20  ;;  %v11943_v27 = vpop.f32.mrb[58].mxu0 }
 0x5b6   : > { %v7261_v33 = vmax.f32 %v12308_v7, %v12315_v56  ;;  %v12317_v60 = vadd.f32 %v11943_v27, %v17565_v52  ;;  %v6823_v54 = vpop.f32.mrb[59].mxu0  ;;  %v17567_v56 = vld [vmem:[#allocation92_spill] sm:$0xff] }
 0x5b7   : > { %v7259_v21 = vmax.f32 %v12309_v12, %v12316_v8  ;;  %v12318_v10 = vadd.f32 %v6823_v54, %v17566_v48 }
 0x5b8   : > { %v7268_v46 = vmax.f32 %v7254_v53, %v7261_v33  ;;  %v7262_v32 = vmax.f32 %v12310_v51, %v12317_v60  ;;  %v17568_v33 = vld [vmem:[#allocation95_spill] sm:$0xff]  ;;  %v17569_v51 = vld [vmem:[#allocation98_spill] sm:$0xff] }
 0x5b9   : > { %v7266_v11 = vmax.f32 %v7252_v42, %v7259_v21  ;;  %v7260_v5 = vmax.f32 %v12311_v26, %v12318_v10 }
 0x5ba   : > { %v7275_v4 = vadd.f32 %v16148_v22, %v7268_v46  ;;  %v7269_v16 = vmax.f32 %v7255_v19, %v7262_v32 }
 0x5bb   : > { %v7273_v47 = vadd.f32 %v16148_v22, %v7266_v11  ;;  %v7267_v44 = vmax.f32 %v7253_v29, %v7260_v5  ;;  %v11946_v28 = vpop.f32.mrb[60].mxu0 }
 0x5bc   : > { %v7282_v20 = vmax.f32 %v7275_v4, 0.0  ;;  %v7276_v7 = vadd.f32 %v16148_v22, %v7269_v16  ;;  %v12319_v52 = vadd.f32 %v11946_v28, %v17567_v56  ;;  %v6836_v37 = vpop.f32.mrb[61].mxu0 }
 0x5bd   : > { %v7280_v12 = vmax.f32 %v7273_v47, 0.0  ;;  %v7274_v48 = vadd.f32 %v16148_v22, %v7267_v44  ;;  %v12320_v54 = vadd.f32 %v6836_v37, %v17568_v33  ;;  %v11947_v21 = vpop.f32.mrb[62].mxu0 }
 0x5be   : > { %v7781_v60 = vrot.slane %v7282_v20, 1  ;;  %v7283_v53 = vmax.f32 %v7276_v7, 0.0  ;;  %v7265_v42 = vmax.f32 %v12312_v18, %v12319_v52  ;;  %v6839_v19 = vpop.f32.mrb[63].mxu0  ;;  %v17578_v21 = vld [vmem:[#allocation5_spill] sm:$0xff] }
 0x5bf   : > { %v7777_v11 = vrot.slane %v7280_v12, 1  ;;  %v7281_v5 = vmax.f32 %v7274_v48, 0.0  ;;  %v7263_v29 = vmax.f32 %v12313_v17, %v12320_v54  ;;  %v12321_v26 = vadd.f32 %v6839_v19, %v17569_v51 }
 0x5c0   : > { %v16294_v8 = vpack.c.bf16 %v7283_v53, %v7282_v20  ;;  %v7783_v28 = vrot.slane %v7283_v53, 1  ;;  %v7272_v27 = vmax.f32 %v7258_v63, %v7265_v42  ;;  %v16298_v10 = vsel %vm715_vm2, %v7781_v60, %v16157_v59 }
 0x5c1   : > { %17570 = vst [vmem:[#allocation66_spill] sm:$0xff] %v16298_v10  ;;  %v7779_v46 = vrot.slane %v7281_v5, 1  ;;  %v7270_v32 = vmax.f32 %v7256_v55, %v7263_v29  ;;  %v7264_v4 = vmax.f32 %v12314_v39, %v12321_v26  ;;  %v16300_v16 = vpack.c.bf16 %v7281_v5, %v7280_v12 }
 0x5c2   : > { %v7279_v18 = vadd.f32 %v16148_v22, %v7272_v27  ;;  %v16305_v17 = vsel %vm715_vm2, %v7777_v11, %v16157_v59  ;;  %v16309_v47 = vsel %vm715_vm2, %v7783_v28, %v16157_v59  ;;  %v16311_v63 = vpack.c.bf16 %v7282_v20, %v7281_v5  ;;  %v17576_v20 = vld [vmem:[#allocation3_spill] sm:$0xff]  ;;  %v17579_v11 = vld [vmem:[#allocation22_spill] sm:$0xff] }
 0x5c3   : > { %17571 = vst [vmem:[#allocation68_spill] sm:$0xff] %v16305_v17  ;;  %17572 = vst [vmem:[#allocation69_spill] sm:$0xff] %v16309_v47  ;;  %v7277_v44 = vadd.f32 %v16148_v22, %v7270_v32  ;;  %v17574_v55 = vmax.f32 %v16245_v35, %v16266_v40  ;;  %v11950_v7 = vpop.f32.mrb[64].mxu0  ;;  %12016 = vmatprep.mubr.msk.bf16.mxu1 %vm7446_vm3, %v16300_v16  ;;  %v16321_v56 = vsel %vm715_vm2, %v7779_v46, %v16157_v59  ;;  %v17580_v28 = vld [vmem:[#allocation10_spill] sm:$0xff]  ;;  %v17594_v35 = vld [vmem:[#allocation87_spill] sm:$0xff] }
 0x5c4   : > { %17573 = vst [vmem:[#allocation70_spill] sm:$0xff] %v16311_v63  ;;  %17575 = vst [vmem:[#allocation65_spill] sm:$0xff] %v16321_v56  ;;  %v7286_v37 = vmax.f32 %v7279_v18, 0.0  ;;  %v16326_v12 = vadd.f32 %v11950_v7, %v17576_v20  ;;  %v6851_v48 = vpop.f32.mrb[65].mxu0  ;;  %12017 = vmatmul.mubr.msk.bf16.vlgmr.msra.gmra.mrb[128].mxu1 %vm7446_vm3, %v16294_v8  ;;  %v16334_v40 = vpack.c.bf16 %v16298_v10, %v16321_v56  ;;  %v13585_v18 = vld [vmem:[%s16907_s3 + $0x8] sm:$0xff]   ;;  %v17586_v20 = vld [vmem:[#allocation13_spill] sm:$0xff] }
 0x5c5   : > { %v7271_v39 = vmax.f32 %v17574_v55, %v7264_v4  ;;  %v7284_v33 = vmax.f32 %v7277_v44, 0.0  ;;  %v16338_v60 = vadd.f32 %v6851_v48, %v17578_v21  ;;  %v11951_v42 = vpop.f32.mrb[66].mxu0  ;;  %12041 = vmatpush3.bf16.msra.mxu1 %v16278_v24  ;;  %v17588_v21 = vld [vmem:[#allocation23_spill] sm:$0xff]  ;;  %v17606_v56 = vld [vmem:[#allocation105_spill] sm:$0xff] }
 0x5c6   : > { %17577 = vst [vmem:[#allocation71_spill] sm:$0xff] %v16334_v40  ;;  %v8394_v19 = vrot.slane %v7286_v37, 1  ;;  %v16342_v5 = vadd.f32 %v11951_v42, %v17579_v11  ;;  %v6854_v29 = vpop.f32.mrb[67].mxu0  ;;  %12042 = vmatprep.subr.bf16.mxu1 %v13585_v18  ;;  %v17595_v40 = vld [vmem:[#allocation88_spill] sm:$0xff] }
 0x5c7   : > { %v7278_v54 = vadd.f32 %v16148_v22, %v7271_v39  ;;  %v7785_v51 = vrot.slane %v7284_v33, 1  ;;  %v16345_v27 = vadd.f32 %v6854_v29, %v17580_v28  ;;  %v16347_v46 = vpack.c.bf16 %v7284_v33, %v7283_v53  ;;  %v17589_v29 = vld [vmem:[#allocation43_spill] sm:$0xff]  ;;  %v17590_v28 = vld [vmem:[#allocation24_spill] sm:$0xff] }
 0x5c8   : > { %v8395_v7 = vsel %vm715_vm2, %v8394_v19, %v16157_v59 }
 0x5c9   : > { %v7285_v26 = vmax.f32 %v7278_v54, 0.0  ;;  %17581 = vst [vmem:[#allocation30_spill] sm:$0xff] %v16347_v46  ;;  %v16356_v24 = vsel %vm715_vm2, %v7785_v51, %v16157_v59  ;;  %12043 = vmatpush3.bf16.msra.mxu1 %v13585_v18 }
 0x5ca   : > { %17582 = vst [vmem:[#allocation74_spill] sm:$0xff] %v16356_v24  ;;  %v16362_v55 = vpack.c.bf16 %v16356_v24, %v16309_v47 }
 0x5cb   : > { %v7787_v32 = vrot.slane %v7285_v26, 1  ;;  %v16349_v4 = vpack.c.bf16 %v7285_v26, %v7284_v33  ;;  %v16358_v44 = vpack.c.bf16 %v7286_v37, %v7285_v26  ;;  %v11954_v39 = vpop.f32.mrb[68].mxu0 }
 0x5cc   : > { %17584 = vst [vmem:[#allocation75_spill] sm:$0xff] %v16362_v55  ;;  %v16373_v48 = vadd.f32 %v11954_v39, %v17586_v20  ;;  %v6867_v37 = vpop.f32.mrb[69].mxu0 }
 0x5cd   : > { %17583 = vst [vmem:[#allocation32_spill] sm:$0xff] %v16358_v44  ;;  %12020 = vmatprep.mubr.msk.bf16.mxu1 %vm7446_vm3, %v16349_v4  ;;  %v16368_v53 = vsel %vm715_vm2, %v7787_v32, %v16157_v59  ;;  %v16383_v42 = vadd.f32 %v6867_v37, %v17588_v21  ;;  %v11955_v11 = vpop.f32.mrb[70].mxu0  ;;  %v16397_v21 = vld [vmem:[%s16907_s3 + $0x20] sm:$0xff]  }
 0x5ce   : > { %17585 = vst [vmem:[#allocation42_spill] sm:$0xff] %v16368_v53  ;;  %12021 = vmatmul.mubr.msk.bf16.gmra.mrb[132].mxu1 %vm7446_vm3, %v16197_v57  ;;  %v16380_v54 = vpack.c.bf16 %v8395_v7, %v16368_v53  ;;  %v6870_v19 = vpop.f32.mrb[71].mxu0  ;;  %v17591_v7 = vld [vmem:[#allocation44_spill] sm:$0xff]  ;;  %v17592_v11 = vld [vmem:[#allocation21_spill] sm:$0xff]  ;;  %12068 = vmatprep.subr.bf16.mxu1 %v16397_v21 }
 0x5cf   : > { %12024 = vmatprep.mubr.msk.bf16.mxu1 %vm7446_vm3, %v16192_v45  ;;  %v16388_v51 = vadd.f32 %v6870_v19, %v17589_v29  ;;  %v17603_v53 = vld [vmem:[#allocation104_spill] sm:$0xff] }
 0x5d0   : > { %17587 = vst [vmem:[#allocation45_spill] sm:$0xff] %v16380_v54 }
 0x5d3   : > { %v11958_v26 = vpop.f32.mrb[72].mxu0 }
 0x5d4   : > { %v12329_v32 = vadd.f32 %v11958_v26, %v17590_v28  ;;  %v6882_v39 = vpop.f32.mrb[73].mxu0  ;;  %v17593_v26 = vld [vmem:[#allocation86_spill] sm:$0xff] }
 0x5d5   : > { %v12330_v20 = vadd.f32 %v6882_v39, %v17591_v7  ;;  %v11959_v37 = vpop.f32.mrb[74].mxu0 }
 0x5d6   : > { %12025 = vmatmul.mubr.msk.bf16.gmra.mrb[136].mxu1 %vm7446_vm3, %v16237_v9  ;;  %v7289_v18 = vmax.f32 %v16326_v12, %v12329_v32  ;;  %v12331_v19 = vadd.f32 %v11959_v37, %v17592_v11  ;;  %v6885_v29 = vpop.f32.mrb[75].mxu0 }
 0x5d7   : > { %v7287_v33 = vmax.f32 %v16338_v60, %v12330_v20  ;;  %v12332_v28 = vadd.f32 %v6885_v29, %v17593_v26  ;;  %v17596_v20 = vld [vmem:[#allocation89_spill] sm:$0xff]  ;;  %v17598_v26 = vld [vmem:[#allocation100_spill] sm:$0xff] }
 0x5d8   : > { %v7290_v52 = vmax.f32 %v16342_v5, %v12331_v19  ;;  %v17597_v19 = vld [vmem:[#allocation99_spill] sm:$0xff] }
 0x5d9   : > { %v7288_v39 = vmax.f32 %v16345_v27, %v12332_v28  ;;  %v17599_v28 = vld [vmem:[#allocation101_spill] sm:$0xff] }
 0x5db   : > { %v11962_v7 = vpop.f32.mrb[76].mxu0 }
 0x5dc   : > { %v12333_v54 = vadd.f32 %v11962_v7, %v17594_v35  ;;  %v6898_v55 = vpop.f32.mrb[77].mxu0 }
 0x5dd   : > { %v16408_v44 = vadd.f32 %v6898_v55, %v17595_v40  ;;  %v11963_v12 = vpop.f32.mrb[78].mxu0 }
 0x5de   : > { %v7293_v32 = vmax.f32 %v16373_v48, %v12333_v54  ;;  %v6901_v37 = vpop.f32.mrb[79].mxu0  ;;  %v17600_v54 = vld [vmem:[#allocation102_spill] sm:$0xff] }
 0x5df   : > { %v7291_v60 = vmax.f32 %v16383_v42, %v16408_v44  ;;  %v16414_v11 = vadd.f32 %v6901_v37, %v17596_v20  ;;  %v17601_v44 = vld [vmem:[#allocation7_spill] sm:$0xff] }
 0x5e0   : > { %v17602_v20 = vld [vmem:[#allocation103_spill] sm:$0xff] }
 0x5e3   : > { %v11966_v27 = vpop.f32.mrb[80].mxu0 }
 0x5e4   : > { %v12336_v35 = vadd.f32 %v11966_v27, %v17597_v19  ;;  %v6913_v29 = vpop.f32.mrb[81].mxu0  ;;  %v17604_v19 = vld [vmem:[#allocation11_spill] sm:$0xff] }
 0x5e5   : > { %v12337_v40 = vadd.f32 %v6913_v29, %v17598_v26  ;;  %v11967_v55 = vpop.f32.mrb[82].mxu0  ;;  %v17605_v26 = vld [vmem:[#allocation6_spill] sm:$0xff] }
 0x5e6   : > { %v12338_v7 = vadd.f32 %v11967_v55, %v17599_v28  ;;  %v6916_v48 = vpop.f32.mrb[83].mxu0 }
 0x5e7   : > { %v12339_v12 = vadd.f32 %v6916_v48, %v17600_v54 }
 0x5eb   : > { %v11970_v46 = vpop.f32.mrb[84].mxu0 }
 0x5ec   : > { %v12340_v42 = vadd.f32 %v11970_v46, %v17601_v44  ;;  %v6929_v37 = vpop.f32.mrb[85].mxu0  ;;  %v17607_v46 = vld [vmem:[#allocation106_spill] sm:$0xff] }
 0x5ed   : > { %v12341_v63 = vadd.f32 %v6929_v37, %v17602_v20  ;;  %v11971_v24 = vpop.f32.mrb[86].mxu0 }
 0x5ee   : > { %v6932_v5 = vpop.f32.mrb[87].mxu0 }
 0x5ef   : > { %v12342_v10 = vadd.f32 %v6932_v5, %v17603_v53 }
 0x5f3   : > { %v11974_v27 = vpop.f32.mrb[88].mxu0 }
 0x5f4   : > { %v12343_v47 = vadd.f32 %v11974_v27, %v17604_v19  ;;  %v6944_v29 = vpop.f32.mrb[89].mxu0 }
 0x5f5   : > { %v12344_v17 = vadd.f32 %v6944_v29, %v17605_v26  ;;  %v11975_v55 = vpop.f32.mrb[90].mxu0 }
 0x5f6   : > { %v7296_v28 = vmax.f32 %v12336_v35, %v12343_v47  ;;  %v12345_v48 = vadd.f32 %v11975_v55, %v17606_v56  ;;  %v6947_v54 = vpop.f32.mrb[91].mxu0  ;;  %v17608_v56 = vld [vmem:[#allocation8_spill] sm:$0xff] }
 0x5f7   : > { %v7294_v9 = vmax.f32 %v12337_v40, %v12344_v17  ;;  %v12346_v44 = vadd.f32 %v6947_v54, %v17607_v46 }
 0x5f8   : > { %v7303_v45 = vmax.f32 %v7289_v18, %v7296_v28  ;;  %v7297_v37 = vmax.f32 %v12338_v7, %v12345_v48  ;;  %v17609_v7 = vld [vmem:[#allocation107_spill] sm:$0xff]  ;;  %v17610_v48 = vld [vmem:[#allocation108_spill] sm:$0xff] }
 0x5f9   : > { %v7301_v24 = vmax.f32 %v7287_v33, %v7294_v9  ;;  %v7295_v20 = vmax.f32 %v12339_v12, %v12346_v44 }
 0x5fa   : > { %v7310_v53 = vadd.f32 %v16148_v22, %v7303_v45  ;;  %v7304_v5 = vmax.f32 %v7290_v52, %v7297_v37 }
 0x5fb   : > { %v7308_v27 = vadd.f32 %v16148_v22, %v7301_v24  ;;  %v7302_v19 = vmax.f32 %v7288_v39, %v7295_v20  ;;  %v11978_v57 = vpop.f32.mrb[92].mxu0 }
 0x5fc   : > { %v16431_v29 = vmax.f32 %v7310_v53, 0.0  ;;  %v7311_v47 = vadd.f32 %v16148_v22, %v7304_v5  ;;  %v12347_v35 = vadd.f32 %v11978_v57, %v17608_v56  ;;  %v6960_v17 = vpop.f32.mrb[93].mxu0 }
 0x5fd   : > { %v7315_v40 = vmax.f32 %v7308_v27, 0.0  ;;  %v7309_v18 = vadd.f32 %v16148_v22, %v7302_v19  ;;  %v12348_v9 = vadd.f32 %v6960_v17, %v17609_v7  ;;  %v11979_v33 = vpop.f32.mrb[94].mxu0 }
 0x5fe   : > { %v7409_v45 = vrot.slane %v16431_v29, 1  ;;  %v16438_v52 = vmax.f32 %v7311_v47, 0.0  ;;  %v7300_v12 = vmax.f32 %v12340_v42, %v12347_v35  ;;  %v6963_v39 = vpop.f32.mrb[95].mxu0 }
 0x5ff   : > { %v7405_v26 = vrot.slane %v7315_v40, 1  ;;  %v16440_v55 = vmax.f32 %v7309_v18, 0.0  ;;  %v7298_v28 = vmax.f32 %v12341_v63, %v12348_v9  ;;  %v12349_v54 = vadd.f32 %v6963_v39, %v17610_v48  ;;  %v17612_v18 = vld [vmem:[#allocation109_spill] sm:$0xff] }
 0x600   : > { %v7411_v57 = vrot.slane %v16438_v52, 1  ;;  %v7307_v46 = vmax.f32 %v7293_v32, %v7300_v12  ;;  %v7410_v44 = vsel %vm715_vm2, %v7409_v45, %v16157_v59  ;;  %v16448_v37 = vpack.c.bf16 %v16438_v52, %v16431_v29 }
 0x601   : > { %v7407_v24 = vrot.slane %v16440_v55, 1  ;;  %v7305_v42 = vmax.f32 %v7291_v60, %v7298_v28  ;;  %v7299_v20 = vmax.f32 %v12342_v10, %v12349_v54  ;;  %v7406_v53 = vsel %vm715_vm2, %v7405_v26, %v16157_v59  ;;  %v17614_v28 = vld [vmem:[#allocation111_spill] sm:$0xff] }
 0x602   : > { %v7314_v63 = vadd.f32 %v16148_v22, %v7307_v46  ;;  %v7412_v5 = vsel %vm715_vm2, %v7411_v57, %v16157_v59  ;;  %v16457_v32 = vpack.c.bf16 %v16440_v55, %v7315_v40  ;;  %v17611_v60 = vmax.f32 %v16388_v51, %v16414_v11  ;;  %v17613_v11 = vld [vmem:[#allocation110_spill] sm:$0xff] }
 0x603   : > { %v7312_v19 = vadd.f32 %v16148_v22, %v7305_v42  ;;  %v11982_v47 = vpop.f32.mrb[96].mxu0  ;;  %v7408_v56 = vsel %vm715_vm2, %v7407_v24, %v16157_v59  ;;  %v16467_v35 = vpack.c.bf16 %v7412_v5, %v7410_v44  ;;  %v17615_v24 = vld [vmem:[#allocation53_spill] sm:$0xff] }
 0x604   : > { %v7306_v10 = vmax.f32 %v17611_v60, %v7299_v20  ;;  %v7321_v17 = vmax.f32 %v7314_v63, 0.0  ;;  %v16470_v7 = vadd.f32 %v11982_v47, %v17612_v18  ;;  %v6975_v40 = vpop.f32.mrb[97].mxu0  ;;  %v16472_v9 = vpack.c.bf16 %v7408_v56, %v7406_v53 }
 0x605   : > { %v16474_v33 = vpack.c.bf16 %v7410_v44, %v7408_v56  ;;  %v16476_v45 = vmax.f32 %v7312_v19, 0.0  ;;  %v16480_v12 = vadd.f32 %v6975_v40, %v17613_v11  ;;  %v11983_v39 = vpop.f32.mrb[98].mxu0 }
 0x606   : > { %v7313_v51 = vadd.f32 %v16148_v22, %v7306_v10  ;;  %v8774_v26 = vrot.slane %v7321_v17, 1  ;;  %v16483_v48 = vadd.f32 %v11983_v39, %v17614_v28  ;;  %v6978_v54 = vpop.f32.mrb[99].mxu0  ;;  %v17616_v39 = vld [vmem:[#allocation56_spill] sm:$0xff] }
 0x607   : > { %v7413_v57 = vrot.slane %v16476_v45, 1  ;;  %v16487_v42 = vadd.f32 %v6978_v54, %v17615_v24 }
 0x608   : > { %v7320_v46 = vmax.f32 %v7313_v51, 0.0  ;;  %v8775_v56 = vsel %vm715_vm2, %v8774_v26, %v16157_v59 }
 0x609   : > { %v7414_v53 = vsel %vm715_vm2, %v7413_v57, %v16157_v59 }
 0x60a   : > { %v7415_v20 = vrot.slane %v7320_v46, 1  ;;  %v16494_v63 = vpack.c.bf16 %v7320_v46, %v16476_v45  ;;  %v16496_v19 = vpack.c.bf16 %v7321_v17, %v7320_v46  ;;  %v16498_v60 = vpack.c.bf16 %v7414_v53, %v7412_v5 }
 0x60b   : > { %v11986_v10 = vpop.f32.mrb[100].mxu0 }
 0x60c   : > { %v7416_v47 = vsel %vm715_vm2, %v7415_v20, %v16157_v59  ;;  %v16505_v18 = vadd.f32 %v11986_v10, %v15879_v3  ;;  %v6991_v40 = vpop.f32.mrb[101].mxu0 }
 0x60d   : > { %v16507_v51 = vpack.c.bf16 %v7416_v47, %v7414_v53  ;;  %v16509_v11 = vpack.c.bf16 %v8775_v56, %v7416_v47  ;;  %v16512_v17 = vadd.f32 %v6991_v40, %v17616_v39  ;;  %v11987_v5 = vpop.f32.mrb[102].mxu0  ;;  %v17617_v56 = vld [vmem:[#allocation57_spill] sm:$0xff] }
 0x60e   : > { %v6994_v28 = vpop.f32.mrb[103].mxu0 }
 0x60f   : > { %v16515_v54 = vadd.f32 %v6994_v28, %v15891_v41 }
 0x613   : > { %v11990_v57 = vpop.f32.mrb[104].mxu0 }
 0x614   : > { %v12357_v46 = vadd.f32 %v11990_v57, %v15898_v6  ;;  %v7006_v26 = vpop.f32.mrb[105].mxu0 }
 0x615   : > { %v12358_v3 = vadd.f32 %v7006_v26, %v15900_v34  ;;  %v11991_v24 = vpop.f32.mrb[106].mxu0 }
 0x616   : > { %v7324_v20 = vmax.f32 %v16470_v7, %v12357_v46  ;;  %v12359_v53 = vadd.f32 %v11991_v24, %v15905_v49  ;;  %v7009_v10 = vpop.f32.mrb[107].mxu0  ;;  %v17618_v46 = vld [vmem:[#allocation58_spill] sm:$0xff] }
 0x617   : > { %v7322_v47 = vmax.f32 %v16480_v12, %v12358_v3  ;;  %v12360_v40 = vadd.f32 %v7009_v10, %v17617_v56  ;;  %v17620_v56 = vld [vmem:[#allocation62_spill] sm:$0xff] }
 0x618   : > { %v7325_v39 = vmax.f32 %v16483_v48, %v12359_v53  ;;  %v17619_v53 = vld [vmem:[#allocation59_spill] sm:$0xff] }
 0x619   : > { %v7323_v41 = vmax.f32 %v16487_v42, %v12360_v40 }
 0x61b   : > { %v11994_v5 = vpop.f32.mrb[108].mxu0 }
 0x61c   : > { %v12361_v6 = vadd.f32 %v11994_v5, %v15913_v25  ;;  %v7022_v28 = vpop.f32.mrb[109].mxu0 }
 0x61d   : > { %v16527_v34 = vadd.f32 %v7022_v28, %v15915_v36  ;;  %v11995_v57 = vpop.f32.mrb[110].mxu0 }
 0x61e   : > { %v7328_v7 = vmax.f32 %v16505_v18, %v12361_v6  ;;  %v7025_v49 = vpop.f32.mrb[111].mxu0 }
 0x61f   : > { %v7326_v12 = vmax.f32 %v16512_v17, %v16527_v34  ;;  %v16533_v26 = vadd.f32 %v7025_v49, %v17618_v46  ;;  %v17621_v49 = vld [vmem:[#allocation63_spill] sm:$0xff] }
 0x621   : > { %v7327_v48 = vmax.f32 %v16515_v54, %v16533_v26 }
 0x623   : > { %v11998_v42 = vpop.f32.mrb[112].mxu0 }
 0x624   : > { %v12364_v25 = vadd.f32 %v11998_v42, %v15923_v13  ;;  %v7037_v3 = vpop.f32.mrb[113].mxu0 }
 0x625   : > { %v12365_v36 = vadd.f32 %v7037_v3, %v15925_v1  ;;  %v11999_v24 = vpop.f32.mrb[114].mxu0 }
 0x626   : > { %v12366_v10 = vadd.f32 %v11999_v24, %v17619_v53  ;;  %v7040_v18 = vpop.f32.mrb[115].mxu0 }
 0x627   : > { %v12367_v40 = vadd.f32 %v7040_v18, %v17620_v56 }
 0x62b   : > { %v12002_v5 = vpop.f32.mrb[116].mxu0 }
 0x62c   : > { %v12368_v17 = vadd.f32 %v12002_v5, %v15935_v0  ;;  %v7053_v6 = vpop.f32.mrb[117].mxu0 }
 0x62d   : > { %v12369_v28 = vadd.f32 %v7053_v6, %v15937_v31  ;;  %v12003_v34 = vpop.f32.mrb[118].mxu0 }
 0x62e   : > { %v7056_v57 = vpop.f32.mrb[119].mxu0 }
 0x62f   : > { %v12370_v46 = vadd.f32 %v7056_v57, %v17621_v49 }
 0x633   : > { %v12006_v13 = vpop.f32.mrb[120].mxu0 }
 0x634   : > { %v12371_v42 = vadd.f32 %v12006_v13, %v15945_v30  ;;  %v7068_v1 = vpop.f32.mrb[121].mxu0 }
 0x635   : > { %v12372_v3 = vadd.f32 %v7068_v1, %v15947_v38  ;;  %v12007_v24 = vpop.f32.mrb[122].mxu0 }
 0x636   : > { %v7331_v53 = vmax.f32 %v12364_v25, %v12371_v42  ;;  %v12373_v18 = vadd.f32 %v12007_v24, %v15949_v43  ;;  %v7071_v56 = vpop.f32.mrb[123].mxu0 }
 0x637   : > { %v7329_v44 = vmax.f32 %v12365_v36, %v12372_v3  ;;  %v12374_v0 = vadd.f32 %v7071_v56, %v15951_v50 }
 0x638   : > { %v7338_v5 = vmax.f32 %v7324_v20, %v7331_v53  ;;  %v7332_v31 = vmax.f32 %v12366_v10, %v12373_v18 }
 0x639   : > { %v7336_v6 = vmax.f32 %v7322_v47, %v7329_v44  ;;  %v7330_v34 = vmax.f32 %v12367_v40, %v12374_v0 }
 0x63a   : > { %v7345_v57 = vadd.f32 %v16148_v22, %v7338_v5  ;;  %v7339_v49 = vmax.f32 %v7325_v39, %v7332_v31 }
 0x63b   : > { %v7343_v30 = vadd.f32 %v16148_v22, %v7336_v6  ;;  %v7337_v13 = vmax.f32 %v7323_v41, %v7330_v34  ;;  %v12010_v27 = vpop.f32.mrb[124].mxu0 }
 0x63c   : > { %v7352_v38 = vmax.f32 %v7345_v57, 0.0  ;;  %v7346_v25 = vadd.f32 %v16148_v22, %v7339_v49  ;;  %v12375_v43 = vadd.f32 %v12010_v27, %v15957_v14  ;;  %v7084_v42 = vpop.f32.mrb[125].mxu0 }
 0x63d   : > { %v7350_v36 = vmax.f32 %v7343_v30, 0.0  ;;  %v7344_v50 = vadd.f32 %v16148_v22, %v7337_v13  ;;  %v12376_v20 = vadd.f32 %v7084_v42, %v15959_v15  ;;  %v12011_v44 = vpop.f32.mrb[126].mxu0 }
 0x63e   : > { %v7805_v47 = vrot.slane %v7352_v38, 1  ;;  %v7353_v10 = vmax.f32 %v7346_v25, 0.0  ;;  %v7335_v40 = vmax.f32 %v12368_v17, %v12375_v43  ;;  %v7087_v39 = vpop.f32.mrb[127].mxu0 }
 0x63f   : > { %v7801_v1 = vrot.slane %v7350_v36, 1  ;;  %v7351_v3 = vmax.f32 %v7344_v50, 0.0  ;;  %v7333_v41 = vmax.f32 %v12369_v28, %v12376_v20  ;;  %v12377_v24 = vadd.f32 %v7087_v39, %v15961_v62 }
 0x640   : > { %v7807_v53 = vrot.slane %v7353_v10, 1  ;;  %v7342_v18 = vmax.f32 %v7328_v7, %v7335_v40  ;;  %v16555_v56 = vpack.c.bf16 %v7353_v10, %v7352_v38  ;;  %v16559_v14 = vsel %vm715_vm2, %v7805_v47, %v16157_v59  ;;  %v17623_v40 = vld [vmem:[#allocation83_spill] sm:$0xff] }
 0x641   : > { %v7803_v27 = vrot.slane %v7351_v3, 1  ;;  %v7340_v15 = vmax.f32 %v7326_v12, %v7333_v41  ;;  %v7334_v0 = vmax.f32 %v12370_v46, %v12377_v24  ;;  %v16561_v5 = vpack.c.bf16 %v7351_v3, %v7350_v36  ;;  %v17632_v41 = vld [vmem:[#allocation66_spill] sm:$0xff] }
 0x642   : > { %v7349_v17 = vadd.f32 %v16148_v22, %v7342_v18  ;;  %v7802_v28 = vsel %vm715_vm2, %v7801_v1, %v16157_v59  ;;  %v16568_v62 = vsel %vm715_vm2, %v7807_v53, %v16157_v59  ;;  %v16570_v7 = vpack.c.bf16 %v7352_v38, %v7351_v3  ;;  %v17631_v3 = vld [vmem:[#allocation69_spill] sm:$0xff]  ;;  %v17634_v53 = vld [vmem:[#allocation42_spill] sm:$0xff] }
 0x643   : > { %v7347_v31 = vadd.f32 %v16148_v22, %v7340_v15  ;;  %v7341_v12 = vmax.f32 %v7327_v48, %v7334_v0  ;;  %12028 = vmatprep.mubr.msk.bf16.mxu1 %vm7446_vm3, %v16561_v5  ;;  %v16580_v46 = vsel %vm715_vm2, %v7803_v27, %v16157_v59  ;;  %v16584_v6 = vpack.c.bf16 %v16568_v62, %v16559_v14  ;;  %v17635_v18 = vld [vmem:[#allocation74_spill] sm:$0xff]  ;;  %v13591_v15 = vld [vmem:[%s16907_s3 + $0x48] sm:$0xff]   ;;  %v13592_v0 = vld [vmem:[%s16907_s3 + $0x50] sm:$0xff]  }
 0x644   : > { %v7356_v34 = vmax.f32 %v7349_v17, 0.0  ;;  %12029 = vmatmul.mubr.msk.bf16.gmra.mrb[140].mxu1 %vm7446_vm3, %v16555_v56  ;;  %v16589_v57 = vpack.c.bf16 %v16580_v46, %v7802_v28  ;;  %v8963_v54 = vpack.c.bf16 %v16559_v14, %v16580_v46  ;;  %v17624_v39 = vpack.c.bf16 %v16211_v2, %v17623_v40  ;;  %v17626_v2 = vld [vmem:[#allocation80_spill] sm:$0xff]  ;;  %v17640_v17 = vld [vmem:[#allocation70_spill] sm:$0xff] }
 0x645   : > { %v7354_v26 = vmax.f32 %v7347_v31, 0.0  ;;  %v7348_v48 = vadd.f32 %v16148_v22, %v7341_v12  ;;  %v17633_v24 = vpack.c.bf16 %v17631_v3, %v17632_v41  ;;  %v17636_v27 = vpack.c.bf16 %v17634_v53, %v17635_v18  ;;  %v17641_v28 = vld [vmem:[#allocation30_spill] sm:$0xff]  ;;  %v17642_v31 = vld [vmem:[#allocation32_spill] sm:$0xff]  ;;  %v13593_v12 = vld [vmem:[%s16907_s3 + $0x58] sm:$0xff]  }
 0x646   : > { %v8960_v49 = vrot.slane %v7356_v34, 1 }
 0x647   : > { %v7809_v30 = vrot.slane %v7354_v26, 1  ;;  %v7355_v13 = vmax.f32 %v7348_v48, 0.0  ;;  %v16594_v38 = vpack.c.bf16 %v7354_v26, %v7353_v10  ;;  %v17622_v10 = vpack.c.bf16 %v16162_v61, %v16153_v23  ;;  %v17625_v23 = vld [vmem:[#allocation82_spill] sm:$0xff]  ;;  %v13589_v61 = vld [vmem:[%s16907_s3 + $0x38] sm:$0xff]   ;;  %v13595_v48 = vld [vmem:[%s16907_s3 + $0x68] sm:$0xff]  }
 0x648   : > { %v16614_v20 = vsel %vm715_vm2, %v8960_v49, %v16157_v59  ;;  %v13596_v49 = vld [vmem:[%s16907_s3 + $0x70] sm:$0xff]  }
 0x649   : > { %v7811_v25 = vrot.slane %v7355_v13, 1  ;;  %v16596_v43 = vpack.c.bf16 %v7355_v13, %v7354_v26  ;;  %v16600_v42 = vsel %vm715_vm2, %v7809_v30, %v16157_v59  ;;  %v16602_v36 = vpack.c.bf16 %v7356_v34, %v7355_v13  ;;  %v13594_v34 = vld [vmem:[%s16907_s3 + $0x60] sm:$0xff]  }
 0x64a   : > { %v8964_v50 = vpack.c.bf16 %v16600_v42, %v16568_v62  ;;  %v17645_v26 = vld [vmem:[#allocation2_spill] sm:$0xff]  ;;  %v17649_v30 = vpack.c.bf16 %v16431_v29, %v16440_v55  ;;  %v17650_v13 = vpack.c.bf16 %v16476_v45, %v16438_v52  ;;  %v13599_v29 = vld [vmem:[%s16907_s3 + $0x88] sm:$0xff]  }
 0x64b   : > { %12032 = vmatprep.mubr.msk.bf16.mxu1 %vm7446_vm3, %v16596_v43  ;;  %v16610_v22 = vsel %vm715_vm2, %v7811_v25, %v16157_v59  ;;  %v13587_v59 = vld [vmem:[%s16907_s3 + $0x28] sm:$0xff]  }
 0x64c   : > { %12033 = vmatmul.mubr.msk.bf16.gmra.mrb[144].mxu1 %vm7446_vm3, %v16472_v9  ;;  %v16620_v44 = vpack.c.bf16 %v16610_v22, %v16600_v42  ;;  %v8965_v47 = vpack.c.bf16 %v16614_v20, %v16610_v22 }
 0x64d   : > { %12036 = vmatprep.mubr.msk.bf16.mxu1 %vm7446_vm3, %v16467_v35 }
 0x654   : > { %12037 = vmatmul.mubr.msk.bf16.gmra.mrb[148].mxu1 %vm7446_vm3, %v16507_v51 }
 0x655   : > { %12044 = vmatprep.mubr.msk.bf16.mxu1 %vm7446_vm3, %v16181_v58  ;;  %v13588_v58 = vld [vmem:[%s16907_s3 + $0x30] sm:$0xff]  }
 0x65c   : > { %12045 = vmatmul.mubr.msk.bf16.vlgmr.msra.gmra.mrb[128].mxu1 %vm7446_vm3, %v17622_v10 }
 0x65d   : > { %12069 = vmatpush3.bf16.msra.mxu1 %v16397_v21  ;;  %12048 = vmatprep.mubr.msk.bf16.mxu1 %vm7446_vm3, %v17624_v39  ;;  %v17629_v21 = vld [vmem:[#allocation68_spill] sm:$0xff]  ;;  %v10115_v39 = vld [vmem:[%s16908_s4] ss:$0 sm:$0xff] }
 0x65e   : > { %12070 = vmatprep.subr.bf16.mxu1 %v13587_v59 }
 0x661   : > { %12071 = vmatpush3.bf16.msra.mxu1 %v13587_v59 }
 0x662   : > { %12096 = vmatprep.subr.bf16.mxu1 %v13588_v58 }
 0x664   : > { %12049 = vmatmul.mubr.msk.bf16.gmra.mrb[132].mxu1 %vm7446_vm3, %v16300_v16  ;;  %v13590_v16 = vld [vmem:[%s16907_s3 + $0x40] sm:$0xff]  }
 0x665   : > { %12052 = vmatprep.mubr.msk.bf16.mxu1 %vm7446_vm3, %v16294_v8  ;;  %v17627_v8 = vld [vmem:[#allocation77_spill] sm:$0xff] }
 0x66c   : > { %12053 = vmatmul.mubr.msk.bf16.gmra.mrb[136].mxu1 %vm7446_vm3, %v16349_v4  ;;  %v17628_v4 = vld [vmem:[#allocation65_spill] sm:$0xff] }
 0x66d   : > { %12056 = vmatprep.mubr.msk.bf16.mxu1 %vm7446_vm3, %v16457_v32  ;;  %v17630_v1 = vpack.c.bf16 %v17628_v4, %v17629_v21 }
 0x674   : > { %12057 = vmatmul.mubr.msk.bf16.gmra.mrb[140].mxu1 %vm7446_vm3, %v16448_v37 }
 0x675   : > { %12060 = vmatprep.mubr.msk.bf16.mxu1 %vm7446_vm3, %v16494_v63 }
 0x67c   : > { %12061 = vmatmul.mubr.msk.bf16.gmra.mrb[144].mxu1 %vm7446_vm3, %v16561_v5 }
 0x67d   : > { %12064 = vmatprep.mubr.msk.bf16.mxu1 %vm7446_vm3, %v16555_v56 }
 0x684   : > { %12065 = vmatmul.mubr.msk.bf16.gmra.mrb[148].mxu1 %vm7446_vm3, %v16596_v43 }
 0x685   : > { %12072 = vmatprep.mubr.msk.bf16.mxu1 %vm7446_vm3, %v17625_v23 }
 0x68c   : > { %12073 = vmatmul.mubr.msk.bf16.vlgmr.msra.gmra.mrb[128].mxu1 %vm7446_vm3, %v17626_v2 }
 0x68d   : > { %12097 = vmatpush3.bf16.msra.mxu1 %v13588_v58  ;;  %12076 = vmatprep.mubr.msk.bf16.mxu1 %vm7446_vm3, %v17627_v8 }
 0x68e   : > { %12098 = vmatprep.subr.bf16.mxu1 %v13589_v61 }
 0x691   : > { %12099 = vmatpush3.bf16.msra.mxu1 %v13589_v61 }
 0x692   : > { %12124 = vmatprep.subr.bf16.mxu1 %v13590_v16 }
 0x694   : > { %12077 = vmatmul.mubr.msk.bf16.gmra.mrb[132].mxu1 %vm7446_vm3, %v17630_v1 }
 0x695   : > { %12080 = vmatprep.mubr.msk.bf16.mxu1 %vm7446_vm3, %v17633_v24 }
 0x69c   : > { %12081 = vmatmul.mubr.msk.bf16.gmra.mrb[136].mxu1 %vm7446_vm3, %v17636_v27 }
 0x69d   : > { %12084 = vmatprep.mubr.msk.bf16.mxu1 %vm7446_vm3, %v16472_v9 }
 0x6a4   : > { %12085 = vmatmul.mubr.msk.bf16.gmra.mrb[140].mxu1 %vm7446_vm3, %v16467_v35 }
 0x6a5   : > { %12088 = vmatprep.mubr.msk.bf16.mxu1 %vm7446_vm3, %v16507_v51 }
 0x6ac   : > { %12089 = vmatmul.mubr.msk.bf16.gmra.mrb[144].mxu1 %vm7446_vm3, %v16589_v57 }
 0x6ad   : > { %12092 = vmatprep.mubr.msk.bf16.mxu1 %vm7446_vm3, %v16584_v6 }
 0x6b4   : > { %12093 = vmatmul.mubr.msk.bf16.gmra.mrb[148].mxu1 %vm7446_vm3, %v16620_v44 }
 0x6b5   : > { %12100 = vmatprep.mubr.msk.bf16.mxu1 %vm7446_vm3, %v16457_v32  ;;  %v17638_v32 = vld [vmem:[#allocation85_spill] sm:$0xff] }
 0x6bc   : > { %12101 = vmatmul.mubr.msk.bf16.vlgmr.msra.gmra.mrb[128].mxu1 %vm7446_vm3, %v16448_v37  ;;  %v17637_v37 = vld [vmem:[#allocation79_spill] sm:$0xff] }
 0x6bd   : > { %12125 = vmatpush3.bf16.msra.mxu1 %v13590_v16  ;;  %12104 = vmatprep.mubr.msk.bf16.mxu1 %vm7446_vm3, %v16494_v63  ;;  %v17639_v63 = vld [vmem:[#allocation64_spill] sm:$0xff] }
 0x6be   : > { %12126 = vmatprep.subr.bf16.mxu1 %v13591_v15 }
 0x6c1   : > { %12127 = vmatpush3.bf16.msra.mxu1 %v13591_v15 }
 0x6c2   : > { %12152 = vmatprep.subr.bf16.mxu1 %v13592_v0 }
 0x6c4   : > { %12105 = vmatmul.mubr.msk.bf16.gmra.mrb[132].mxu1 %vm7446_vm3, %v16561_v5 }
 0x6c5   : > { %12108 = vmatprep.mubr.msk.bf16.mxu1 %vm7446_vm3, %v16555_v56 }
 0x6cc   : > { %12109 = vmatmul.mubr.msk.bf16.gmra.mrb[136].mxu1 %vm7446_vm3, %v16596_v43 }
 0x6cd   : > { %12112 = vmatprep.mubr.msk.bf16.mxu1 %vm7446_vm3, %v17637_v37 }
 0x6d4   : > { %12113 = vmatmul.mubr.msk.bf16.gmra.mrb[140].mxu1 %vm7446_vm3, %v17638_v32 }
 0x6d5   : > { %12116 = vmatprep.mubr.msk.bf16.mxu1 %vm7446_vm3, %v17639_v63 }
 0x6dc   : > { %12117 = vmatmul.mubr.msk.bf16.gmra.mrb[144].mxu1 %vm7446_vm3, %v17640_v17 }
 0x6dd   : > { %12120 = vmatprep.mubr.msk.bf16.mxu1 %vm7446_vm3, %v17641_v28 }
 0x6e4   : > { %12121 = vmatmul.mubr.msk.bf16.gmra.mrb[148].mxu1 %vm7446_vm3, %v17642_v31 }
 0x6e5   : > { %12128 = vmatprep.mubr.msk.bf16.mxu1 %vm7446_vm3, %v16561_v5  ;;  %v17644_v5 = vld [vmem:[#allocation81_spill] sm:$0xff] }
 0x6ec   : > { %12129 = vmatmul.mubr.msk.bf16.vlgmr.msra.gmra.mrb[128].mxu1 %vm7446_vm3, %v16555_v56  ;;  %v17643_v56 = vld [vmem:[#allocation84_spill] sm:$0xff] }
 0x6ed   : > { %12153 = vmatpush3.bf16.msra.mxu1 %v13592_v0  ;;  %12132 = vmatprep.mubr.msk.bf16.mxu1 %vm7446_vm3, %v16596_v43 }
 0x6ee   : > { %12154 = vmatprep.subr.bf16.mxu1 %v13593_v12 }
 0x6f1   : > { %12155 = vmatpush3.bf16.msra.mxu1 %v13593_v12 }
 0x6f2   : > { %12180 = vmatprep.subr.bf16.mxu1 %v13594_v34 }
 0x6f4   : > { %12133 = vmatmul.mubr.msk.bf16.gmra.mrb[132].mxu1 %vm7446_vm3, %v16472_v9 }
 0x6f5   : > { %12136 = vmatprep.mubr.msk.bf16.mxu1 %vm7446_vm3, %v16467_v35 }
 0x6fc   : > { %12137 = vmatmul.mubr.msk.bf16.gmra.mrb[136].mxu1 %vm7446_vm3, %v16507_v51 }
 0x6fd   : > { %12140 = vmatprep.mubr.msk.bf16.mxu1 %vm7446_vm3, %v17640_v17 }
 0x704   : > { %12141 = vmatmul.mubr.msk.bf16.gmra.mrb[140].mxu1 %vm7446_vm3, %v17641_v28 }
 0x705   : > { %12144 = vmatprep.mubr.msk.bf16.mxu1 %vm7446_vm3, %v17642_v31 }
 0x70c   : > { %12145 = vmatmul.mubr.msk.bf16.gmra.mrb[144].mxu1 %vm7446_vm3, %v17643_v56 }
 0x70d   : > { %12148 = vmatprep.mubr.msk.bf16.mxu1 %vm7446_vm3, %v17644_v5 }
 0x714   : > { %12149 = vmatmul.mubr.msk.bf16.gmra.mrb[148].mxu1 %vm7446_vm3, %v17645_v26 }
 0x715   : > { %12156 = vmatprep.mubr.msk.bf16.mxu1 %vm7446_vm3, %v16472_v9  ;;  %v17647_v9 = vld [vmem:[#allocation75_spill] sm:$0xff] }
 0x71c   : > { %12157 = vmatmul.mubr.msk.bf16.vlgmr.msra.gmra.mrb[128].mxu1 %vm7446_vm3, %v16467_v35  ;;  %v17646_v35 = vld [vmem:[#allocation71_spill] sm:$0xff] }
 0x71d   : > { %12181 = vmatpush3.bf16.msra.mxu1 %v13594_v34  ;;  %12160 = vmatprep.mubr.msk.bf16.mxu1 %vm7446_vm3, %v16507_v51  ;;  %v17648_v51 = vld [vmem:[#allocation45_spill] sm:$0xff] }
 0x71e   : > { %12182 = vmatprep.subr.bf16.mxu1 %v13595_v48 }
 0x721   : > { %12183 = vmatpush3.bf16.msra.mxu1 %v13595_v48 }
 0x722   : > { %12208 = vmatprep.subr.bf16.mxu1 %v13596_v49 }
 0x724   : > { %12161 = vmatmul.mubr.msk.bf16.gmra.mrb[132].mxu1 %vm7446_vm3, %v16589_v57  ;;  %v13598_v57 = vld [vmem:[%s16907_s3 + $0x80] sm:$0xff]  }
 0x725   : > { %12164 = vmatprep.mubr.msk.bf16.mxu1 %vm7446_vm3, %v16584_v6  ;;  %v13597_v6 = vld [vmem:[%s16907_s3 + $0x78] sm:$0xff]  }
 0x72c   : > { %12165 = vmatmul.mubr.msk.bf16.gmra.mrb[136].mxu1 %vm7446_vm3, %v16620_v44 }
 0x72d   : > { %12168 = vmatprep.mubr.msk.bf16.mxu1 %vm7446_vm3, %v17643_v56 }
 0x734   : > { %12169 = vmatmul.mubr.msk.bf16.gmra.mrb[140].mxu1 %vm7446_vm3, %v17644_v5 }
 0x735   : > { %12172 = vmatprep.mubr.msk.bf16.mxu1 %vm7446_vm3, %v17645_v26 }
 0x73c   : > { %12173 = vmatmul.mubr.msk.bf16.gmra.mrb[144].mxu1 %vm7446_vm3, %v17646_v35 }
 0x73d   : > { %12176 = vmatprep.mubr.msk.bf16.mxu1 %vm7446_vm3, %v17647_v9 }
 0x744   : > { %12177 = vmatmul.mubr.msk.bf16.gmra.mrb[148].mxu1 %vm7446_vm3, %v17648_v51 }
 0x745   : > { %12184 = vmatprep.mubr.msk.bf16.mxu1 %vm7446_vm3, %v17637_v37 }
 0x74c   : > { %12185 = vmatmul.mubr.msk.bf16.vlgmr.msra.gmra.mrb[128].mxu1 %vm7446_vm3, %v17638_v32 }
 0x74d   : > { %12209 = vmatpush3.bf16.msra.mxu1 %v13596_v49  ;;  %12188 = vmatprep.mubr.msk.bf16.mxu1 %vm7446_vm3, %v17639_v63 }
 0x74e   : > { %12210 = vmatprep.subr.bf16.mxu1 %v13597_v6 }
 0x751   : > { %12211 = vmatpush3.bf16.msra.mxu1 %v13597_v6 }
 0x752   : > { %12236 = vmatprep.subr.bf16.mxu1 %v13598_v57 }
 0x754   : > { %12189 = vmatmul.mubr.msk.bf16.gmra.mrb[132].mxu1 %vm7446_vm3, %v17640_v17 }
 0x755   : > { %12192 = vmatprep.mubr.msk.bf16.mxu1 %vm7446_vm3, %v17641_v28 }
 0x75c   : > { %12193 = vmatmul.mubr.msk.bf16.gmra.mrb[136].mxu1 %vm7446_vm3, %v17642_v31 }
 0x75d   : > { %12196 = vmatprep.mubr.msk.bf16.mxu1 %vm7446_vm3, %v17649_v30 }
 0x764   : > { %12197 = vmatmul.mubr.msk.bf16.gmra.mrb[140].mxu1 %vm7446_vm3, %v17650_v13 }
 0x765   : > { %12200 = vmatprep.mubr.msk.bf16.mxu1 %vm7446_vm3, %v16496_v19 }
 0x76c   : > { %12201 = vmatmul.mubr.msk.bf16.gmra.mrb[144].mxu1 %vm7446_vm3, %v16570_v7 }
 0x76d   : > { %12204 = vmatprep.mubr.msk.bf16.mxu1 %vm7446_vm3, %v16594_v38 }
 0x774   : > { %12205 = vmatmul.mubr.msk.bf16.gmra.mrb[148].mxu1 %vm7446_vm3, %v16602_v36 }
 0x775   : > { %12212 = vmatprep.mubr.msk.bf16.mxu1 %vm7446_vm3, %v17640_v17 }
 0x77c   : > { %12213 = vmatmul.mubr.msk.bf16.vlgmr.msra.gmra.mrb[128].mxu1 %vm7446_vm3, %v17641_v28 }
 0x77d   : > { %12237 = vmatpush3.bf16.msra.mxu1 %v13598_v57  ;;  %12216 = vmatprep.mubr.msk.bf16.mxu1 %vm7446_vm3, %v17642_v31 }
 0x77e   : > { %12238 = vmatprep.subr.bf16.mxu1 %v13599_v29 }
 0x781   : > { %12239 = vmatpush3.bf16.msra.mxu1 %v13599_v29 }
 0x784   : > { %12217 = vmatmul.mubr.msk.bf16.gmra.mrb[132].mxu1 %vm7446_vm3, %v17643_v56 }
 0x785   : > { %12220 = vmatprep.mubr.msk.bf16.mxu1 %vm7446_vm3, %v17644_v5 }
 0x78c   : > { %12221 = vmatmul.mubr.msk.bf16.gmra.mrb[136].mxu1 %vm7446_vm3, %v17645_v26 }
 0x78d   : > { %12224 = vmatprep.mubr.msk.bf16.mxu1 %vm7446_vm3, %v16570_v7 }
 0x794   : > { %12225 = vmatmul.mubr.msk.bf16.gmra.mrb[140].mxu1 %vm7446_vm3, %v16594_v38 }
 0x795   : > { %12228 = vmatprep.mubr.msk.bf16.mxu1 %vm7446_vm3, %v16602_v36 }
 0x79c   : > { %12229 = vmatmul.mubr.msk.bf16.gmra.mrb[144].mxu1 %vm7446_vm3, %v16474_v33 }
 0x79d   : > { %12232 = vmatprep.mubr.msk.bf16.mxu1 %vm7446_vm3, %v16498_v60 }
 0x7a4   : > { %12233 = vmatmul.mubr.msk.bf16.gmra.mrb[148].mxu1 %vm7446_vm3, %v16509_v11 }
 0x7a5   : > { %12240 = vmatprep.mubr.msk.bf16.mxu1 %vm7446_vm3, %v17643_v56 }
 0x7ac   : > { %12241 = vmatmul.mubr.msk.bf16.vlgmr.msra.gmra.mrb[128].mxu1 %vm7446_vm3, %v17644_v5 }
 0x7ad   : > { %12244 = vmatprep.mubr.msk.bf16.mxu1 %vm7446_vm3, %v17645_v26 }
 0x7b4   : > { %12245 = vmatmul.mubr.msk.bf16.gmra.mrb[132].mxu1 %vm7446_vm3, %v17646_v35 }
 0x7b5   : > { %12248 = vmatprep.mubr.msk.bf16.mxu1 %vm7446_vm3, %v17647_v9 }
 0x7bc   : > { %12249 = vmatmul.mubr.msk.bf16.gmra.mrb[136].mxu1 %vm7446_vm3, %v17648_v51 }
 0x7bd   : > { %12252 = vmatprep.mubr.msk.bf16.mxu1 %vm7446_vm3, %v16474_v33 }
 0x7c4   : > { %12253 = vmatmul.mubr.msk.bf16.gmra.mrb[140].mxu1 %vm7446_vm3, %v16498_v60 }
 0x7c5   : > { %12256 = vmatprep.mubr.msk.bf16.mxu1 %vm7446_vm3, %v16509_v11 }
 0x7cc   : > { %12257 = vmatmul.mubr.msk.bf16.gmra.mrb[144].mxu1 %vm7446_vm3, %v8963_v54 }
 0x7cd   : > { %12260 = vmatprep.mubr.msk.bf16.mxu1 %vm7446_vm3, %v8964_v50 }
 0x7d4   : > { %12261 = vmatmul.mubr.msk.bf16.gmra.mrb[148].mxu1 %vm7446_vm3, %v8965_v47 }
 0x87f   : > { %v12242_v52 = vpop.f32.mrb[128].mxu1 }
 0x880   : > { %v9026_v55 = vpop.f32.mrb[129].mxu1 }
 0x881   : > { %v12243_v33 = vpop.f32.mrb[130].mxu1 }
 0x882   : > { %v9029_v45 = vpop.f32.mrb[131].mxu1 }
 0x887   : > { %v12246_v19 = vpop.f32.mrb[132].mxu1 }
 0x888   : > { %v9145_v60 = vmax.f32 %v9026_v55, %v12246_v19  ;;  %v9042_v11 = vpop.f32.mrb[133].mxu1 }
 0x889   : > { %v12247_v14 = vpop.f32.mrb[134].mxu1 }
 0x88a   : > { %v9146_v7 = vmax.f32 %v9029_v45, %v12247_v14  ;;  %v9045_v46 = vpop.f32.mrb[135].mxu1 }
 0x88f   : > { %v12250_v54 = vpop.f32.mrb[136].mxu1 }
 0x890   : > { %v9149_v38 = vmax.f32 %v9042_v11, %v12250_v54  ;;  %v9058_v62 = vpop.f32.mrb[137].mxu1 }
 0x891   : > { %v9147_v25 = vmax.f32 %v12242_v52, %v9058_v62  ;;  %v12251_v43 = vpop.f32.mrb[138].mxu1 }
 0x892   : > { %v9150_v42 = vmax.f32 %v9045_v46, %v12251_v43  ;;  %v9061_v36 = vpop.f32.mrb[139].mxu1 }
 0x893   : > { %v9148_v50 = vmax.f32 %v12243_v33, %v9061_v36 }
 0x897   : > { %v12254_v22 = vpop.f32.mrb[140].mxu1 }
 0x898   : > { %v9074_v20 = vpop.f32.mrb[141].mxu1 }
 0x899   : > { %v12255_v44 = vpop.f32.mrb[142].mxu1 }
 0x89a   : > { %v9077_v47 = vpop.f32.mrb[143].mxu1 }
 0x89f   : > { %v12258_v59 = vpop.f32.mrb[144].mxu1 }
 0x8a0   : > { %v9151_v10 = vmax.f32 %v9074_v20, %v12258_v59  ;;  %v9090_v40 = vpop.f32.mrb[145].mxu1 }
 0x8a1   : > { %v12259_v58 = vpop.f32.mrb[146].mxu1 }
 0x8a2   : > { %v9157_v23 = vmax.f32 %v9145_v60, %v9151_v10  ;;  %v9152_v61 = vmax.f32 %v9077_v47, %v12259_v58  ;;  %v9093_v2 = vpop.f32.mrb[147].mxu1 }
 0x8a4   : > { %v9170_v8 = vadd.f32 %v10115_v39, %v9157_v23  ;;  %v9158_v16 = vmax.f32 %v9146_v7, %v9152_v61 }
 0x8a6   : > { %v9176_v4 = vmax.f32 %v9170_v8, 0.0  ;;  %v9171_v21 = vadd.f32 %v10115_v39, %v9158_v16 }
 0x8a7   : > { %v12262_v1 = vpop.f32.mrb[148].mxu1 }
 0x8a8   : > { %v10125_v3 = vpack.c.bf16 %v9176_v4, %v9176_v4  ;;  %v9177_v41 = vmax.f32 %v9171_v21, 0.0  ;;  %v9155_v24 = vmax.f32 %v9090_v40, %v12262_v1  ;;  %v9106_v53 = vpop.f32.mrb[149].mxu1 }
 0x8a9   : > { %v9153_v18 = vmax.f32 %v12254_v22, %v9106_v53  ;;  %v12263_v27 = vpop.f32.mrb[150].mxu1 }
 0x8aa   : > { %9207 = vst.msk [vmem:[%s16887_s16] sm:$0xf] %vm9206_vm4, %v10125_v3  ;;  %v10126_v15 = vpack.c.bf16 %v9177_v41, %v9177_v41  ;;  %v9161_v0 = vmax.f32 %v9149_v38, %v9155_v24  ;;  %v9156_v37 = vmax.f32 %v9093_v2, %v12263_v27  ;;  %v9109_v32 = vpop.f32.mrb[151].mxu1 }
 0x8ab   : > { %v9159_v63 = vmax.f32 %v9147_v25, %v9153_v18  ;;  %v9154_v17 = vmax.f32 %v12255_v44, %v9109_v32 }
 0x8ac   : > { %9208 = vst.msk [vmem:[%s16887_s16 + $0x4] sm:$0xf] %vm9206_vm4, %v10126_v15  ;;  %v9174_v28 = vadd.f32 %v10115_v39, %v9161_v0  ;;  %v9162_v31 = vmax.f32 %v9150_v42, %v9156_v37 }
 0x8ad   : > { %v9172_v12 = vadd.f32 %v10115_v39, %v9159_v63  ;;  %v9160_v34 = vmax.f32 %v9148_v50, %v9154_v17 }
 0x8ae   : > { %v9180_v56 = vmax.f32 %v9174_v28, 0.0  ;;  %v9175_v5 = vadd.f32 %v10115_v39, %v9162_v31 }
 0x8af   : > { %v9178_v26 = vmax.f32 %v9172_v12, 0.0  ;;  %v9173_v48 = vadd.f32 %v10115_v39, %v9160_v34 }
 0x8b0   : > { %v10129_v49 = vpack.c.bf16 %v9180_v56, %v9180_v56  ;;  %v9181_v35 = vmax.f32 %v9175_v5, 0.0 }
 0x8b1   : > { %v10127_v9 = vpack.c.bf16 %v9178_v26, %v9178_v26  ;;  %v9179_v51 = vmax.f32 %v9173_v48, 0.0 }
 0x8b2   : > { %9211 = vst.msk [vmem:[%s16887_s16 + $0x10] sm:$0xf] %vm9206_vm4, %v10129_v49  ;;  %v10130_v6 = vpack.c.bf16 %v9181_v35, %v9181_v35 }
 0x8b3   : > { %9209 = vst.msk [vmem:[%s16887_s16 + $0x8] sm:$0xf] %vm9206_vm4, %v10127_v9  ;;  %v10128_v57 = vpack.c.bf16 %v9179_v51, %v9179_v51 }
 0x8b4   : > { %9212 = vst.msk [vmem:[%s16887_s16 + $0x14] sm:$0xf] %vm9206_vm4, %v10130_v6 }
 0x8b5   : > { %9210 = vst.msk [vmem:[%s16887_s16 + $0xc] sm:$0xf] %vm9206_vm4, %v10128_v57 }
 0x8b6 PF: > { %s15_s18 = sadd.s32 1, %s13673_s18  }
 0x8b7   : > { %p12_p4 = scmp.ge.s32.totalorder %s15_s18, 4  }
 0x8b9   :  { %14 = sbr.rel (!%p12_p4) target bundleno = 1 (0x1), region = 86 }

</bundles_post_ra>
